<compile_context>
chip_gen: v6e
topology: v6e:2x2x1
jax: 0.10.0
libtpu: 0.0.40
codegen_flags: <defaults>
</compile_context>

<pallas_src>
import functools
import numpy as np
import jax
import jax.numpy as jnp
from jax.experimental import pallas as pl
from jax.experimental.pallas import tpu as pltpu


# ----------------------------------------------------------------------------
# Pallas kernel: full-K matmul + bias (+ optional fused sigmoid)
# ----------------------------------------------------------------------------
def _mm_kernel(a_ref, b_ref, bias_ref, o_ref, *, apply_sigmoid):
    acc = jnp.dot(a_ref[...], b_ref[...], preferred_element_type=jnp.float32)
    acc = acc + bias_ref[...]                       # (tm,tn) + (1,tn) broadcast
    if apply_sigmoid:
        acc = jax.nn.sigmoid(acc)
    o_ref[...] = acc.astype(o_ref.dtype)


def _round_up(x, m):
    return ((x + m - 1) // m) * m


def matmul_bias(a, wm, bias, n_real, *, apply_sigmoid=False,
                out_dtype=jnp.bfloat16):
    """out[:M, :n_real] = a @ wm[:K_real] + bias, computed on the MXU.

    a:      (M, K_real)  bf16 (im2col / activation matrix)
    wm:     (Kp, Np)     bf16, pre-padded weights (Kp mult of 16, Np mult of 128)
    bias:   (1, Np)      f32, pre-padded
    n_real: static Python int — real number of output columns.
    """
    M, K = a.shape
    Kp, Np = wm.shape
    if K < Kp:                                    # e.g. enc1_1 (K=9 -> 16)
        a = jnp.pad(a, ((0, 0), (0, Kp - K)))

    tm = 512 if M >= 1024 else _round_up(M, 8)
    Mp = _round_up(M, tm)
    if Mp > M:                                    # only the 2x2 bottleneck level
        a = jnp.pad(a, ((0, Mp - M), (0, 0)))
    tn = 128

    out = pl.pallas_call(
        functools.partial(_mm_kernel, apply_sigmoid=apply_sigmoid),
        out_shape=jax.ShapeDtypeStruct((Mp, Np), out_dtype),
        grid_spec=pltpu.PrefetchScalarGridSpec(
            num_scalar_prefetch=0,
            grid=(Mp // tm, Np // tn),
            in_specs=[
                pl.BlockSpec((tm, Kp), lambda i, j: (i, 0)),   # full-K A tile
                pl.BlockSpec((Kp, tn), lambda i, j: (0, j)),   # full-K B tile
                pl.BlockSpec((1, tn), lambda i, j: (0, j)),    # bias
            ],
            out_specs=pl.BlockSpec((tm, tn), lambda i, j: (i, j)),
        ),
        compiler_params=pltpu.CompilerParams(
            dimension_semantics=("parallel", "parallel")),
    )(a.astype(jnp.bfloat16), wm, bias)
    return out[:M, :n_real]


# ----------------------------------------------------------------------------
# Conv / transposed-conv wrappers (im2col + pixel-shuffle are XLA glue)
# ----------------------------------------------------------------------------
def conv3x3(x, layer, cout, *, stride=1, apply_sigmoid=False,
            out_dtype=jnp.bfloat16):
    """x: (N,H,W,Cin) NHWC bf16. 3x3 conv, padding=1, stride 1 or 2."""
    N, H, W, Cin = x.shape
    Ho = (H + 2 - 3) // stride + 1
    Wo = (W + 2 - 3) // stride + 1
    xp = jnp.pad(x, ((0, 0), (1, 1), (1, 1), (0, 0)))
    patches = []
    for kh in range(3):
        for kw in range(3):
            patches.append(
                xp[:, kh:kh + stride * (Ho - 1) + 1:stride,
                      kw:kw + stride * (Wo - 1) + 1:stride, :])
    a = jnp.concatenate(patches, axis=-1).reshape(N * Ho * Wo, 9 * Cin)
    out = matmul_bias(a, layer['wm'], layer['bias'], cout,
                      apply_sigmoid=apply_sigmoid, out_dtype=out_dtype)
    return out.reshape(N, Ho, Wo, cout)


def deconv2x2(x, layer, cout, *, out_dtype=jnp.bfloat16):
    """x: (N,H,W,Cin). ConvTranspose2d k=2, stride=2, pad=0 -> (N,2H,2W,Cout)."""
    N, H, W, Cin = x.shape
    z = matmul_bias(x.reshape(N * H * W, Cin), layer['wm'], layer['bias'],
                    4 * cout, out_dtype=out_dtype)
    z = z.reshape(N, H, W, 2, 2, cout)
    z = z.transpose(0, 1, 3, 2, 4, 5).reshape(N, 2 * H, 2 * W, cout)
    return z


# ----------------------------------------------------------------------------
# Deterministic parameter construction (+ one-time packing to bf16 / padded)
# ----------------------------------------------------------------------------
def _init_conv(key, cin, cout, k=3):
    wkey, bkey = jax.random.split(key)
    s = 1.0 / np.sqrt(k * k * cin)
    w = jax.random.uniform(wkey, (k, k, cin, cout), jnp.float32, -s, s)
    b = jax.random.uniform(bkey, (cout,), jnp.float32, -s, s)
    return w, b


def _init_deconv(key, cin, cout):
    wkey, bkey = jax.random.split(key)
    s = 1.0 / np.sqrt(4 * cin)
    w = jax.random.uniform(wkey, (cin, 2, 2, cout), jnp.float32, -s, s)
    b = jax.random.uniform(bkey, (cout,), jnp.float32, -s, s)
    return w, b


def _pack(wm_f32, bias_f32):
    """Pad K to mult of 16, N to mult of 128; weights bf16, bias f32 (1, Np)."""
    K, Nreal = wm_f32.shape
    Kp, Np = _round_up(K, 16), _round_up(Nreal, 128)
    wm = jnp.pad(wm_f32, ((0, Kp - K), (0, Np - Nreal))).astype(jnp.bfloat16)
    bias = jnp.pad(bias_f32, (0, Np - Nreal)).reshape(1, Np).astype(jnp.float32)
    return {'wm': wm, 'bias': bias}


def make_params(key, num_hologram, in_planes, channels):
    """Returns (params, meta): params = arrays-only pytree (traced under jit),
    meta = static Python ints (layer output widths), kept OUT of the pytree."""
    c = channels
    conv_layers = {
        'enc1_1': (in_planes, c[0]), 'enc1_2': (c[0], c[0]), 'pool1': (c[0], c[0]),
        'enc2_1': (c[0], c[1]),      'enc2_2': (c[1], c[1]), 'pool2': (c[1], c[1]),
        'enc3_1': (c[1], c[2]),      'enc3_2': (c[2], c[2]), 'pool3': (c[2], c[2]),
        'enc4_1': (c[2], c[3]),      'enc4_2': (c[3], c[3]), 'pool4': (c[3], c[3]),
        'enc5_1': (c[3], c[4]),      'enc5_2': (c[4], c[4]),
        'dec4_1': (c[4], c[3]),      'dec4_2': (c[3], c[3]),
        'dec3_1': (c[3], c[2]),      'dec3_2': (c[2], c[2]),
        'dec2_1': (c[2], c[1]),      'dec2_2': (c[1], c[1]),
        'dec1_1': (c[1], c[0]),      'dec1_2': (c[0], c[0]),
        'classifier': (c[0], num_hologram),
    }
    deconv_layers = {
        'deconv4': (c[4], c[3]), 'deconv3': (c[3], c[2]),
        'deconv2': (c[2], c[1]), 'deconv1': (c[1], c[0]),
    }
    params, meta = {}, {}
    for i, (name, (ci, co)) in enumerate(conv_layers.items()):
        w, b = _init_conv(jax.random.fold_in(key, i), ci, co)
        params[name] = _pack(w.reshape(9 * ci, co), b)
        meta[name] = int(co)
    for i, (name, (ci, co)) in enumerate(deconv_layers.items()):
        w, b = _init_deconv(jax.random.fold_in(key, 1000 + i), ci, co)
        # columns flattened (kh, kw, co) with co fastest -> tile bias 4x
        params[name] = _pack(w.reshape(ci, 4 * co), jnp.tile(b, 4))
        meta[name] = int(co)
    return params, meta


# ----------------------------------------------------------------------------
# Forward pass (mirrors BinaryNet.forward with the all-False flags)
# ----------------------------------------------------------------------------
def binary_net_forward(params, meta, x_nchw):
    x = jnp.transpose(x_nchw, (0, 2, 3, 1)).astype(jnp.bfloat16)   # NCHW -> NHWC

    cv = lambda n, t, s=1: conv3x3(t, params[n], meta[n], stride=s)
    dc = lambda n, t: deconv2x2(t, params[n], meta[n])
    cat = lambda a, b: jnp.concatenate([a, b], axis=-1)            # dim=1 in NCHW

    enc1_1 = cv('enc1_1', x);      enc1_2 = cv('enc1_2', enc1_1)
    pool1 = cv('pool1', enc1_2, 2)
    enc2_1 = cv('enc2_1', pool1);  enc2_2 = cv('enc2_2', enc2_1)
    pool2 = cv('pool2', enc2_2, 2)
    enc3_1 = cv('enc3_1', pool2);  enc3_2 = cv('enc3_2', enc3_1)
    pool3 = cv('pool3', enc3_2, 2)
    enc4_1 = cv('enc4_1', pool3);  enc4_2 = cv('enc4_2', enc4_1)
    pool4 = cv('pool4', enc4_2, 2)
    enc5_1 = cv('enc5_1', pool4);  enc5_2 = cv('enc5_2', enc5_1)

    deconv4 = dc('deconv4', enc5_2)
    dec4_1 = cv('dec4_1', cat(deconv4, enc4_2)); dec4_2 = cv('dec4_2', dec4_1)
    deconv3 = dc('deconv3', dec4_2)
    dec3_1 = cv('dec3_1', cat(deconv3, enc3_2)); dec3_2 = cv('dec3_2', dec3_1)
    deconv2 = dc('deconv2', dec3_2)
    dec2_1 = cv('dec2_1', cat(deconv2, enc2_2)); dec2_2 = cv('dec2_2', dec2_1)
    deconv1 = dc('deconv1', dec2_2)
    dec1_1 = cv('dec1_1', cat(deconv1, enc1_2)); dec1_2 = cv('dec1_2', dec1_1)

    out = conv3x3(dec1_2, params['classifier'], meta['classifier'], stride=1,
                  apply_sigmoid=True, out_dtype=jnp.float32)
    return jnp.transpose(out, (0, 3, 1, 2))                        # NHWC -> NCHW


# ----------------------------------------------------------------------------
if __name__ == "__main__":
    key = jax.random.PRNGKey(0)

    # Small, module-consistent configuration: num_hologram=CH=8, in_planes=1,
    # reduced channel widths, 32x32 input (divisible by 16 for the 4 pools).
    CH = 8
    IN_PLANES = 1
    CHANNELS = [8, 16, 32, 64, 128]
    IPS = 32

    params, meta = make_params(jax.random.fold_in(key, 7), CH, IN_PLANES, CHANNELS)
    x = jax.random.normal(jax.random.fold_in(key, 99),
                          (1, IN_PLANES, IPS, IPS), dtype=jnp.float32)

    # meta holds static Python ints (layer widths) and is captured by closure,
    # NOT passed through the jit pytree, so slices stay static.
    fwd = jax.jit(lambda p, xx: binary_net_forward(p, meta, xx))
    out = jax.block_until_ready(fwd(params, x))

    assert out.shape == (1, CH, IPS, IPS), out.shape
    assert bool(jnp.all(jnp.isfinite(out)))
    assert bool(jnp.all((out >= 0.0) & (out <= 1.0)))   # sigmoid output range
    print("KERNEL_OK")
</pallas_src>

<mosaic_0001>
module attributes {stable_mosaic.version = 11 : i64} {
  func.func @_mm_kernel(%arg0: i32, %arg1: i32, %arg2: memref<512x16xbf16, #tpu.memory_space<vmem>>, %arg3: memref<16x128xbf16, #tpu.memory_space<vmem>>, %arg4: memref<1x128xf32, #tpu.memory_space<vmem>>, %arg5: memref<512x128xbf16, #tpu.memory_space<vmem>>) attributes {dimension_semantics = [#tpu.dimension_semantics<parallel>, #tpu.dimension_semantics<parallel>], iteration_bounds = array<i64: 2, 1>, scalar_prefetch = 0 : i64, scratch_operands = 0 : i64, tpu.core_type = #tpu.core_type<tc>, window_params = [{transform_indices = @transform_0, window_bounds = array<i64: 512, 16>}, {transform_indices = @transform_1, window_bounds = array<i64: 16, 128>}, {transform_indices = @transform_2, window_bounds = array<i64: 1, 128>}, {transform_indices = @transform_3, window_bounds = array<i64: 512, 128>}]} {
    %c0 = arith.constant 0 : index
    %c0_0 = arith.constant 0 : index
    %0 = vector.load %arg2[%c0, %c0_0] : memref<512x16xbf16, #tpu.memory_space<vmem>>, vector<512x16xbf16>
    %c0_1 = arith.constant 0 : index
    %c0_2 = arith.constant 0 : index
    %1 = vector.load %arg3[%c0_1, %c0_2] : memref<16x128xbf16, #tpu.memory_space<vmem>>, vector<16x128xbf16>
    %cst = arith.constant dense<0.000000e+00> : vector<512x128xf32>
    %2 = tpu.matmul %0, %1, %cst {dimension_numbers = #tpu.dot_dimension_numbers<[1], [0], [0], [1], [0, 0, 1, 1], [], []>} : vector<512x16xbf16>, vector<16x128xbf16>, vector<512x128xf32> -> vector<512x128xf32>
    %c0_3 = arith.constant 0 : index
    %c0_4 = arith.constant 0 : index
    %3 = vector.load %arg4[%c0_3, %c0_4] : memref<1x128xf32, #tpu.memory_space<vmem>>, vector<1x128xf32>
    %4 = vector.broadcast %3 : vector<1x128xf32> to vector<512x128xf32>
    %5 = arith.addf %2, %4 : vector<512x128xf32>
    %6 = arith.truncf %5 : vector<512x128xf32> to vector<512x128xbf16>
    %c0_5 = arith.constant 0 : index
    %c0_6 = arith.constant 0 : index
    %7 = vector.load %arg5[%c0_5, %c0_6] : memref<512x128xbf16, #tpu.memory_space<vmem>>, vector<512x128xbf16>
    tpu.vector_store %arg5[%c0_5, %c0_6], %6 {strides = array<i32>} : memref<512x128xbf16, #tpu.memory_space<vmem>>, vector<512x128xbf16>,
    return
  }
  func.func @transform_0(%arg0: i32, %arg1: i32) -> (i32, i32) {
    %c0_i32 = arith.constant 0 : i32
    %c0_i32_0 = arith.constant 0 : i32
    return %arg0, %c0_i32 : i32, i32
  }
  func.func @transform_1(%arg0: i32, %arg1: i32) -> (i32, i32) {
    %c0_i32 = arith.constant 0 : i32
    %c0_i32_0 = arith.constant 0 : i32
    return %c0_i32, %arg1 : i32, i32
  }
  func.func @transform_2(%arg0: i32, %arg1: i32) -> (i32, i32) {
    %c0_i32 = arith.constant 0 : i32
    %c0_i32_0 = arith.constant 0 : i32
    return %c0_i32, %arg1 : i32, i32
  }
  func.func @transform_3(%arg0: i32, %arg1: i32) -> (i32, i32) {
    %c0_i32 = arith.constant 0 : i32
    return %arg0, %arg1 : i32, i32
  }
}

module attributes {stable_mosaic.version = 11 : i64} {
  func.func @_mm_kernel(%arg0: i32, %arg1: i32, %arg2: memref<512x80xbf16, #tpu.memory_space<vmem>>, %arg3: memref<80x128xbf16, #tpu.memory_space<vmem>>, %arg4: memref<1x128xf32, #tpu.memory_space<vmem>>, %arg5: memref<512x128xbf16, #tpu.memory_space<vmem>>) attributes {dimension_semantics = [#tpu.dimension_semantics<parallel>, #tpu.dimension_semantics<parallel>], iteration_bounds = array<i64: 2, 1>, scalar_prefetch = 0 : i64, scratch_operands = 0 : i64, tpu.core_type = #tpu.core_type<tc>, window_params = [{transform_indices = @transform_0, window_bounds = array<i64: 512, 80>}, {transform_indices = @transform_1, window_bounds = array<i64: 80, 128>}, {transform_indices = @transform_2, window_bounds = array<i64: 1, 128>}, {transform_indices = @transform_3, window_bounds = array<i64: 512, 128>}]} {
    %c0 = arith.constant 0 : index
    %c0_0 = arith.constant 0 : index
    %0 = vector.load %arg2[%c0, %c0_0] : memref<512x80xbf16, #tpu.memory_space<vmem>>, vector<512x80xbf16>
    %c0_1 = arith.constant 0 : index
    %c0_2 = arith.constant 0 : index
    %1 = vector.load %arg3[%c0_1, %c0_2] : memref<80x128xbf16, #tpu.memory_space<vmem>>, vector<80x128xbf16>
    %cst = arith.constant dense<0.000000e+00> : vector<512x128xf32>
    %2 = tpu.matmul %0, %1, %cst {dimension_numbers = #tpu.dot_dimension_numbers<[1], [0], [0], [1], [0, 0, 1, 1], [], []>} : vector<512x80xbf16>, vector<80x128xbf16>, vector<512x128xf32> -> vector<512x128xf32>
    %c0_3 = arith.constant 0 : index
    %c0_4 = arith.constant 0 : index
    %3 = vector.load %arg4[%c0_3, %c0_4] : memref<1x128xf32, #tpu.memory_space<vmem>>, vector<1x128xf32>
    %4 = vector.broadcast %3 : vector<1x128xf32> to vector<512x128xf32>
    %5 = arith.addf %2, %4 : vector<512x128xf32>
    %6 = arith.truncf %5 : vector<512x128xf32> to vector<512x128xbf16>
    %c0_5 = arith.constant 0 : index
    %c0_6 = arith.constant 0 : index
    %7 = vector.load %arg5[%c0_5, %c0_6] : memref<512x128xbf16, #tpu.memory_space<vmem>>, vector<512x128xbf16>
    tpu.vector_store %arg5[%c0_5, %c0_6], %6 {strides = array<i32>} : memref<512x128xbf16, #tpu.memory_space<vmem>>, vector<512x128xbf16>,
    return
  }
  func.func @transform_0(%arg0: i32, %arg1: i32) -> (i32, i32) {
    %c0_i32 = arith.constant 0 : i32
    %c0_i32_0 = arith.constant 0 : i32
    return %arg0, %c0_i32 : i32, i32
  }
  func.func @transform_1(%arg0: i32, %arg1: i32) -> (i32, i32) {
    %c0_i32 = arith.constant 0 : i32
    %c0_i32_0 = arith.constant 0 : i32
    return %c0_i32, %arg1 : i32, i32
  }
  func.func @transform_2(%arg0: i32, %arg1: i32) -> (i32, i32) {
    %c0_i32 = arith.constant 0 : i32
    %c0_i32_0 = arith.constant 0 : i32
    return %c0_i32, %arg1 : i32, i32
  }
  func.func @transform_3(%arg0: i32, %arg1: i32) -> (i32, i32) {
    %c0_i32 = arith.constant 0 : i32
    return %arg0, %arg1 : i32, i32
  }
}

module attributes {stable_mosaic.version = 11 : i64} {
  func.func @_mm_kernel(%arg0: i32, %arg1: i32, %arg2: memref<256x80xbf16, #tpu.memory_space<vmem>>, %arg3: memref<80x128xbf16, #tpu.memory_space<vmem>>, %arg4: memref<1x128xf32, #tpu.memory_space<vmem>>, %arg5: memref<256x128xbf16, #tpu.memory_space<vmem>>) attributes {dimension_semantics = [#tpu.dimension_semantics<parallel>, #tpu.dimension_semantics<parallel>], iteration_bounds = array<i64: 1, 1>, scalar_prefetch = 0 : i64, scratch_operands = 0 : i64, tpu.core_type = #tpu.core_type<tc>, window_params = [{transform_indices = @transform_0, window_bounds = array<i64: 256, 80>}, {transform_indices = @transform_1, window_bounds = array<i64: 80, 128>}, {transform_indices = @transform_2, window_bounds = array<i64: 1, 128>}, {transform_indices = @transform_3, window_bounds = array<i64: 256, 128>}]} {
    %c0 = arith.constant 0 : index
    %c0_0 = arith.constant 0 : index
    %0 = vector.load %arg2[%c0, %c0_0] : memref<256x80xbf16, #tpu.memory_space<vmem>>, vector<256x80xbf16>
    %c0_1 = arith.constant 0 : index
    %c0_2 = arith.constant 0 : index
    %1 = vector.load %arg3[%c0_1, %c0_2] : memref<80x128xbf16, #tpu.memory_space<vmem>>, vector<80x128xbf16>
    %cst = arith.constant dense<0.000000e+00> : vector<256x128xf32>
    %2 = tpu.matmul %0, %1, %cst {dimension_numbers = #tpu.dot_dimension_numbers<[1], [0], [0], [1], [0, 0, 1, 1], [], []>} : vector<256x80xbf16>, vector<80x128xbf16>, vector<256x128xf32> -> vector<256x128xf32>
    %c0_3 = arith.constant 0 : index
    %c0_4 = arith.constant 0 : index
    %3 = vector.load %arg4[%c0_3, %c0_4] : memref<1x128xf32, #tpu.memory_space<vmem>>, vector<1x128xf32>
    %4 = vector.broadcast %3 : vector<1x128xf32> to vector<256x128xf32>
    %5 = arith.addf %2, %4 : vector<256x128xf32>
    %6 = arith.truncf %5 : vector<256x128xf32> to vector<256x128xbf16>
    %c0_5 = arith.constant 0 : index
    %c0_6 = arith.constant 0 : index
    %7 = vector.load %arg5[%c0_5, %c0_6] : memref<256x128xbf16, #tpu.memory_space<vmem>>, vector<256x128xbf16>
    tpu.vector_store %arg5[%c0_5, %c0_6], %6 {strides = array<i32>} : memref<256x128xbf16, #tpu.memory_space<vmem>>, vector<256x128xbf16>,
    return
  }
  func.func @transform_0(%arg0: i32, %arg1: i32) -> (i32, i32) {
    %c0_i32 = arith.constant 0 : i32
    %c0_i32_0 = arith.constant 0 : i32
    return %arg0, %c0_i32 : i32, i32
  }
  func.func @transform_1(%arg0: i32, %arg1: i32) -> (i32, i32) {
    %c0_i32 = arith.constant 0 : i32
    %c0_i32_0 = arith.constant 0 : i32
    return %c0_i32, %arg1 : i32, i32
  }
  func.func @transform_2(%arg0: i32, %arg1: i32) -> (i32, i32) {
    %c0_i32 = arith.constant 0 : i32
    %c0_i32_0 = arith.constant 0 : i32
    return %c0_i32, %arg1 : i32, i32
  }
  func.func @transform_3(%arg0: i32, %arg1: i32) -> (i32, i32) {
    %c0_i32 = arith.constant 0 : i32
    return %arg0, %arg1 : i32, i32
  }
}

module attributes {stable_mosaic.version = 11 : i64} {
  func.func @_mm_kernel(%arg0: i32, %arg1: i32, %arg2: memref<256x144xbf16, #tpu.memory_space<vmem>>, %arg3: memref<144x128xbf16, #tpu.memory_space<vmem>>, %arg4: memref<1x128xf32, #tpu.memory_space<vmem>>, %arg5: memref<256x128xbf16, #tpu.memory_space<vmem>>) attributes {dimension_semantics = [#tpu.dimension_semantics<parallel>, #tpu.dimension_semantics<parallel>], iteration_bounds = array<i64: 1, 1>, scalar_prefetch = 0 : i64, scratch_operands = 0 : i64, tpu.core_type = #tpu.core_type<tc>, window_params = [{transform_indices = @transform_0, window_bounds = array<i64: 256, 144>}, {transform_indices = @transform_1, window_bounds = array<i64: 144, 128>}, {transform_indices = @transform_2, window_bounds = array<i64: 1, 128>}, {transform_indices = @transform_3, window_bounds = array<i64: 256, 128>}]} {
    %c0 = arith.constant 0 : index
    %c0_0 = arith.constant 0 : index
    %0 = vector.load %arg2[%c0, %c0_0] : memref<256x144xbf16, #tpu.memory_space<vmem>>, vector<256x144xbf16>
    %c0_1 = arith.constant 0 : index
    %c0_2 = arith.constant 0 : index
    %1 = vector.load %arg3[%c0_1, %c0_2] : memref<144x128xbf16, #tpu.memory_space<vmem>>, vector<144x128xbf16>
    %cst = arith.constant dense<0.000000e+00> : vector<256x128xf32>
    %2 = tpu.matmul %0, %1, %cst {dimension_numbers = #tpu.dot_dimension_numbers<[1], [0], [0], [1], [0, 0, 1, 1], [], []>} : vector<256x144xbf16>, vector<144x128xbf16>, vector<256x128xf32> -> vector<256x128xf32>
    %c0_3 = arith.constant 0 : index
    %c0_4 = arith.constant 0 : index
    %3 = vector.load %arg4[%c0_3, %c0_4] : memref<1x128xf32, #tpu.memory_space<vmem>>, vector<1x128xf32>
    %4 = vector.broadcast %3 : vector<1x128xf32> to vector<256x128xf32>
    %5 = arith.addf %2, %4 : vector<256x128xf32>
    %6 = arith.truncf %5 : vector<256x128xf32> to vector<256x128xbf16>
    %c0_5 = arith.constant 0 : index
    %c0_6 = arith.constant 0 : index
    %7 = vector.load %arg5[%c0_5, %c0_6] : memref<256x128xbf16, #tpu.memory_space<vmem>>, vector<256x128xbf16>
    tpu.vector_store %arg5[%c0_5, %c0_6], %6 {strides = array<i32>} : memref<256x128xbf16, #tpu.memory_space<vmem>>, vector<256x128xbf16>,
    return
  }
  func.func @transform_0(%arg0: i32, %arg1: i32) -> (i32, i32) {
    %c0_i32 = arith.constant 0 : i32
    %c0_i32_0 = arith.constant 0 : i32
    return %arg0, %c0_i32 : i32, i32
  }
  func.func @transform_1(%arg0: i32, %arg1: i32) -> (i32, i32) {
    %c0_i32 = arith.constant 0 : i32
    %c0_i32_0 = arith.constant 0 : i32
    return %c0_i32, %arg1 : i32, i32
  }
  func.func @transform_2(%arg0: i32, %arg1: i32) -> (i32, i32) {
    %c0_i32 = arith.constant 0 : i32
    %c0_i32_0 = arith.constant 0 : i32
    return %c0_i32, %arg1 : i32, i32
  }
  func.func @transform_3(%arg0: i32, %arg1: i32) -> (i32, i32) {
    %c0_i32 = arith.constant 0 : i32
    return %arg0, %arg1 : i32, i32
  }
}

module attributes {stable_mosaic.version = 11 : i64} {
  func.func @_mm_kernel(%arg0: i32, %arg1: i32, %arg2: memref<64x144xbf16, #tpu.memory_space<vmem>>, %arg3: memref<144x128xbf16, #tpu.memory_space<vmem>>, %arg4: memref<1x128xf32, #tpu.memory_space<vmem>>, %arg5: memref<64x128xbf16, #tpu.memory_space<vmem>>) attributes {dimension_semantics = [#tpu.dimension_semantics<parallel>, #tpu.dimension_semantics<parallel>], iteration_bounds = array<i64: 1, 1>, scalar_prefetch = 0 : i64, scratch_operands = 0 : i64, tpu.core_type = #tpu.core_type<tc>, window_params = [{transform_indices = @transform_0, window_bounds = array<i64: 64, 144>}, {transform_indices = @transform_1, window_bounds = array<i64: 144, 128>}, {transform_indices = @transform_2, window_bounds = array<i64: 1, 128>}, {transform_indices = @transform_3, window_bounds = array<i64: 64, 128>}]} {
    %c0 = arith.constant 0 : index
    %c0_0 = arith.constant 0 : index
    %0 = vector.load %arg2[%c0, %c0_0] : memref<64x144xbf16, #tpu.memory_space<vmem>>, vector<64x144xbf16>
    %c0_1 = arith.constant 0 : index
    %c0_2 = arith.constant 0 : index
    %1 = vector.load %arg3[%c0_1, %c0_2] : memref<144x128xbf16, #tpu.memory_space<vmem>>, vector<144x128xbf16>
    %cst = arith.constant dense<0.000000e+00> : vector<64x128xf32>
    %2 = tpu.matmul %0, %1, %cst {dimension_numbers = #tpu.dot_dimension_numbers<[1], [0], [0], [1], [0, 0, 1, 1], [], []>} : vector<64x144xbf16>, vector<144x128xbf16>, vector<64x128xf32> -> vector<64x128xf32>
    %c0_3 = arith.constant 0 : index
    %c0_4 = arith.constant 0 : index
    %3 = vector.load %arg4[%c0_3, %c0_4] : memref<1x128xf32, #tpu.memory_space<vmem>>, vector<1x128xf32>
    %4 = vector.broadcast %3 : vector<1x128xf32> to vector<64x128xf32>
    %5 = arith.addf %2, %4 : vector<64x128xf32>
    %6 = arith.truncf %5 : vector<64x128xf32> to vector<64x128xbf16>
    %c0_5 = arith.constant 0 : index
    %c0_6 = arith.constant 0 : index
    %7 = vector.load %arg5[%c0_5, %c0_6] : memref<64x128xbf16, #tpu.memory_space<vmem>>, vector<64x128xbf16>
    tpu.vector_store %arg5[%c0_5, %c0_6], %6 {strides = array<i32>} : memref<64x128xbf16, #tpu.memory_space<vmem>>, vector<64x128xbf16>,
    return
  }
  func.func @transform_0(%arg0: i32, %arg1: i32) -> (i32, i32) {
    %c0_i32 = arith.constant 0 : i32
    %c0_i32_0 = arith.constant 0 : i32
    return %arg0, %c0_i32 : i32, i32
  }
  func.func @transform_1(%arg0: i32, %arg1: i32) -> (i32, i32) {
    %c0_i32 = arith.constant 0 : i32
    %c0_i32_0 = arith.constant 0 : i32
    return %c0_i32, %arg1 : i32, i32
  }
  func.func @transform_2(%arg0: i32, %arg1: i32) -> (i32, i32) {
    %c0_i32 = arith.constant 0 : i32
    %c0_i32_0 = arith.constant 0 : i32
    return %c0_i32, %arg1 : i32, i32
  }
  func.func @transform_3(%arg0: i32, %arg1: i32) -> (i32, i32) {
    %c0_i32 = arith.constant 0 : i32
    return %arg0, %arg1 : i32, i32
  }
}

module attributes {stable_mosaic.version = 11 : i64} {
  func.func @_mm_kernel(%arg0: i32, %arg1: i32, %arg2: memref<64x288xbf16, #tpu.memory_space<vmem>>, %arg3: memref<288x128xbf16, #tpu.memory_space<vmem>>, %arg4: memref<1x128xf32, #tpu.memory_space<vmem>>, %arg5: memref<64x128xbf16, #tpu.memory_space<vmem>>) attributes {dimension_semantics = [#tpu.dimension_semantics<parallel>, #tpu.dimension_semantics<parallel>], iteration_bounds = array<i64: 1, 1>, scalar_prefetch = 0 : i64, scratch_operands = 0 : i64, tpu.core_type = #tpu.core_type<tc>, window_params = [{transform_indices = @transform_0, window_bounds = array<i64: 64, 288>}, {transform_indices = @transform_1, window_bounds = array<i64: 288, 128>}, {transform_indices = @transform_2, window_bounds = array<i64: 1, 128>}, {transform_indices = @transform_3, window_bounds = array<i64: 64, 128>}]} {
    %c0 = arith.constant 0 : index
    %c0_0 = arith.constant 0 : index
    %0 = vector.load %arg2[%c0, %c0_0] : memref<64x288xbf16, #tpu.memory_space<vmem>>, vector<64x288xbf16>
    %c0_1 = arith.constant 0 : index
    %c0_2 = arith.constant 0 : index
    %1 = vector.load %arg3[%c0_1, %c0_2] : memref<288x128xbf16, #tpu.memory_space<vmem>>, vector<288x128xbf16>
    %cst = arith.constant dense<0.000000e+00> : vector<64x128xf32>
    %2 = tpu.matmul %0, %1, %cst {dimension_numbers = #tpu.dot_dimension_numbers<[1], [0], [0], [1], [0, 0, 1, 1], [], []>} : vector<64x288xbf16>, vector<288x128xbf16>, vector<64x128xf32> -> vector<64x128xf32>
    %c0_3 = arith.constant 0 : index
    %c0_4 = arith.constant 0 : index
    %3 = vector.load %arg4[%c0_3, %c0_4] : memref<1x128xf32, #tpu.memory_space<vmem>>, vector<1x128xf32>
    %4 = vector.broadcast %3 : vector<1x128xf32> to vector<64x128xf32>
    %5 = arith.addf %2, %4 : vector<64x128xf32>
    %6 = arith.truncf %5 : vector<64x128xf32> to vector<64x128xbf16>
    %c0_5 = arith.constant 0 : index
    %c0_6 = arith.constant 0 : index
    %7 = vector.load %arg5[%c0_5, %c0_6] : memref<64x128xbf16, #tpu.memory_space<vmem>>, vector<64x128xbf16>
    tpu.vector_store %arg5[%c0_5, %c0_6], %6 {strides = array<i32>} : memref<64x128xbf16, #tpu.memory_space<vmem>>, vector<64x128xbf16>,
    return
  }
  func.func @transform_0(%arg0: i32, %arg1: i32) -> (i32, i32) {
    %c0_i32 = arith.constant 0 : i32
    %c0_i32_0 = arith.constant 0 : i32
    return %arg0, %c0_i32 : i32, i32
  }
  func.func @transform_1(%arg0: i32, %arg1: i32) -> (i32, i32) {
    %c0_i32 = arith.constant 0 : i32
    %c0_i32_0 = arith.constant 0 : i32
    return %c0_i32, %arg1 : i32, i32
  }
  func.func @transform_2(%arg0: i32, %arg1: i32) -> (i32, i32) {
    %c0_i32 = arith.constant 0 : i32
    %c0_i32_0 = arith.constant 0 : i32
    return %c0_i32, %arg1 : i32, i32
  }
  func.func @transform_3(%arg0: i32, %arg1: i32) -> (i32, i32) {
    %c0_i32 = arith.constant 0 : i32
    return %arg0, %arg1 : i32, i32
  }
}

module attributes {stable_mosaic.version = 11 : i64} {
  func.func @_mm_kernel(%arg0: i32, %arg1: i32, %arg2: memref<16x288xbf16, #tpu.memory_space<vmem>>, %arg3: memref<288x128xbf16, #tpu.memory_space<vmem>>, %arg4: memref<1x128xf32, #tpu.memory_space<vmem>>, %arg5: memref<16x128xbf16, #tpu.memory_space<vmem>>) attributes {dimension_semantics = [#tpu.dimension_semantics<parallel>, #tpu.dimension_semantics<parallel>], iteration_bounds = array<i64: 1, 1>, scalar_prefetch = 0 : i64, scratch_operands = 0 : i64, tpu.core_type = #tpu.core_type<tc>, window_params = [{transform_indices = @transform_0, window_bounds = array<i64: 16, 288>}, {transform_indices = @transform_1, window_bounds = array<i64: 288, 128>}, {transform_indices = @transform_2, window_bounds = array<i64: 1, 128>}, {transform_indices = @transform_3, window_bounds = array<i64: 16, 128>}]} {
    %c0 = arith.constant 0 : index
    %c0_0 = arith.constant 0 : index
    %0 = vector.load %arg2[%c0, %c0_0] : memref<16x288xbf16, #tpu.memory_space<vmem>>, vector<16x288xbf16>
    %c0_1 = arith.constant 0 : index
    %c0_2 = arith.constant 0 : index
    %1 = vector.load %arg3[%c0_1, %c0_2] : memref<288x128xbf16, #tpu.memory_space<vmem>>, vector<288x128xbf16>
    %cst = arith.constant dense<0.000000e+00> : vector<16x128xf32>
    %2 = tpu.matmul %0, %1, %cst {dimension_numbers = #tpu.dot_dimension_numbers<[1], [0], [0], [1], [0, 0, 1, 1], [], []>} : vector<16x288xbf16>, vector<288x128xbf16>, vector<16x128xf32> -> vector<16x128xf32>
    %c0_3 = arith.constant 0 : index
    %c0_4 = arith.constant 0 : index
    %3 = vector.load %arg4[%c0_3, %c0_4] : memref<1x128xf32, #tpu.memory_space<vmem>>, vector<1x128xf32>
    %4 = vector.broadcast %3 : vector<1x128xf32> to vector<16x128xf32>
    %5 = arith.addf %2, %4 : vector<16x128xf32>
    %6 = arith.truncf %5 : vector<16x128xf32> to vector<16x128xbf16>
    %c0_5 = arith.constant 0 : index
    %c0_6 = arith.constant 0 : index
    %7 = vector.load %arg5[%c0_5, %c0_6] : memref<16x128xbf16, #tpu.memory_space<vmem>>, vector<16x128xbf16>
    tpu.vector_store %arg5[%c0_5, %c0_6], %6 {strides = array<i32>} : memref<16x128xbf16, #tpu.memory_space<vmem>>, vector<16x128xbf16>,
    return
  }
  func.func @transform_0(%arg0: i32, %arg1: i32) -> (i32, i32) {
    %c0_i32 = arith.constant 0 : i32
    %c0_i32_0 = arith.constant 0 : i32
    return %arg0, %c0_i32 : i32, i32
  }
  func.func @transform_1(%arg0: i32, %arg1: i32) -> (i32, i32) {
    %c0_i32 = arith.constant 0 : i32
    %c0_i32_0 = arith.constant 0 : i32
    return %c0_i32, %arg1 : i32, i32
  }
  func.func @transform_2(%arg0: i32, %arg1: i32) -> (i32, i32) {
    %c0_i32 = arith.constant 0 : i32
    %c0_i32_0 = arith.constant 0 : i32
    return %c0_i32, %arg1 : i32, i32
  }
  func.func @transform_3(%arg0: i32, %arg1: i32) -> (i32, i32) {
    %c0_i32 = arith.constant 0 : i32
    return %arg0, %arg1 : i32, i32
  }
}

module attributes {stable_mosaic.version = 11 : i64} {
  func.func @_mm_kernel(%arg0: i32, %arg1: i32, %arg2: memref<16x576xbf16, #tpu.memory_space<vmem>>, %arg3: memref<576x128xbf16, #tpu.memory_space<vmem>>, %arg4: memref<1x128xf32, #tpu.memory_space<vmem>>, %arg5: memref<16x128xbf16, #tpu.memory_space<vmem>>) attributes {dimension_semantics = [#tpu.dimension_semantics<parallel>, #tpu.dimension_semantics<parallel>], iteration_bounds = array<i64: 1, 1>, scalar_prefetch = 0 : i64, scratch_operands = 0 : i64, tpu.core_type = #tpu.core_type<tc>, window_params = [{transform_indices = @transform_0, window_bounds = array<i64: 16, 576>}, {transform_indices = @transform_1, window_bounds = array<i64: 576, 128>}, {transform_indices = @transform_2, window_bounds = array<i64: 1, 128>}, {transform_indices = @transform_3, window_bounds = array<i64: 16, 128>}]} {
    %c0 = arith.constant 0 : index
    %c0_0 = arith.constant 0 : index
    %0 = vector.load %arg2[%c0, %c0_0] : memref<16x576xbf16, #tpu.memory_space<vmem>>, vector<16x576xbf16>
    %c0_1 = arith.constant 0 : index
    %c0_2 = arith.constant 0 : index
    %1 = vector.load %arg3[%c0_1, %c0_2] : memref<576x128xbf16, #tpu.memory_space<vmem>>, vector<576x128xbf16>
    %cst = arith.constant dense<0.000000e+00> : vector<16x128xf32>
    %2 = tpu.matmul %0, %1, %cst {dimension_numbers = #tpu.dot_dimension_numbers<[1], [0], [0], [1], [0, 0, 1, 1], [], []>} : vector<16x576xbf16>, vector<576x128xbf16>, vector<16x128xf32> -> vector<16x128xf32>
    %c0_3 = arith.constant 0 : index
    %c0_4 = arith.constant 0 : index
    %3 = vector.load %arg4[%c0_3, %c0_4] : memref<1x128xf32, #tpu.memory_space<vmem>>, vector<1x128xf32>
    %4 = vector.broadcast %3 : vector<1x128xf32> to vector<16x128xf32>
    %5 = arith.addf %2, %4 : vector<16x128xf32>
    %6 = arith.truncf %5 : vector<16x128xf32> to vector<16x128xbf16>
    %c0_5 = arith.constant 0 : index
    %c0_6 = arith.constant 0 : index
    %7 = vector.load %arg5[%c0_5, %c0_6] : memref<16x128xbf16, #tpu.memory_space<vmem>>, vector<16x128xbf16>
    tpu.vector_store %arg5[%c0_5, %c0_6], %6 {strides = array<i32>} : memref<16x128xbf16, #tpu.memory_space<vmem>>, vector<16x128xbf16>,
    return
  }
  func.func @transform_0(%arg0: i32, %arg1: i32) -> (i32, i32) {
    %c0_i32 = arith.constant 0 : i32
    %c0_i32_0 = arith.constant 0 : i32
    return %arg0, %c0_i32 : i32, i32
  }
  func.func @transform_1(%arg0: i32, %arg1: i32) -> (i32, i32) {
    %c0_i32 = arith.constant 0 : i32
    %c0_i32_0 = arith.constant 0 : i32
    return %c0_i32, %arg1 : i32, i32
  }
  func.func @transform_2(%arg0: i32, %arg1: i32) -> (i32, i32) {
    %c0_i32 = arith.constant 0 : i32
    %c0_i32_0 = arith.constant 0 : i32
    return %c0_i32, %arg1 : i32, i32
  }
  func.func @transform_3(%arg0: i32, %arg1: i32) -> (i32, i32) {
    %c0_i32 = arith.constant 0 : i32
    return %arg0, %arg1 : i32, i32
  }
}

module attributes {stable_mosaic.version = 11 : i64} {
  func.func @_mm_kernel(%arg0: i32, %arg1: i32, %arg2: memref<8x576xbf16, #tpu.memory_space<vmem>>, %arg3: memref<576x128xbf16, #tpu.memory_space<vmem>>, %arg4: memref<1x128xf32, #tpu.memory_space<vmem>>, %arg5: memref<8x128xbf16, #tpu.memory_space<vmem>>) attributes {dimension_semantics = [#tpu.dimension_semantics<parallel>, #tpu.dimension_semantics<parallel>], iteration_bounds = array<i64: 1, 1>, scalar_prefetch = 0 : i64, scratch_operands = 0 : i64, tpu.core_type = #tpu.core_type<tc>, window_params = [{transform_indices = @transform_0, window_bounds = array<i64: 8, 576>}, {transform_indices = @transform_1, window_bounds = array<i64: 576, 128>}, {transform_indices = @transform_2, window_bounds = array<i64: 1, 128>}, {transform_indices = @transform_3, window_bounds = array<i64: 8, 128>}]} {
    %c0 = arith.constant 0 : index
    %c0_0 = arith.constant 0 : index
    %0 = vector.load %arg2[%c0, %c0_0] : memref<8x576xbf16, #tpu.memory_space<vmem>>, vector<8x576xbf16>
    %c0_1 = arith.constant 0 : index
    %c0_2 = arith.constant 0 : index
    %1 = vector.load %arg3[%c0_1, %c0_2] : memref<576x128xbf16, #tpu.memory_space<vmem>>, vector<576x128xbf16>
    %cst = arith.constant dense<0.000000e+00> : vector<8x128xf32>
    %2 = tpu.matmul %0, %1, %cst {dimension_numbers = #tpu.dot_dimension_numbers<[1], [0], [0], [1], [0, 0, 1, 1], [], []>} : vector<8x576xbf16>, vector<576x128xbf16>, vector<8x128xf32> -> vector<8x128xf32>
    %c0_3 = arith.constant 0 : index
    %c0_4 = arith.constant 0 : index
    %3 = vector.load %arg4[%c0_3, %c0_4] : memref<1x128xf32, #tpu.memory_space<vmem>>, vector<1x128xf32>
    %4 = vector.broadcast %3 : vector<1x128xf32> to vector<8x128xf32>
    %5 = arith.addf %2, %4 : vector<8x128xf32>
    %6 = arith.truncf %5 : vector<8x128xf32> to vector<8x128xbf16>
    %c0_5 = arith.constant 0 : index
    %c0_6 = arith.constant 0 : index
    %7 = vector.load %arg5[%c0_5, %c0_6] : memref<8x128xbf16, #tpu.memory_space<vmem>>, vector<8x128xbf16>
    tpu.vector_store %arg5[%c0_5, %c0_6], %6 {strides = array<i32>} : memref<8x128xbf16, #tpu.memory_space<vmem>>, vector<8x128xbf16>,
    return
  }
  func.func @transform_0(%arg0: i32, %arg1: i32) -> (i32, i32) {
    %c0_i32 = arith.constant 0 : i32
    %c0_i32_0 = arith.constant 0 : i32
    return %arg0, %c0_i32 : i32, i32
  }
  func.func @transform_1(%arg0: i32, %arg1: i32) -> (i32, i32) {
    %c0_i32 = arith.constant 0 : i32
    %c0_i32_0 = arith.constant 0 : i32
    return %c0_i32, %arg1 : i32, i32
  }
  func.func @transform_2(%arg0: i32, %arg1: i32) -> (i32, i32) {
    %c0_i32 = arith.constant 0 : i32
    %c0_i32_0 = arith.constant 0 : i32
    return %c0_i32, %arg1 : i32, i32
  }
  func.func @transform_3(%arg0: i32, %arg1: i32) -> (i32, i32) {
    %c0_i32 = arith.constant 0 : i32
    return %arg0, %arg1 : i32, i32
  }
}

module attributes {stable_mosaic.version = 11 : i64} {
  func.func @_mm_kernel(%arg0: i32, %arg1: i32, %arg2: memref<8x128xbf16, #tpu.memory_space<vmem>>, %arg3: memref<128x128xbf16, #tpu.memory_space<vmem>>, %arg4: memref<1x128xf32, #tpu.memory_space<vmem>>, %arg5: memref<8x128xbf16, #tpu.memory_space<vmem>>) attributes {dimension_semantics = [#tpu.dimension_semantics<parallel>, #tpu.dimension_semantics<parallel>], iteration_bounds = array<i64: 1, 2>, scalar_prefetch = 0 : i64, scratch_operands = 0 : i64, tpu.core_type = #tpu.core_type<tc>, window_params = [{transform_indices = @transform_0, window_bounds = array<i64: 8, 128>}, {transform_indices = @transform_1, window_bounds = array<i64: 128, 128>}, {transform_indices = @transform_2, window_bounds = array<i64: 1, 128>}, {transform_indices = @transform_3, window_bounds = array<i64: 8, 128>}]} {
    %c0 = arith.constant 0 : index
    %c0_0 = arith.constant 0 : index
    %0 = vector.load %arg2[%c0, %c0_0] : memref<8x128xbf16, #tpu.memory_space<vmem>>, vector<8x128xbf16>
    %c0_1 = arith.constant 0 : index
    %c0_2 = arith.constant 0 : index
    %1 = vector.load %arg3[%c0_1, %c0_2] : memref<128x128xbf16, #tpu.memory_space<vmem>>, vector<128x128xbf16>
    %cst = arith.constant dense<0.000000e+00> : vector<8x128xf32>
    %2 = tpu.matmul %0, %1, %cst {dimension_numbers = #tpu.dot_dimension_numbers<[1], [0], [0], [1], [0, 0, 1, 1], [], []>} : vector<8x128xbf16>, vector<128x128xbf16>, vector<8x128xf32> -> vector<8x128xf32>
    %c0_3 = arith.constant 0 : index
    %c0_4 = arith.constant 0 : index
    %3 = vector.load %arg4[%c0_3, %c0_4] : memref<1x128xf32, #tpu.memory_space<vmem>>, vector<1x128xf32>
    %4 = vector.broadcast %3 : vector<1x128xf32> to vector<8x128xf32>
    %5 = arith.addf %2, %4 : vector<8x128xf32>
    %6 = arith.truncf %5 : vector<8x128xf32> to vector<8x128xbf16>
    %c0_5 = arith.constant 0 : index
    %c0_6 = arith.constant 0 : index
    %7 = vector.load %arg5[%c0_5, %c0_6] : memref<8x128xbf16, #tpu.memory_space<vmem>>, vector<8x128xbf16>
    tpu.vector_store %arg5[%c0_5, %c0_6], %6 {strides = array<i32>} : memref<8x128xbf16, #tpu.memory_space<vmem>>, vector<8x128xbf16>,
    return
  }
  func.func @transform_0(%arg0: i32, %arg1: i32) -> (i32, i32) {
    %c0_i32 = arith.constant 0 : i32
    %c0_i32_0 = arith.constant 0 : i32
    return %arg0, %c0_i32 : i32, i32
  }
  func.func @transform_1(%arg0: i32, %arg1: i32) -> (i32, i32) {
    %c0_i32 = arith.constant 0 : i32
    %c0_i32_0 = arith.constant 0 : i32
    return %c0_i32, %arg1 : i32, i32
  }
  func.func @transform_2(%arg0: i32, %arg1: i32) -> (i32, i32) {
    %c0_i32 = arith.constant 0 : i32
    %c0_i32_0 = arith.constant 0 : i32
    return %c0_i32, %arg1 : i32, i32
  }
  func.func @transform_3(%arg0: i32, %arg1: i32) -> (i32, i32) {
    %c0_i32 = arith.constant 0 : i32
    return %arg0, %arg1 : i32, i32
  }
}

module attributes {stable_mosaic.version = 11 : i64} {
  func.func @_mm_kernel(%arg0: i32, %arg1: i32, %arg2: memref<8x1152xbf16, #tpu.memory_space<vmem>>, %arg3: memref<1152x128xbf16, #tpu.memory_space<vmem>>, %arg4: memref<1x128xf32, #tpu.memory_space<vmem>>, %arg5: memref<8x128xbf16, #tpu.memory_space<vmem>>) attributes {dimension_semantics = [#tpu.dimension_semantics<parallel>, #tpu.dimension_semantics<parallel>], iteration_bounds = array<i64: 1, 1>, scalar_prefetch = 0 : i64, scratch_operands = 0 : i64, tpu.core_type = #tpu.core_type<tc>, window_params = [{transform_indices = @transform_0, window_bounds = array<i64: 8, 1152>}, {transform_indices = @transform_1, window_bounds = array<i64: 1152, 128>}, {transform_indices = @transform_2, window_bounds = array<i64: 1, 128>}, {transform_indices = @transform_3, window_bounds = array<i64: 8, 128>}]} {
    %c0 = arith.constant 0 : index
    %c0_0 = arith.constant 0 : index
    %0 = vector.load %arg2[%c0, %c0_0] : memref<8x1152xbf16, #tpu.memory_space<vmem>>, vector<8x1152xbf16>
    %c0_1 = arith.constant 0 : index
    %c0_2 = arith.constant 0 : index
    %1 = vector.load %arg3[%c0_1, %c0_2] : memref<1152x128xbf16, #tpu.memory_space<vmem>>, vector<1152x128xbf16>
    %cst = arith.constant dense<0.000000e+00> : vector<8x128xf32>
    %2 = tpu.matmul %0, %1, %cst {dimension_numbers = #tpu.dot_dimension_numbers<[1], [0], [0], [1], [0, 0, 1, 1], [], []>} : vector<8x1152xbf16>, vector<1152x128xbf16>, vector<8x128xf32> -> vector<8x128xf32>
    %c0_3 = arith.constant 0 : index
    %c0_4 = arith.constant 0 : index
    %3 = vector.load %arg4[%c0_3, %c0_4] : memref<1x128xf32, #tpu.memory_space<vmem>>, vector<1x128xf32>
    %4 = vector.broadcast %3 : vector<1x128xf32> to vector<8x128xf32>
    %5 = arith.addf %2, %4 : vector<8x128xf32>
    %6 = arith.truncf %5 : vector<8x128xf32> to vector<8x128xbf16>
    %c0_5 = arith.constant 0 : index
    %c0_6 = arith.constant 0 : index
    %7 = vector.load %arg5[%c0_5, %c0_6] : memref<8x128xbf16, #tpu.memory_space<vmem>>, vector<8x128xbf16>
    tpu.vector_store %arg5[%c0_5, %c0_6], %6 {strides = array<i32>} : memref<8x128xbf16, #tpu.memory_space<vmem>>, vector<8x128xbf16>,
    return
  }
  func.func @transform_0(%arg0: i32, %arg1: i32) -> (i32, i32) {
    %c0_i32 = arith.constant 0 : i32
    %c0_i32_0 = arith.constant 0 : i32
    return %arg0, %c0_i32 : i32, i32
  }
  func.func @transform_1(%arg0: i32, %arg1: i32) -> (i32, i32) {
    %c0_i32 = arith.constant 0 : i32
    %c0_i32_0 = arith.constant 0 : i32
    return %c0_i32, %arg1 : i32, i32
  }
  func.func @transform_2(%arg0: i32, %arg1: i32) -> (i32, i32) {
    %c0_i32 = arith.constant 0 : i32
    %c0_i32_0 = arith.constant 0 : i32
    return %c0_i32, %arg1 : i32, i32
  }
  func.func @transform_3(%arg0: i32, %arg1: i32) -> (i32, i32) {
    %c0_i32 = arith.constant 0 : i32
    return %arg0, %arg1 : i32, i32
  }
}

module attributes {stable_mosaic.version = 11 : i64} {
  func.func @_mm_kernel(%arg0: i32, %arg1: i32, %arg2: memref<16x64xbf16, #tpu.memory_space<vmem>>, %arg3: memref<64x128xbf16, #tpu.memory_space<vmem>>, %arg4: memref<1x128xf32, #tpu.memory_space<vmem>>, %arg5: memref<16x128xbf16, #tpu.memory_space<vmem>>) attributes {dimension_semantics = [#tpu.dimension_semantics<parallel>, #tpu.dimension_semantics<parallel>], iteration_bounds = array<i64: 1, 1>, scalar_prefetch = 0 : i64, scratch_operands = 0 : i64, tpu.core_type = #tpu.core_type<tc>, window_params = [{transform_indices = @transform_0, window_bounds = array<i64: 16, 64>}, {transform_indices = @transform_1, window_bounds = array<i64: 64, 128>}, {transform_indices = @transform_2, window_bounds = array<i64: 1, 128>}, {transform_indices = @transform_3, window_bounds = array<i64: 16, 128>}]} {
    %c0 = arith.constant 0 : index
    %c0_0 = arith.constant 0 : index
    %0 = vector.load %arg2[%c0, %c0_0] : memref<16x64xbf16, #tpu.memory_space<vmem>>, vector<16x64xbf16>
    %c0_1 = arith.constant 0 : index
    %c0_2 = arith.constant 0 : index
    %1 = vector.load %arg3[%c0_1, %c0_2] : memref<64x128xbf16, #tpu.memory_space<vmem>>, vector<64x128xbf16>
    %cst = arith.constant dense<0.000000e+00> : vector<16x128xf32>
    %2 = tpu.matmul %0, %1, %cst {dimension_numbers = #tpu.dot_dimension_numbers<[1], [0], [0], [1], [0, 0, 1, 1], [], []>} : vector<16x64xbf16>, vector<64x128xbf16>, vector<16x128xf32> -> vector<16x128xf32>
    %c0_3 = arith.constant 0 : index
    %c0_4 = arith.constant 0 : index
    %3 = vector.load %arg4[%c0_3, %c0_4] : memref<1x128xf32, #tpu.memory_space<vmem>>, vector<1x128xf32>
    %4 = vector.broadcast %3 : vector<1x128xf32> to vector<16x128xf32>
    %5 = arith.addf %2, %4 : vector<16x128xf32>
    %6 = arith.truncf %5 : vector<16x128xf32> to vector<16x128xbf16>
    %c0_5 = arith.constant 0 : index
    %c0_6 = arith.constant 0 : index
    %7 = vector.load %arg5[%c0_5, %c0_6] : memref<16x128xbf16, #tpu.memory_space<vmem>>, vector<16x128xbf16>
    tpu.vector_store %arg5[%c0_5, %c0_6], %6 {strides = array<i32>} : memref<16x128xbf16, #tpu.memory_space<vmem>>, vector<16x128xbf16>,
    return
  }
  func.func @transform_0(%arg0: i32, %arg1: i32) -> (i32, i32) {
    %c0_i32 = arith.constant 0 : i32
    %c0_i32_0 = arith.constant 0 : i32
    return %arg0, %c0_i32 : i32, i32
  }
  func.func @transform_1(%arg0: i32, %arg1: i32) -> (i32, i32) {
    %c0_i32 = arith.constant 0 : i32
    %c0_i32_0 = arith.constant 0 : i32
    return %c0_i32, %arg1 : i32, i32
  }
  func.func @transform_2(%arg0: i32, %arg1: i32) -> (i32, i32) {
    %c0_i32 = arith.constant 0 : i32
    %c0_i32_0 = arith.constant 0 : i32
    return %c0_i32, %arg1 : i32, i32
  }
  func.func @transform_3(%arg0: i32, %arg1: i32) -> (i32, i32) {
    %c0_i32 = arith.constant 0 : i32
    return %arg0, %arg1 : i32, i32
  }
}

module attributes {stable_mosaic.version = 11 : i64} {
  func.func @_mm_kernel(%arg0: i32, %arg1: i32, %arg2: memref<16x1152xbf16, #tpu.memory_space<vmem>>, %arg3: memref<1152x128xbf16, #tpu.memory_space<vmem>>, %arg4: memref<1x128xf32, #tpu.memory_space<vmem>>, %arg5: memref<16x128xbf16, #tpu.memory_space<vmem>>) attributes {dimension_semantics = [#tpu.dimension_semantics<parallel>, #tpu.dimension_semantics<parallel>], iteration_bounds = array<i64: 1, 1>, scalar_prefetch = 0 : i64, scratch_operands = 0 : i64, tpu.core_type = #tpu.core_type<tc>, window_params = [{transform_indices = @transform_0, window_bounds = array<i64: 16, 1152>}, {transform_indices = @transform_1, window_bounds = array<i64: 1152, 128>}, {transform_indices = @transform_2, window_bounds = array<i64: 1, 128>}, {transform_indices = @transform_3, window_bounds = array<i64: 16, 128>}]} {
    %c0 = arith.constant 0 : index
    %c0_0 = arith.constant 0 : index
    %0 = vector.load %arg2[%c0, %c0_0] : memref<16x1152xbf16, #tpu.memory_space<vmem>>, vector<16x1152xbf16>
    %c0_1 = arith.constant 0 : index
    %c0_2 = arith.constant 0 : index
    %1 = vector.load %arg3[%c0_1, %c0_2] : memref<1152x128xbf16, #tpu.memory_space<vmem>>, vector<1152x128xbf16>
    %cst = arith.constant dense<0.000000e+00> : vector<16x128xf32>
    %2 = tpu.matmul %0, %1, %cst {dimension_numbers = #tpu.dot_dimension_numbers<[1], [0], [0], [1], [0, 0, 1, 1], [], []>} : vector<16x1152xbf16>, vector<1152x128xbf16>, vector<16x128xf32> -> vector<16x128xf32>
    %c0_3 = arith.constant 0 : index
    %c0_4 = arith.constant 0 : index
    %3 = vector.load %arg4[%c0_3, %c0_4] : memref<1x128xf32, #tpu.memory_space<vmem>>, vector<1x128xf32>
    %4 = vector.broadcast %3 : vector<1x128xf32> to vector<16x128xf32>
    %5 = arith.addf %2, %4 : vector<16x128xf32>
    %6 = arith.truncf %5 : vector<16x128xf32> to vector<16x128xbf16>
    %c0_5 = arith.constant 0 : index
    %c0_6 = arith.constant 0 : index
    %7 = vector.load %arg5[%c0_5, %c0_6] : memref<16x128xbf16, #tpu.memory_space<vmem>>, vector<16x128xbf16>
    tpu.vector_store %arg5[%c0_5, %c0_6], %6 {strides = array<i32>} : memref<16x128xbf16, #tpu.memory_space<vmem>>, vector<16x128xbf16>,
    return
  }
  func.func @transform_0(%arg0: i32, %arg1: i32) -> (i32, i32) {
    %c0_i32 = arith.constant 0 : i32
    %c0_i32_0 = arith.constant 0 : i32
    return %arg0, %c0_i32 : i32, i32
  }
  func.func @transform_1(%arg0: i32, %arg1: i32) -> (i32, i32) {
    %c0_i32 = arith.constant 0 : i32
    %c0_i32_0 = arith.constant 0 : i32
    return %c0_i32, %arg1 : i32, i32
  }
  func.func @transform_2(%arg0: i32, %arg1: i32) -> (i32, i32) {
    %c0_i32 = arith.constant 0 : i32
    %c0_i32_0 = arith.constant 0 : i32
    return %c0_i32, %arg1 : i32, i32
  }
  func.func @transform_3(%arg0: i32, %arg1: i32) -> (i32, i32) {
    %c0_i32 = arith.constant 0 : i32
    return %arg0, %arg1 : i32, i32
  }
}

module attributes {stable_mosaic.version = 11 : i64} {
  func.func @_mm_kernel(%arg0: i32, %arg1: i32, %arg2: memref<64x576xbf16, #tpu.memory_space<vmem>>, %arg3: memref<576x128xbf16, #tpu.memory_space<vmem>>, %arg4: memref<1x128xf32, #tpu.memory_space<vmem>>, %arg5: memref<64x128xbf16, #tpu.memory_space<vmem>>) attributes {dimension_semantics = [#tpu.dimension_semantics<parallel>, #tpu.dimension_semantics<parallel>], iteration_bounds = array<i64: 1, 1>, scalar_prefetch = 0 : i64, scratch_operands = 0 : i64, tpu.core_type = #tpu.core_type<tc>, window_params = [{transform_indices = @transform_0, window_bounds = array<i64: 64, 576>}, {transform_indices = @transform_1, window_bounds = array<i64: 576, 128>}, {transform_indices = @transform_2, window_bounds = array<i64: 1, 128>}, {transform_indices = @transform_3, window_bounds = array<i64: 64, 128>}]} {
    %c0 = arith.constant 0 : index
    %c0_0 = arith.constant 0 : index
    %0 = vector.load %arg2[%c0, %c0_0] : memref<64x576xbf16, #tpu.memory_space<vmem>>, vector<64x576xbf16>
    %c0_1 = arith.constant 0 : index
    %c0_2 = arith.constant 0 : index
    %1 = vector.load %arg3[%c0_1, %c0_2] : memref<576x128xbf16, #tpu.memory_space<vmem>>, vector<576x128xbf16>
    %cst = arith.constant dense<0.000000e+00> : vector<64x128xf32>
    %2 = tpu.matmul %0, %1, %cst {dimension_numbers = #tpu.dot_dimension_numbers<[1], [0], [0], [1], [0, 0, 1, 1], [], []>} : vector<64x576xbf16>, vector<576x128xbf16>, vector<64x128xf32> -> vector<64x128xf32>
    %c0_3 = arith.constant 0 : index
    %c0_4 = arith.constant 0 : index
    %3 = vector.load %arg4[%c0_3, %c0_4] : memref<1x128xf32, #tpu.memory_space<vmem>>, vector<1x128xf32>
    %4 = vector.broadcast %3 : vector<1x128xf32> to vector<64x128xf32>
    %5 = arith.addf %2, %4 : vector<64x128xf32>
    %6 = arith.truncf %5 : vector<64x128xf32> to vector<64x128xbf16>
    %c0_5 = arith.constant 0 : index
    %c0_6 = arith.constant 0 : index
    %7 = vector.load %arg5[%c0_5, %c0_6] : memref<64x128xbf16, #tpu.memory_space<vmem>>, vector<64x128xbf16>
    tpu.vector_store %arg5[%c0_5, %c0_6], %6 {strides = array<i32>} : memref<64x128xbf16, #tpu.memory_space<vmem>>, vector<64x128xbf16>,
    return
  }
  func.func @transform_0(%arg0: i32, %arg1: i32) -> (i32, i32) {
    %c0_i32 = arith.constant 0 : i32
    %c0_i32_0 = arith.constant 0 : i32
    return %arg0, %c0_i32 : i32, i32
  }
  func.func @transform_1(%arg0: i32, %arg1: i32) -> (i32, i32) {
    %c0_i32 = arith.constant 0 : i32
    %c0_i32_0 = arith.constant 0 : i32
    return %c0_i32, %arg1 : i32, i32
  }
  func.func @transform_2(%arg0: i32, %arg1: i32) -> (i32, i32) {
    %c0_i32 = arith.constant 0 : i32
    %c0_i32_0 = arith.constant 0 : i32
    return %c0_i32, %arg1 : i32, i32
  }
  func.func @transform_3(%arg0: i32, %arg1: i32) -> (i32, i32) {
    %c0_i32 = arith.constant 0 : i32
    return %arg0, %arg1 : i32, i32
  }
}

module attributes {stable_mosaic.version = 11 : i64} {
  func.func @_mm_kernel(%arg0: i32, %arg1: i32, %arg2: memref<64x32xbf16, #tpu.memory_space<vmem>>, %arg3: memref<32x128xbf16, #tpu.memory_space<vmem>>, %arg4: memref<1x128xf32, #tpu.memory_space<vmem>>, %arg5: memref<64x128xbf16, #tpu.memory_space<vmem>>) attributes {dimension_semantics = [#tpu.dimension_semantics<parallel>, #tpu.dimension_semantics<parallel>], iteration_bounds = array<i64: 1, 1>, scalar_prefetch = 0 : i64, scratch_operands = 0 : i64, tpu.core_type = #tpu.core_type<tc>, window_params = [{transform_indices = @transform_0, window_bounds = array<i64: 64, 32>}, {transform_indices = @transform_1, window_bounds = array<i64: 32, 128>}, {transform_indices = @transform_2, window_bounds = array<i64: 1, 128>}, {transform_indices = @transform_3, window_bounds = array<i64: 64, 128>}]} {
    %c0 = arith.constant 0 : index
    %c0_0 = arith.constant 0 : index
    %0 = vector.load %arg2[%c0, %c0_0] : memref<64x32xbf16, #tpu.memory_space<vmem>>, vector<64x32xbf16>
    %c0_1 = arith.constant 0 : index
    %c0_2 = arith.constant 0 : index
    %1 = vector.load %arg3[%c0_1, %c0_2] : memref<32x128xbf16, #tpu.memory_space<vmem>>, vector<32x128xbf16>
    %cst = arith.constant dense<0.000000e+00> : vector<64x128xf32>
    %2 = tpu.matmul %0, %1, %cst {dimension_numbers = #tpu.dot_dimension_numbers<[1], [0], [0], [1], [0, 0, 1, 1], [], []>} : vector<64x32xbf16>, vector<32x128xbf16>, vector<64x128xf32> -> vector<64x128xf32>
    %c0_3 = arith.constant 0 : index
    %c0_4 = arith.constant 0 : index
    %3 = vector.load %arg4[%c0_3, %c0_4] : memref<1x128xf32, #tpu.memory_space<vmem>>, vector<1x128xf32>
    %4 = vector.broadcast %3 : vector<1x128xf32> to vector<64x128xf32>
    %5 = arith.addf %2, %4 : vector<64x128xf32>
    %6 = arith.truncf %5 : vector<64x128xf32> to vector<64x128xbf16>
    %c0_5 = arith.constant 0 : index
    %c0_6 = arith.constant 0 : index
    %7 = vector.load %arg5[%c0_5, %c0_6] : memref<64x128xbf16, #tpu.memory_space<vmem>>, vector<64x128xbf16>
    tpu.vector_store %arg5[%c0_5, %c0_6], %6 {strides = array<i32>} : memref<64x128xbf16, #tpu.memory_space<vmem>>, vector<64x128xbf16>,
    return
  }
  func.func @transform_0(%arg0: i32, %arg1: i32) -> (i32, i32) {
    %c0_i32 = arith.constant 0 : i32
    %c0_i32_0 = arith.constant 0 : i32
    return %arg0, %c0_i32 : i32, i32
  }
  func.func @transform_1(%arg0: i32, %arg1: i32) -> (i32, i32) {
    %c0_i32 = arith.constant 0 : i32
    %c0_i32_0 = arith.constant 0 : i32
    return %c0_i32, %arg1 : i32, i32
  }
  func.func @transform_2(%arg0: i32, %arg1: i32) -> (i32, i32) {
    %c0_i32 = arith.constant 0 : i32
    %c0_i32_0 = arith.constant 0 : i32
    return %c0_i32, %arg1 : i32, i32
  }
  func.func @transform_3(%arg0: i32, %arg1: i32) -> (i32, i32) {
    %c0_i32 = arith.constant 0 : i32
    return %arg0, %arg1 : i32, i32
  }
}

module attributes {stable_mosaic.version = 11 : i64} {
  func.func @_mm_kernel(%arg0: i32, %arg1: i32, %arg2: memref<256x288xbf16, #tpu.memory_space<vmem>>, %arg3: memref<288x128xbf16, #tpu.memory_space<vmem>>, %arg4: memref<1x128xf32, #tpu.memory_space<vmem>>, %arg5: memref<256x128xbf16, #tpu.memory_space<vmem>>) attributes {dimension_semantics = [#tpu.dimension_semantics<parallel>, #tpu.dimension_semantics<parallel>], iteration_bounds = array<i64: 1, 1>, scalar_prefetch = 0 : i64, scratch_operands = 0 : i64, tpu.core_type = #tpu.core_type<tc>, window_params = [{transform_indices = @transform_0, window_bounds = array<i64: 256, 288>}, {transform_indices = @transform_1, window_bounds = array<i64: 288, 128>}, {transform_indices = @transform_2, window_bounds = array<i64: 1, 128>}, {transform_indices = @transform_3, window_bounds = array<i64: 256, 128>}]} {
    %c0 = arith.constant 0 : index
    %c0_0 = arith.constant 0 : index
    %0 = vector.load %arg2[%c0, %c0_0] : memref<256x288xbf16, #tpu.memory_space<vmem>>, vector<256x288xbf16>
    %c0_1 = arith.constant 0 : index
    %c0_2 = arith.constant 0 : index
    %1 = vector.load %arg3[%c0_1, %c0_2] : memref<288x128xbf16, #tpu.memory_space<vmem>>, vector<288x128xbf16>
    %cst = arith.constant dense<0.000000e+00> : vector<256x128xf32>
    %2 = tpu.matmul %0, %1, %cst {dimension_numbers = #tpu.dot_dimension_numbers<[1], [0], [0], [1], [0, 0, 1, 1], [], []>} : vector<256x288xbf16>, vector<288x128xbf16>, vector<256x128xf32> -> vector<256x128xf32>
    %c0_3 = arith.constant 0 : index
    %c0_4 = arith.constant 0 : index
    %3 = vector.load %arg4[%c0_3, %c0_4] : memref<1x128xf32, #tpu.memory_space<vmem>>, vector<1x128xf32>
    %4 = vector.broadcast %3 : vector<1x128xf32> to vector<256x128xf32>
    %5 = arith.addf %2, %4 : vector<256x128xf32>
    %6 = arith.truncf %5 : vector<256x128xf32> to vector<256x128xbf16>
    %c0_5 = arith.constant 0 : index
    %c0_6 = arith.constant 0 : index
    %7 = vector.load %arg5[%c0_5, %c0_6] : memref<256x128xbf16, #tpu.memory_space<vmem>>, vector<256x128xbf16>
    tpu.vector_store %arg5[%c0_5, %c0_6], %6 {strides = array<i32>} : memref<256x128xbf16, #tpu.memory_space<vmem>>, vector<256x128xbf16>,
    return
  }
  func.func @transform_0(%arg0: i32, %arg1: i32) -> (i32, i32) {
    %c0_i32 = arith.constant 0 : i32
    %c0_i32_0 = arith.constant 0 : i32
    return %arg0, %c0_i32 : i32, i32
  }
  func.func @transform_1(%arg0: i32, %arg1: i32) -> (i32, i32) {
    %c0_i32 = arith.constant 0 : i32
    %c0_i32_0 = arith.constant 0 : i32
    return %c0_i32, %arg1 : i32, i32
  }
  func.func @transform_2(%arg0: i32, %arg1: i32) -> (i32, i32) {
    %c0_i32 = arith.constant 0 : i32
    %c0_i32_0 = arith.constant 0 : i32
    return %c0_i32, %arg1 : i32, i32
  }
  func.func @transform_3(%arg0: i32, %arg1: i32) -> (i32, i32) {
    %c0_i32 = arith.constant 0 : i32
    return %arg0, %arg1 : i32, i32
  }
}

module attributes {stable_mosaic.version = 11 : i64} {
  func.func @_mm_kernel(%arg0: i32, %arg1: i32, %arg2: memref<256x16xbf16, #tpu.memory_space<vmem>>, %arg3: memref<16x128xbf16, #tpu.memory_space<vmem>>, %arg4: memref<1x128xf32, #tpu.memory_space<vmem>>, %arg5: memref<256x128xbf16, #tpu.memory_space<vmem>>) attributes {dimension_semantics = [#tpu.dimension_semantics<parallel>, #tpu.dimension_semantics<parallel>], iteration_bounds = array<i64: 1, 1>, scalar_prefetch = 0 : i64, scratch_operands = 0 : i64, tpu.core_type = #tpu.core_type<tc>, window_params = [{transform_indices = @transform_0, window_bounds = array<i64: 256, 16>}, {transform_indices = @transform_1, window_bounds = array<i64: 16, 128>}, {transform_indices = @transform_2, window_bounds = array<i64: 1, 128>}, {transform_indices = @transform_3, window_bounds = array<i64: 256, 128>}]} {
    %c0 = arith.constant 0 : index
    %c0_0 = arith.constant 0 : index
    %0 = vector.load %arg2[%c0, %c0_0] : memref<256x16xbf16, #tpu.memory_space<vmem>>, vector<256x16xbf16>
    %c0_1 = arith.constant 0 : index
    %c0_2 = arith.constant 0 : index
    %1 = vector.load %arg3[%c0_1, %c0_2] : memref<16x128xbf16, #tpu.memory_space<vmem>>, vector<16x128xbf16>
    %cst = arith.constant dense<0.000000e+00> : vector<256x128xf32>
    %2 = tpu.matmul %0, %1, %cst {dimension_numbers = #tpu.dot_dimension_numbers<[1], [0], [0], [1], [0, 0, 1, 1], [], []>} : vector<256x16xbf16>, vector<16x128xbf16>, vector<256x128xf32> -> vector<256x128xf32>
    %c0_3 = arith.constant 0 : index
    %c0_4 = arith.constant 0 : index
    %3 = vector.load %arg4[%c0_3, %c0_4] : memref<1x128xf32, #tpu.memory_space<vmem>>, vector<1x128xf32>
    %4 = vector.broadcast %3 : vector<1x128xf32> to vector<256x128xf32>
    %5 = arith.addf %2, %4 : vector<256x128xf32>
    %6 = arith.truncf %5 : vector<256x128xf32> to vector<256x128xbf16>
    %c0_5 = arith.constant 0 : index
    %c0_6 = arith.constant 0 : index
    %7 = vector.load %arg5[%c0_5, %c0_6] : memref<256x128xbf16, #tpu.memory_space<vmem>>, vector<256x128xbf16>
    tpu.vector_store %arg5[%c0_5, %c0_6], %6 {strides = array<i32>} : memref<256x128xbf16, #tpu.memory_space<vmem>>, vector<256x128xbf16>,
    return
  }
  func.func @transform_0(%arg0: i32, %arg1: i32) -> (i32, i32) {
    %c0_i32 = arith.constant 0 : i32
    %c0_i32_0 = arith.constant 0 : i32
    return %arg0, %c0_i32 : i32, i32
  }
  func.func @transform_1(%arg0: i32, %arg1: i32) -> (i32, i32) {
    %c0_i32 = arith.constant 0 : i32
    %c0_i32_0 = arith.constant 0 : i32
    return %c0_i32, %arg1 : i32, i32
  }
  func.func @transform_2(%arg0: i32, %arg1: i32) -> (i32, i32) {
    %c0_i32 = arith.constant 0 : i32
    %c0_i32_0 = arith.constant 0 : i32
    return %c0_i32, %arg1 : i32, i32
  }
  func.func @transform_3(%arg0: i32, %arg1: i32) -> (i32, i32) {
    %c0_i32 = arith.constant 0 : i32
    return %arg0, %arg1 : i32, i32
  }
}

module attributes {stable_mosaic.version = 11 : i64} {
  func.func @_mm_kernel(%arg0: i32, %arg1: i32, %arg2: memref<512x144xbf16, #tpu.memory_space<vmem>>, %arg3: memref<144x128xbf16, #tpu.memory_space<vmem>>, %arg4: memref<1x128xf32, #tpu.memory_space<vmem>>, %arg5: memref<512x128xbf16, #tpu.memory_space<vmem>>) attributes {dimension_semantics = [#tpu.dimension_semantics<parallel>, #tpu.dimension_semantics<parallel>], iteration_bounds = array<i64: 2, 1>, scalar_prefetch = 0 : i64, scratch_operands = 0 : i64, tpu.core_type = #tpu.core_type<tc>, window_params = [{transform_indices = @transform_0, window_bounds = array<i64: 512, 144>}, {transform_indices = @transform_1, window_bounds = array<i64: 144, 128>}, {transform_indices = @transform_2, window_bounds = array<i64: 1, 128>}, {transform_indices = @transform_3, window_bounds = array<i64: 512, 128>}]} {
    %c0 = arith.constant 0 : index
    %c0_0 = arith.constant 0 : index
    %0 = vector.load %arg2[%c0, %c0_0] : memref<512x144xbf16, #tpu.memory_space<vmem>>, vector<512x144xbf16>
    %c0_1 = arith.constant 0 : index
    %c0_2 = arith.constant 0 : index
    %1 = vector.load %arg3[%c0_1, %c0_2] : memref<144x128xbf16, #tpu.memory_space<vmem>>, vector<144x128xbf16>
    %cst = arith.constant dense<0.000000e+00> : vector<512x128xf32>
    %2 = tpu.matmul %0, %1, %cst {dimension_numbers = #tpu.dot_dimension_numbers<[1], [0], [0], [1], [0, 0, 1, 1], [], []>} : vector<512x144xbf16>, vector<144x128xbf16>, vector<512x128xf32> -> vector<512x128xf32>
    %c0_3 = arith.constant 0 : index
    %c0_4 = arith.constant 0 : index
    %3 = vector.load %arg4[%c0_3, %c0_4] : memref<1x128xf32, #tpu.memory_space<vmem>>, vector<1x128xf32>
    %4 = vector.broadcast %3 : vector<1x128xf32> to vector<512x128xf32>
    %5 = arith.addf %2, %4 : vector<512x128xf32>
    %6 = arith.truncf %5 : vector<512x128xf32> to vector<512x128xbf16>
    %c0_5 = arith.constant 0 : index
    %c0_6 = arith.constant 0 : index
    %7 = vector.load %arg5[%c0_5, %c0_6] : memref<512x128xbf16, #tpu.memory_space<vmem>>, vector<512x128xbf16>
    tpu.vector_store %arg5[%c0_5, %c0_6], %6 {strides = array<i32>} : memref<512x128xbf16, #tpu.memory_space<vmem>>, vector<512x128xbf16>,
    return
  }
  func.func @transform_0(%arg0: i32, %arg1: i32) -> (i32, i32) {
    %c0_i32 = arith.constant 0 : i32
    %c0_i32_0 = arith.constant 0 : i32
    return %arg0, %c0_i32 : i32, i32
  }
  func.func @transform_1(%arg0: i32, %arg1: i32) -> (i32, i32) {
    %c0_i32 = arith.constant 0 : i32
    %c0_i32_0 = arith.constant 0 : i32
    return %c0_i32, %arg1 : i32, i32
  }
  func.func @transform_2(%arg0: i32, %arg1: i32) -> (i32, i32) {
    %c0_i32 = arith.constant 0 : i32
    %c0_i32_0 = arith.constant 0 : i32
    return %c0_i32, %arg1 : i32, i32
  }
  func.func @transform_3(%arg0: i32, %arg1: i32) -> (i32, i32) {
    %c0_i32 = arith.constant 0 : i32
    return %arg0, %arg1 : i32, i32
  }
}

module attributes {stable_mosaic.version = 11 : i64} {
  func.func @_mm_kernel(%arg0: i32, %arg1: i32, %arg2: memref<512x80xbf16, #tpu.memory_space<vmem>>, %arg3: memref<80x128xbf16, #tpu.memory_space<vmem>>, %arg4: memref<1x128xf32, #tpu.memory_space<vmem>>, %arg5: memref<512x128xf32, #tpu.memory_space<vmem>>) attributes {dimension_semantics = [#tpu.dimension_semantics<parallel>, #tpu.dimension_semantics<parallel>], iteration_bounds = array<i64: 2, 1>, scalar_prefetch = 0 : i64, scratch_operands = 0 : i64, tpu.core_type = #tpu.core_type<tc>, window_params = [{transform_indices = @transform_0, window_bounds = array<i64: 512, 80>}, {transform_indices = @transform_1, window_bounds = array<i64: 80, 128>}, {transform_indices = @transform_2, window_bounds = array<i64: 1, 128>}, {transform_indices = @transform_3, window_bounds = array<i64: 512, 128>}]} {
    %c0 = arith.constant 0 : index
    %c0_0 = arith.constant 0 : index
    %0 = vector.load %arg2[%c0, %c0_0] : memref<512x80xbf16, #tpu.memory_space<vmem>>, vector<512x80xbf16>
    %c0_1 = arith.constant 0 : index
    %c0_2 = arith.constant 0 : index
    %1 = vector.load %arg3[%c0_1, %c0_2] : memref<80x128xbf16, #tpu.memory_space<vmem>>, vector<80x128xbf16>
    %cst = arith.constant dense<0.000000e+00> : vector<512x128xf32>
    %2 = tpu.matmul %0, %1, %cst {dimension_numbers = #tpu.dot_dimension_numbers<[1], [0], [0], [1], [0, 0, 1, 1], [], []>} : vector<512x80xbf16>, vector<80x128xbf16>, vector<512x128xf32> -> vector<512x128xf32>
    %c0_3 = arith.constant 0 : index
    %c0_4 = arith.constant 0 : index
    %3 = vector.load %arg4[%c0_3, %c0_4] : memref<1x128xf32, #tpu.memory_space<vmem>>, vector<1x128xf32>
    %4 = vector.broadcast %3 : vector<1x128xf32> to vector<512x128xf32>
    %5 = arith.addf %2, %4 : vector<512x128xf32>
    %6 = arith.negf %5 : vector<512x128xf32>
    %7 = math.exp %6 : vector<512x128xf32>
    %cst_5 = arith.constant 1.000000e+00 : f32
    %8 = vector.broadcast %cst_5 : f32 to vector<512x128xf32>
    %9 = arith.addf %8, %7 : vector<512x128xf32>
    %10 = arith.divf %8, %9 : vector<512x128xf32>
    %c0_6 = arith.constant 0 : index
    %c0_7 = arith.constant 0 : index
    %11 = vector.load %arg5[%c0_6, %c0_7] : memref<512x128xf32, #tpu.memory_space<vmem>>, vector<512x128xf32>
    tpu.vector_store %arg5[%c0_6, %c0_7], %10 {strides = array<i32>} : memref<512x128xf32, #tpu.memory_space<vmem>>, vector<512x128xf32>,
    return
  }
  func.func @transform_0(%arg0: i32, %arg1: i32) -> (i32, i32) {
    %c0_i32 = arith.constant 0 : i32
    %c0_i32_0 = arith.constant 0 : i32
    return %arg0, %c0_i32 : i32, i32
  }
  func.func @transform_1(%arg0: i32, %arg1: i32) -> (i32, i32) {
    %c0_i32 = arith.constant 0 : i32
    %c0_i32_0 = arith.constant 0 : i32
    return %c0_i32, %arg1 : i32, i32
  }
  func.func @transform_2(%arg0: i32, %arg1: i32) -> (i32, i32) {
    %c0_i32 = arith.constant 0 : i32
    %c0_i32_0 = arith.constant 0 : i32
    return %c0_i32, %arg1 : i32, i32
  }
  func.func @transform_3(%arg0: i32, %arg1: i32) -> (i32, i32) {
    %c0_i32 = arith.constant 0 : i32
    return %arg0, %arg1 : i32, i32
  }
}

</mosaic_0001>

<bundles_post_ra>
// kernel: _lambda_.27
= control target key start
LH: loop header
LB: loop body
LE: loop exit
PB: predicated region body
PF: predicated region fallthrough
CT: control target
= control target key end

     0   :  { %s1873_s12 = smov 0   ;;  %s1875_s13 = smov 0   ;;  %s2085_s0 = inlined_call_operand.vmem [shape: bf16[1024,16], index: 0, kind: input, shape index: {}]   ;;  %s2086_s1 = inlined_call_operand.vmem [shape: bf16[16,128], index: 1, kind: input, shape index: {}]   ;;  %s2087_s2 = inlined_call_operand.vmem [shape: f32[1,128], index: 2, kind: input, shape index: {}]   ;;  %s2088_s3 = inlined_call_operand.vmem [shape: bf16[1024,128], index: 3, kind: output, shape index: {}]  }
   0x1   :  { %s1877_s14 = smov 0  }
   0x2 LB: > { %s25_s15 = sadd.s32 1, %s1847_s13  ;;  %p1279_p0 = scmp.ge.s32.totalorder %s1851_s14, 1  ;;  %s1851_s14 = sphi %s1877_s14, %s13_s14   ;;  %s1847_s13 = sphi %s1875_s13, %s2090_s13   ;;  %s1843_s12 = sphi %s1873_s12, %s2089_s12  }
   0x3   : > { %p27_p1 = scmp.ge.s32.totalorder %s25_s15, 2  ;;  %p169_p2 = scmp.lt.s32.totalorder %s1851_s14, 3 }
   0x5   : > { %s2092_s15 = smov (%p27_p1, %s25_s15), 0  ;;  %p170_p3 = pnand %p1279_p0, %p169_p2 }
   0x6   : > { %s1280_s18 = sshll.u32 (!%p170_p3), %s1843_s12, 6 }
   0x7   : > { %173 = sbr.rel (%p170_p3) target bundleno = 278 (0x116), region = 32  ;;  %p204_p4 = scmp.lt.s32.totalorder (!%p170_p3), %s1280_s18, 127 }
   0xc   : > { %v1796_v0 = vld [vmem:[%s2086_s1] sm:$0xff]   ;;  %s2094_s18 = smov (!%p204_p4, %s1280_s18), 127  ;;  %vm465_vm0 = vcmask 130048  }
   0xd   : > { %1704 = vmatprep.subr.bf16.mxu0 %v1796_v0  ;;  %1770 = vmatprep.subr.bf16.mxu1 %v1796_v0  ;;  %s1281_s19 = sshll.u32 %s2094_s18, 2  ;;  %v1971_v35 = vld [vmem:[%s2087_s2] ss:$0 sm:$0xff] }
   0xe   : > { %1705 = vmatpush3.bf16.msra.mxu0 %v1796_v0  ;;  %1771 = vmatpush3.bf16.msra.mxu1 %v1796_v0  ;;  %s1902_s22 = scalar_lea.vmem %s2085_s0, %s1281_s19  ;;  %s1981_s27 = scalar_lea.vmem %s2088_s3, %s1281_s19 }
   0xf   : > { %v1797_v1 = vld [vmem:[%s1902_s22] sm:$0xff]   ;;  %v1799_v3 = vld [vmem:[%s1902_s22 + $0x8] sm:$0xff]   ;;  %v1801_v5 = vld [vmem:[%s1902_s22 + $0x10] sm:$0xff]  }
  0x10   : > { %v1798_v2 = vld [vmem:[%s1902_s22 + $0x80] sm:$0xff]   ;;  %1706 = vmatprep.mubr.msk.bf16.mxu0 %vm465_vm0, %v1797_v1  ;;  %v1800_v4 = vld [vmem:[%s1902_s22 + $0x88] sm:$0xff]   ;;  %v1802_v6 = vld [vmem:[%s1902_s22 + $0x90] sm:$0xff]  }
  0x11   : > { %1738 = vmatprep.mubr.msk.bf16.mxu1 %vm465_vm0, %v1798_v2  ;;  %1707 = vmatmul.mubr.msk.bf16.vlgmr.msra.gmra.mxu0 %vm465_vm0, %v1799_v3  ;;  %v1803_v7 = vld [vmem:[%s1902_s22 + $0x18] sm:$0xff]   ;;  %v1805_v9 = vld [vmem:[%s1902_s22 + $0x20] sm:$0xff]   ;;  %v1807_v11 = vld [vmem:[%s1902_s22 + $0x28] sm:$0xff]  }
  0x12   : > { %1739 = vmatmul.mubr.msk.bf16.vlgmr.msra.gmra.mxu1 %vm465_vm0, %v1800_v4  ;;  %1710 = vmatprep.mubr.msk.bf16.mxu0 %vm465_vm0, %v1801_v5  ;;  %v1804_v8 = vld [vmem:[%s1902_s22 + $0x98] sm:$0xff]   ;;  %v1806_v10 = vld [vmem:[%s1902_s22 + $0xa0] sm:$0xff]   ;;  %v1808_v12 = vld [vmem:[%s1902_s22 + $0xa8] sm:$0xff]  }
  0x13   : > { %1742 = vmatprep.mubr.msk.bf16.mxu1 %vm465_vm0, %v1802_v6  ;;  %v1809_v13 = vld [vmem:[%s1902_s22 + $0x30] sm:$0xff]   ;;  %v1811_v15 = vld [vmem:[%s1902_s22 + $0x38] sm:$0xff]   ;;  %v1813_v17 = vld [vmem:[%s1902_s22 + $0x40] sm:$0xff]  }
  0x14   : > { %v1810_v14 = vld [vmem:[%s1902_s22 + $0xb0] sm:$0xff]   ;;  %v1812_v16 = vld [vmem:[%s1902_s22 + $0xb8] sm:$0xff]   ;;  %v1814_v18 = vld [vmem:[%s1902_s22 + $0xc0] sm:$0xff]  }
  0x15   : > { %v1815_v19 = vld [vmem:[%s1902_s22 + $0x48] sm:$0xff]   ;;  %v1817_v21 = vld [vmem:[%s1902_s22 + $0x50] sm:$0xff]   ;;  %v1819_v23 = vld [vmem:[%s1902_s22 + $0x58] sm:$0xff]  }
  0x16   : > { %v1816_v20 = vld [vmem:[%s1902_s22 + $0xc8] sm:$0xff]   ;;  %v1818_v22 = vld [vmem:[%s1902_s22 + $0xd0] sm:$0xff]   ;;  %v1820_v24 = vld [vmem:[%s1902_s22 + $0xd8] sm:$0xff]  }
  0x17   : > { %v1821_v25 = vld [vmem:[%s1902_s22 + $0x60] sm:$0xff]   ;;  %v1823_v27 = vld [vmem:[%s1902_s22 + $0x68] sm:$0xff]   ;;  %v1825_v29 = vld [vmem:[%s1902_s22 + $0x70] sm:$0xff]  }
  0x18   : > { %v1822_v26 = vld [vmem:[%s1902_s22 + $0xe0] sm:$0xff]   ;;  %v1824_v28 = vld [vmem:[%s1902_s22 + $0xe8] sm:$0xff]   ;;  %v1826_v30 = vld [vmem:[%s1902_s22 + $0xf0] sm:$0xff]  }
  0x19   : > { %1711 = vmatmul.mubr.msk.bf16.gmra.mxu0 %vm465_vm0, %v1803_v7  ;;  %v1827_v31 = vld [vmem:[%s1902_s22 + $0x78] sm:$0xff]  }
  0x1a   : > { %1743 = vmatmul.mubr.msk.bf16.gmra.mxu1 %vm465_vm0, %v1804_v8  ;;  %1714 = vmatprep.mubr.msk.bf16.mxu0 %vm465_vm0, %v1805_v9  ;;  %v1828_v32 = vld [vmem:[%s1902_s22 + $0xf8] sm:$0xff]  }
  0x1b   : > { %1746 = vmatprep.mubr.msk.bf16.mxu1 %vm465_vm0, %v1806_v10 }
  0x21   : > { %1715 = vmatmul.mubr.msk.bf16.gmra.mxu0 %vm465_vm0, %v1807_v11 }
  0x22   : > { %1747 = vmatmul.mubr.msk.bf16.gmra.mxu1 %vm465_vm0, %v1808_v12  ;;  %1718 = vmatprep.mubr.msk.bf16.mxu0 %vm465_vm0, %v1809_v13 }
  0x23   : > { %1750 = vmatprep.mubr.msk.bf16.mxu1 %vm465_vm0, %v1810_v14 }
  0x29   : > { %1719 = vmatmul.mubr.msk.bf16.gmra.mxu0 %vm465_vm0, %v1811_v15 }
  0x2a   : > { %1751 = vmatmul.mubr.msk.bf16.gmra.mxu1 %vm465_vm0, %v1812_v16  ;;  %1722 = vmatprep.mubr.msk.bf16.mxu0 %vm465_vm0, %v1813_v17 }
  0x2b   : > { %1754 = vmatprep.mubr.msk.bf16.mxu1 %vm465_vm0, %v1814_v18 }
  0x31   : > { %1723 = vmatmul.mubr.msk.bf16.gmra.mxu0 %vm465_vm0, %v1815_v19 }
  0x32   : > { %1755 = vmatmul.mubr.msk.bf16.gmra.mxu1 %vm465_vm0, %v1816_v20  ;;  %1726 = vmatprep.mubr.msk.bf16.mxu0 %vm465_vm0, %v1817_v21 }
  0x33   : > { %1758 = vmatprep.mubr.msk.bf16.mxu1 %vm465_vm0, %v1818_v22 }
  0x39   : > { %1727 = vmatmul.mubr.msk.bf16.gmra.mxu0 %vm465_vm0, %v1819_v23 }
  0x3a   : > { %1759 = vmatmul.mubr.msk.bf16.gmra.mxu1 %vm465_vm0, %v1820_v24  ;;  %1730 = vmatprep.mubr.msk.bf16.mxu0 %vm465_vm0, %v1821_v25 }
  0x3b   : > { %1762 = vmatprep.mubr.msk.bf16.mxu1 %vm465_vm0, %v1822_v26 }
  0x41   : > { %1731 = vmatmul.mubr.msk.bf16.gmra.mxu0 %vm465_vm0, %v1823_v27 }
  0x42   : > { %1763 = vmatmul.mubr.msk.bf16.gmra.mxu1 %vm465_vm0, %v1824_v28  ;;  %1734 = vmatprep.mubr.msk.bf16.mxu0 %vm465_vm0, %v1825_v29 }
  0x43   : > { %1766 = vmatprep.mubr.msk.bf16.mxu1 %vm465_vm0, %v1826_v30 }
  0x49   : > { %1735 = vmatmul.mubr.msk.bf16.gmra.mxu0 %vm465_vm0, %v1827_v31 }
  0x4a   : > { %1767 = vmatmul.mubr.msk.bf16.gmra.mxu1 %vm465_vm0, %v1828_v32 }
  0xd1   : > { %v1708_v33 = vpop.f32.mrf.mxu0 }
  0xd2   : > { %v1740_v34 = vpop.f32.mrf.mxu1  ;;  %v605_v39 = vadd.f32 %v1708_v33, %v1971_v35 }
  0xd3   : > { %v596_v36 = vpop.f32.mrf.mxu0  ;;  %v733_v42 = vadd.f32 %v1740_v34, %v1971_v35 }
  0xd4   : > { %v724_v37 = vpop.f32.mrf.mxu1  ;;  %v597_v45 = vadd.f32 %v1971_v35, %v596_v36 }
  0xd5   : > { %v1709_v38 = vpop.f32.mrf.mxu0  ;;  %v725_v49 = vadd.f32 %v1971_v35, %v724_v37 }
  0xd6   : > { %v608_v40 = vadd.f32 %v1709_v38, %v1971_v35  ;;  %v1741_v41 = vpop.f32.mrf.mxu1 }
  0xd7   : > { %v736_v43 = vadd.f32 %v1741_v41, %v1971_v35  ;;  %v599_v44 = vpop.f32.mrf.mxu0 }
  0xd8   : > { %v1488_v46 = vpack.c.bf16 %v608_v40, %v605_v39  ;;  %v600_v47 = vadd.f32 %v1971_v35, %v599_v44  ;;  %v727_v48 = vpop.f32.mrf.mxu1 }
  0xd9   : > { %v1568_v50 = vpack.c.bf16 %v736_v43, %v733_v42  ;;  %v728_v51 = vadd.f32 %v1971_v35, %v727_v48  ;;  %v1712_v52 = vpop.f32.mrf.mxu0 }
  0xda   : > { %1640 = vst [vmem:[%s1981_s27 + $0x8] sm:$0xff] %v1488_v46   ;;  %v1483_v53 = vpack.c.bf16 %v600_v47, %v597_v45  ;;  %v1744_v54 = vpop.f32.mrf.mxu1  ;;  %v621_v59 = vadd.f32 %v1712_v52, %v1971_v35 }
  0xdb   : > { %1656 = vst [vmem:[%s1981_s27 + $0x88] sm:$0xff] %v1568_v50   ;;  %v1563_v55 = vpack.c.bf16 %v728_v51, %v725_v49  ;;  %v612_v56 = vpop.f32.mrf.mxu0  ;;  %v749_v62 = vadd.f32 %v1744_v54, %v1971_v35 }
  0xdc   : > { %1484 = vst [vmem:[%s1981_s27] sm:$0xff] %v1483_v53   ;;  %v740_v57 = vpop.f32.mrf.mxu1  ;;  %v613_v1 = vadd.f32 %v1971_v35, %v612_v56 }
  0xdd   : > { %1655 = vst [vmem:[%s1981_s27 + $0x80] sm:$0xff] %v1563_v55   ;;  %v1713_v58 = vpop.f32.mrf.mxu0  ;;  %v741_v5 = vadd.f32 %v1971_v35, %v740_v57 }
  0xde   : > { %v624_v60 = vadd.f32 %v1713_v58, %v1971_v35  ;;  %v1745_v61 = vpop.f32.mrf.mxu1 }
  0xdf   : > { %v752_v63 = vadd.f32 %v1745_v61, %v1971_v35  ;;  %v615_v0 = vpop.f32.mrf.mxu0 }
  0xe0   : > { %v1498_v2 = vpack.c.bf16 %v624_v60, %v621_v59  ;;  %v616_v3 = vadd.f32 %v1971_v35, %v615_v0  ;;  %v743_v4 = vpop.f32.mrf.mxu1 }
  0xe1   : > { %v1578_v6 = vpack.c.bf16 %v752_v63, %v749_v62  ;;  %v744_v7 = vadd.f32 %v1971_v35, %v743_v4  ;;  %v1716_v8 = vpop.f32.mrf.mxu0 }
  0xe2   : > { %1642 = vst [vmem:[%s1981_s27 + $0x18] sm:$0xff] %v1498_v2   ;;  %v1493_v9 = vpack.c.bf16 %v616_v3, %v613_v1  ;;  %v1748_v10 = vpop.f32.mrf.mxu1  ;;  %v637_v15 = vadd.f32 %v1716_v8, %v1971_v35 }
  0xe3   : > { %1658 = vst [vmem:[%s1981_s27 + $0x98] sm:$0xff] %v1578_v6   ;;  %v1573_v11 = vpack.c.bf16 %v744_v7, %v741_v5  ;;  %v628_v12 = vpop.f32.mrf.mxu0  ;;  %v765_v18 = vadd.f32 %v1748_v10, %v1971_v35 }
  0xe4   : > { %1641 = vst [vmem:[%s1981_s27 + $0x10] sm:$0xff] %v1493_v9   ;;  %v756_v13 = vpop.f32.mrf.mxu1  ;;  %v629_v21 = vadd.f32 %v1971_v35, %v628_v12 }
  0xe5   : > { %1657 = vst [vmem:[%s1981_s27 + $0x90] sm:$0xff] %v1573_v11   ;;  %v1717_v14 = vpop.f32.mrf.mxu0  ;;  %v757_v25 = vadd.f32 %v1971_v35, %v756_v13 }
  0xe6   : > { %v640_v16 = vadd.f32 %v1717_v14, %v1971_v35  ;;  %v1749_v17 = vpop.f32.mrf.mxu1 }
  0xe7   : > { %v768_v19 = vadd.f32 %v1749_v17, %v1971_v35  ;;  %v631_v20 = vpop.f32.mrf.mxu0 }
  0xe8   : > { %v1508_v22 = vpack.c.bf16 %v640_v16, %v637_v15  ;;  %v632_v23 = vadd.f32 %v1971_v35, %v631_v20  ;;  %v759_v24 = vpop.f32.mrf.mxu1 }
  0xe9   : > { %v1588_v26 = vpack.c.bf16 %v768_v19, %v765_v18  ;;  %v760_v27 = vadd.f32 %v1971_v35, %v759_v24  ;;  %v1720_v28 = vpop.f32.mrf.mxu0 }
  0xea   : > { %1644 = vst [vmem:[%s1981_s27 + $0x28] sm:$0xff] %v1508_v22   ;;  %v1503_v29 = vpack.c.bf16 %v632_v23, %v629_v21  ;;  %v1752_v30 = vpop.f32.mrf.mxu1  ;;  %v653_v36 = vadd.f32 %v1720_v28, %v1971_v35 }
  0xeb   : > { %1660 = vst [vmem:[%s1981_s27 + $0xa8] sm:$0xff] %v1588_v26   ;;  %v1583_v31 = vpack.c.bf16 %v760_v27, %v757_v25  ;;  %v644_v32 = vpop.f32.mrf.mxu0  ;;  %v781_v39 = vadd.f32 %v1752_v30, %v1971_v35 }
  0xec   : > { %1643 = vst [vmem:[%s1981_s27 + $0x20] sm:$0xff] %v1503_v29   ;;  %v772_v33 = vpop.f32.mrf.mxu1  ;;  %v645_v42 = vadd.f32 %v1971_v35, %v644_v32 }
  0xed   : > { %1659 = vst [vmem:[%s1981_s27 + $0xa0] sm:$0xff] %v1583_v31   ;;  %v1721_v34 = vpop.f32.mrf.mxu0  ;;  %v773_v46 = vadd.f32 %v1971_v35, %v772_v33 }
  0xee   : > { %v656_v37 = vadd.f32 %v1721_v34, %v1971_v35  ;;  %v1753_v38 = vpop.f32.mrf.mxu1 }
  0xef   : > { %v784_v40 = vadd.f32 %v1753_v38, %v1971_v35  ;;  %v647_v41 = vpop.f32.mrf.mxu0 }
  0xf0   : > { %v1518_v43 = vpack.c.bf16 %v656_v37, %v653_v36  ;;  %v648_v44 = vadd.f32 %v1971_v35, %v647_v41  ;;  %v775_v45 = vpop.f32.mrf.mxu1 }
  0xf1   : > { %v1598_v47 = vpack.c.bf16 %v784_v40, %v781_v39  ;;  %v776_v48 = vadd.f32 %v1971_v35, %v775_v45  ;;  %v1724_v49 = vpop.f32.mrf.mxu0 }
  0xf2   : > { %1646 = vst [vmem:[%s1981_s27 + $0x38] sm:$0xff] %v1518_v43   ;;  %v1513_v50 = vpack.c.bf16 %v648_v44, %v645_v42  ;;  %v1756_v51 = vpop.f32.mrf.mxu1  ;;  %v669_v56 = vadd.f32 %v1724_v49, %v1971_v35 }
  0xf3   : > { %1662 = vst [vmem:[%s1981_s27 + $0xb8] sm:$0xff] %v1598_v47   ;;  %v1593_v52 = vpack.c.bf16 %v776_v48, %v773_v46  ;;  %v660_v53 = vpop.f32.mrf.mxu0  ;;  %v797_v59 = vadd.f32 %v1756_v51, %v1971_v35 }
  0xf4   : > { %1645 = vst [vmem:[%s1981_s27 + $0x30] sm:$0xff] %v1513_v50   ;;  %v788_v54 = vpop.f32.mrf.mxu1  ;;  %v661_v62 = vadd.f32 %v1971_v35, %v660_v53 }
  0xf5   : > { %1661 = vst [vmem:[%s1981_s27 + $0xb0] sm:$0xff] %v1593_v52   ;;  %v1725_v55 = vpop.f32.mrf.mxu0  ;;  %v789_v2 = vadd.f32 %v1971_v35, %v788_v54 }
  0xf6   : > { %v672_v57 = vadd.f32 %v1725_v55, %v1971_v35  ;;  %v1757_v58 = vpop.f32.mrf.mxu1 }
  0xf7   : > { %v800_v60 = vadd.f32 %v1757_v58, %v1971_v35  ;;  %v663_v61 = vpop.f32.mrf.mxu0 }
  0xf8   : > { %v1528_v63 = vpack.c.bf16 %v672_v57, %v669_v56  ;;  %v664_v0 = vadd.f32 %v1971_v35, %v663_v61  ;;  %v791_v1 = vpop.f32.mrf.mxu1 }
  0xf9   : > { %v1608_v3 = vpack.c.bf16 %v800_v60, %v797_v59  ;;  %v792_v4 = vadd.f32 %v1971_v35, %v791_v1  ;;  %v1728_v5 = vpop.f32.mrf.mxu0 }
  0xfa   : > { %1648 = vst [vmem:[%s1981_s27 + $0x48] sm:$0xff] %v1528_v63   ;;  %v1523_v6 = vpack.c.bf16 %v664_v0, %v661_v62  ;;  %v1760_v7 = vpop.f32.mrf.mxu1  ;;  %v685_v12 = vadd.f32 %v1728_v5, %v1971_v35 }
  0xfb   : > { %1664 = vst [vmem:[%s1981_s27 + $0xc8] sm:$0xff] %v1608_v3   ;;  %v1603_v8 = vpack.c.bf16 %v792_v4, %v789_v2  ;;  %v676_v9 = vpop.f32.mrf.mxu0  ;;  %v813_v15 = vadd.f32 %v1760_v7, %v1971_v35 }
  0xfc   : > { %1647 = vst [vmem:[%s1981_s27 + $0x40] sm:$0xff] %v1523_v6   ;;  %v804_v10 = vpop.f32.mrf.mxu1  ;;  %v677_v18 = vadd.f32 %v1971_v35, %v676_v9 }
  0xfd   : > { %1663 = vst [vmem:[%s1981_s27 + $0xc0] sm:$0xff] %v1603_v8   ;;  %v1729_v11 = vpop.f32.mrf.mxu0  ;;  %v805_v22 = vadd.f32 %v1971_v35, %v804_v10 }
  0xfe   : > { %v688_v13 = vadd.f32 %v1729_v11, %v1971_v35  ;;  %v1761_v14 = vpop.f32.mrf.mxu1 }
  0xff   : > { %v816_v16 = vadd.f32 %v1761_v14, %v1971_v35  ;;  %v679_v17 = vpop.f32.mrf.mxu0 }
 0x100   : > { %v1538_v19 = vpack.c.bf16 %v688_v13, %v685_v12  ;;  %v680_v20 = vadd.f32 %v1971_v35, %v679_v17  ;;  %v807_v21 = vpop.f32.mrf.mxu1 }
 0x101   : > { %v1618_v23 = vpack.c.bf16 %v816_v16, %v813_v15  ;;  %v808_v24 = vadd.f32 %v1971_v35, %v807_v21  ;;  %v1732_v25 = vpop.f32.mrf.mxu0 }
 0x102   : > { %1650 = vst [vmem:[%s1981_s27 + $0x58] sm:$0xff] %v1538_v19   ;;  %v1533_v26 = vpack.c.bf16 %v680_v20, %v677_v18  ;;  %v1764_v27 = vpop.f32.mrf.mxu1  ;;  %v701_v32 = vadd.f32 %v1732_v25, %v1971_v35 }
 0x103   : > { %1666 = vst [vmem:[%s1981_s27 + $0xd8] sm:$0xff] %v1618_v23   ;;  %v1613_v28 = vpack.c.bf16 %v808_v24, %v805_v22  ;;  %v692_v29 = vpop.f32.mrf.mxu0  ;;  %v829_v36 = vadd.f32 %v1764_v27, %v1971_v35 }
 0x104   : > { %1649 = vst [vmem:[%s1981_s27 + $0x50] sm:$0xff] %v1533_v26   ;;  %v820_v30 = vpop.f32.mrf.mxu1  ;;  %v693_v39 = vadd.f32 %v1971_v35, %v692_v29 }
 0x105   : > { %1665 = vst [vmem:[%s1981_s27 + $0xd0] sm:$0xff] %v1613_v28   ;;  %v1733_v31 = vpop.f32.mrf.mxu0  ;;  %v821_v43 = vadd.f32 %v1971_v35, %v820_v30 }
 0x106   : > { %v704_v33 = vadd.f32 %v1733_v31, %v1971_v35  ;;  %v1765_v34 = vpop.f32.mrf.mxu1 }
 0x107   : > { %v832_v37 = vadd.f32 %v1765_v34, %v1971_v35  ;;  %v695_v38 = vpop.f32.mrf.mxu0 }
 0x108   : > { %v1548_v40 = vpack.c.bf16 %v704_v33, %v701_v32  ;;  %v696_v41 = vadd.f32 %v1971_v35, %v695_v38  ;;  %v823_v42 = vpop.f32.mrf.mxu1 }
 0x109   : > { %v1628_v44 = vpack.c.bf16 %v832_v37, %v829_v36  ;;  %v824_v45 = vadd.f32 %v1971_v35, %v823_v42  ;;  %v1736_v46 = vpop.f32.mrf.mxu0 }
 0x10a   : > { %1652 = vst [vmem:[%s1981_s27 + $0x68] sm:$0xff] %v1548_v40   ;;  %v1543_v47 = vpack.c.bf16 %v696_v41, %v693_v39  ;;  %v1768_v48 = vpop.f32.mrf.mxu1  ;;  %v717_v53 = vadd.f32 %v1736_v46, %v1971_v35 }
 0x10b   : > { %1668 = vst [vmem:[%s1981_s27 + $0xe8] sm:$0xff] %v1628_v44   ;;  %v1623_v49 = vpack.c.bf16 %v824_v45, %v821_v43  ;;  %v708_v50 = vpop.f32.mrf.mxu0  ;;  %v845_v56 = vadd.f32 %v1768_v48, %v1971_v35 }
 0x10c   : > { %1651 = vst [vmem:[%s1981_s27 + $0x60] sm:$0xff] %v1543_v47   ;;  %v836_v51 = vpop.f32.mrf.mxu1  ;;  %v709_v59 = vadd.f32 %v1971_v35, %v708_v50 }
 0x10d   : > { %1667 = vst [vmem:[%s1981_s27 + $0xe0] sm:$0xff] %v1623_v49   ;;  %v1737_v52 = vpop.f32.mrf.mxu0  ;;  %v837_v63 = vadd.f32 %v1971_v35, %v836_v51 }
 0x10e   : > { %v720_v54 = vadd.f32 %v1737_v52, %v1971_v35  ;;  %v1769_v55 = vpop.f32.mrf.mxu1 }
 0x10f   : > { %v848_v57 = vadd.f32 %v1769_v55, %v1971_v35  ;;  %v711_v58 = vpop.f32.mrf.mxu0 }
 0x110   : > { %v1558_v60 = vpack.c.bf16 %v720_v54, %v717_v53  ;;  %v712_v61 = vadd.f32 %v1971_v35, %v711_v58  ;;  %v839_v62 = vpop.f32.mrf.mxu1 }
 0x111   : > { %v1638_v0 = vpack.c.bf16 %v848_v57, %v845_v56  ;;  %v840_v1 = vadd.f32 %v1971_v35, %v839_v62 }
 0x112   : > { %1654 = vst [vmem:[%s1981_s27 + $0x78] sm:$0xff] %v1558_v60   ;;  %v1553_v2 = vpack.c.bf16 %v712_v61, %v709_v59 }
 0x113   : > { %1670 = vst [vmem:[%s1981_s27 + $0xf8] sm:$0xff] %v1638_v0   ;;  %v1633_v3 = vpack.c.bf16 %v840_v1, %v837_v63 }
 0x114   : > { %1653 = vst [vmem:[%s1981_s27 + $0x70] sm:$0xff] %v1553_v2  }
 0x115   : > { %1669 = vst [vmem:[%s1981_s27 + $0xf0] sm:$0xff] %v1633_v3  }
 0x116 PF: > { %s13_s14 = sadd.s32 1, %s1851_s14   ;;  %s2089_s12 = smov %s1847_s13 }
 0x117   : > { %p10_p5 = scmp.ge.s32.totalorder %s13_s14, 4   ;;  %s2090_s13 = smov %s2092_s15 }
 0x119   :  { %12 = sbr.rel (!%p10_p5) target bundleno = 2 (0x2), region = 68 }

// kernel: _lambda_.28
= control target key start
LH: loop header
LB: loop body
LE: loop exit
PB: predicated region body
PF: predicated region fallthrough
CT: control target
= control target key end

     0   :  { %s1933_s12 = smov 0   ;;  %s1935_s13 = smov 0   ;;  %s2157_s0 = inlined_call_operand.vmem [shape: bf16[1024,80], index: 0, kind: input, shape index: {}]   ;;  %s2158_s1 = inlined_call_operand.vmem [shape: bf16[80,128], index: 1, kind: input, shape index: {}]   ;;  %s2159_s2 = inlined_call_operand.vmem [shape: f32[1,128], index: 2, kind: input, shape index: {}]   ;;  %s2160_s3 = inlined_call_operand.vmem [shape: bf16[1024,128], index: 3, kind: output, shape index: {}]  }
   0x1   :  { %s1937_s14 = smov 0  }
   0x2 LB: > { %s25_s15 = sadd.s32 1, %s1907_s13  ;;  %p1311_p0 = scmp.ge.s32.totalorder %s1911_s14, 1  ;;  %s1911_s14 = sphi %s1937_s14, %s13_s14   ;;  %s1907_s13 = sphi %s1935_s13, %s2162_s13   ;;  %s1903_s12 = sphi %s1933_s12, %s2161_s12  }
   0x3   : > { %p27_p1 = scmp.ge.s32.totalorder %s25_s15, 2  ;;  %p169_p2 = scmp.lt.s32.totalorder %s1911_s14, 3 }
   0x5   : > { %s2164_s15 = smov (%p27_p1, %s25_s15), 0  ;;  %p170_p3 = pnand %p1311_p0, %p169_p2 }
   0x6   : > { %s1312_s18 = sshll.u32 (!%p170_p3), %s1903_s12, 6 }
   0x7   : > { %173 = sbr.rel (%p170_p3) target bundleno = 293 (0x125), region = 32  ;;  %p204_p4 = scmp.lt.s32.totalorder (!%p170_p3), %s1312_s18, 127 }
   0xc   : > { %v1852_v0 = vld [vmem:[%s2158_s1 + $0x20] sm:$0xff]   ;;  %v1853_v1 = vld [vmem:[%s2158_s1 + $0x18] sm:$0xff]   ;;  %s2166_s18 = smov (!%p204_p4, %s1312_s18), 127  ;;  %v1854_v2 = vld [vmem:[%s2158_s1 + $0x10] sm:$0xff]   ;;  %vm497_vm0 = vcmask 654336  }
   0xd   : > { %1744 = vmatprep.subr.bf16.mxu0 %v1852_v0  ;;  %1818 = vmatprep.subr.bf16.mxu1 %v1852_v0  ;;  %s1313_s23 = sshll.u32 %s2166_s18, 2  ;;  %v1855_v3 = vld [vmem:[%s2158_s1 + $0x8] sm:$0xff]   ;;  %v1856_v6 = vld [vmem:[%s2158_s1] sm:$0xff]  }
   0xe   : > { %1745 = vmatpush3.bf16.msra.mxu0 %v1852_v0  ;;  %1823 = vmatpush3.bf16.msra.mxu1 %v1852_v0  ;;  %s1971_s28 = scalar_lea.vmem %s2157_s0, %s1313_s23  ;;  %v2043_v39 = vld [vmem:[%s2159_s2] ss:$0 sm:$0xff]  ;;  %s2056_s8 = scalar_lea.vmem %s2160_s3, %s1313_s23 }
   0xf   : > { %1746 = vmatprep.subr.bf16.mxu0 %v1853_v1  ;;  %1819 = vmatprep.subr.bf16.mxu1 %v1853_v1  ;;  %v1857_v4 = vld [vmem:[%s1971_s28] sm:$0xff]   ;;  %v1859_v7 = vld [vmem:[%s1971_s28 + $0x8] sm:$0xff]   ;;  %v1861_v9 = vld [vmem:[%s1971_s28 + $0x10] sm:$0xff]  }
  0x10   : > { %v1858_v5 = vld [vmem:[%s1971_s28 + $0x80] sm:$0xff]   ;;  %1754 = vmatprep.mubr.msk.bf16.mxu0 %vm497_vm0, %v1857_v4  ;;  %v1860_v8 = vld [vmem:[%s1971_s28 + $0x88] sm:$0xff]   ;;  %v1862_v10 = vld [vmem:[%s1971_s28 + $0x90] sm:$0xff]  }
  0x11   : > { %1786 = vmatprep.mubr.msk.bf16.mxu1 %vm497_vm0, %v1858_v5  ;;  %v1863_v11 = vld [vmem:[%s1971_s28 + $0x18] sm:$0xff]   ;;  %v1865_v13 = vld [vmem:[%s1971_s28 + $0x20] sm:$0xff]   ;;  %v1867_v15 = vld [vmem:[%s1971_s28 + $0x28] sm:$0xff]  }
  0x12   : > { %1747 = vmatpush3.bf16.msra.mxu0 %v1853_v1  ;;  %1824 = vmatpush3.bf16.msra.mxu1 %v1853_v1  ;;  %v1864_v12 = vld [vmem:[%s1971_s28 + $0x98] sm:$0xff]   ;;  %v1866_v14 = vld [vmem:[%s1971_s28 + $0xa0] sm:$0xff]   ;;  %v1868_v16 = vld [vmem:[%s1971_s28 + $0xa8] sm:$0xff]  }
  0x13   : > { %1748 = vmatprep.subr.bf16.mxu0 %v1854_v2  ;;  %1820 = vmatprep.subr.bf16.mxu1 %v1854_v2  ;;  %v1869_v17 = vld [vmem:[%s1971_s28 + $0x30] sm:$0xff]   ;;  %v1871_v19 = vld [vmem:[%s1971_s28 + $0x38] sm:$0xff]   ;;  %v1873_v21 = vld [vmem:[%s1971_s28 + $0x40] sm:$0xff]  }
  0x14   : > { %v1870_v18 = vld [vmem:[%s1971_s28 + $0xb0] sm:$0xff]   ;;  %v1872_v20 = vld [vmem:[%s1971_s28 + $0xb8] sm:$0xff]   ;;  %v1874_v22 = vld [vmem:[%s1971_s28 + $0xc0] sm:$0xff]  }
  0x15   : > { %v1875_v23 = vld [vmem:[%s1971_s28 + $0x48] sm:$0xff]   ;;  %v1877_v25 = vld [vmem:[%s1971_s28 + $0x50] sm:$0xff]   ;;  %v1879_v27 = vld [vmem:[%s1971_s28 + $0x58] sm:$0xff]  }
  0x16   : > { %1749 = vmatpush3.bf16.msra.mxu0 %v1854_v2  ;;  %1825 = vmatpush3.bf16.msra.mxu1 %v1854_v2  ;;  %v1876_v24 = vld [vmem:[%s1971_s28 + $0xc8] sm:$0xff]   ;;  %v1878_v26 = vld [vmem:[%s1971_s28 + $0xd0] sm:$0xff]   ;;  %v1880_v28 = vld [vmem:[%s1971_s28 + $0xd8] sm:$0xff]  }
  0x17   : > { %1750 = vmatprep.subr.bf16.mxu0 %v1855_v3  ;;  %1821 = vmatprep.subr.bf16.mxu1 %v1855_v3  ;;  %v1881_v29 = vld [vmem:[%s1971_s28 + $0x60] sm:$0xff]   ;;  %v1883_v31 = vld [vmem:[%s1971_s28 + $0x68] sm:$0xff]   ;;  %v1885_v33 = vld [vmem:[%s1971_s28 + $0x70] sm:$0xff]  }
  0x18   : > { %v1882_v30 = vld [vmem:[%s1971_s28 + $0xe0] sm:$0xff]   ;;  %v1884_v32 = vld [vmem:[%s1971_s28 + $0xe8] sm:$0xff]   ;;  %v1886_v34 = vld [vmem:[%s1971_s28 + $0xf0] sm:$0xff]  }
  0x19   : > { %v1887_v35 = vld [vmem:[%s1971_s28 + $0x78] sm:$0xff]  }
  0x1a   : > { %1751 = vmatpush3.bf16.msra.mxu0 %v1855_v3  ;;  %1826 = vmatpush3.bf16.msra.mxu1 %v1855_v3  ;;  %v1888_v36 = vld [vmem:[%s1971_s28 + $0xf8] sm:$0xff]  }
  0x1b   : > { %1752 = vmatprep.subr.bf16.mxu0 %v1856_v6  ;;  %1822 = vmatprep.subr.bf16.mxu1 %v1856_v6 }
  0x1e   : > { %1753 = vmatpush3.bf16.msra.mxu0 %v1856_v6  ;;  %1827 = vmatpush3.bf16.msra.mxu1 %v1856_v6 }
  0x21   : > { %1755 = vmatmul.mubr.msk.bf16.vlgmr.msra.gmra.mxu0 %vm497_vm0, %v1859_v7  ;;  %1787 = vmatmul.mubr.msk.bf16.vlgmr.msra.gmra.mxu1 %vm497_vm0, %v1860_v8 }
  0x22   : > { %1758 = vmatprep.mubr.msk.bf16.mxu0 %vm497_vm0, %v1861_v9  ;;  %1790 = vmatprep.mubr.msk.bf16.mxu1 %vm497_vm0, %v1862_v10 }
  0x29   : > { %1759 = vmatmul.mubr.msk.bf16.gmra.mxu0 %vm497_vm0, %v1863_v11  ;;  %1791 = vmatmul.mubr.msk.bf16.gmra.mxu1 %vm497_vm0, %v1864_v12 }
  0x2a   : > { %1762 = vmatprep.mubr.msk.bf16.mxu0 %vm497_vm0, %v1865_v13  ;;  %1794 = vmatprep.mubr.msk.bf16.mxu1 %vm497_vm0, %v1866_v14 }
  0x31   : > { %1763 = vmatmul.mubr.msk.bf16.gmra.mxu0 %vm497_vm0, %v1867_v15  ;;  %1795 = vmatmul.mubr.msk.bf16.gmra.mxu1 %vm497_vm0, %v1868_v16 }
  0x32   : > { %1766 = vmatprep.mubr.msk.bf16.mxu0 %vm497_vm0, %v1869_v17  ;;  %1798 = vmatprep.mubr.msk.bf16.mxu1 %vm497_vm0, %v1870_v18 }
  0x39   : > { %1767 = vmatmul.mubr.msk.bf16.gmra.mxu0 %vm497_vm0, %v1871_v19  ;;  %1799 = vmatmul.mubr.msk.bf16.gmra.mxu1 %vm497_vm0, %v1872_v20 }
  0x3a   : > { %1770 = vmatprep.mubr.msk.bf16.mxu0 %vm497_vm0, %v1873_v21  ;;  %1802 = vmatprep.mubr.msk.bf16.mxu1 %vm497_vm0, %v1874_v22 }
  0x41   : > { %1771 = vmatmul.mubr.msk.bf16.gmra.mxu0 %vm497_vm0, %v1875_v23  ;;  %1803 = vmatmul.mubr.msk.bf16.gmra.mxu1 %vm497_vm0, %v1876_v24 }
  0x42   : > { %1774 = vmatprep.mubr.msk.bf16.mxu0 %vm497_vm0, %v1877_v25  ;;  %1806 = vmatprep.mubr.msk.bf16.mxu1 %vm497_vm0, %v1878_v26 }
  0x49   : > { %1775 = vmatmul.mubr.msk.bf16.gmra.mxu0 %vm497_vm0, %v1879_v27  ;;  %1807 = vmatmul.mubr.msk.bf16.gmra.mxu1 %vm497_vm0, %v1880_v28 }
  0x4a   : > { %1778 = vmatprep.mubr.msk.bf16.mxu0 %vm497_vm0, %v1881_v29  ;;  %1810 = vmatprep.mubr.msk.bf16.mxu1 %vm497_vm0, %v1882_v30 }
  0x51   : > { %1779 = vmatmul.mubr.msk.bf16.gmra.mxu0 %vm497_vm0, %v1883_v31  ;;  %1811 = vmatmul.mubr.msk.bf16.gmra.mxu1 %vm497_vm0, %v1884_v32 }
  0x52   : > { %1782 = vmatprep.mubr.msk.bf16.mxu0 %vm497_vm0, %v1885_v33  ;;  %1814 = vmatprep.mubr.msk.bf16.mxu1 %vm497_vm0, %v1886_v34 }
  0x59   : > { %1783 = vmatmul.mubr.msk.bf16.gmra.mxu0 %vm497_vm0, %v1887_v35  ;;  %1815 = vmatmul.mubr.msk.bf16.gmra.mxu1 %vm497_vm0, %v1888_v36 }
  0xe1   : > { %v1756_v37 = vpop.f32.mrf.mxu0  ;;  %v1788_v38 = vpop.f32.mrf.mxu1 }
  0xe2   : > { %v637_v44 = vadd.f32 %v1756_v37, %v2043_v39  ;;  %v765_v45 = vadd.f32 %v1788_v38, %v2043_v39 }
  0xe3   : > { %v628_v40 = vpop.f32.mrf.mxu0  ;;  %v756_v41 = vpop.f32.mrf.mxu1 }
  0xe4   : > { %v629_v48 = vadd.f32 %v2043_v39, %v628_v40  ;;  %v757_v49 = vadd.f32 %v2043_v39, %v756_v41 }
  0xe5   : > { %v1757_v42 = vpop.f32.mrf.mxu0  ;;  %v1789_v43 = vpop.f32.mrf.mxu1 }
  0xe6   : > { %v640_v46 = vadd.f32 %v1757_v42, %v2043_v39  ;;  %v768_v47 = vadd.f32 %v1789_v43, %v2043_v39 }
  0xe7   : > { %v631_v50 = vpop.f32.mrf.mxu0  ;;  %v759_v51 = vpop.f32.mrf.mxu1 }
  0xe8   : > { %v1524_v52 = vpack.c.bf16 %v640_v46, %v637_v44  ;;  %v1604_v53 = vpack.c.bf16 %v768_v47, %v765_v45  ;;  %v632_v54 = vadd.f32 %v2043_v39, %v631_v50  ;;  %v760_v55 = vadd.f32 %v2043_v39, %v759_v51 }
  0xe9   : > { %v1760_v56 = vpop.f32.mrf.mxu0  ;;  %v1792_v57 = vpop.f32.mrf.mxu1 }
  0xea   : > { %1676 = vst [vmem:[%s2056_s8 + $0x8] sm:$0xff] %v1524_v52   ;;  %1692 = vst [vmem:[%s2056_s8 + $0x88] sm:$0xff] %v1604_v53   ;;  %v1519_v58 = vpack.c.bf16 %v632_v54, %v629_v48  ;;  %v1599_v59 = vpack.c.bf16 %v760_v55, %v757_v49  ;;  %v653_v0 = vadd.f32 %v1760_v56, %v2043_v39 }
  0xeb   : > { %v644_v60 = vpop.f32.mrf.mxu0  ;;  %v772_v61 = vpop.f32.mrf.mxu1  ;;  %v781_v1 = vadd.f32 %v1792_v57, %v2043_v39 }
  0xec   : > { %1520 = vst [vmem:[%s2056_s8] sm:$0xff] %v1519_v58   ;;  %1691 = vst [vmem:[%s2056_s8 + $0x80] sm:$0xff] %v1599_v59   ;;  %v645_v4 = vadd.f32 %v2043_v39, %v644_v60  ;;  %v773_v5 = vadd.f32 %v2043_v39, %v772_v61 }
  0xed   : > { %v1761_v62 = vpop.f32.mrf.mxu0  ;;  %v1793_v63 = vpop.f32.mrf.mxu1 }
  0xee   : > { %v656_v2 = vadd.f32 %v1761_v62, %v2043_v39  ;;  %v784_v3 = vadd.f32 %v1793_v63, %v2043_v39 }
  0xef   : > { %v647_v6 = vpop.f32.mrf.mxu0  ;;  %v775_v7 = vpop.f32.mrf.mxu1 }
  0xf0   : > { %v1534_v8 = vpack.c.bf16 %v656_v2, %v653_v0  ;;  %v1614_v9 = vpack.c.bf16 %v784_v3, %v781_v1  ;;  %v648_v10 = vadd.f32 %v2043_v39, %v647_v6  ;;  %v776_v11 = vadd.f32 %v2043_v39, %v775_v7 }
  0xf1   : > { %v1764_v12 = vpop.f32.mrf.mxu0  ;;  %v1796_v13 = vpop.f32.mrf.mxu1 }
  0xf2   : > { %1678 = vst [vmem:[%s2056_s8 + $0x18] sm:$0xff] %v1534_v8   ;;  %1694 = vst [vmem:[%s2056_s8 + $0x98] sm:$0xff] %v1614_v9   ;;  %v1529_v14 = vpack.c.bf16 %v648_v10, %v645_v4  ;;  %v1609_v15 = vpack.c.bf16 %v776_v11, %v773_v5  ;;  %v669_v20 = vadd.f32 %v1764_v12, %v2043_v39 }
  0xf3   : > { %v660_v16 = vpop.f32.mrf.mxu0  ;;  %v788_v17 = vpop.f32.mrf.mxu1  ;;  %v797_v21 = vadd.f32 %v1796_v13, %v2043_v39 }
  0xf4   : > { %1677 = vst [vmem:[%s2056_s8 + $0x10] sm:$0xff] %v1529_v14   ;;  %1693 = vst [vmem:[%s2056_s8 + $0x90] sm:$0xff] %v1609_v15   ;;  %v661_v24 = vadd.f32 %v2043_v39, %v660_v16  ;;  %v789_v25 = vadd.f32 %v2043_v39, %v788_v17 }
  0xf5   : > { %v1765_v18 = vpop.f32.mrf.mxu0  ;;  %v1797_v19 = vpop.f32.mrf.mxu1 }
  0xf6   : > { %v672_v22 = vadd.f32 %v1765_v18, %v2043_v39  ;;  %v800_v23 = vadd.f32 %v1797_v19, %v2043_v39 }
  0xf7   : > { %v663_v26 = vpop.f32.mrf.mxu0  ;;  %v791_v27 = vpop.f32.mrf.mxu1 }
  0xf8   : > { %v1544_v28 = vpack.c.bf16 %v672_v22, %v669_v20  ;;  %v1624_v29 = vpack.c.bf16 %v800_v23, %v797_v21  ;;  %v664_v30 = vadd.f32 %v2043_v39, %v663_v26  ;;  %v792_v31 = vadd.f32 %v2043_v39, %v791_v27 }
  0xf9   : > { %v1768_v32 = vpop.f32.mrf.mxu0  ;;  %v1800_v33 = vpop.f32.mrf.mxu1 }
  0xfa   : > { %1680 = vst [vmem:[%s2056_s8 + $0x28] sm:$0xff] %v1544_v28   ;;  %1696 = vst [vmem:[%s2056_s8 + $0xa8] sm:$0xff] %v1624_v29   ;;  %v1539_v34 = vpack.c.bf16 %v664_v30, %v661_v24  ;;  %v1619_v35 = vpack.c.bf16 %v792_v31, %v789_v25  ;;  %v685_v41 = vadd.f32 %v1768_v32, %v2043_v39 }
  0xfb   : > { %v676_v36 = vpop.f32.mrf.mxu0  ;;  %v804_v37 = vpop.f32.mrf.mxu1  ;;  %v813_v42 = vadd.f32 %v1800_v33, %v2043_v39 }
  0xfc   : > { %1679 = vst [vmem:[%s2056_s8 + $0x20] sm:$0xff] %v1539_v34   ;;  %1695 = vst [vmem:[%s2056_s8 + $0xa0] sm:$0xff] %v1619_v35   ;;  %v677_v45 = vadd.f32 %v2043_v39, %v676_v36  ;;  %v805_v46 = vadd.f32 %v2043_v39, %v804_v37 }
  0xfd   : > { %v1769_v38 = vpop.f32.mrf.mxu0  ;;  %v1801_v40 = vpop.f32.mrf.mxu1 }
  0xfe   : > { %v688_v43 = vadd.f32 %v1769_v38, %v2043_v39  ;;  %v816_v44 = vadd.f32 %v1801_v40, %v2043_v39 }
  0xff   : > { %v679_v47 = vpop.f32.mrf.mxu0  ;;  %v807_v48 = vpop.f32.mrf.mxu1 }
 0x100   : > { %v1554_v49 = vpack.c.bf16 %v688_v43, %v685_v41  ;;  %v1634_v50 = vpack.c.bf16 %v816_v44, %v813_v42  ;;  %v680_v51 = vadd.f32 %v2043_v39, %v679_v47  ;;  %v808_v52 = vadd.f32 %v2043_v39, %v807_v48 }
 0x101   : > { %v1772_v53 = vpop.f32.mrf.mxu0  ;;  %v1804_v54 = vpop.f32.mrf.mxu1 }
 0x102   : > { %1682 = vst [vmem:[%s2056_s8 + $0x38] sm:$0xff] %v1554_v49   ;;  %1698 = vst [vmem:[%s2056_s8 + $0xb8] sm:$0xff] %v1634_v50   ;;  %v1549_v55 = vpack.c.bf16 %v680_v51, %v677_v45  ;;  %v1629_v56 = vpack.c.bf16 %v808_v52, %v805_v46  ;;  %v701_v61 = vadd.f32 %v1772_v53, %v2043_v39 }
 0x103   : > { %v692_v57 = vpop.f32.mrf.mxu0  ;;  %v820_v58 = vpop.f32.mrf.mxu1  ;;  %v829_v62 = vadd.f32 %v1804_v54, %v2043_v39 }
 0x104   : > { %1681 = vst [vmem:[%s2056_s8 + $0x30] sm:$0xff] %v1549_v55   ;;  %1697 = vst [vmem:[%s2056_s8 + $0xb0] sm:$0xff] %v1629_v56   ;;  %v693_v1 = vadd.f32 %v2043_v39, %v692_v57  ;;  %v821_v2 = vadd.f32 %v2043_v39, %v820_v58 }
 0x105   : > { %v1773_v59 = vpop.f32.mrf.mxu0  ;;  %v1805_v60 = vpop.f32.mrf.mxu1 }
 0x106   : > { %v704_v63 = vadd.f32 %v1773_v59, %v2043_v39  ;;  %v832_v0 = vadd.f32 %v1805_v60, %v2043_v39 }
 0x107   : > { %v695_v3 = vpop.f32.mrf.mxu0  ;;  %v823_v4 = vpop.f32.mrf.mxu1 }
 0x108   : > { %v1564_v5 = vpack.c.bf16 %v704_v63, %v701_v61  ;;  %v1644_v6 = vpack.c.bf16 %v832_v0, %v829_v62  ;;  %v696_v7 = vadd.f32 %v2043_v39, %v695_v3  ;;  %v824_v8 = vadd.f32 %v2043_v39, %v823_v4 }
 0x109   : > { %v1776_v9 = vpop.f32.mrf.mxu0  ;;  %v1808_v10 = vpop.f32.mrf.mxu1 }
 0x10a   : > { %1684 = vst [vmem:[%s2056_s8 + $0x48] sm:$0xff] %v1564_v5   ;;  %1700 = vst [vmem:[%s2056_s8 + $0xc8] sm:$0xff] %v1644_v6   ;;  %v1559_v11 = vpack.c.bf16 %v696_v7, %v693_v1  ;;  %v1639_v12 = vpack.c.bf16 %v824_v8, %v821_v2  ;;  %v717_v17 = vadd.f32 %v1776_v9, %v2043_v39 }
 0x10b   : > { %v708_v13 = vpop.f32.mrf.mxu0  ;;  %v836_v14 = vpop.f32.mrf.mxu1  ;;  %v845_v18 = vadd.f32 %v1808_v10, %v2043_v39 }
 0x10c   : > { %1683 = vst [vmem:[%s2056_s8 + $0x40] sm:$0xff] %v1559_v11   ;;  %1699 = vst [vmem:[%s2056_s8 + $0xc0] sm:$0xff] %v1639_v12   ;;  %v709_v21 = vadd.f32 %v2043_v39, %v708_v13  ;;  %v837_v22 = vadd.f32 %v2043_v39, %v836_v14 }
 0x10d   : > { %v1777_v15 = vpop.f32.mrf.mxu0  ;;  %v1809_v16 = vpop.f32.mrf.mxu1 }
 0x10e   : > { %v720_v19 = vadd.f32 %v1777_v15, %v2043_v39  ;;  %v848_v20 = vadd.f32 %v1809_v16, %v2043_v39 }
 0x10f   : > { %v711_v23 = vpop.f32.mrf.mxu0  ;;  %v839_v24 = vpop.f32.mrf.mxu1 }
 0x110   : > { %v1574_v25 = vpack.c.bf16 %v720_v19, %v717_v17  ;;  %v1654_v26 = vpack.c.bf16 %v848_v20, %v845_v18  ;;  %v712_v27 = vadd.f32 %v2043_v39, %v711_v23  ;;  %v840_v28 = vadd.f32 %v2043_v39, %v839_v24 }
 0x111   : > { %v1780_v29 = vpop.f32.mrf.mxu0  ;;  %v1812_v30 = vpop.f32.mrf.mxu1 }
 0x112   : > { %1686 = vst [vmem:[%s2056_s8 + $0x58] sm:$0xff] %v1574_v25   ;;  %1702 = vst [vmem:[%s2056_s8 + $0xd8] sm:$0xff] %v1654_v26   ;;  %v1569_v31 = vpack.c.bf16 %v712_v27, %v709_v21  ;;  %v1649_v32 = vpack.c.bf16 %v840_v28, %v837_v22  ;;  %v733_v37 = vadd.f32 %v1780_v29, %v2043_v39 }
 0x113   : > { %v724_v33 = vpop.f32.mrf.mxu0  ;;  %v852_v34 = vpop.f32.mrf.mxu1  ;;  %v861_v38 = vadd.f32 %v1812_v30, %v2043_v39 }
 0x114   : > { %1685 = vst [vmem:[%s2056_s8 + $0x50] sm:$0xff] %v1569_v31   ;;  %1701 = vst [vmem:[%s2056_s8 + $0xd0] sm:$0xff] %v1649_v32   ;;  %v725_v42 = vadd.f32 %v2043_v39, %v724_v33  ;;  %v853_v43 = vadd.f32 %v2043_v39, %v852_v34 }
 0x115   : > { %v1781_v35 = vpop.f32.mrf.mxu0  ;;  %v1813_v36 = vpop.f32.mrf.mxu1 }
 0x116   : > { %v736_v40 = vadd.f32 %v1781_v35, %v2043_v39  ;;  %v864_v41 = vadd.f32 %v1813_v36, %v2043_v39 }
 0x117   : > { %v727_v44 = vpop.f32.mrf.mxu0  ;;  %v855_v45 = vpop.f32.mrf.mxu1 }
 0x118   : > { %v1584_v46 = vpack.c.bf16 %v736_v40, %v733_v37  ;;  %v1664_v47 = vpack.c.bf16 %v864_v41, %v861_v38  ;;  %v728_v48 = vadd.f32 %v2043_v39, %v727_v44  ;;  %v856_v49 = vadd.f32 %v2043_v39, %v855_v45 }
 0x119   : > { %v1784_v50 = vpop.f32.mrf.mxu0  ;;  %v1816_v51 = vpop.f32.mrf.mxu1 }
 0x11a   : > { %1688 = vst [vmem:[%s2056_s8 + $0x68] sm:$0xff] %v1584_v46   ;;  %1704 = vst [vmem:[%s2056_s8 + $0xe8] sm:$0xff] %v1664_v47   ;;  %v1579_v52 = vpack.c.bf16 %v728_v48, %v725_v42  ;;  %v1659_v53 = vpack.c.bf16 %v856_v49, %v853_v43  ;;  %v749_v58 = vadd.f32 %v1784_v50, %v2043_v39 }
 0x11b   : > { %v740_v54 = vpop.f32.mrf.mxu0  ;;  %v868_v55 = vpop.f32.mrf.mxu1  ;;  %v877_v59 = vadd.f32 %v1816_v51, %v2043_v39 }
 0x11c   : > { %1687 = vst [vmem:[%s2056_s8 + $0x60] sm:$0xff] %v1579_v52   ;;  %1703 = vst [vmem:[%s2056_s8 + $0xe0] sm:$0xff] %v1659_v53   ;;  %v741_v62 = vadd.f32 %v2043_v39, %v740_v54  ;;  %v869_v63 = vadd.f32 %v2043_v39, %v868_v55 }
 0x11d   : > { %v1785_v56 = vpop.f32.mrf.mxu0  ;;  %v1817_v57 = vpop.f32.mrf.mxu1 }
 0x11e   : > { %v752_v60 = vadd.f32 %v1785_v56, %v2043_v39  ;;  %v880_v61 = vadd.f32 %v1817_v57, %v2043_v39 }
 0x11f   : > { %v743_v0 = vpop.f32.mrf.mxu0  ;;  %v871_v1 = vpop.f32.mrf.mxu1 }
 0x120   : > { %v1594_v2 = vpack.c.bf16 %v752_v60, %v749_v58  ;;  %v1674_v3 = vpack.c.bf16 %v880_v61, %v877_v59  ;;  %v744_v4 = vadd.f32 %v2043_v39, %v743_v0  ;;  %v872_v5 = vadd.f32 %v2043_v39, %v871_v1 }
 0x122   : > { %1690 = vst [vmem:[%s2056_s8 + $0x78] sm:$0xff] %v1594_v2   ;;  %1706 = vst [vmem:[%s2056_s8 + $0xf8] sm:$0xff] %v1674_v3   ;;  %v1589_v6 = vpack.c.bf16 %v744_v4, %v741_v62  ;;  %v1669_v7 = vpack.c.bf16 %v872_v5, %v869_v63 }
 0x124   : > { %1689 = vst [vmem:[%s2056_s8 + $0x70] sm:$0xff] %v1589_v6   ;;  %1705 = vst [vmem:[%s2056_s8 + $0xf0] sm:$0xff] %v1669_v7  }
 0x125 PF: > { %s13_s14 = sadd.s32 1, %s1911_s14   ;;  %s2161_s12 = smov %s1907_s13 }
 0x126   : > { %p10_p5 = scmp.ge.s32.totalorder %s13_s14, 4   ;;  %s2162_s13 = smov %s2164_s15 }
 0x128   :  { %12 = sbr.rel (!%p10_p5) target bundleno = 2 (0x2), region = 68 }

// kernel: _lambda_.29
= control target key start
LH: loop header
LB: loop body
LE: loop exit
PB: predicated region body
PF: predicated region fallthrough
CT: control target
= control target key end

     0   :  { %vm174_vm0 = vcmask 654336   ;;  %s1023_s1 = inlined_call_operand.vmem [shape: bf16[80,128], index: 1, kind: input, shape index: {}]   ;;  %s1024_s0 = inlined_call_operand.vmem [shape: bf16[256,80], index: 0, kind: input, shape index: {}]   ;;  %s1025_s2 = inlined_call_operand.vmem [shape: f32[1,128], index: 2, kind: input, shape index: {}]   ;;  %s1026_s3 = inlined_call_operand.vmem [shape: bf16[256,128], index: 3, kind: output, shape index: {}]  }
   0x1   :  { %v818_v0 = vld [vmem:[%s1023_s1 + $0x20] sm:$0xff]   ;;  %v819_v1 = vld [vmem:[%s1023_s1 + $0x18] sm:$0xff]   ;;  %v820_v2 = vld [vmem:[%s1023_s1 + $0x10] sm:$0xff]  }
   0x2   :  { %766 = vmatprep.subr.bf16.mxu0 %v818_v0  ;;  %808 = vmatprep.subr.bf16.mxu1 %v818_v0  ;;  %v823_v3 = vld [vmem:[%s1024_s0] sm:$0xff]   ;;  %v821_v5 = vld [vmem:[%s1023_s1 + $0x8] sm:$0xff]   ;;  %v827_v9 = vld [vmem:[%s1024_s0 + $0x10] sm:$0xff]  }
   0x3   :  { %767 = vmatpush3.bf16.msra.mxu0 %v818_v0  ;;  %813 = vmatpush3.bf16.msra.mxu1 %v818_v0  ;;  %v824_v4 = vld [vmem:[%s1024_s0 + $0x40] sm:$0xff]   ;;  %v825_v7 = vld [vmem:[%s1024_s0 + $0x8] sm:$0xff]   ;;  %v828_v10 = vld [vmem:[%s1024_s0 + $0x50] sm:$0xff]  }
   0x4   :  { %768 = vmatprep.subr.bf16.mxu0 %v819_v1  ;;  %809 = vmatprep.subr.bf16.mxu1 %v819_v1  ;;  %v822_v6 = vld [vmem:[%s1023_s1] sm:$0xff]   ;;  %v826_v8 = vld [vmem:[%s1024_s0 + $0x48] sm:$0xff]   ;;  %v829_v11 = vld [vmem:[%s1024_s0 + $0x18] sm:$0xff]  }
   0x5   :  { %776 = vmatprep.mubr.msk.bf16.mxu0 %vm174_vm0, %v823_v3  ;;  %792 = vmatprep.mubr.msk.bf16.mxu1 %vm174_vm0, %v824_v4  ;;  %v830_v12 = vld [vmem:[%s1024_s0 + $0x58] sm:$0xff]   ;;  %v831_v13 = vld [vmem:[%s1024_s0 + $0x20] sm:$0xff]   ;;  %v833_v15 = vld [vmem:[%s1024_s0 + $0x28] sm:$0xff]  }
   0x6   :  { %v832_v14 = vld [vmem:[%s1024_s0 + $0x60] sm:$0xff]   ;;  %v834_v16 = vld [vmem:[%s1024_s0 + $0x68] sm:$0xff]   ;;  %v835_v17 = vld [vmem:[%s1024_s0 + $0x30] sm:$0xff]  }
   0x7   :  { %769 = vmatpush3.bf16.msra.mxu0 %v819_v1  ;;  %814 = vmatpush3.bf16.msra.mxu1 %v819_v1  ;;  %v836_v18 = vld [vmem:[%s1024_s0 + $0x70] sm:$0xff]   ;;  %v837_v19 = vld [vmem:[%s1024_s0 + $0x38] sm:$0xff]   ;;  %v941_v23 = vld [vmem:[%s1025_s2] ss:$0 sm:$0xff] }
   0x8   :  { %770 = vmatprep.subr.bf16.mxu0 %v820_v2  ;;  %810 = vmatprep.subr.bf16.mxu1 %v820_v2  ;;  %v838_v20 = vld [vmem:[%s1024_s0 + $0x78] sm:$0xff]  }
   0xb   :  { %771 = vmatpush3.bf16.msra.mxu0 %v820_v2  ;;  %815 = vmatpush3.bf16.msra.mxu1 %v820_v2 }
   0xc   :  { %772 = vmatprep.subr.bf16.mxu0 %v821_v5  ;;  %811 = vmatprep.subr.bf16.mxu1 %v821_v5 }
   0xf   :  { %773 = vmatpush3.bf16.msra.mxu0 %v821_v5  ;;  %816 = vmatpush3.bf16.msra.mxu1 %v821_v5 }
  0x10   :  { %774 = vmatprep.subr.bf16.mxu0 %v822_v6  ;;  %812 = vmatprep.subr.bf16.mxu1 %v822_v6 }
  0x13   :  { %775 = vmatpush3.bf16.msra.mxu0 %v822_v6  ;;  %817 = vmatpush3.bf16.msra.mxu1 %v822_v6 }
  0x16   :  { %777 = vmatmul.mubr.msk.bf16.vlgmr.msra.gmra.mxu0 %vm174_vm0, %v825_v7  ;;  %793 = vmatmul.mubr.msk.bf16.vlgmr.msra.gmra.mxu1 %vm174_vm0, %v826_v8 }
  0x17   :  { %780 = vmatprep.mubr.msk.bf16.mxu0 %vm174_vm0, %v827_v9  ;;  %796 = vmatprep.mubr.msk.bf16.mxu1 %vm174_vm0, %v828_v10 }
  0x1e   :  { %781 = vmatmul.mubr.msk.bf16.gmra.mxu0 %vm174_vm0, %v829_v11  ;;  %797 = vmatmul.mubr.msk.bf16.gmra.mxu1 %vm174_vm0, %v830_v12 }
  0x1f   :  { %784 = vmatprep.mubr.msk.bf16.mxu0 %vm174_vm0, %v831_v13  ;;  %800 = vmatprep.mubr.msk.bf16.mxu1 %vm174_vm0, %v832_v14 }
  0x26   :  { %785 = vmatmul.mubr.msk.bf16.gmra.mxu0 %vm174_vm0, %v833_v15  ;;  %801 = vmatmul.mubr.msk.bf16.gmra.mxu1 %vm174_vm0, %v834_v16 }
  0x27   :  { %788 = vmatprep.mubr.msk.bf16.mxu0 %vm174_vm0, %v835_v17  ;;  %804 = vmatprep.mubr.msk.bf16.mxu1 %vm174_vm0, %v836_v18 }
  0x2e   :  { %789 = vmatmul.mubr.msk.bf16.gmra.mxu0 %vm174_vm0, %v837_v19  ;;  %805 = vmatmul.mubr.msk.bf16.gmra.mxu1 %vm174_vm0, %v838_v20 }
  0xd6   :  { %v778_v21 = vpop.f32.mrf.mxu0  ;;  %v794_v22 = vpop.f32.mrf.mxu1 }
  0xd7   :  { %v266_v28 = vadd.f32 %v778_v21, %v941_v23  ;;  %v330_v29 = vadd.f32 %v794_v22, %v941_v23 }
  0xd8   :  { %v257_v24 = vpop.f32.mrf.mxu0  ;;  %v321_v25 = vpop.f32.mrf.mxu1 }
  0xd9   :  { %v258_v32 = vadd.f32 %v941_v23, %v257_v24  ;;  %v322_v33 = vadd.f32 %v941_v23, %v321_v25 }
  0xda   :  { %v779_v26 = vpop.f32.mrf.mxu0  ;;  %v795_v27 = vpop.f32.mrf.mxu1 }
  0xdb   :  { %v269_v30 = vadd.f32 %v779_v26, %v941_v23  ;;  %v333_v31 = vadd.f32 %v795_v27, %v941_v23 }
  0xdc   :  { %v260_v34 = vpop.f32.mrf.mxu0  ;;  %v324_v35 = vpop.f32.mrf.mxu1 }
  0xdd   :  { %v658_v36 = vpack.c.bf16 %v269_v30, %v266_v28  ;;  %v698_v37 = vpack.c.bf16 %v333_v31, %v330_v29  ;;  %v261_v38 = vadd.f32 %v941_v23, %v260_v34  ;;  %v325_v39 = vadd.f32 %v941_v23, %v324_v35 }
  0xde   :  { %v782_v40 = vpop.f32.mrf.mxu0  ;;  %v798_v41 = vpop.f32.mrf.mxu1 }
  0xdf   :  { %730 = vst [vmem:[%s1026_s3 + $0x8] sm:$0xff] %v658_v36   ;;  %738 = vst [vmem:[%s1026_s3 + $0x48] sm:$0xff] %v698_v37   ;;  %v653_v42 = vpack.c.bf16 %v261_v38, %v258_v32  ;;  %v693_v43 = vpack.c.bf16 %v325_v39, %v322_v33  ;;  %v282_v48 = vadd.f32 %v782_v40, %v941_v23 }
  0xe0   :  { %v273_v44 = vpop.f32.mrf.mxu0  ;;  %v337_v45 = vpop.f32.mrf.mxu1  ;;  %v346_v49 = vadd.f32 %v798_v41, %v941_v23 }
  0xe1   :  { %654 = vst [vmem:[%s1026_s3] sm:$0xff] %v653_v42   ;;  %737 = vst [vmem:[%s1026_s3 + $0x40] sm:$0xff] %v693_v43   ;;  %v274_v52 = vadd.f32 %v941_v23, %v273_v44  ;;  %v338_v53 = vadd.f32 %v941_v23, %v337_v45 }
  0xe2   :  { %v783_v46 = vpop.f32.mrf.mxu0  ;;  %v799_v47 = vpop.f32.mrf.mxu1 }
  0xe3   :  { %v285_v50 = vadd.f32 %v783_v46, %v941_v23  ;;  %v349_v51 = vadd.f32 %v799_v47, %v941_v23 }
  0xe4   :  { %v276_v54 = vpop.f32.mrf.mxu0  ;;  %v340_v55 = vpop.f32.mrf.mxu1 }
  0xe5   :  { %v668_v56 = vpack.c.bf16 %v285_v50, %v282_v48  ;;  %v708_v57 = vpack.c.bf16 %v349_v51, %v346_v49  ;;  %v277_v58 = vadd.f32 %v941_v23, %v276_v54  ;;  %v341_v59 = vadd.f32 %v941_v23, %v340_v55 }
  0xe6   :  { %v786_v60 = vpop.f32.mrf.mxu0  ;;  %v802_v61 = vpop.f32.mrf.mxu1 }
  0xe7   :  { %732 = vst [vmem:[%s1026_s3 + $0x18] sm:$0xff] %v668_v56   ;;  %740 = vst [vmem:[%s1026_s3 + $0x58] sm:$0xff] %v708_v57   ;;  %v663_v62 = vpack.c.bf16 %v277_v58, %v274_v52  ;;  %v703_v63 = vpack.c.bf16 %v341_v59, %v338_v53  ;;  %v298_v4 = vadd.f32 %v786_v60, %v941_v23 }
  0xe8   :  { %v289_v0 = vpop.f32.mrf.mxu0  ;;  %v353_v1 = vpop.f32.mrf.mxu1  ;;  %v362_v5 = vadd.f32 %v802_v61, %v941_v23 }
  0xe9   :  { %731 = vst [vmem:[%s1026_s3 + $0x10] sm:$0xff] %v663_v62   ;;  %739 = vst [vmem:[%s1026_s3 + $0x50] sm:$0xff] %v703_v63   ;;  %v290_v8 = vadd.f32 %v941_v23, %v289_v0  ;;  %v354_v9 = vadd.f32 %v941_v23, %v353_v1 }
  0xea   :  { %v787_v2 = vpop.f32.mrf.mxu0  ;;  %v803_v3 = vpop.f32.mrf.mxu1 }
  0xeb   :  { %v301_v6 = vadd.f32 %v787_v2, %v941_v23  ;;  %v365_v7 = vadd.f32 %v803_v3, %v941_v23 }
  0xec   :  { %v292_v10 = vpop.f32.mrf.mxu0  ;;  %v356_v11 = vpop.f32.mrf.mxu1 }
  0xed   :  { %v678_v12 = vpack.c.bf16 %v301_v6, %v298_v4  ;;  %v718_v13 = vpack.c.bf16 %v365_v7, %v362_v5  ;;  %v293_v14 = vadd.f32 %v941_v23, %v292_v10  ;;  %v357_v15 = vadd.f32 %v941_v23, %v356_v11 }
  0xee   :  { %v790_v16 = vpop.f32.mrf.mxu0  ;;  %v806_v17 = vpop.f32.mrf.mxu1 }
  0xef   :  { %734 = vst [vmem:[%s1026_s3 + $0x28] sm:$0xff] %v678_v12   ;;  %742 = vst [vmem:[%s1026_s3 + $0x68] sm:$0xff] %v718_v13   ;;  %v673_v18 = vpack.c.bf16 %v293_v14, %v290_v8  ;;  %v713_v19 = vpack.c.bf16 %v357_v15, %v354_v9  ;;  %v314_v25 = vadd.f32 %v790_v16, %v941_v23 }
  0xf0   :  { %v305_v20 = vpop.f32.mrf.mxu0  ;;  %v369_v21 = vpop.f32.mrf.mxu1  ;;  %v378_v26 = vadd.f32 %v806_v17, %v941_v23 }
  0xf1   :  { %733 = vst [vmem:[%s1026_s3 + $0x20] sm:$0xff] %v673_v18   ;;  %741 = vst [vmem:[%s1026_s3 + $0x60] sm:$0xff] %v713_v19   ;;  %v306_v29 = vadd.f32 %v941_v23, %v305_v20  ;;  %v370_v30 = vadd.f32 %v941_v23, %v369_v21 }
  0xf2   :  { %v791_v22 = vpop.f32.mrf.mxu0  ;;  %v807_v24 = vpop.f32.mrf.mxu1 }
  0xf3   :  { %v317_v27 = vadd.f32 %v791_v22, %v941_v23  ;;  %v381_v28 = vadd.f32 %v807_v24, %v941_v23 }
  0xf4   :  { %v308_v31 = vpop.f32.mrf.mxu0  ;;  %v372_v32 = vpop.f32.mrf.mxu1 }
  0xf5   :  { %v688_v33 = vpack.c.bf16 %v317_v27, %v314_v25  ;;  %v728_v34 = vpack.c.bf16 %v381_v28, %v378_v26  ;;  %v309_v35 = vadd.f32 %v941_v23, %v308_v31  ;;  %v373_v36 = vadd.f32 %v941_v23, %v372_v32 }
  0xf7   :  { %736 = vst [vmem:[%s1026_s3 + $0x38] sm:$0xff] %v688_v33   ;;  %744 = vst [vmem:[%s1026_s3 + $0x78] sm:$0xff] %v728_v34   ;;  %v683_v37 = vpack.c.bf16 %v309_v35, %v306_v29  ;;  %v723_v38 = vpack.c.bf16 %v373_v36, %v370_v30 }
  0xf9   :  { %735 = vst [vmem:[%s1026_s3 + $0x30] sm:$0xff] %v683_v37   ;;  %743 = vst [vmem:[%s1026_s3 + $0x70] sm:$0xff] %v723_v38  }

// kernel: _lambda_.31
= control target key start
LH: loop header
LB: loop body
LE: loop exit
PB: predicated region body
PF: predicated region fallthrough
CT: control target
= control target key end

     0   :  { %v937_v0 = vmov 0   ;;  %vm270_vm0 = vcmask 130048   ;;  %s1182_s1 = inlined_call_operand.vmem [shape: bf16[144,128], index: 1, kind: input, shape index: {}]   ;;  %s1183_s0 = inlined_call_operand.vmem [shape: bf16[256,144], index: 0, kind: input, shape index: {}]   ;;  %s1184_s2 = inlined_call_operand.vmem [shape: f32[1,128], index: 2, kind: input, shape index: {}]   ;;  %s1185_s3 = inlined_call_operand.vmem [shape: bf16[256,128], index: 3, kind: output, shape index: {}]  }
   0x1   :  { %319 = vmatprep.subr.bf16.mxu0 %v937_v0  ;;  %861 = vmatprep.subr.bf16.mxu1 %v937_v0  ;;  %v880_v1 = vld [vmem:[%s1182_s1 + $0x38] sm:$0xff]   ;;  %v881_v2 = vld [vmem:[%s1182_s1 + $0x30] sm:$0xff]   ;;  %v882_v3 = vld [vmem:[%s1182_s1 + $0x28] sm:$0xff]  }
   0x2   :  { %320 = vmatpush1.bf16.msra.mxu0 %v880_v1  ;;  %870 = vmatpush1.bf16.msra.mxu1 %v880_v1  ;;  %v883_v4 = vld [vmem:[%s1182_s1 + $0x20] sm:$0xff]   ;;  %v884_v7 = vld [vmem:[%s1182_s1 + $0x18] sm:$0xff]   ;;  %v885_v8 = vld [vmem:[%s1182_s1 + $0x10] sm:$0xff]  }
   0x3   :  { %321 = vmatprep.subr.bf16.mxu0 %v937_v0  ;;  %862 = vmatprep.subr.bf16.mxu1 %v937_v0  ;;  %v891_v5 = vld [vmem:[%s1183_s0 + $0x4] ss:$8 sps:$4 sm:$0xff]   ;;  %v889_v12 = vld [vmem:[%s1183_s0] ss:$8 sps:$4 sm:$0xff]   ;;  %v895_v14 = vld [vmem:[%s1183_s0 + $0x14] ss:$8 sps:$4 sm:$0xff]  }
   0x4   :  { %v894_v6 = vld [vmem:[%s1183_s0 + $0x84] ss:$8 sps:$4 sm:$0xff]   ;;  %686 = vmatprep.mubr.msk.bf16.mxu0 %vm270_vm0, %v891_v5  ;;  %v892_v13 = vld [vmem:[%s1183_s0 + $0x80] ss:$8 sps:$4 sm:$0xff]   ;;  %v897_v15 = vld [vmem:[%s1183_s0 + $0x94] ss:$8 sps:$4 sm:$0xff]  }
   0x5   :  { %694 = vmatprep.mubr.msk.bf16.mxu1 %vm270_vm0, %v894_v6  ;;  %v886_v9 = vld [vmem:[%s1182_s1 + $0x8] sm:$0xff]   ;;  %v887_v10 = vld [vmem:[%s1182_s1] sm:$0xff]   ;;  %v899_v16 = vld [vmem:[%s1183_s0 + $0x10] ss:$8 sps:$4 sm:$0xff]  }
   0x6   :  { %322 = vmatpush1.bf16.msra.mxu0 %v881_v2  ;;  %871 = vmatpush1.bf16.msra.mxu1 %v881_v2  ;;  %v888_v11 = vld [vmem:[%s1182_s1 + $0x40] sm:$0xff]   ;;  %v900_v17 = vld [vmem:[%s1183_s0 + $0x90] ss:$8 sps:$4 sm:$0xff]   ;;  %v907_v22 = vld [vmem:[%s1183_s0 + $0x34] ss:$8 sps:$4 sm:$0xff]  }
   0x7   :  { %323 = vmatprep.subr.bf16.mxu0 %v937_v0  ;;  %863 = vmatprep.subr.bf16.mxu1 %v937_v0  ;;  %v901_v18 = vld [vmem:[%s1183_s0 + $0x24] ss:$8 sps:$4 sm:$0xff]   ;;  %v905_v20 = vld [vmem:[%s1183_s0 + $0x20] ss:$8 sps:$4 sm:$0xff]   ;;  %v909_v23 = vld [vmem:[%s1183_s0 + $0xb4] ss:$8 sps:$4 sm:$0xff]  }
   0x8   :  { %v903_v19 = vld [vmem:[%s1183_s0 + $0xa4] ss:$8 sps:$4 sm:$0xff]   ;;  %v906_v21 = vld [vmem:[%s1183_s0 + $0xa0] ss:$8 sps:$4 sm:$0xff]   ;;  %v911_v24 = vld [vmem:[%s1183_s0 + $0x30] ss:$8 sps:$4 sm:$0xff]  }
   0x9   :  { %v912_v25 = vld [vmem:[%s1183_s0 + $0xb0] ss:$8 sps:$4 sm:$0xff]   ;;  %v913_v26 = vld [vmem:[%s1183_s0 + $0x44] ss:$8 sps:$4 sm:$0xff]   ;;  %v917_v28 = vld [vmem:[%s1183_s0 + $0x40] ss:$8 sps:$4 sm:$0xff]  }
   0xa   :  { %324 = vmatpush1.bf16.msra.mxu0 %v882_v3  ;;  %872 = vmatpush1.bf16.msra.mxu1 %v882_v3  ;;  %v915_v27 = vld [vmem:[%s1183_s0 + $0xc4] ss:$8 sps:$4 sm:$0xff]   ;;  %v918_v29 = vld [vmem:[%s1183_s0 + $0xc0] ss:$8 sps:$4 sm:$0xff]   ;;  %v919_v30 = vld [vmem:[%s1183_s0 + $0x54] ss:$8 sps:$4 sm:$0xff]  }
   0xb   :  { %325 = vmatprep.subr.bf16.mxu0 %v937_v0  ;;  %864 = vmatprep.subr.bf16.mxu1 %v937_v0  ;;  %v921_v31 = vld [vmem:[%s1183_s0 + $0xd4] ss:$8 sps:$4 sm:$0xff]   ;;  %v923_v32 = vld [vmem:[%s1183_s0 + $0x50] ss:$8 sps:$4 sm:$0xff]   ;;  %v925_v34 = vld [vmem:[%s1183_s0 + $0x64] ss:$8 sps:$4 sm:$0xff]  }
   0xc   :  { %v924_v33 = vld [vmem:[%s1183_s0 + $0xd0] ss:$8 sps:$4 sm:$0xff]   ;;  %v927_v35 = vld [vmem:[%s1183_s0 + $0xe4] ss:$8 sps:$4 sm:$0xff]   ;;  %v929_v36 = vld [vmem:[%s1183_s0 + $0x60] ss:$8 sps:$4 sm:$0xff]  }
   0xd   :  { %v930_v37 = vld [vmem:[%s1183_s0 + $0xe0] ss:$8 sps:$4 sm:$0xff]   ;;  %v931_v38 = vld [vmem:[%s1183_s0 + $0x74] ss:$8 sps:$4 sm:$0xff]   ;;  %v935_v40 = vld [vmem:[%s1183_s0 + $0x70] ss:$8 sps:$4 sm:$0xff]  }
   0xe   :  { %326 = vmatpush1.bf16.msra.mxu0 %v883_v4  ;;  %873 = vmatpush1.bf16.msra.mxu1 %v883_v4  ;;  %v933_v39 = vld [vmem:[%s1183_s0 + $0xf4] ss:$8 sps:$4 sm:$0xff]   ;;  %v936_v41 = vld [vmem:[%s1183_s0 + $0xf0] ss:$8 sps:$4 sm:$0xff]   ;;  %v1100_v44 = vld [vmem:[%s1184_s2] ss:$0 sm:$0xff] }
   0xf   :  { %327 = vmatprep.subr.bf16.mxu0 %v937_v0  ;;  %865 = vmatprep.subr.bf16.mxu1 %v937_v0 }
  0x12   :  { %328 = vmatpush1.bf16.msra.mxu0 %v884_v7  ;;  %874 = vmatpush1.bf16.msra.mxu1 %v884_v7 }
  0x13   :  { %329 = vmatprep.subr.bf16.mxu0 %v937_v0  ;;  %866 = vmatprep.subr.bf16.mxu1 %v937_v0 }
  0x16   :  { %330 = vmatpush1.bf16.msra.mxu0 %v885_v8  ;;  %875 = vmatpush1.bf16.msra.mxu1 %v885_v8 }
  0x17   :  { %331 = vmatprep.subr.bf16.mxu0 %v937_v0  ;;  %867 = vmatprep.subr.bf16.mxu1 %v937_v0 }
  0x1a   :  { %332 = vmatpush1.bf16.msra.mxu0 %v886_v9  ;;  %876 = vmatpush1.bf16.msra.mxu1 %v886_v9 }
  0x1b   :  { %333 = vmatprep.subr.bf16.mxu0 %v937_v0  ;;  %868 = vmatprep.subr.bf16.mxu1 %v937_v0 }
  0x1e   :  { %334 = vmatpush1.bf16.msra.mxu0 %v887_v10  ;;  %877 = vmatpush1.bf16.msra.mxu1 %v887_v10 }
  0x1f   :  { %349 = vmatprep.subr.bf16.mxu0 %v937_v0  ;;  %869 = vmatprep.subr.bf16.mxu1 %v937_v0 }
  0x22   :  { %350 = vmatpush2.bf16.msra.mxu0 %v888_v11  ;;  %878 = vmatpush2.bf16.msra.mxu1 %v888_v11 }
  0x25   :  { %352 = vmatmul.mubr.bf16.vlgmr.msra.gmra.mxu0 %v889_v12  ;;  %416 = vmatmul.mubr.bf16.vlgmr.msra.gmra.mxu1 %v892_v13 }
  0x26   :  { %687 = vmatprep.mubr.msk.bf16.mxu0 %vm270_vm0, %v895_v14  ;;  %695 = vmatprep.mubr.msk.bf16.mxu1 %vm270_vm0, %v897_v15 }
  0x2d   :  { %360 = vmatmul.mubr.bf16.gmra.mxu0 %v899_v16  ;;  %424 = vmatmul.mubr.bf16.gmra.mxu1 %v900_v17 }
  0x2e   :  { %688 = vmatprep.mubr.msk.bf16.mxu0 %vm270_vm0, %v901_v18  ;;  %696 = vmatprep.mubr.msk.bf16.mxu1 %vm270_vm0, %v903_v19 }
  0x35   :  { %368 = vmatmul.mubr.bf16.gmra.mxu0 %v905_v20  ;;  %432 = vmatmul.mubr.bf16.gmra.mxu1 %v906_v21 }
  0x36   :  { %689 = vmatprep.mubr.msk.bf16.mxu0 %vm270_vm0, %v907_v22  ;;  %697 = vmatprep.mubr.msk.bf16.mxu1 %vm270_vm0, %v909_v23 }
  0x3d   :  { %376 = vmatmul.mubr.bf16.gmra.mxu0 %v911_v24  ;;  %440 = vmatmul.mubr.bf16.gmra.mxu1 %v912_v25 }
  0x3e   :  { %690 = vmatprep.mubr.msk.bf16.mxu0 %vm270_vm0, %v913_v26  ;;  %698 = vmatprep.mubr.msk.bf16.mxu1 %vm270_vm0, %v915_v27 }
  0x45   :  { %384 = vmatmul.mubr.bf16.gmra.mxu0 %v917_v28  ;;  %448 = vmatmul.mubr.bf16.gmra.mxu1 %v918_v29 }
  0x46   :  { %691 = vmatprep.mubr.msk.bf16.mxu0 %vm270_vm0, %v919_v30  ;;  %699 = vmatprep.mubr.msk.bf16.mxu1 %vm270_vm0, %v921_v31 }
  0x4d   :  { %392 = vmatmul.mubr.bf16.gmra.mxu0 %v923_v32  ;;  %456 = vmatmul.mubr.bf16.gmra.mxu1 %v924_v33 }
  0x4e   :  { %692 = vmatprep.mubr.msk.bf16.mxu0 %vm270_vm0, %v925_v34  ;;  %700 = vmatprep.mubr.msk.bf16.mxu1 %vm270_vm0, %v927_v35 }
  0x55   :  { %400 = vmatmul.mubr.bf16.gmra.mxu0 %v929_v36  ;;  %464 = vmatmul.mubr.bf16.gmra.mxu1 %v930_v37 }
  0x56   :  { %693 = vmatprep.mubr.msk.bf16.mxu0 %vm270_vm0, %v931_v38  ;;  %701 = vmatprep.mubr.msk.bf16.mxu1 %vm270_vm0, %v933_v39 }
  0x5d   :  { %408 = vmatmul.mubr.bf16.gmra.mxu0 %v935_v40  ;;  %472 = vmatmul.mubr.bf16.gmra.mxu1 %v936_v41 }
  0xe5   :  { %v353_v42 = vpop.f32.mrf.mxu0  ;;  %v417_v43 = vpop.f32.mrf.mxu1 }
  0xe6   :  { %v354_v49 = vadd.f32 %v1100_v44, %v353_v42  ;;  %v418_v50 = vadd.f32 %v1100_v44, %v417_v43 }
  0xe7   :  { %v355_v45 = vpop.f32.mrf.mxu0  ;;  %v419_v46 = vpop.f32.mrf.mxu1 }
  0xe9   :  { %v356_v47 = vpop.f32.mrf.mxu0  ;;  %v420_v48 = vpop.f32.mrf.mxu1 }
  0xea   :  { %v357_v51 = vadd.f32 %v1100_v44, %v356_v47  ;;  %v421_v52 = vadd.f32 %v1100_v44, %v420_v48 }
  0xeb   :  { %v358_v53 = vpop.f32.mrf.mxu0  ;;  %v422_v54 = vpop.f32.mrf.mxu1 }
  0xec   :  { %v769_v55 = vpack.c.bf16 %v357_v51, %v354_v49  ;;  %v809_v56 = vpack.c.bf16 %v421_v52, %v418_v50 }
  0xed   :  { %v361_v57 = vpop.f32.mrf.mxu0  ;;  %v425_v58 = vpop.f32.mrf.mxu1 }
  0xee   :  { %770 = vst [vmem:[%s1185_s3] sm:$0xff] %v769_v55   ;;  %853 = vst [vmem:[%s1185_s3 + $0x40] sm:$0xff] %v809_v56   ;;  %v362_v63 = vadd.f32 %v1100_v44, %v361_v57  ;;  %v426_v0 = vadd.f32 %v1100_v44, %v425_v58 }
  0xef   :  { %v363_v59 = vpop.f32.mrf.mxu0  ;;  %v427_v60 = vpop.f32.mrf.mxu1 }
  0xf1   :  { %v364_v61 = vpop.f32.mrf.mxu0  ;;  %v428_v62 = vpop.f32.mrf.mxu1 }
  0xf2   :  { %v365_v1 = vadd.f32 %v1100_v44, %v364_v61  ;;  %v429_v2 = vadd.f32 %v1100_v44, %v428_v62 }
  0xf3   :  { %v366_v3 = vpop.f32.mrf.mxu0  ;;  %v430_v4 = vpop.f32.mrf.mxu1 }
  0xf4   :  { %v774_v5 = vpack.c.bf16 %v365_v1, %v362_v63  ;;  %v814_v6 = vpack.c.bf16 %v429_v2, %v426_v0 }
  0xf5   :  { %v369_v7 = vpop.f32.mrf.mxu0  ;;  %v433_v8 = vpop.f32.mrf.mxu1 }
  0xf6   :  { %846 = vst [vmem:[%s1185_s3 + $0x8] sm:$0xff] %v774_v5   ;;  %854 = vst [vmem:[%s1185_s3 + $0x48] sm:$0xff] %v814_v6   ;;  %v370_v13 = vadd.f32 %v1100_v44, %v369_v7  ;;  %v434_v14 = vadd.f32 %v1100_v44, %v433_v8 }
  0xf7   :  { %v371_v9 = vpop.f32.mrf.mxu0  ;;  %v435_v10 = vpop.f32.mrf.mxu1 }
  0xf9   :  { %v372_v11 = vpop.f32.mrf.mxu0  ;;  %v436_v12 = vpop.f32.mrf.mxu1 }
  0xfa   :  { %v373_v15 = vadd.f32 %v1100_v44, %v372_v11  ;;  %v437_v16 = vadd.f32 %v1100_v44, %v436_v12 }
  0xfb   :  { %v374_v17 = vpop.f32.mrf.mxu0  ;;  %v438_v18 = vpop.f32.mrf.mxu1 }
  0xfc   :  { %v779_v19 = vpack.c.bf16 %v373_v15, %v370_v13  ;;  %v819_v20 = vpack.c.bf16 %v437_v16, %v434_v14 }
  0xfd   :  { %v377_v21 = vpop.f32.mrf.mxu0  ;;  %v441_v22 = vpop.f32.mrf.mxu1 }
  0xfe   :  { %847 = vst [vmem:[%s1185_s3 + $0x10] sm:$0xff] %v779_v19   ;;  %855 = vst [vmem:[%s1185_s3 + $0x50] sm:$0xff] %v819_v20   ;;  %v378_v27 = vadd.f32 %v1100_v44, %v377_v21  ;;  %v442_v28 = vadd.f32 %v1100_v44, %v441_v22 }
  0xff   :  { %v379_v23 = vpop.f32.mrf.mxu0  ;;  %v443_v24 = vpop.f32.mrf.mxu1 }
 0x101   :  { %v380_v25 = vpop.f32.mrf.mxu0  ;;  %v444_v26 = vpop.f32.mrf.mxu1 }
 0x102   :  { %v381_v29 = vadd.f32 %v1100_v44, %v380_v25  ;;  %v445_v30 = vadd.f32 %v1100_v44, %v444_v26 }
 0x103   :  { %v382_v31 = vpop.f32.mrf.mxu0  ;;  %v446_v32 = vpop.f32.mrf.mxu1 }
 0x104   :  { %v784_v33 = vpack.c.bf16 %v381_v29, %v378_v27  ;;  %v824_v34 = vpack.c.bf16 %v445_v30, %v442_v28 }
 0x105   :  { %v385_v35 = vpop.f32.mrf.mxu0  ;;  %v449_v36 = vpop.f32.mrf.mxu1 }
 0x106   :  { %848 = vst [vmem:[%s1185_s3 + $0x18] sm:$0xff] %v784_v33   ;;  %856 = vst [vmem:[%s1185_s3 + $0x58] sm:$0xff] %v824_v34   ;;  %v386_v41 = vadd.f32 %v1100_v44, %v385_v35  ;;  %v450_v42 = vadd.f32 %v1100_v44, %v449_v36 }
 0x107   :  { %v387_v37 = vpop.f32.mrf.mxu0  ;;  %v451_v38 = vpop.f32.mrf.mxu1 }
 0x109   :  { %v388_v39 = vpop.f32.mrf.mxu0  ;;  %v452_v40 = vpop.f32.mrf.mxu1 }
 0x10a   :  { %v389_v43 = vadd.f32 %v1100_v44, %v388_v39  ;;  %v453_v45 = vadd.f32 %v1100_v44, %v452_v40 }
 0x10b   :  { %v390_v46 = vpop.f32.mrf.mxu0  ;;  %v454_v47 = vpop.f32.mrf.mxu1 }
 0x10c   :  { %v789_v48 = vpack.c.bf16 %v389_v43, %v386_v41  ;;  %v829_v49 = vpack.c.bf16 %v453_v45, %v450_v42 }
 0x10d   :  { %v393_v50 = vpop.f32.mrf.mxu0  ;;  %v457_v51 = vpop.f32.mrf.mxu1 }
 0x10e   :  { %849 = vst [vmem:[%s1185_s3 + $0x20] sm:$0xff] %v789_v48   ;;  %857 = vst [vmem:[%s1185_s3 + $0x60] sm:$0xff] %v829_v49   ;;  %v394_v56 = vadd.f32 %v1100_v44, %v393_v50  ;;  %v458_v57 = vadd.f32 %v1100_v44, %v457_v51 }
 0x10f   :  { %v395_v52 = vpop.f32.mrf.mxu0  ;;  %v459_v53 = vpop.f32.mrf.mxu1 }
 0x111   :  { %v396_v54 = vpop.f32.mrf.mxu0  ;;  %v460_v55 = vpop.f32.mrf.mxu1 }
 0x112   :  { %v397_v58 = vadd.f32 %v1100_v44, %v396_v54  ;;  %v461_v59 = vadd.f32 %v1100_v44, %v460_v55 }
 0x113   :  { %v398_v60 = vpop.f32.mrf.mxu0  ;;  %v462_v61 = vpop.f32.mrf.mxu1 }
 0x114   :  { %v794_v62 = vpack.c.bf16 %v397_v58, %v394_v56  ;;  %v834_v63 = vpack.c.bf16 %v461_v59, %v458_v57 }
 0x115   :  { %v401_v0 = vpop.f32.mrf.mxu0  ;;  %v465_v1 = vpop.f32.mrf.mxu1 }
 0x116   :  { %850 = vst [vmem:[%s1185_s3 + $0x28] sm:$0xff] %v794_v62   ;;  %858 = vst [vmem:[%s1185_s3 + $0x68] sm:$0xff] %v834_v63   ;;  %v402_v6 = vadd.f32 %v1100_v44, %v401_v0  ;;  %v466_v7 = vadd.f32 %v1100_v44, %v465_v1 }
 0x117   :  { %v403_v2 = vpop.f32.mrf.mxu0  ;;  %v467_v3 = vpop.f32.mrf.mxu1 }
 0x119   :  { %v404_v4 = vpop.f32.mrf.mxu0  ;;  %v468_v5 = vpop.f32.mrf.mxu1 }
 0x11a   :  { %v405_v8 = vadd.f32 %v1100_v44, %v404_v4  ;;  %v469_v9 = vadd.f32 %v1100_v44, %v468_v5 }
 0x11b   :  { %v406_v10 = vpop.f32.mrf.mxu0  ;;  %v470_v11 = vpop.f32.mrf.mxu1 }
 0x11c   :  { %v799_v12 = vpack.c.bf16 %v405_v8, %v402_v6  ;;  %v839_v13 = vpack.c.bf16 %v469_v9, %v466_v7 }
 0x11d   :  { %v409_v14 = vpop.f32.mrf.mxu0  ;;  %v473_v15 = vpop.f32.mrf.mxu1 }
 0x11e   :  { %851 = vst [vmem:[%s1185_s3 + $0x30] sm:$0xff] %v799_v12   ;;  %859 = vst [vmem:[%s1185_s3 + $0x70] sm:$0xff] %v839_v13   ;;  %v410_v20 = vadd.f32 %v1100_v44, %v409_v14  ;;  %v474_v21 = vadd.f32 %v1100_v44, %v473_v15 }
 0x11f   :  { %v411_v16 = vpop.f32.mrf.mxu0  ;;  %v475_v17 = vpop.f32.mrf.mxu1 }
 0x121   :  { %v412_v18 = vpop.f32.mrf.mxu0  ;;  %v476_v19 = vpop.f32.mrf.mxu1 }
 0x122   :  { %v413_v22 = vadd.f32 %v1100_v44, %v412_v18  ;;  %v477_v23 = vadd.f32 %v1100_v44, %v476_v19 }
 0x123   :  { %v414_v24 = vpop.f32.mrf.mxu0  ;;  %v478_v25 = vpop.f32.mrf.mxu1 }
 0x124   :  { %v804_v26 = vpack.c.bf16 %v413_v22, %v410_v20  ;;  %v844_v27 = vpack.c.bf16 %v477_v23, %v474_v21 }
 0x126   :  { %852 = vst [vmem:[%s1185_s3 + $0x38] sm:$0xff] %v804_v26   ;;  %860 = vst [vmem:[%s1185_s3 + $0x78] sm:$0xff] %v844_v27  }

// kernel: _lambda_.32
= control target key start
LH: loop header
LB: loop body
LE: loop exit
PB: predicated region body
PF: predicated region fallthrough
CT: control target
= control target key end

     0   :  { %v361_v0 = vmov 0   ;;  %vm138_vm0 = vcmask 130048   ;;  %s452_s1 = inlined_call_operand.vmem [shape: bf16[144,128], index: 1, kind: input, shape index: {}]   ;;  %s453_s0 = inlined_call_operand.vmem [shape: bf16[64,144], index: 0, kind: input, shape index: {}]   ;;  %s454_s2 = inlined_call_operand.vmem [shape: f32[1,128], index: 2, kind: input, shape index: {}]   ;;  %s455_s3 = inlined_call_operand.vmem [shape: bf16[64,128], index: 3, kind: output, shape index: {}]  }
   0x1   :  { %151 = vmatprep.subr.bf16.mxu0 %v361_v0  ;;  %321 = vmatprep.subr.bf16.mxu1 %v361_v0  ;;  %v340_v1 = vld [vmem:[%s452_s1 + $0x38] sm:$0xff]   ;;  %v341_v2 = vld [vmem:[%s452_s1 + $0x30] sm:$0xff]   ;;  %v342_v3 = vld [vmem:[%s452_s1 + $0x28] sm:$0xff]  }
   0x2   :  { %152 = vmatpush1.bf16.msra.mxu0 %v340_v1  ;;  %330 = vmatpush1.bf16.msra.mxu1 %v340_v1  ;;  %v343_v4 = vld [vmem:[%s452_s1 + $0x20] sm:$0xff]   ;;  %v344_v7 = vld [vmem:[%s452_s1 + $0x18] sm:$0xff]   ;;  %v345_v8 = vld [vmem:[%s452_s1 + $0x10] sm:$0xff]  }
   0x3   :  { %153 = vmatprep.subr.bf16.mxu0 %v361_v0  ;;  %322 = vmatprep.subr.bf16.mxu1 %v361_v0  ;;  %v351_v5 = vld [vmem:[%s453_s0 + $0x4] ss:$8 sps:$4 sm:$0xff]   ;;  %v349_v12 = vld [vmem:[%s453_s0] ss:$8 sps:$4 sm:$0xff]   ;;  %v355_v14 = vld [vmem:[%s453_s0 + $0x14] ss:$8 sps:$4 sm:$0xff]  }
   0x4   :  { %v354_v6 = vld [vmem:[%s453_s0 + $0x24] ss:$8 sps:$4 sm:$0xff]   ;;  %278 = vmatprep.mubr.msk.bf16.mxu0 %vm138_vm0, %v351_v5  ;;  %v352_v13 = vld [vmem:[%s453_s0 + $0x20] ss:$8 sps:$4 sm:$0xff]   ;;  %v357_v15 = vld [vmem:[%s453_s0 + $0x34] ss:$8 sps:$4 sm:$0xff]  }
   0x5   :  { %280 = vmatprep.mubr.msk.bf16.mxu1 %vm138_vm0, %v354_v6  ;;  %v346_v9 = vld [vmem:[%s452_s1 + $0x8] sm:$0xff]   ;;  %v347_v10 = vld [vmem:[%s452_s1] sm:$0xff]   ;;  %v359_v16 = vld [vmem:[%s453_s0 + $0x10] ss:$8 sps:$4 sm:$0xff]  }
   0x6   :  { %154 = vmatpush1.bf16.msra.mxu0 %v341_v2  ;;  %331 = vmatpush1.bf16.msra.mxu1 %v341_v2  ;;  %v348_v11 = vld [vmem:[%s452_s1 + $0x40] sm:$0xff]   ;;  %v360_v17 = vld [vmem:[%s453_s0 + $0x30] ss:$8 sps:$4 sm:$0xff]  }
   0x7   :  { %155 = vmatprep.subr.bf16.mxu0 %v361_v0  ;;  %323 = vmatprep.subr.bf16.mxu1 %v361_v0  ;;  %v260_v20 = vld [vmem:[%s454_s2] ss:$0 sm:$0xff] }
   0xa   :  { %156 = vmatpush1.bf16.msra.mxu0 %v342_v3  ;;  %332 = vmatpush1.bf16.msra.mxu1 %v342_v3 }
   0xb   :  { %157 = vmatprep.subr.bf16.mxu0 %v361_v0  ;;  %324 = vmatprep.subr.bf16.mxu1 %v361_v0 }
   0xe   :  { %158 = vmatpush1.bf16.msra.mxu0 %v343_v4  ;;  %333 = vmatpush1.bf16.msra.mxu1 %v343_v4 }
   0xf   :  { %159 = vmatprep.subr.bf16.mxu0 %v361_v0  ;;  %325 = vmatprep.subr.bf16.mxu1 %v361_v0 }
  0x12   :  { %160 = vmatpush1.bf16.msra.mxu0 %v344_v7  ;;  %334 = vmatpush1.bf16.msra.mxu1 %v344_v7 }
  0x13   :  { %161 = vmatprep.subr.bf16.mxu0 %v361_v0  ;;  %326 = vmatprep.subr.bf16.mxu1 %v361_v0 }
  0x16   :  { %162 = vmatpush1.bf16.msra.mxu0 %v345_v8  ;;  %335 = vmatpush1.bf16.msra.mxu1 %v345_v8 }
  0x17   :  { %163 = vmatprep.subr.bf16.mxu0 %v361_v0  ;;  %327 = vmatprep.subr.bf16.mxu1 %v361_v0 }
  0x1a   :  { %164 = vmatpush1.bf16.msra.mxu0 %v346_v9  ;;  %336 = vmatpush1.bf16.msra.mxu1 %v346_v9 }
  0x1b   :  { %165 = vmatprep.subr.bf16.mxu0 %v361_v0  ;;  %328 = vmatprep.subr.bf16.mxu1 %v361_v0 }
  0x1e   :  { %166 = vmatpush1.bf16.msra.mxu0 %v347_v10  ;;  %337 = vmatpush1.bf16.msra.mxu1 %v347_v10 }
  0x1f   :  { %181 = vmatprep.subr.bf16.mxu0 %v361_v0  ;;  %329 = vmatprep.subr.bf16.mxu1 %v361_v0 }
  0x22   :  { %182 = vmatpush2.bf16.msra.mxu0 %v348_v11  ;;  %338 = vmatpush2.bf16.msra.mxu1 %v348_v11 }
  0x25   :  { %184 = vmatmul.mubr.bf16.vlgmr.msra.gmra.mxu0 %v349_v12  ;;  %200 = vmatmul.mubr.bf16.vlgmr.msra.gmra.mxu1 %v352_v13 }
  0x26   :  { %279 = vmatprep.mubr.msk.bf16.mxu0 %vm138_vm0, %v355_v14  ;;  %281 = vmatprep.mubr.msk.bf16.mxu1 %vm138_vm0, %v357_v15 }
  0x2d   :  { %192 = vmatmul.mubr.bf16.gmra.mxu0 %v359_v16  ;;  %208 = vmatmul.mubr.bf16.gmra.mxu1 %v360_v17 }
  0xe5   :  { %v185_v18 = vpop.f32.mrf.mxu0  ;;  %v201_v19 = vpop.f32.mrf.mxu1 }
  0xe6   :  { %v186_v25 = vadd.f32 %v260_v20, %v185_v18  ;;  %v202_v26 = vadd.f32 %v260_v20, %v201_v19 }
  0xe7   :  { %v187_v21 = vpop.f32.mrf.mxu0  ;;  %v203_v22 = vpop.f32.mrf.mxu1 }
  0xe9   :  { %v188_v23 = vpop.f32.mrf.mxu0  ;;  %v204_v24 = vpop.f32.mrf.mxu1 }
  0xea   :  { %v189_v27 = vadd.f32 %v260_v20, %v188_v23  ;;  %v205_v28 = vadd.f32 %v260_v20, %v204_v24 }
  0xeb   :  { %v190_v29 = vpop.f32.mrf.mxu0  ;;  %v206_v30 = vpop.f32.mrf.mxu1 }
  0xec   :  { %v301_v31 = vpack.c.bf16 %v189_v27, %v186_v25  ;;  %v311_v32 = vpack.c.bf16 %v205_v28, %v202_v26 }
  0xed   :  { %v193_v33 = vpop.f32.mrf.mxu0  ;;  %v209_v34 = vpop.f32.mrf.mxu1 }
  0xee   :  { %302 = vst [vmem:[%s455_s3] sm:$0xff] %v301_v31   ;;  %319 = vst [vmem:[%s455_s3 + $0x10] sm:$0xff] %v311_v32   ;;  %v194_v39 = vadd.f32 %v260_v20, %v193_v33  ;;  %v210_v40 = vadd.f32 %v260_v20, %v209_v34 }
  0xef   :  { %v195_v35 = vpop.f32.mrf.mxu0  ;;  %v211_v36 = vpop.f32.mrf.mxu1 }
  0xf1   :  { %v196_v37 = vpop.f32.mrf.mxu0  ;;  %v212_v38 = vpop.f32.mrf.mxu1 }
  0xf2   :  { %v197_v41 = vadd.f32 %v260_v20, %v196_v37  ;;  %v213_v42 = vadd.f32 %v260_v20, %v212_v38 }
  0xf3   :  { %v198_v43 = vpop.f32.mrf.mxu0  ;;  %v214_v44 = vpop.f32.mrf.mxu1 }
  0xf4   :  { %v306_v45 = vpack.c.bf16 %v197_v41, %v194_v39  ;;  %v316_v46 = vpack.c.bf16 %v213_v42, %v210_v40 }
  0xf6   :  { %318 = vst [vmem:[%s455_s3 + $0x8] sm:$0xff] %v306_v45   ;;  %320 = vst [vmem:[%s455_s3 + $0x18] sm:$0xff] %v316_v46  }

// kernel: _lambda_.34
= control target key start
LH: loop header
LB: loop body
LE: loop exit
PB: predicated region body
PF: predicated region fallthrough
CT: control target
= control target key end

     0   :  { %vm242_vm0 = vcmask 261120   ;;  %s740_s1 = inlined_call_operand.vmem [shape: bf16[288,128], index: 1, kind: input, shape index: {}]   ;;  %s741_s0 = inlined_call_operand.vmem [shape: bf16[64,288], index: 0, kind: input, shape index: {}]   ;;  %s742_s2 = inlined_call_operand.vmem [shape: f32[1,128], index: 2, kind: input, shape index: {}]   ;;  %s743_s3 = inlined_call_operand.vmem [shape: bf16[64,128], index: 3, kind: output, shape index: {}]  }
   0x1   :  { %v577_v0 = vld [vmem:[%s740_s1 + $0x78] sm:$0xff]   ;;  %v579_v2 = vld [vmem:[%s740_s1 + $0x70] sm:$0xff]   ;;  %v581_v4 = vld [vmem:[%s740_s1 + $0x68] sm:$0xff]  }
   0x2   :  { %v578_v1 = vld [vmem:[%s740_s1 + $0x38] sm:$0xff]   ;;  %503 = vmatprep.subr.bf16.mxu0 %v577_v0  ;;  %561 = vmatprep.subr.bf16.mxu1 %v577_v0  ;;  %v580_v3 = vld [vmem:[%s740_s1 + $0x30] sm:$0xff]   ;;  %v582_v5 = vld [vmem:[%s740_s1 + $0x28] sm:$0xff]  }
   0x3   :  { %504 = vmatpush3.bf16.msra.mxu0 %v578_v1  ;;  %569 = vmatpush3.bf16.msra.mxu1 %v578_v1  ;;  %v583_v6 = vld [vmem:[%s740_s1 + $0x60] sm:$0xff]   ;;  %v585_v8 = vld [vmem:[%s740_s1 + $0x58] sm:$0xff]   ;;  %v587_v10 = vld [vmem:[%s740_s1 + $0x50] sm:$0xff]  }
   0x4   :  { %505 = vmatprep.subr.bf16.mxu0 %v579_v2  ;;  %562 = vmatprep.subr.bf16.mxu1 %v579_v2  ;;  %v584_v7 = vld [vmem:[%s740_s1 + $0x20] sm:$0xff]   ;;  %v586_v9 = vld [vmem:[%s740_s1 + $0x18] sm:$0xff]   ;;  %v588_v13 = vld [vmem:[%s740_s1 + $0x10] sm:$0xff]  }
   0x5   :  { %v595_v11 = vld [vmem:[%s741_s0 + $0x4] ss:$12 sps:$4 sm:$0xff]   ;;  %v598_v12 = vld [vmem:[%s741_s0 + $0x4c] ss:$12 sps:$4 sm:$0xff]   ;;  %v596_v20 = vld [vmem:[%s741_s0 + $0x48] ss:$12 sps:$4 sm:$0xff]  }
   0x6   :  { %v589_v14 = vld [vmem:[%s740_s1 + $0x48] sm:$0xff]   ;;  %287 = vmatprep.mubr.bf16.mxu0 %v595_v11  ;;  %311 = vmatprep.mubr.bf16.mxu1 %v598_v12  ;;  %v591_v16 = vld [vmem:[%s740_s1 + $0x40] sm:$0xff]   ;;  %v609_v28 = vld [vmem:[%s741_s0 + $0x30] ss:$12 sps:$4 sm:$0xff]  }
   0x7   :  { %506 = vmatpush3.bf16.msra.mxu0 %v580_v3  ;;  %570 = vmatpush3.bf16.msra.mxu1 %v580_v3  ;;  %v590_v15 = vld [vmem:[%s740_s1 + $0x8] sm:$0xff]   ;;  %v592_v17 = vld [vmem:[%s740_s1] sm:$0xff]   ;;  %v610_v29 = vld [vmem:[%s741_s0 + $0x50] ss:$12 sps:$4 sm:$0xff]  }
   0x8   :  { %507 = vmatprep.subr.bf16.mxu0 %v581_v4  ;;  %563 = vmatprep.subr.bf16.mxu1 %v581_v4  ;;  %v599_v18 = vld [vmem:[%s740_s1 + $0x88] sm:$0xff]   ;;  %v600_v22 = vld [vmem:[%s740_s1 + $0x80] sm:$0xff]  }
   0x9   :  { %v593_v19 = vld [vmem:[%s741_s0] ss:$12 sps:$4 sm:$0xff]   ;;  %v601_v21 = vld [vmem:[%s741_s0 + $0x1c] ss:$12 sps:$4 sm:$0xff]   ;;  %v604_v24 = vld [vmem:[%s741_s0 + $0x18] ss:$12 sps:$4 sm:$0xff]  }
   0xa   :  { %v603_v23 = vld [vmem:[%s741_s0 + $0x8] ss:$12 sps:$4 sm:$0xff]   ;;  %v605_v25 = vld [vmem:[%s741_s0 + $0x20] ss:$12 sps:$4 sm:$0xff]   ;;  %v608_v27 = vld [vmem:[%s741_s0 + $0x38] ss:$12 sps:$4 sm:$0xff]  }
   0xb   :  { %508 = vmatpush3.bf16.msra.mxu0 %v582_v5  ;;  %571 = vmatpush3.bf16.msra.mxu1 %v582_v5  ;;  %v606_v26 = vld [vmem:[%s741_s0 + $0x34] ss:$12 sps:$4 sm:$0xff]  }
   0xc   :  { %509 = vmatprep.subr.bf16.mxu0 %v583_v6  ;;  %564 = vmatprep.subr.bf16.mxu1 %v583_v6  ;;  %v429_v42 = vld [vmem:[%s742_s2] ss:$0 sm:$0xff] }
   0xf   :  { %510 = vmatpush3.bf16.msra.mxu0 %v584_v7  ;;  %572 = vmatpush3.bf16.msra.mxu1 %v584_v7 }
  0x10   :  { %511 = vmatprep.subr.bf16.mxu0 %v585_v8  ;;  %565 = vmatprep.subr.bf16.mxu1 %v585_v8 }
  0x13   :  { %512 = vmatpush3.bf16.msra.mxu0 %v586_v9  ;;  %573 = vmatpush3.bf16.msra.mxu1 %v586_v9 }
  0x14   :  { %513 = vmatprep.subr.bf16.mxu0 %v587_v10  ;;  %566 = vmatprep.subr.bf16.mxu1 %v587_v10 }
  0x17   :  { %514 = vmatpush3.bf16.msra.mxu0 %v588_v13  ;;  %574 = vmatpush3.bf16.msra.mxu1 %v588_v13 }
  0x18   :  { %515 = vmatprep.subr.bf16.mxu0 %v589_v14  ;;  %567 = vmatprep.subr.bf16.mxu1 %v589_v14 }
  0x1b   :  { %516 = vmatpush3.bf16.msra.mxu0 %v590_v15  ;;  %575 = vmatpush3.bf16.msra.mxu1 %v590_v15 }
  0x1c   :  { %517 = vmatprep.subr.bf16.mxu0 %v591_v16  ;;  %568 = vmatprep.subr.bf16.mxu1 %v591_v16 }
  0x1f   :  { %518 = vmatpush3.bf16.msra.mxu0 %v592_v17  ;;  %576 = vmatpush3.bf16.msra.mxu1 %v592_v17 }
  0x20   :  { %549 = vmatprep.subr.bf16.mxu1 %v599_v18 }
  0x22   :  { %288 = vmatmul.mubr.bf16.vlgmr.msra.gmra.mxu0 %v593_v19  ;;  %312 = vmatmul.mubr.bf16.vlgmr.msra.gmra.mxu1 %v596_v20 }
  0x23   :  { %550 = vmatpush3.bf16.msra.mxu1 %v599_v18  ;;  %295 = vmatprep.mubr.bf16.mxu0 %v601_v21 }
  0x24   :  { %551 = vmatprep.subr.bf16.mxu1 %v600_v22  ;;  %553 = vmatprep.mubr.msk.bf16.mxu1 %vm242_vm0, %v603_v23 }
  0x27   :  { %552 = vmatpush3.bf16.msra.mxu1 %v600_v22 }
  0x2a   :  { %296 = vmatmul.mubr.bf16.gmra.mxu0 %v604_v24  ;;  %554 = vmatmul.mubr.msk.bf16.vlgmr.msra.gmra.mxu1 %vm242_vm0, %v605_v25 }
  0x2b   :  { %303 = vmatprep.mubr.bf16.mxu0 %v606_v26  ;;  %557 = vmatprep.mubr.msk.bf16.mxu1 %vm242_vm0, %v608_v27 }
  0x32   :  { %304 = vmatmul.mubr.bf16.gmra.mxu0 %v609_v28  ;;  %558 = vmatmul.mubr.msk.bf16.gmra.mxu1 %vm242_vm0, %v610_v29 }
  0xe2   :  { %v519_v30 = vpop.f32.mrf.mxu0  ;;  %v537_v31 = vpop.f32.mrf.mxu1 }
  0xe4   :  { %v520_v32 = vpop.f32.mrf.mxu0  ;;  %v538_v33 = vpop.f32.mrf.mxu1 }
  0xe5   :  { %v521_v40 = vadd.f32 %v520_v32, %v519_v30  ;;  %v539_v50 = vadd.f32 %v538_v33, %v537_v31 }
  0xe6   :  { %v522_v34 = vpop.f32.mrf.mxu0  ;;  %v540_v35 = vpop.f32.mrf.mxu1 }
  0xe7   :  { %v290_v48 = vadd.f32 %v521_v40, %v429_v42  ;;  %v314_v62 = vadd.f32 %v539_v50, %v429_v42 }
  0xe8   :  { %v523_v36 = vpop.f32.mrf.mxu0  ;;  %v541_v37 = vpop.f32.mrf.mxu1 }
  0xe9   :  { %v524_v41 = vadd.f32 %v523_v36, %v522_v34  ;;  %v542_v51 = vadd.f32 %v541_v37, %v540_v35 }
  0xea   :  { %v525_v38 = vpop.f32.mrf.mxu0  ;;  %v555_v39 = vpop.f32.mrf.mxu1 }
  0xeb   :  { %v293_v49 = vadd.f32 %v524_v41, %v429_v42  ;;  %v317_v4 = vadd.f32 %v542_v51, %v429_v42 }
  0xec   :  { %v526_v43 = vpop.f32.mrf.mxu0  ;;  %v354_v44 = vpop.f32.mrf.mxu1 }
  0xed   :  { %v527_v45 = vadd.f32 %v526_v43, %v525_v38  ;;  %v355_v55 = vadd.f32 %v354_v44, %v290_v48 }
  0xee   :  { %v528_v46 = vpop.f32.mrf.mxu0  ;;  %v556_v47 = vpop.f32.mrf.mxu1 }
  0xef   :  { %v298_v54 = vadd.f32 %v527_v45, %v429_v42 }
  0xf0   :  { %v529_v52 = vpop.f32.mrf.mxu0  ;;  %v357_v53 = vpop.f32.mrf.mxu1 }
  0xf1   :  { %v530_v56 = vadd.f32 %v529_v52, %v528_v46  ;;  %v358_v57 = vadd.f32 %v357_v53, %v293_v49  ;;  %v363_v1 = vadd.f32 %v555_v39, %v298_v54 }
  0xf2   :  { %v531_v58 = vpop.f32.mrf.mxu0  ;;  %v559_v59 = vpop.f32.mrf.mxu1 }
  0xf3   :  { %v301_v60 = vadd.f32 %v530_v56, %v429_v42  ;;  %v483_v61 = vpack.c.bf16 %v358_v57, %v355_v55  ;;  %v379_v8 = vadd.f32 %v559_v59, %v314_v62 }
  0xf4   :  { %v532_v63 = vpop.f32.mrf.mxu0  ;;  %v370_v0 = vpop.f32.mrf.mxu1 }
  0xf5   :  { %v366_v2 = vadd.f32 %v556_v47, %v301_v60  ;;  %484 = vst [vmem:[%s743_s3] sm:$0xff] %v483_v61   ;;  %v533_v3 = vadd.f32 %v532_v63, %v531_v58 }
  0xf6   :  { %v534_v5 = vpop.f32.mrf.mxu0  ;;  %v560_v6 = vpop.f32.mrf.mxu1 }
  0xf7   :  { %v488_v7 = vpack.c.bf16 %v366_v2, %v363_v1  ;;  %v382_v9 = vadd.f32 %v560_v6, %v317_v4  ;;  %v306_v11 = vadd.f32 %v533_v3, %v429_v42 }
  0xf8   :  { %v535_v10 = vpop.f32.mrf.mxu0  ;;  %v373_v15 = vpop.f32.mrf.mxu1 }
  0xf9   :  { %500 = vst [vmem:[%s743_s3 + $0x8] sm:$0xff] %v488_v7   ;;  %v498_v12 = vpack.c.bf16 %v382_v9, %v379_v8  ;;  %v536_v13 = vadd.f32 %v535_v10, %v534_v5  ;;  %v371_v16 = vadd.f32 %v370_v0, %v306_v11 }
  0xfb   :  { %502 = vst [vmem:[%s743_s3 + $0x18] sm:$0xff] %v498_v12   ;;  %v309_v14 = vadd.f32 %v536_v13, %v429_v42 }
  0xfd   :  { %v374_v17 = vadd.f32 %v373_v15, %v309_v14 }
  0xff   :  { %v493_v18 = vpack.c.bf16 %v374_v17, %v371_v16 }
 0x101   :  { %501 = vst [vmem:[%s743_s3 + $0x10] sm:$0xff] %v493_v18  }

// kernel: _lambda_.35
= control target key start
LH: loop header
LB: loop body
LE: loop exit
PB: predicated region body
PF: predicated region fallthrough
CT: control target
= control target key end

     0   :  { %v374_v1 = vmov 0.0   ;;  %vm375_vm0 = vmmov 0   ;;  %vm185_vm1 = vcmask 261120   ;;  %s465_s1 = inlined_call_operand.vmem [shape: bf16[288,128], index: 1, kind: input, shape index: {}]   ;;  %s466_s0 = inlined_call_operand.vmem [shape: bf16[16,288], index: 0, kind: input, shape index: {}]   ;;  %s467_s2 = inlined_call_operand.vmem [shape: f32[1,128], index: 2, kind: input, shape index: {}]   ;;  %s468_s3 = inlined_call_operand.vmem [shape: bf16[16,128], index: 3, kind: output, shape index: {}]  }
   0x1   :  { %v352_v0 = vld [vmem:[%s465_s1 + $0x78] sm:$0xff]   ;;  %342 = vmatprep.subr.bf16.mxu1 %v374_v1  ;;  %346 = vmatprep.mubr.msk.bf16.mxu1 %vm375_vm0, %v374_v1  ;;  %v354_v3 = vld [vmem:[%s465_s1 + $0x70] sm:$0xff]   ;;  %v356_v5 = vld [vmem:[%s465_s1 + $0x68] sm:$0xff]  }
   0x2   :  { %v353_v2 = vld [vmem:[%s465_s1 + $0x38] sm:$0xff]   ;;  %317 = vmatprep.subr.bf16.mxu0 %v352_v0  ;;  %v355_v4 = vld [vmem:[%s465_s1 + $0x30] sm:$0xff]   ;;  %v357_v6 = vld [vmem:[%s465_s1 + $0x28] sm:$0xff]  }
   0x3   :  { %318 = vmatpush3.bf16.msra.mxu0 %v353_v2  ;;  %v358_v7 = vld [vmem:[%s465_s1 + $0x60] sm:$0xff]   ;;  %v360_v9 = vld [vmem:[%s465_s1 + $0x58] sm:$0xff]   ;;  %v366_v10 = vld [vmem:[%s465_s1 + $0x88] sm:$0xff]  }
   0x4   :  { %319 = vmatprep.subr.bf16.mxu0 %v354_v3  ;;  %v359_v8 = vld [vmem:[%s465_s1 + $0x20] sm:$0xff]   ;;  %v361_v11 = vld [vmem:[%s465_s1 + $0x18] sm:$0xff]   ;;  %v362_v12 = vld [vmem:[%s465_s1 + $0x50] sm:$0xff]   ;;  %343 = vmatpush3.bf16.msra.mxu1 %v366_v10 }
   0x5   :  { %344 = vmatprep.subr.bf16.mxu1 %v374_v1  ;;  %v369_v13 = vld [vmem:[%s465_s1 + $0x80] sm:$0xff]   ;;  %v363_v14 = vld [vmem:[%s465_s1 + $0x10] sm:$0xff]   ;;  %v364_v16 = vld [vmem:[%s465_s1 + $0x48] sm:$0xff]  }
   0x6   :  { %v372_v15 = vld [vmem:[%s466_s0 + $0x4] ss:$12 sps:$4 sm:$0xff]   ;;  %v373_v17 = vld [vmem:[%s466_s0 + $0x8] ss:$12 sps:$4 sm:$0xff]   ;;  %v370_v21 = vld [vmem:[%s466_s0] ss:$12 sps:$4 sm:$0xff]  }
   0x7   :  { %320 = vmatpush3.bf16.msra.mxu0 %v355_v4  ;;  %221 = vmatprep.mubr.bf16.mxu0 %v372_v15  ;;  %v365_v18 = vld [vmem:[%s465_s1 + $0x8] sm:$0xff]   ;;  %v367_v19 = vld [vmem:[%s465_s1 + $0x40] sm:$0xff]  }
   0x8   :  { %321 = vmatprep.subr.bf16.mxu0 %v356_v5  ;;  %345 = vmatpush3.bf16.msra.mxu1 %v369_v13  ;;  %v368_v20 = vld [vmem:[%s465_s1] sm:$0xff]  }
   0x9   :  { %v285_v29 = vld [vmem:[%s467_s2] ss:$0 sm:$0xff] }
   0xb   :  { %322 = vmatpush3.bf16.msra.mxu0 %v357_v6  ;;  %347 = vmatmul.mubr.msk.bf16.vlgmr.msra.gmra.mxu1 %vm185_vm1, %v373_v17 }
   0xc   :  { %323 = vmatprep.subr.bf16.mxu0 %v358_v7 }
   0xf   :  { %324 = vmatpush3.bf16.msra.mxu0 %v359_v8 }
  0x10   :  { %325 = vmatprep.subr.bf16.mxu0 %v360_v9 }
  0x13   :  { %326 = vmatpush3.bf16.msra.mxu0 %v361_v11 }
  0x14   :  { %327 = vmatprep.subr.bf16.mxu0 %v362_v12 }
  0x17   :  { %328 = vmatpush3.bf16.msra.mxu0 %v363_v14 }
  0x18   :  { %329 = vmatprep.subr.bf16.mxu0 %v364_v16 }
  0x1b   :  { %330 = vmatpush3.bf16.msra.mxu0 %v365_v18 }
  0x1c   :  { %331 = vmatprep.subr.bf16.mxu0 %v367_v19 }
  0x1f   :  { %332 = vmatpush3.bf16.msra.mxu0 %v368_v20 }
  0x22   :  { %222 = vmatmul.mubr.bf16.vlgmr.msra.gmra.mxu0 %v370_v21 }
  0xcb   :  { %v264_v22 = vpop.f32.mrf.mxu1 }
  0xcd   :  { %v348_v23 = vpop.f32.mrf.mxu1 }
  0xcf   :  { %v267_v24 = vpop.f32.mrf.mxu1 }
  0xd1   :  { %v349_v25 = vpop.f32.mrf.mxu1 }
  0xe2   :  { %v333_v26 = vpop.f32.mrf.mxu0 }
  0xe4   :  { %v334_v27 = vpop.f32.mrf.mxu0 }
  0xe5   :  { %v335_v28 = vadd.f32 %v334_v27, %v333_v26 }
  0xe6   :  { %v336_v30 = vpop.f32.mrf.mxu0 }
  0xe7   :  { %v224_v32 = vadd.f32 %v335_v28, %v285_v29 }
  0xe8   :  { %v337_v31 = vpop.f32.mrf.mxu0 }
  0xe9   :  { %v338_v33 = vadd.f32 %v337_v31, %v336_v30  ;;  %v265_v35 = vadd.f32 %v264_v22, %v224_v32 }
  0xeb   :  { %v227_v34 = vadd.f32 %v338_v33, %v285_v29 }
  0xed   :  { %v268_v36 = vadd.f32 %v267_v24, %v227_v34 }
  0xef   :  { %v315_v37 = vpack.c.bf16 %v268_v36, %v265_v35 }
  0xf1   :  { %316 = vst [vmem:[%s468_s3] sm:$0xff] %v315_v37  }

// kernel: _lambda_.37
= control target key start
LH: loop header
LB: loop body
LE: loop exit
PB: predicated region body
PF: predicated region fallthrough
CT: control target
= control target key end

     0   :  { %v640_v33 = vmov 0.0   ;;  %vm641_vm0 = vmmov 0   ;;  %vm341_vm1 = vcmask 523264   ;;  %s791_s1 = inlined_call_operand.vmem [shape: bf16[576,128], index: 1, kind: input, shape index: {}]   ;;  %s792_s0 = inlined_call_operand.vmem [shape: bf16[16,576], index: 0, kind: input, shape index: {}]   ;;  %s793_s2 = inlined_call_operand.vmem [shape: f32[1,128], index: 2, kind: input, shape index: {}]   ;;  %s794_s3 = inlined_call_operand.vmem [shape: bf16[16,128], index: 3, kind: output, shape index: {}]  }
   0x1   :  { %v597_v0 = vld [vmem:[%s791_s1 + $0x78] sm:$0xff]   ;;  %v601_v4 = vld [vmem:[%s791_s1 + $0x70] sm:$0xff]   ;;  %v605_v8 = vld [vmem:[%s791_s1 + $0x68] sm:$0xff]  }
   0x2   :  { %v598_v1 = vld [vmem:[%s791_s1 + $0x38] sm:$0xff]   ;;  %534 = vmatprep.subr.bf16.mxu0 %v597_v0  ;;  %v602_v5 = vld [vmem:[%s791_s1 + $0x30] sm:$0xff]   ;;  %v606_v9 = vld [vmem:[%s791_s1 + $0x28] sm:$0xff]  }
   0x3   :  { %v599_v2 = vld [vmem:[%s791_s1 + $0xf8] sm:$0xff]   ;;  %535 = vmatpush3.bf16.msra.mxu0 %v598_v1  ;;  %v603_v6 = vld [vmem:[%s791_s1 + $0xf0] sm:$0xff]   ;;  %v607_v10 = vld [vmem:[%s791_s1 + $0xe8] sm:$0xff]  }
   0x4   :  { %v600_v3 = vld [vmem:[%s791_s1 + $0xb8] sm:$0xff]   ;;  %556 = vmatprep.subr.bf16.mxu1 %v599_v2  ;;  %536 = vmatprep.subr.bf16.mxu0 %v601_v4  ;;  %v604_v7 = vld [vmem:[%s791_s1 + $0xb0] sm:$0xff]   ;;  %v608_v11 = vld [vmem:[%s791_s1 + $0xa8] sm:$0xff]  }
   0x5   :  { %557 = vmatpush3.bf16.msra.mxu1 %v600_v3  ;;  %v609_v12 = vld [vmem:[%s791_s1 + $0x60] sm:$0xff]   ;;  %v613_v16 = vld [vmem:[%s791_s1 + $0x58] sm:$0xff]   ;;  %v617_v20 = vld [vmem:[%s791_s1 + $0x50] sm:$0xff]  }
   0x6   :  { %558 = vmatprep.subr.bf16.mxu1 %v603_v6  ;;  %v610_v13 = vld [vmem:[%s791_s1 + $0x20] sm:$0xff]   ;;  %v614_v17 = vld [vmem:[%s791_s1 + $0x18] sm:$0xff]   ;;  %v618_v21 = vld [vmem:[%s791_s1 + $0x10] sm:$0xff]  }
   0x7   :  { %537 = vmatpush3.bf16.msra.mxu0 %v602_v5  ;;  %v611_v14 = vld [vmem:[%s791_s1 + $0xe0] sm:$0xff]   ;;  %v615_v18 = vld [vmem:[%s791_s1 + $0xd8] sm:$0xff]   ;;  %v619_v22 = vld [vmem:[%s791_s1 + $0xd0] sm:$0xff]  }
   0x8   :  { %538 = vmatprep.subr.bf16.mxu0 %v605_v8  ;;  %v612_v15 = vld [vmem:[%s791_s1 + $0xa0] sm:$0xff]   ;;  %v616_v19 = vld [vmem:[%s791_s1 + $0x98] sm:$0xff]   ;;  %v620_v23 = vld [vmem:[%s791_s1 + $0x90] sm:$0xff]  }
   0x9   :  { %559 = vmatpush3.bf16.msra.mxu1 %v604_v7  ;;  %v621_v24 = vld [vmem:[%s791_s1 + $0x48] sm:$0xff]   ;;  %v625_v28 = vld [vmem:[%s791_s1 + $0x40] sm:$0xff]   ;;  %v635_v37 = vld [vmem:[%s791_s1 + $0x118] sm:$0xff]  }
   0xa   :  { %560 = vmatprep.subr.bf16.mxu1 %v607_v10  ;;  %v622_v25 = vld [vmem:[%s791_s1 + $0x8] sm:$0xff]   ;;  %v626_v29 = vld [vmem:[%s791_s1] sm:$0xff]   ;;  %v636_v38 = vld [vmem:[%s791_s1 + $0x110] sm:$0xff]  }
   0xb   :  { %539 = vmatpush3.bf16.msra.mxu0 %v606_v9  ;;  %v623_v26 = vld [vmem:[%s791_s1 + $0xc8] sm:$0xff]   ;;  %v627_v30 = vld [vmem:[%s791_s1 + $0xc0] sm:$0xff]  }
   0xc   :  { %540 = vmatprep.subr.bf16.mxu0 %v609_v12  ;;  %v624_v27 = vld [vmem:[%s791_s1 + $0x88] sm:$0xff]   ;;  %v628_v31 = vld [vmem:[%s792_s0] ss:$20 sps:$4 sm:$0xff]   ;;  %v630_v32 = vld [vmem:[%s792_s0 + $0x4] ss:$20 sps:$4 sm:$0xff]  }
   0xd   :  { %561 = vmatpush3.bf16.msra.mxu1 %v608_v11  ;;  %v631_v34 = vld [vmem:[%s791_s1 + $0x80] sm:$0xff]   ;;  %377 = vmatprep.mubr.bf16.mxu0 %v630_v32  ;;  %v632_v35 = vld [vmem:[%s792_s0 + $0x8] ss:$20 sps:$4 sm:$0xff]  }
   0xe   :  { %562 = vmatprep.subr.bf16.mxu1 %v611_v14  ;;  %v634_v36 = vld [vmem:[%s792_s0 + $0xc] ss:$20 sps:$4 sm:$0xff]   ;;  %v639_v41 = vld [vmem:[%s792_s0 + $0x10] ss:$20 sps:$4 sm:$0xff]  }
   0xf   :  { %541 = vmatpush3.bf16.msra.mxu0 %v610_v13  ;;  %418 = vmatprep.mubr.bf16.mxu1 %v634_v36  ;;  %v637_v39 = vld [vmem:[%s791_s1 + $0x108] sm:$0xff]   ;;  %v638_v40 = vld [vmem:[%s791_s1 + $0x100] sm:$0xff]  }
  0x10   :  { %542 = vmatprep.subr.bf16.mxu0 %v613_v16  ;;  %v482_v51 = vld [vmem:[%s793_s2] ss:$0 sm:$0xff] }
  0x11   :  { %563 = vmatpush3.bf16.msra.mxu1 %v612_v15 }
  0x12   :  { %564 = vmatprep.subr.bf16.mxu1 %v615_v18 }
  0x13   :  { %543 = vmatpush3.bf16.msra.mxu0 %v614_v17 }
  0x14   :  { %544 = vmatprep.subr.bf16.mxu0 %v617_v20 }
  0x15   :  { %565 = vmatpush3.bf16.msra.mxu1 %v616_v19 }
  0x16   :  { %566 = vmatprep.subr.bf16.mxu1 %v619_v22 }
  0x17   :  { %545 = vmatpush3.bf16.msra.mxu0 %v618_v21 }
  0x18   :  { %546 = vmatprep.subr.bf16.mxu0 %v621_v24 }
  0x19   :  { %567 = vmatpush3.bf16.msra.mxu1 %v620_v23 }
  0x1a   :  { %568 = vmatprep.subr.bf16.mxu1 %v623_v26 }
  0x1b   :  { %547 = vmatpush3.bf16.msra.mxu0 %v622_v25 }
  0x1c   :  { %548 = vmatprep.subr.bf16.mxu0 %v625_v28 }
  0x1d   :  { %569 = vmatpush3.bf16.msra.mxu1 %v624_v27 }
  0x1e   :  { %570 = vmatprep.subr.bf16.mxu1 %v627_v30 }
  0x1f   :  { %549 = vmatpush3.bf16.msra.mxu0 %v626_v29 }
  0x20   :  { %583 = vmatprep.subr.bf16.mxu0 %v640_v33 }
  0x21   :  { %571 = vmatpush3.bf16.msra.mxu1 %v631_v34 }
  0x22   :  { %378 = vmatmul.mubr.bf16.vlgmr.msra.gmra.mxu0 %v628_v31 }
  0x23   :  { %591 = vmatprep.mubr.msk.bf16.mxu0 %vm641_vm0, %v640_v33  ;;  %584 = vmatpush3.bf16.msra.mxu0 %v635_v37 }
  0x24   :  { %419 = vmatmul.mubr.bf16.vlgmr.msra.gmra.mxu1 %v632_v35  ;;  %585 = vmatprep.subr.bf16.mxu0 %v640_v33 }
  0x27   :  { %586 = vmatpush3.bf16.msra.mxu0 %v636_v38 }
  0x28   :  { %587 = vmatprep.subr.bf16.mxu0 %v640_v33 }
  0x2b   :  { %588 = vmatpush3.bf16.msra.mxu0 %v637_v39 }
  0x2c   :  { %589 = vmatprep.subr.bf16.mxu0 %v640_v33 }
  0x2f   :  { %590 = vmatpush3.bf16.msra.mxu0 %v638_v40 }
  0x32   :  { %592 = vmatmul.mubr.msk.bf16.vlgmr.msra.gmra.mxu0 %vm341_vm1, %v639_v41 }
  0xe2   :  { %v550_v42 = vpop.f32.mrf.mxu0 }
  0xe4   :  { %v551_v43 = vpop.f32.mrf.mxu0  ;;  %v572_v44 = vpop.f32.mrf.mxu1 }
  0xe5   :  { %v552_v49 = vadd.f32 %v551_v43, %v550_v42 }
  0xe6   :  { %v553_v45 = vpop.f32.mrf.mxu0  ;;  %v573_v46 = vpop.f32.mrf.mxu1 }
  0xe7   :  { %v380_v53 = vadd.f32 %v552_v49, %v482_v51  ;;  %v574_v54 = vadd.f32 %v573_v46, %v572_v44 }
  0xe8   :  { %v554_v47 = vpop.f32.mrf.mxu0  ;;  %v575_v48 = vpop.f32.mrf.mxu1 }
  0xe9   :  { %v555_v50 = vadd.f32 %v554_v47, %v553_v45  ;;  %v421_v59 = vadd.f32 %v574_v54, %v380_v53 }
  0xea   :  { %v576_v52 = vpop.f32.mrf.mxu1 }
  0xeb   :  { %v383_v55 = vadd.f32 %v555_v50, %v482_v51  ;;  %v577_v56 = vadd.f32 %v576_v52, %v575_v48 }
  0xed   :  { %v424_v60 = vadd.f32 %v577_v56, %v383_v55 }
  0xf2   :  { %v461_v57 = vpop.f32.mrf.mxu0 }
  0xf3   :  { %v462_v62 = vadd.f32 %v461_v57, %v421_v59 }
  0xf4   :  { %v593_v58 = vpop.f32.mrf.mxu0 }
  0xf6   :  { %v464_v61 = vpop.f32.mrf.mxu0 }
  0xf7   :  { %v465_v63 = vadd.f32 %v464_v61, %v424_v60 }
  0xf8   :  { %v594_v0 = vpop.f32.mrf.mxu0 }
  0xf9   :  { %v532_v1 = vpack.c.bf16 %v465_v63, %v462_v62 }
  0xfb   :  { %533 = vst [vmem:[%s794_s3] sm:$0xff] %v532_v1  }

// kernel: _lambda_.38
= control target key start
LH: loop header
LB: loop body
LE: loop exit
PB: predicated region body
PF: predicated region fallthrough
CT: control target
= control target key end

     0   :  { %v607_v35 = vmov 0.0   ;;  %vm608_vm0 = vmmov 0   ;;  %vm330_vm1 = vcmask 523264   ;;  %s752_s1 = inlined_call_operand.vmem [shape: bf16[576,128], index: 1, kind: input, shape index: {}]   ;;  %s753_s0 = inlined_call_operand.vmem [shape: bf16[8,576], index: 0, kind: input, shape index: {}]   ;;  %s754_s2 = inlined_call_operand.vmem [shape: f32[1,128], index: 2, kind: input, shape index: {}]   ;;  %s755_s3 = inlined_call_operand.vmem [shape: bf16[8,128], index: 3, kind: output, shape index: {}]  }
   0x1   :  { %v566_v0 = vld [vmem:[%s752_s1 + $0x78] sm:$0xff]   ;;  %v570_v4 = vld [vmem:[%s752_s1 + $0x70] sm:$0xff]   ;;  %v574_v8 = vld [vmem:[%s752_s1 + $0x68] sm:$0xff]  }
   0x2   :  { %v567_v1 = vld [vmem:[%s752_s1 + $0x38] sm:$0xff]   ;;  %503 = vmatprep.subr.bf16.mxu0 %v566_v0  ;;  %v571_v5 = vld [vmem:[%s752_s1 + $0x30] sm:$0xff]   ;;  %v575_v9 = vld [vmem:[%s752_s1 + $0x28] sm:$0xff]  }
   0x3   :  { %v568_v2 = vld [vmem:[%s752_s1 + $0xf8] sm:$0xff]   ;;  %504 = vmatpush3.bf16.msra.mxu0 %v567_v1  ;;  %v572_v6 = vld [vmem:[%s752_s1 + $0xf0] sm:$0xff]   ;;  %v576_v10 = vld [vmem:[%s752_s1 + $0xe8] sm:$0xff]  }
   0x4   :  { %v569_v3 = vld [vmem:[%s752_s1 + $0xb8] sm:$0xff]   ;;  %525 = vmatprep.subr.bf16.mxu1 %v568_v2  ;;  %505 = vmatprep.subr.bf16.mxu0 %v570_v4  ;;  %v573_v7 = vld [vmem:[%s752_s1 + $0xb0] sm:$0xff]   ;;  %v577_v11 = vld [vmem:[%s752_s1 + $0xa8] sm:$0xff]  }
   0x5   :  { %526 = vmatpush3.bf16.msra.mxu1 %v569_v3  ;;  %v578_v12 = vld [vmem:[%s752_s1 + $0x60] sm:$0xff]   ;;  %v582_v16 = vld [vmem:[%s752_s1 + $0x58] sm:$0xff]   ;;  %v586_v20 = vld [vmem:[%s752_s1 + $0x50] sm:$0xff]  }
   0x6   :  { %527 = vmatprep.subr.bf16.mxu1 %v572_v6  ;;  %v579_v13 = vld [vmem:[%s752_s1 + $0x20] sm:$0xff]   ;;  %v583_v17 = vld [vmem:[%s752_s1 + $0x18] sm:$0xff]   ;;  %v587_v21 = vld [vmem:[%s752_s1 + $0x10] sm:$0xff]  }
   0x7   :  { %506 = vmatpush3.bf16.msra.mxu0 %v571_v5  ;;  %v580_v14 = vld [vmem:[%s752_s1 + $0xe0] sm:$0xff]   ;;  %v584_v18 = vld [vmem:[%s752_s1 + $0xd8] sm:$0xff]   ;;  %v588_v22 = vld [vmem:[%s752_s1 + $0xd0] sm:$0xff]  }
   0x8   :  { %507 = vmatprep.subr.bf16.mxu0 %v574_v8  ;;  %v581_v15 = vld [vmem:[%s752_s1 + $0xa0] sm:$0xff]   ;;  %v585_v19 = vld [vmem:[%s752_s1 + $0x98] sm:$0xff]   ;;  %v589_v23 = vld [vmem:[%s752_s1 + $0x90] sm:$0xff]  }
   0x9   :  { %528 = vmatpush3.bf16.msra.mxu1 %v573_v7  ;;  %v590_v24 = vld [vmem:[%s752_s1 + $0x48] sm:$0xff]   ;;  %v594_v28 = vld [vmem:[%s752_s1 + $0x40] sm:$0xff]   ;;  %v603_v39 = vld [vmem:[%s752_s1 + $0x118] sm:$0xff]  }
   0xa   :  { %529 = vmatprep.subr.bf16.mxu1 %v576_v10  ;;  %v591_v25 = vld [vmem:[%s752_s1 + $0x8] sm:$0xff]   ;;  %v595_v29 = vld [vmem:[%s752_s1] sm:$0xff]   ;;  %v604_v40 = vld [vmem:[%s752_s1 + $0x110] sm:$0xff]  }
   0xb   :  { %508 = vmatpush3.bf16.msra.mxu0 %v575_v9  ;;  %v592_v26 = vld [vmem:[%s752_s1 + $0xc8] sm:$0xff]   ;;  %v596_v30 = vld [vmem:[%s752_s1 + $0xc0] sm:$0xff]   ;;  %v599_v43 = vld [vmem:[%s753_s0 + $0x10] ss:$0 sps:$4 sm:$0xff]  }
   0xc   :  { %509 = vmatprep.subr.bf16.mxu0 %v578_v12  ;;  %v593_v27 = vld [vmem:[%s752_s1 + $0x88] sm:$0xff]   ;;  %v15_v31 = vld [vmem:[%s753_s0] sm:$0xff] }
   0xd   :  { %530 = vmatpush3.bf16.msra.mxu1 %v577_v11  ;;  %v461_v32 = vcombine.low %v15_v31, %v15_v31  ;;  %v462_v33 = vcombine.high %v15_v31, %v15_v31  ;;  %v600_v34 = vld [vmem:[%s752_s1 + $0x80] sm:$0xff]   ;;  %v16_v36 = vld [vmem:[%s753_s0 + $0x8] sm:$0xff] }
   0xe   :  { %531 = vmatprep.subr.bf16.mxu1 %v580_v14  ;;  %v463_v37 = vcombine.low %v16_v36, %v16_v36  ;;  %v464_v38 = vcombine.high %v16_v36, %v16_v36  ;;  %v605_v41 = vld [vmem:[%s752_s1 + $0x108] sm:$0xff]   ;;  %v606_v42 = vld [vmem:[%s752_s1 + $0x100] sm:$0xff]  }
   0xf   :  { %510 = vmatpush3.bf16.msra.mxu0 %v579_v13  ;;  %366 = vmatprep.mubr.bf16.mxu0 %v462_v33  ;;  %v460_v52 = vld [vmem:[%s754_s2] ss:$0 sm:$0xff] }
  0x10   :  { %511 = vmatprep.subr.bf16.mxu0 %v582_v16  ;;  %406 = vmatprep.mubr.bf16.mxu1 %v464_v38 }
  0x11   :  { %532 = vmatpush3.bf16.msra.mxu1 %v581_v15 }
  0x12   :  { %533 = vmatprep.subr.bf16.mxu1 %v584_v18 }
  0x13   :  { %512 = vmatpush3.bf16.msra.mxu0 %v583_v17 }
  0x14   :  { %513 = vmatprep.subr.bf16.mxu0 %v586_v20 }
  0x15   :  { %534 = vmatpush3.bf16.msra.mxu1 %v585_v19 }
  0x16   :  { %535 = vmatprep.subr.bf16.mxu1 %v588_v22 }
  0x17   :  { %514 = vmatpush3.bf16.msra.mxu0 %v587_v21 }
  0x18   :  { %515 = vmatprep.subr.bf16.mxu0 %v590_v24 }
  0x19   :  { %536 = vmatpush3.bf16.msra.mxu1 %v589_v23 }
  0x1a   :  { %537 = vmatprep.subr.bf16.mxu1 %v592_v26 }
  0x1b   :  { %516 = vmatpush3.bf16.msra.mxu0 %v591_v25 }
  0x1c   :  { %517 = vmatprep.subr.bf16.mxu0 %v594_v28 }
  0x1d   :  { %538 = vmatpush3.bf16.msra.mxu1 %v593_v27 }
  0x1e   :  { %539 = vmatprep.subr.bf16.mxu1 %v596_v30 }
  0x1f   :  { %518 = vmatpush3.bf16.msra.mxu0 %v595_v29 }
  0x20   :  { %552 = vmatprep.subr.bf16.mxu0 %v607_v35 }
  0x21   :  { %540 = vmatpush3.bf16.msra.mxu1 %v600_v34 }
  0x22   :  { %367 = vmatmul.mubr.bf16.vlgmr.msra.gmra.mxu0 %v461_v32 }
  0x23   :  { %553 = vmatpush3.bf16.msra.mxu0 %v603_v39  ;;  %560 = vmatprep.mubr.msk.bf16.mxu0 %vm608_vm0, %v607_v35 }
  0x24   :  { %407 = vmatmul.mubr.bf16.vlgmr.msra.gmra.mxu1 %v463_v37  ;;  %554 = vmatprep.subr.bf16.mxu0 %v607_v35 }
  0x27   :  { %555 = vmatpush3.bf16.msra.mxu0 %v604_v40 }
  0x28   :  { %556 = vmatprep.subr.bf16.mxu0 %v607_v35 }
  0x2b   :  { %557 = vmatpush3.bf16.msra.mxu0 %v605_v41 }
  0x2c   :  { %558 = vmatprep.subr.bf16.mxu0 %v607_v35 }
  0x2f   :  { %559 = vmatpush3.bf16.msra.mxu0 %v606_v42 }
  0x32   :  { %561 = vmatmul.mubr.msk.bf16.vlgmr.msra.gmra.mxu0 %vm330_vm1, %v599_v43 }
  0xe2   :  { %v519_v44 = vpop.f32.mrf.mxu0 }
  0xe4   :  { %v520_v45 = vpop.f32.mrf.mxu0  ;;  %v541_v46 = vpop.f32.mrf.mxu1 }
  0xe5   :  { %v521_v51 = vadd.f32 %v520_v45, %v519_v44 }
  0xe6   :  { %v522_v47 = vpop.f32.mrf.mxu0  ;;  %v542_v48 = vpop.f32.mrf.mxu1 }
  0xe7   :  { %v369_v54 = vadd.f32 %v521_v51, %v460_v52  ;;  %v543_v55 = vadd.f32 %v542_v48, %v541_v46 }
  0xe8   :  { %v523_v49 = vpop.f32.mrf.mxu0  ;;  %v544_v50 = vpop.f32.mrf.mxu1 }
  0xe9   :  { %v409_v56 = vadd.f32 %v543_v55, %v369_v54 }
  0xea   :  { %v545_v53 = vpop.f32.mrf.mxu1 }
  0xf2   :  { %v448_v57 = vpop.f32.mrf.mxu0 }
  0xf3   :  { %v449_v58 = vadd.f32 %v448_v57, %v409_v56 }
  0xf4   :  { %v562_v59 = vpop.f32.mrf.mxu0 }
  0xf5   :  { %v454_v60 = vpack.c.bf16 %v449_v58, %v449_v58 }
  0xf6   :  { %v451_v61 = vpop.f32.mrf.mxu0 }
  0xf7   :  { %455 = vst [vmem:[%s755_s3] sm:$0xf] %v454_v60 }
  0xf8   :  { %v563_v62 = vpop.f32.mrf.mxu0 }

// kernel: _lambda_.41
= control target key start
LH: loop header
LB: loop body
LE: loop exit
PB: predicated region body
PF: predicated region fallthrough
CT: control target
= control target key end

     0   :  { %s710_s12 = smov 0   ;;  %s712_s13 = smov 0   ;;  %s800_s0 = inlined_call_operand.vmem [shape: bf16[8,128], index: 0, kind: input, shape index: {}]   ;;  %s801_s1 = inlined_call_operand.vmem [shape: bf16[128,256], index: 1, kind: input, shape index: {}]   ;;  %s802_s2 = inlined_call_operand.vmem [shape: f32[1,256], index: 2, kind: input, shape index: {}]   ;;  %s803_s3 = inlined_call_operand.vmem [shape: bf16[8,256], index: 3, kind: output, shape index: {}]  }
   0x1   :  { %s714_s14 = smov 0   ;;  %s716_s15 = smov 0  }
   0x2   :  { %s718_s16 = smov 0  }
   0x3 LB: > { %s22_s17 = sadd.s32 1, %s682_s15  ;;  %p65_p1 = scmp.ne.s32.totalorder %s674_s13, %s670_s12  ;;  %s686_s16 = sphi %s718_s16, %s13_s16   ;;  %s682_s15 = sphi %s716_s15, %s807_s15   ;;  %s678_s14 = sphi %s714_s14, %s806_s14   ;;  %s674_s13 = sphi %s712_s13, %s805_s13   ;;  %s670_s12 = sphi %s710_s12, %s804_s12  }
   0x4   : > { %p23_p0 = scmp.ge.s32.totalorder %s22_s17, 2  ;;  %p66_p2 = scmp.eq.s32.totalorder %s686_s16, 0 }
   0x5   : > { %s58_s19 = sadd.s32 1, %s674_s13  ;;  %p552_p5 = scmp.ge.s32.totalorder %s686_s16, 2 }
   0x6   : > { %s809_s17 = smov (%p23_p0, %s22_s17), 0  ;;  %p67_p3 = por %p66_p2, %p65_p1 }
   0x7   : > { %s55_s18 = ssub.s32 %s682_s15, %s809_s17  ;;  %152 = sbr.rel (%p552_p5) target bundleno = 26 (0x1a), region = 20 }
   0x8   : > { %p56_p4 = scmp.eq.s32.totalorder %s55_s18, 0 }
   0xa   : > { %s745_s20 = scalar_select %p56_p4, %s674_s13, %s58_s19  }
   0xc   : > { %155 = sbr.rel (!%p67_p3) target bundleno = 26 (0x1a), region = 24  ;;  %s157_s21 = sand.u32 (%p67_p3), 1, %s674_s13  }
   0xd   : > { %s554_s22 = sshll.u32 (%p67_p3), %s682_s15, 2  ;;  %s553_s23 = sshll.u32 (%p67_p3), %s157_s21, 6 }
   0xe   : > { %s753_s26 = scalar_lea.vmem (%p67_p3), %s801_s1, %s554_s22  ;;  %s159_s27 = scalar_lea.vmem (%p67_p3), [#allocation2], %s553_s23 }
   0xf   : > { %v178_v0 = vld [vmem:[%s753_s26] sm:$0xf] (%p67_p3)  ;;  %v180_v1 = vld [vmem:[%s753_s26 + $0x8] sm:$0xf] (%p67_p3)  ;;  %v182_v2 = vld [vmem:[%s753_s26 + $0x10] sm:$0xf] (%p67_p3) }
  0x10   : > { %179 = vst [vmem:[%s159_s27] sm:$0xf] (%p67_p3), %v178_v0  ;;  %181 = vst [vmem:[%s159_s27 + $0x4] sm:$0xf] (%p67_p3), %v180_v1  ;;  %v184_v3 = vld [vmem:[%s753_s26 + $0x18] sm:$0xf] (%p67_p3) }
  0x11   : > { %v186_v4 = vld [vmem:[%s753_s26 + $0x20] sm:$0xf]  ;;  %183 = vst [vmem:[%s159_s27 + $0x8] sm:$0xf] %v182_v2  ;;  %185 = vst [vmem:[%s159_s27 + $0xc] sm:$0xf] %v184_v3 }
  0x12   : > { %187 = vst [vmem:[%s159_s27 + $0x10] sm:$0xf] %v186_v4  ;;  %v188_v5 = vld [vmem:[%s753_s26 + $0x28] sm:$0xf]  ;;  %v190_v6 = vld [vmem:[%s753_s26 + $0x30] sm:$0xf] }
  0x13   : > { %v192_v7 = vld [vmem:[%s753_s26 + $0x38] sm:$0xf]  ;;  %189 = vst [vmem:[%s159_s27 + $0x14] sm:$0xf] %v188_v5  ;;  %191 = vst [vmem:[%s159_s27 + $0x18] sm:$0xf] %v190_v6 }
  0x14   : > { %193 = vst [vmem:[%s159_s27 + $0x1c] sm:$0xf] %v192_v7  ;;  %v194_v8 = vld [vmem:[%s753_s26 + $0x40] sm:$0xf]  ;;  %v196_v9 = vld [vmem:[%s753_s26 + $0x48] sm:$0xf] }
  0x15   : > { %v198_v10 = vld [vmem:[%s753_s26 + $0x50] sm:$0xf]  ;;  %195 = vst [vmem:[%s159_s27 + $0x20] sm:$0xf] %v194_v8  ;;  %197 = vst [vmem:[%s159_s27 + $0x24] sm:$0xf] %v196_v9 }
  0x16   : > { %199 = vst [vmem:[%s159_s27 + $0x28] sm:$0xf] %v198_v10  ;;  %v200_v11 = vld [vmem:[%s753_s26 + $0x58] sm:$0xf]  ;;  %v202_v12 = vld [vmem:[%s753_s26 + $0x60] sm:$0xf] }
  0x17   : > { %v204_v13 = vld [vmem:[%s753_s26 + $0x68] sm:$0xf]  ;;  %201 = vst [vmem:[%s159_s27 + $0x2c] sm:$0xf] %v200_v11  ;;  %203 = vst [vmem:[%s159_s27 + $0x30] sm:$0xf] %v202_v12 }
  0x18   : > { %205 = vst [vmem:[%s159_s27 + $0x34] sm:$0xf] %v204_v13  ;;  %v206_v14 = vld [vmem:[%s753_s26 + $0x70] sm:$0xf]  ;;  %v208_v15 = vld [vmem:[%s753_s26 + $0x78] sm:$0xf] }
  0x19   : > { %207 = vst [vmem:[%s159_s27 + $0x38] sm:$0xf] %v206_v14  ;;  %209 = vst [vmem:[%s159_s27 + $0x3c] sm:$0xf] %v208_v15 }
  0x1a PF: > { %p555_p6 = scmp.ge.s32.totalorder %s686_s16, 1  ;;  %p270_p7 = scmp.lt.s32.totalorder %s686_s16, 3 }
  0x1c   : > { %p271_p8 = pnand %p555_p6, %p270_p7 }
  0x1d   : > { %s277_s28 = sand.u32 (!%p271_p8), 1, %s670_s12   ;;  %p314_p9 = scmp.lt.s32.totalorder (!%p271_p8), %s678_s14, 1 }
  0x1e   : > { %274 = sbr.rel (%p271_p8) target bundleno = 267 (0x10b), region = 69  ;;  %s556_s29 = sshll.u32 (!%p271_p8), %s277_s28, 6 }
  0x1f   : > { %s279_s30 = scalar_lea.vmem (!%p271_p8), [#allocation2], %s556_s29 }
  0x23   : > { %v688_v16 = vmov 0.0   ;;  %vm689_vm0 = vmmov 0   ;;  %v640_v17 = vld [vmem:[%s279_s30 + $0x38] sm:$0xff]   ;;  %v641_v18 = vld [vmem:[%s279_s30 + $0x30] sm:$0xff]   ;;  %v642_v19 = vld [vmem:[%s279_s30 + $0x28] sm:$0xff]   ;;  %s811_s14 = smov (!%p314_p9, %s678_s14), 1 }
  0x24   : > { %578 = vmatprep.subr.bf16.mxu0 %v688_v16  ;;  %594 = vmatprep.mubr.msk.bf16.mxu0 %vm689_vm0, %v688_v16  ;;  %v643_v20 = vld [vmem:[%s279_s30 + $0x20] sm:$0xff]   ;;  %v644_v21 = vld [vmem:[%s279_s30 + $0x18] sm:$0xff]   ;;  %v645_v22 = vld [vmem:[%s279_s30 + $0x10] sm:$0xff]   ;;  %s316_s8 = scalar_lea.vmem %s802_s2, %s811_s14  ;;  %s557_s9 = sshll.u32 %s811_s14, 2 }
  0x25   : > { %579 = vmatpush3.bf16.msra.mxu0 %v640_v17  ;;  %v646_v23 = vld [vmem:[%s279_s30 + $0x8] sm:$0xff]   ;;  %v647_v24 = vld [vmem:[%s279_s30] sm:$0xff]   ;;  %s324_s12 = scalar_lea.vmem %s803_s3, %s557_s9 }
  0x26   : > { %580 = vmatprep.subr.bf16.mxu0 %v688_v16  ;;  %v326_v25 = vld [vmem:[%s800_s0] sm:$0xf] }
  0x27   : > { %v558_v26 = vld [vmem:[%s316_s8] ss:$0 sm:$0xff] }
  0x29   : > { %581 = vmatpush3.bf16.msra.mxu0 %v641_v18 }
  0x2a   : > { %582 = vmatprep.subr.bf16.mxu0 %v688_v16 }
  0x2d   : > { %583 = vmatpush3.bf16.msra.mxu0 %v642_v19 }
  0x2e   : > { %584 = vmatprep.subr.bf16.mxu0 %v688_v16 }
  0x31   : > { %585 = vmatpush3.bf16.msra.mxu0 %v643_v20 }
  0x32   : > { %586 = vmatprep.subr.bf16.mxu0 %v688_v16 }
  0x35   : > { %587 = vmatpush3.bf16.msra.mxu0 %v644_v21 }
  0x36   : > { %588 = vmatprep.subr.bf16.mxu0 %v688_v16 }
  0x39   : > { %589 = vmatpush3.bf16.msra.mxu0 %v645_v22 }
  0x3a   : > { %590 = vmatprep.subr.bf16.mxu0 %v688_v16 }
  0x3d   : > { %591 = vmatpush3.bf16.msra.mxu0 %v646_v23 }
  0x3e   : > { %592 = vmatprep.subr.bf16.mxu0 %v688_v16 }
  0x41   : > { %593 = vmatpush3.bf16.msra.mxu0 %v647_v24 }
  0x44   : > { %595 = vmatmul.mubr.bf16.vlgmr.msra.gmra.mxu0 %v326_v25 }
 0x104   : > { %v432_v27 = vpop.f32.mrf.mxu0 }
 0x105   : > { %v433_v28 = vadd.f32 %v558_v26, %v432_v27 }
 0x106   : > { %v596_v29 = vpop.f32.mrf.mxu0 }
 0x107   : > { %v438_v30 = vpack.c.bf16 %v433_v28, %v433_v28 }
 0x108   : > { %v435_v31 = vpop.f32.mrf.mxu0 }
 0x109   : > { %439 = vst [vmem:[%s324_s12] sm:$0xf] %v438_v30 }
 0x10a   : > { %v597_v32 = vpop.f32.mrf.mxu0 }
 0x10b PF: > { %s13_s16 = sadd.s32 1, %s686_s16   ;;  %s804_s12 = smov %s674_s13 }
 0x10c   : > { %p10_p10 = scmp.ge.s32.totalorder %s13_s16, 4   ;;  %s805_s13 = smov %s745_s20 }
 0x10d   : > { %s806_s14 = smov %s682_s15  ;;  %s807_s15 = smov %s809_s17 }
 0x10e   :  { %12 = sbr.rel (!%p10_p10) target bundleno = 3 (0x3), region = 114 }

// kernel: _lambda_.44
= control target key start
LH: loop header
LB: loop body
LE: loop exit
PB: predicated region body
PF: predicated region fallthrough
CT: control target
= control target key end

     0   :  { %v160_v0 = vmov 0.0   ;;  %vm161_vm0 = vmmov 0   ;;  %vm61_vm1 = vcmask 523264   ;;  %s203_s1 = inlined_call_operand.vmem [shape: bf16[64,128], index: 1, kind: input, shape index: {}]   ;;  %s204_s0 = inlined_call_operand.vmem [shape: bf16[16,64], index: 0, kind: input, shape index: {}]   ;;  %s205_s2 = inlined_call_operand.vmem [shape: f32[1,128], index: 2, kind: input, shape index: {}]   ;;  %s206_s3 = inlined_call_operand.vmem [shape: bf16[16,128], index: 3, kind: output, shape index: {}]  }
   0x1   :  { %141 = vmatprep.subr.bf16.mxu0 %v160_v0  ;;  %v155_v1 = vld [vmem:[%s203_s1 + $0x18] sm:$0xff]   ;;  %149 = vmatprep.mubr.msk.bf16.mxu0 %vm161_vm0, %v160_v0  ;;  %v156_v2 = vld [vmem:[%s203_s1 + $0x10] sm:$0xff]   ;;  %v157_v3 = vld [vmem:[%s203_s1 + $0x8] sm:$0xff]  }
   0x2   :  { %142 = vmatpush3.bf16.msra.mxu0 %v155_v1  ;;  %v158_v4 = vld [vmem:[%s203_s1] sm:$0xff]  }
   0x3   :  { %143 = vmatprep.subr.bf16.mxu0 %v160_v0  ;;  %v159_v5 = vld [vmem:[%s204_s0] sm:$0xff]  }
   0x4   :  { %v120_v7 = vld [vmem:[%s205_s2] ss:$0 sm:$0xff] }
   0x6   :  { %144 = vmatpush3.bf16.msra.mxu0 %v156_v2 }
   0x7   :  { %145 = vmatprep.subr.bf16.mxu0 %v160_v0 }
   0xa   :  { %146 = vmatpush3.bf16.msra.mxu0 %v157_v3 }
   0xb   :  { %147 = vmatprep.subr.bf16.mxu0 %v160_v0 }
   0xe   :  { %148 = vmatpush3.bf16.msra.mxu0 %v158_v4 }
  0x11   :  { %150 = vmatmul.mubr.msk.bf16.vlgmr.msra.gmra.mxu0 %vm61_vm1, %v159_v5 }
  0xd1   :  { %v99_v6 = vpop.f32.mrf.mxu0 }
  0xd2   :  { %v100_v10 = vadd.f32 %v120_v7, %v99_v6 }
  0xd3   :  { %v151_v8 = vpop.f32.mrf.mxu0 }
  0xd5   :  { %v102_v9 = vpop.f32.mrf.mxu0 }
  0xd6   :  { %v103_v11 = vadd.f32 %v120_v7, %v102_v9 }
  0xd7   :  { %v152_v12 = vpop.f32.mrf.mxu0 }
  0xd8   :  { %v134_v13 = vpack.c.bf16 %v103_v11, %v100_v10 }
  0xda   :  { %135 = vst [vmem:[%s206_s3] sm:$0xff] %v134_v13  }

// kernel: _lambda_.40
= control target key start
LH: loop header
LB: loop body
LE: loop exit
PB: predicated region body
PF: predicated region fallthrough
CT: control target
= control target key end

     0   :  { %vm1124_vm0 = vmmov 0   ;;  %s1382_s1 = inlined_call_operand.vmem [shape: bf16[1152,128], index: 1, kind: input, shape index: {}]   ;;  %s1383_s0 = inlined_call_operand.vmem [shape: bf16[8,1152], index: 0, kind: input, shape index: {}]   ;;  %s1384_s2 = inlined_call_operand.vmem [shape: f32[1,128], index: 2, kind: input, shape index: {}]   ;;  %s1385_s3 = inlined_call_operand.vmem [shape: bf16[8,128], index: 3, kind: output, shape index: {}]  }
   0x1   :  { %v1042_v0 = vld [vmem:[%s1382_s1 + $0x78] sm:$0xff]   ;;  %v1046_v4 = vld [vmem:[%s1382_s1 + $0x70] sm:$0xff]   ;;  %v1050_v8 = vld [vmem:[%s1382_s1 + $0x68] sm:$0xff]  }
   0x2   :  { %v1043_v1 = vld [vmem:[%s1382_s1 + $0x38] sm:$0xff]   ;;  %923 = vmatprep.subr.bf16.mxu0 %v1042_v0  ;;  %v1047_v5 = vld [vmem:[%s1382_s1 + $0x30] sm:$0xff]   ;;  %v1051_v9 = vld [vmem:[%s1382_s1 + $0x28] sm:$0xff]  }
   0x3   :  { %v1044_v2 = vld [vmem:[%s1382_s1 + $0xf8] sm:$0xff]   ;;  %924 = vmatpush3.bf16.msra.mxu0 %v1043_v1  ;;  %v1048_v6 = vld [vmem:[%s1382_s1 + $0xf0] sm:$0xff]   ;;  %v1052_v10 = vld [vmem:[%s1382_s1 + $0xe8] sm:$0xff]  }
   0x4   :  { %v1045_v3 = vld [vmem:[%s1382_s1 + $0xb8] sm:$0xff]   ;;  %945 = vmatprep.subr.bf16.mxu1 %v1044_v2  ;;  %925 = vmatprep.subr.bf16.mxu0 %v1046_v4  ;;  %v1049_v7 = vld [vmem:[%s1382_s1 + $0xb0] sm:$0xff]   ;;  %v1053_v11 = vld [vmem:[%s1382_s1 + $0xa8] sm:$0xff]  }
   0x5   :  { %946 = vmatpush3.bf16.msra.mxu1 %v1045_v3  ;;  %v1054_v12 = vld [vmem:[%s1382_s1 + $0x60] sm:$0xff]   ;;  %v1058_v16 = vld [vmem:[%s1382_s1 + $0x58] sm:$0xff]   ;;  %v1062_v20 = vld [vmem:[%s1382_s1 + $0x50] sm:$0xff]  }
   0x6   :  { %947 = vmatprep.subr.bf16.mxu1 %v1048_v6  ;;  %v1055_v13 = vld [vmem:[%s1382_s1 + $0x20] sm:$0xff]   ;;  %v1059_v17 = vld [vmem:[%s1382_s1 + $0x18] sm:$0xff]   ;;  %v1063_v21 = vld [vmem:[%s1382_s1 + $0x10] sm:$0xff]  }
   0x7   :  { %926 = vmatpush3.bf16.msra.mxu0 %v1047_v5  ;;  %v1056_v14 = vld [vmem:[%s1382_s1 + $0xe0] sm:$0xff]   ;;  %v1060_v18 = vld [vmem:[%s1382_s1 + $0xd8] sm:$0xff]   ;;  %v1064_v22 = vld [vmem:[%s1382_s1 + $0xd0] sm:$0xff]  }
   0x8   :  { %927 = vmatprep.subr.bf16.mxu0 %v1050_v8  ;;  %v1057_v15 = vld [vmem:[%s1382_s1 + $0xa0] sm:$0xff]   ;;  %v1061_v19 = vld [vmem:[%s1382_s1 + $0x98] sm:$0xff]   ;;  %v1065_v23 = vld [vmem:[%s1382_s1 + $0x90] sm:$0xff]  }
   0x9   :  { %948 = vmatpush3.bf16.msra.mxu1 %v1049_v7  ;;  %v1066_v24 = vld [vmem:[%s1382_s1 + $0x48] sm:$0xff]   ;;  %v1070_v28 = vld [vmem:[%s1382_s1 + $0x40] sm:$0xff]   ;;  %v1076_v35 = vld [vmem:[%s1382_s1 + $0x178] sm:$0xff]  }
   0xa   :  { %949 = vmatprep.subr.bf16.mxu1 %v1052_v10  ;;  %v1067_v25 = vld [vmem:[%s1382_s1 + $0x8] sm:$0xff]   ;;  %v1071_v29 = vld [vmem:[%s1382_s1] sm:$0xff]   ;;  %v1079_v39 = vld [vmem:[%s1382_s1 + $0x138] sm:$0xff]  }
   0xb   :  { %928 = vmatpush3.bf16.msra.mxu0 %v1051_v9  ;;  %v1068_v26 = vld [vmem:[%s1382_s1 + $0xc8] sm:$0xff]   ;;  %v1072_v30 = vld [vmem:[%s1382_s1 + $0xc0] sm:$0xff]   ;;  %v1080_v40 = vld [vmem:[%s1382_s1 + $0x1f8] sm:$0xff]   ;;  %v1123_v9 = vmov 0.0  }
   0xc   :  { %929 = vmatprep.subr.bf16.mxu0 %v1054_v12  ;;  %v1069_v27 = vld [vmem:[%s1382_s1 + $0x88] sm:$0xff]   ;;  %v15_v31 = vld [vmem:[%s1383_s0] sm:$0xff]  ;;  %v1081_v41 = vld [vmem:[%s1382_s1 + $0x1b8] sm:$0xff]  }
   0xd   :  { %950 = vmatpush3.bf16.msra.mxu1 %v1053_v11  ;;  %v842_v32 = vcombine.low %v15_v31, %v15_v31  ;;  %v843_v33 = vcombine.high %v15_v31, %v15_v31  ;;  %v1075_v34 = vld [vmem:[%s1382_s1 + $0x80] sm:$0xff]   ;;  %v16_v36 = vld [vmem:[%s1383_s0 + $0x8] sm:$0xff]  ;;  %v1082_v42 = vld [vmem:[%s1382_s1 + $0x170] sm:$0xff]  }
   0xe   :  { %951 = vmatprep.subr.bf16.mxu1 %v1056_v14  ;;  %v844_v37 = vcombine.low %v16_v36, %v16_v36  ;;  %v845_v38 = vcombine.high %v16_v36, %v16_v36  ;;  %v1083_v43 = vld [vmem:[%s1382_s1 + $0x130] sm:$0xff]   ;;  %v1086_v46 = vld [vmem:[%s1382_s1 + $0x168] sm:$0xff]   ;;  %v1090_v50 = vld [vmem:[%s1382_s1 + $0x160] sm:$0xff]  }
   0xf   :  { %930 = vmatpush3.bf16.msra.mxu0 %v1055_v13  ;;  %667 = vmatprep.mubr.bf16.mxu0 %v843_v33  ;;  %v1084_v44 = vld [vmem:[%s1382_s1 + $0x1f0] sm:$0xff]   ;;  %v1087_v47 = vld [vmem:[%s1382_s1 + $0x128] sm:$0xff]   ;;  %v1091_v51 = vld [vmem:[%s1382_s1 + $0x120] sm:$0xff]  }
  0x10   :  { %931 = vmatprep.subr.bf16.mxu0 %v1058_v16  ;;  %707 = vmatprep.mubr.bf16.mxu1 %v845_v38  ;;  %v1085_v45 = vld [vmem:[%s1382_s1 + $0x1b0] sm:$0xff]   ;;  %v1088_v48 = vld [vmem:[%s1382_s1 + $0x1e8] sm:$0xff]   ;;  %v1092_v52 = vld [vmem:[%s1382_s1 + $0x1e0] sm:$0xff]  }
  0x11   :  { %952 = vmatpush3.bf16.msra.mxu1 %v1057_v15  ;;  %v1089_v49 = vld [vmem:[%s1382_s1 + $0x1a8] sm:$0xff]   ;;  %v1093_v53 = vld [vmem:[%s1382_s1 + $0x1a0] sm:$0xff]   ;;  %v1094_v54 = vld [vmem:[%s1382_s1 + $0x158] sm:$0xff]  }
  0x12   :  { %953 = vmatprep.subr.bf16.mxu1 %v1060_v18  ;;  %v1095_v55 = vld [vmem:[%s1382_s1 + $0x118] sm:$0xff]   ;;  %v1098_v58 = vld [vmem:[%s1382_s1 + $0x150] sm:$0xff]   ;;  %v1102_v62 = vld [vmem:[%s1382_s1 + $0x148] sm:$0xff]  }
  0x13   :  { %932 = vmatpush3.bf16.msra.mxu0 %v1059_v17  ;;  %v1096_v56 = vld [vmem:[%s1382_s1 + $0x1d8] sm:$0xff]   ;;  %v1099_v59 = vld [vmem:[%s1382_s1 + $0x110] sm:$0xff]   ;;  %v1103_v63 = vld [vmem:[%s1382_s1 + $0x108] sm:$0xff]  }
  0x14   :  { %933 = vmatprep.subr.bf16.mxu0 %v1062_v20  ;;  %v1097_v57 = vld [vmem:[%s1382_s1 + $0x198] sm:$0xff]   ;;  %v1100_v60 = vld [vmem:[%s1382_s1 + $0x1d0] sm:$0xff]   ;;  %v1104_v0 = vld [vmem:[%s1382_s1 + $0x1c8] sm:$0xff]  }
  0x15   :  { %954 = vmatpush3.bf16.msra.mxu1 %v1061_v19  ;;  %v1101_v61 = vld [vmem:[%s1382_s1 + $0x190] sm:$0xff]   ;;  %v1105_v1 = vld [vmem:[%s1382_s1 + $0x188] sm:$0xff]   ;;  %v1106_v2 = vld [vmem:[%s1382_s1 + $0x140] sm:$0xff]  }
  0x16   :  { %955 = vmatprep.subr.bf16.mxu1 %v1064_v22  ;;  %v1107_v3 = vld [vmem:[%s1382_s1 + $0x100] sm:$0xff]   ;;  %v17_v5 = vld [vmem:[%s1383_s0 + $0x10] sm:$0xff]  ;;  %v18_v10 = vld [vmem:[%s1383_s0 + $0x18] sm:$0xff] }
  0x17   :  { %934 = vmatpush3.bf16.msra.mxu0 %v1063_v21  ;;  %v1108_v4 = vld [vmem:[%s1382_s1 + $0x1c0] sm:$0xff]   ;;  %v846_v6 = vcombine.low %v17_v5, %v17_v5  ;;  %v847_v7 = vcombine.high %v17_v5, %v17_v5  ;;  %v848_v11 = vcombine.low %v18_v10, %v18_v10  ;;  %v849_v12 = vcombine.high %v18_v10, %v18_v10  ;;  %v1114_v13 = vld [vmem:[%s1382_s1 + $0x238] sm:$0xff]   ;;  %v1115_v14 = vld [vmem:[%s1382_s1 + $0x230] sm:$0xff]  }
  0x18   :  { %935 = vmatprep.subr.bf16.mxu0 %v1066_v24  ;;  %v1111_v8 = vld [vmem:[%s1382_s1 + $0x180] sm:$0xff]   ;;  %v1116_v15 = vld [vmem:[%s1382_s1 + $0x228] sm:$0xff]   ;;  %v1118_v17 = vld [vmem:[%s1382_s1 + $0x218] sm:$0xff]  }
  0x19   :  { %956 = vmatpush3.bf16.msra.mxu1 %v1065_v23  ;;  %v1117_v16 = vld [vmem:[%s1382_s1 + $0x220] sm:$0xff]   ;;  %v1119_v18 = vld [vmem:[%s1382_s1 + $0x210] sm:$0xff]   ;;  %v1120_v19 = vld [vmem:[%s1382_s1 + $0x208] sm:$0xff]  }
  0x1a   :  { %957 = vmatprep.subr.bf16.mxu1 %v1068_v26  ;;  %v1121_v20 = vld [vmem:[%s1382_s1 + $0x200] sm:$0xff]  }
  0x1b   :  { %936 = vmatpush3.bf16.msra.mxu0 %v1067_v25  ;;  %v1122_v21 = vld [vmem:[%s1383_s0 + $0x20] ss:$0 sps:$4 sm:$0xff]  }
  0x1c   :  { %937 = vmatprep.subr.bf16.mxu0 %v1070_v28 }
  0x1d   :  { %958 = vmatpush3.bf16.msra.mxu1 %v1069_v27 }
  0x1e   :  { %959 = vmatprep.subr.bf16.mxu1 %v1072_v30 }
  0x1f   :  { %938 = vmatpush3.bf16.msra.mxu0 %v1071_v29 }
  0x20   :  { %967 = vmatprep.subr.bf16.mxu0 %v1076_v35 }
  0x21   :  { %960 = vmatpush3.bf16.msra.mxu1 %v1075_v34 }
  0x22   :  { %668 = vmatmul.mubr.bf16.vlgmr.msra.gmra.mxu0 %v842_v32  ;;  %989 = vmatprep.subr.bf16.mxu1 %v1080_v40 }
  0x23   :  { %968 = vmatpush3.bf16.msra.mxu0 %v1079_v39  ;;  %747 = vmatprep.mubr.bf16.mxu0 %v847_v7  ;;  %v841_v39 = vld [vmem:[%s1384_s2] ss:$0 sm:$0xff] }
  0x24   :  { %708 = vmatmul.mubr.bf16.vlgmr.msra.gmra.mxu1 %v844_v37  ;;  %969 = vmatprep.subr.bf16.mxu0 %v1082_v42 }
  0x25   :  { %990 = vmatpush3.bf16.msra.mxu1 %v1081_v41  ;;  %787 = vmatprep.mubr.bf16.mxu1 %v849_v12 }
  0x26   :  { %991 = vmatprep.subr.bf16.mxu1 %v1084_v44 }
  0x27   :  { %970 = vmatpush3.bf16.msra.mxu0 %v1083_v43 }
  0x28   :  { %971 = vmatprep.subr.bf16.mxu0 %v1086_v46 }
  0x29   :  { %992 = vmatpush3.bf16.msra.mxu1 %v1085_v45 }
  0x2a   :  { %993 = vmatprep.subr.bf16.mxu1 %v1088_v48 }
  0x2b   :  { %972 = vmatpush3.bf16.msra.mxu0 %v1087_v47 }
  0x2c   :  { %973 = vmatprep.subr.bf16.mxu0 %v1090_v50 }
  0x2d   :  { %994 = vmatpush3.bf16.msra.mxu1 %v1089_v49 }
  0x2e   :  { %995 = vmatprep.subr.bf16.mxu1 %v1092_v52 }
  0x2f   :  { %974 = vmatpush3.bf16.msra.mxu0 %v1091_v51 }
  0x30   :  { %975 = vmatprep.subr.bf16.mxu0 %v1094_v54 }
  0x31   :  { %996 = vmatpush3.bf16.msra.mxu1 %v1093_v53 }
  0x32   :  { %997 = vmatprep.subr.bf16.mxu1 %v1096_v56 }
  0x33   :  { %976 = vmatpush3.bf16.msra.mxu0 %v1095_v55 }
  0x34   :  { %977 = vmatprep.subr.bf16.mxu0 %v1098_v58 }
  0x35   :  { %998 = vmatpush3.bf16.msra.mxu1 %v1097_v57 }
  0x36   :  { %999 = vmatprep.subr.bf16.mxu1 %v1100_v60 }
  0x37   :  { %978 = vmatpush3.bf16.msra.mxu0 %v1099_v59 }
  0x38   :  { %979 = vmatprep.subr.bf16.mxu0 %v1102_v62 }
  0x39   :  { %1000 = vmatpush3.bf16.msra.mxu1 %v1101_v61 }
  0x3a   :  { %1001 = vmatprep.subr.bf16.mxu1 %v1104_v0 }
  0x3b   :  { %980 = vmatpush3.bf16.msra.mxu0 %v1103_v63 }
  0x3c   :  { %981 = vmatprep.subr.bf16.mxu0 %v1106_v2 }
  0x3d   :  { %1002 = vmatpush3.bf16.msra.mxu1 %v1105_v1 }
  0x3e   :  { %1003 = vmatprep.subr.bf16.mxu1 %v1108_v4 }
  0x3f   :  { %982 = vmatpush3.bf16.msra.mxu0 %v1107_v3 }
  0x40   :  { %1020 = vmatprep.subr.bf16.mxu0 %v1123_v9 }
  0x41   :  { %1004 = vmatpush3.bf16.msra.mxu1 %v1111_v8 }
  0x42   :  { %748 = vmatmul.mubr.bf16.vlgmr.msra.gmra.mxu0 %v846_v6 }
  0x43   :  { %1021 = vmatpush3.bf16.msra.mxu0 %v1114_v13  ;;  %1036 = vmatprep.mubr.msk.bf16.mxu0 %vm1124_vm0, %v1123_v9 }
  0x44   :  { %788 = vmatmul.mubr.bf16.vlgmr.msra.gmra.mxu1 %v848_v11  ;;  %1022 = vmatprep.subr.bf16.mxu0 %v1123_v9 }
  0x47   :  { %1023 = vmatpush3.bf16.msra.mxu0 %v1115_v14 }
  0x48   :  { %1024 = vmatprep.subr.bf16.mxu0 %v1123_v9 }
  0x4b   :  { %1025 = vmatpush3.bf16.msra.mxu0 %v1116_v15 }
  0x4c   :  { %1026 = vmatprep.subr.bf16.mxu0 %v1123_v9 }
  0x4f   :  { %1027 = vmatpush3.bf16.msra.mxu0 %v1117_v16 }
  0x50   :  { %1028 = vmatprep.subr.bf16.mxu0 %v1123_v9 }
  0x53   :  { %1029 = vmatpush3.bf16.msra.mxu0 %v1118_v17 }
  0x54   :  { %1030 = vmatprep.subr.bf16.mxu0 %v1123_v9 }
  0x57   :  { %1031 = vmatpush3.bf16.msra.mxu0 %v1119_v18 }
  0x58   :  { %1032 = vmatprep.subr.bf16.mxu0 %v1123_v9 }
  0x5b   :  { %1033 = vmatpush3.bf16.msra.mxu0 %v1120_v19 }
  0x5c   :  { %1034 = vmatprep.subr.bf16.mxu0 %v1123_v9 }
  0x5f   :  { %1035 = vmatpush3.bf16.msra.mxu0 %v1121_v20 }
  0x62   :  { %1037 = vmatmul.mubr.bf16.vlgmr.msra.gmra.mxu0 %v1122_v21 }
  0xe2   :  { %v939_v22 = vpop.f32.mrf.mxu0 }
  0xe4   :  { %v940_v23 = vpop.f32.mrf.mxu0  ;;  %v961_v24 = vpop.f32.mrf.mxu1 }
  0xe5   :  { %v941_v38 = vadd.f32 %v940_v23, %v939_v22 }
  0xe6   :  { %v942_v25 = vpop.f32.mrf.mxu0  ;;  %v962_v26 = vpop.f32.mrf.mxu1 }
  0xe7   :  { %v670_v40 = vadd.f32 %v941_v38, %v841_v39  ;;  %v963_v41 = vadd.f32 %v962_v26, %v961_v24 }
  0xe8   :  { %v943_v27 = vpop.f32.mrf.mxu0  ;;  %v964_v28 = vpop.f32.mrf.mxu1 }
  0xe9   :  { %v710_v43 = vadd.f32 %v963_v41, %v670_v40 }
  0xea   :  { %v965_v29 = vpop.f32.mrf.mxu1 }
 0x102   :  { %v983_v30 = vpop.f32.mrf.mxu0 }
 0x104   :  { %v984_v31 = vpop.f32.mrf.mxu0  ;;  %v1005_v32 = vpop.f32.mrf.mxu1 }
 0x105   :  { %v985_v42 = vadd.f32 %v984_v31, %v983_v30 }
 0x106   :  { %v986_v33 = vpop.f32.mrf.mxu0  ;;  %v1006_v34 = vpop.f32.mrf.mxu1 }
 0x107   :  { %v750_v44 = vadd.f32 %v985_v42, %v710_v43  ;;  %v1007_v45 = vadd.f32 %v1006_v34, %v1005_v32 }
 0x108   :  { %v987_v35 = vpop.f32.mrf.mxu0  ;;  %v1008_v36 = vpop.f32.mrf.mxu1 }
 0x109   :  { %v790_v46 = vadd.f32 %v1007_v45, %v750_v44 }
 0x10a   :  { %v1009_v37 = vpop.f32.mrf.mxu1 }
 0x122   :  { %v829_v47 = vpop.f32.mrf.mxu0 }
 0x123   :  { %v830_v48 = vadd.f32 %v829_v47, %v790_v46 }
 0x124   :  { %v1038_v49 = vpop.f32.mrf.mxu0 }
 0x125   :  { %v835_v50 = vpack.c.bf16 %v830_v48, %v830_v48 }
 0x126   :  { %v832_v51 = vpop.f32.mrf.mxu0 }
 0x127   :  { %836 = vst [vmem:[%s1385_s3] sm:$0xf] %v835_v50 }
 0x128   :  { %v1039_v52 = vpop.f32.mrf.mxu0 }

// kernel: _lambda_.42
= control target key start
LH: loop header
LB: loop body
LE: loop exit
PB: predicated region body
PF: predicated region fallthrough
CT: control target
= control target key end

     0   :  { %vm1169_vm0 = vmmov 0   ;;  %s1439_s1 = inlined_call_operand.vmem [shape: bf16[1152,128], index: 1, kind: input, shape index: {}]   ;;  %s1440_s0 = inlined_call_operand.vmem [shape: bf16[16,1152], index: 0, kind: input, shape index: {}]   ;;  %s1441_s2 = inlined_call_operand.vmem [shape: f32[1,128], index: 2, kind: input, shape index: {}]   ;;  %s1442_s3 = inlined_call_operand.vmem [shape: bf16[16,128], index: 3, kind: output, shape index: {}]  }
   0x1   :  { %v1083_v0 = vld [vmem:[%s1439_s1 + $0x78] sm:$0xff]   ;;  %v1087_v4 = vld [vmem:[%s1439_s1 + $0x70] sm:$0xff]   ;;  %v1091_v8 = vld [vmem:[%s1439_s1 + $0x68] sm:$0xff]  }
   0x2   :  { %v1084_v1 = vld [vmem:[%s1439_s1 + $0x38] sm:$0xff]   ;;  %964 = vmatprep.subr.bf16.mxu0 %v1083_v0  ;;  %v1088_v5 = vld [vmem:[%s1439_s1 + $0x30] sm:$0xff]   ;;  %v1092_v9 = vld [vmem:[%s1439_s1 + $0x28] sm:$0xff]  }
   0x3   :  { %v1085_v2 = vld [vmem:[%s1439_s1 + $0xf8] sm:$0xff]   ;;  %965 = vmatpush3.bf16.msra.mxu0 %v1084_v1  ;;  %v1089_v6 = vld [vmem:[%s1439_s1 + $0xf0] sm:$0xff]   ;;  %v1093_v10 = vld [vmem:[%s1439_s1 + $0xe8] sm:$0xff]  }
   0x4   :  { %v1086_v3 = vld [vmem:[%s1439_s1 + $0xb8] sm:$0xff]   ;;  %986 = vmatprep.subr.bf16.mxu1 %v1085_v2  ;;  %966 = vmatprep.subr.bf16.mxu0 %v1087_v4  ;;  %v1090_v7 = vld [vmem:[%s1439_s1 + $0xb0] sm:$0xff]   ;;  %v1094_v11 = vld [vmem:[%s1439_s1 + $0xa8] sm:$0xff]  }
   0x5   :  { %987 = vmatpush3.bf16.msra.mxu1 %v1086_v3  ;;  %v1095_v12 = vld [vmem:[%s1439_s1 + $0x60] sm:$0xff]   ;;  %v1099_v16 = vld [vmem:[%s1439_s1 + $0x58] sm:$0xff]   ;;  %v1103_v20 = vld [vmem:[%s1439_s1 + $0x50] sm:$0xff]  }
   0x6   :  { %988 = vmatprep.subr.bf16.mxu1 %v1089_v6  ;;  %v1096_v13 = vld [vmem:[%s1439_s1 + $0x20] sm:$0xff]   ;;  %v1100_v17 = vld [vmem:[%s1439_s1 + $0x18] sm:$0xff]   ;;  %v1104_v21 = vld [vmem:[%s1439_s1 + $0x10] sm:$0xff]   ;;  %v1168_v6 = vmov 0.0  }
   0x7   :  { %967 = vmatpush3.bf16.msra.mxu0 %v1088_v5  ;;  %v1097_v14 = vld [vmem:[%s1439_s1 + $0xe0] sm:$0xff]   ;;  %v1101_v18 = vld [vmem:[%s1439_s1 + $0xd8] sm:$0xff]   ;;  %v1105_v22 = vld [vmem:[%s1439_s1 + $0xd0] sm:$0xff]  }
   0x8   :  { %968 = vmatprep.subr.bf16.mxu0 %v1091_v8  ;;  %v1098_v15 = vld [vmem:[%s1439_s1 + $0xa0] sm:$0xff]   ;;  %v1102_v19 = vld [vmem:[%s1439_s1 + $0x98] sm:$0xff]   ;;  %v1106_v23 = vld [vmem:[%s1439_s1 + $0x90] sm:$0xff]  }
   0x9   :  { %989 = vmatpush3.bf16.msra.mxu1 %v1090_v7  ;;  %v1107_v24 = vld [vmem:[%s1439_s1 + $0x48] sm:$0xff]   ;;  %v1111_v28 = vld [vmem:[%s1439_s1 + $0x40] sm:$0xff]   ;;  %v1118_v34 = vld [vmem:[%s1439_s1 + $0x178] sm:$0xff]  }
   0xa   :  { %990 = vmatprep.subr.bf16.mxu1 %v1093_v10  ;;  %v1108_v25 = vld [vmem:[%s1439_s1 + $0x8] sm:$0xff]   ;;  %v1112_v29 = vld [vmem:[%s1439_s1] sm:$0xff]   ;;  %v1122_v37 = vld [vmem:[%s1439_s1 + $0x138] sm:$0xff]  }
   0xb   :  { %969 = vmatpush3.bf16.msra.mxu0 %v1092_v9  ;;  %v1109_v26 = vld [vmem:[%s1439_s1 + $0xc8] sm:$0xff]   ;;  %v1113_v30 = vld [vmem:[%s1439_s1 + $0xc0] sm:$0xff]   ;;  %v1123_v38 = vld [vmem:[%s1439_s1 + $0x1f8] sm:$0xff]  }
   0xc   :  { %970 = vmatprep.subr.bf16.mxu0 %v1095_v12  ;;  %v1110_v27 = vld [vmem:[%s1439_s1 + $0x88] sm:$0xff]   ;;  %v1114_v31 = vld [vmem:[%s1440_s0] ss:$36 sps:$4 sm:$0xff]   ;;  %v1124_v39 = vld [vmem:[%s1439_s1 + $0x1b8] sm:$0xff]  }
   0xd   :  { %991 = vmatpush3.bf16.msra.mxu1 %v1094_v11  ;;  %v1116_v32 = vld [vmem:[%s1440_s0 + $0x4] ss:$36 sps:$4 sm:$0xff]   ;;  %v1121_v36 = vld [vmem:[%s1440_s0 + $0xc] ss:$36 sps:$4 sm:$0xff]   ;;  %v1137_v52 = vld [vmem:[%s1439_s1 + $0x158] sm:$0xff]  }
   0xe   :  { %992 = vmatprep.subr.bf16.mxu1 %v1097_v14  ;;  %v1117_v33 = vld [vmem:[%s1439_s1 + $0x80] sm:$0xff]   ;;  %686 = vmatprep.mubr.bf16.mxu0 %v1116_v32  ;;  %v1119_v35 = vld [vmem:[%s1440_s0 + $0x8] ss:$36 sps:$4 sm:$0xff]   ;;  %v1125_v40 = vld [vmem:[%s1439_s1 + $0x170] sm:$0xff]  }
   0xf   :  { %971 = vmatpush3.bf16.msra.mxu0 %v1096_v13  ;;  %727 = vmatprep.mubr.bf16.mxu1 %v1121_v36  ;;  %v1126_v41 = vld [vmem:[%s1439_s1 + $0x130] sm:$0xff]   ;;  %v1129_v44 = vld [vmem:[%s1439_s1 + $0x168] sm:$0xff]   ;;  %v1133_v48 = vld [vmem:[%s1439_s1 + $0x160] sm:$0xff]  }
  0x10   :  { %972 = vmatprep.subr.bf16.mxu0 %v1099_v16  ;;  %v1127_v42 = vld [vmem:[%s1439_s1 + $0x1f0] sm:$0xff]   ;;  %v1130_v45 = vld [vmem:[%s1439_s1 + $0x128] sm:$0xff]   ;;  %v1134_v49 = vld [vmem:[%s1439_s1 + $0x120] sm:$0xff]  }
  0x11   :  { %993 = vmatpush3.bf16.msra.mxu1 %v1098_v15  ;;  %v1128_v43 = vld [vmem:[%s1439_s1 + $0x1b0] sm:$0xff]   ;;  %v1131_v46 = vld [vmem:[%s1439_s1 + $0x1e8] sm:$0xff]   ;;  %v1135_v50 = vld [vmem:[%s1439_s1 + $0x1e0] sm:$0xff]  }
  0x12   :  { %994 = vmatprep.subr.bf16.mxu1 %v1101_v18  ;;  %v1132_v47 = vld [vmem:[%s1439_s1 + $0x1a8] sm:$0xff]   ;;  %v1136_v51 = vld [vmem:[%s1439_s1 + $0x1a0] sm:$0xff]   ;;  %v1138_v53 = vld [vmem:[%s1439_s1 + $0x118] sm:$0xff]  }
  0x13   :  { %973 = vmatpush3.bf16.msra.mxu0 %v1100_v17  ;;  %v1139_v54 = vld [vmem:[%s1439_s1 + $0x1d8] sm:$0xff]   ;;  %v1141_v56 = vld [vmem:[%s1439_s1 + $0x150] sm:$0xff]   ;;  %v1145_v60 = vld [vmem:[%s1439_s1 + $0x148] sm:$0xff]  }
  0x14   :  { %974 = vmatprep.subr.bf16.mxu0 %v1103_v20  ;;  %v1140_v55 = vld [vmem:[%s1439_s1 + $0x198] sm:$0xff]   ;;  %v1142_v57 = vld [vmem:[%s1439_s1 + $0x110] sm:$0xff]   ;;  %v1146_v61 = vld [vmem:[%s1439_s1 + $0x108] sm:$0xff]  }
  0x15   :  { %995 = vmatpush3.bf16.msra.mxu1 %v1102_v19  ;;  %v1143_v58 = vld [vmem:[%s1439_s1 + $0x1d0] sm:$0xff]   ;;  %v1147_v62 = vld [vmem:[%s1439_s1 + $0x1c8] sm:$0xff]   ;;  %v1149_v0 = vld [vmem:[%s1439_s1 + $0x140] sm:$0xff]  }
  0x16   :  { %996 = vmatprep.subr.bf16.mxu1 %v1105_v22  ;;  %v1144_v59 = vld [vmem:[%s1439_s1 + $0x190] sm:$0xff]   ;;  %v1148_v63 = vld [vmem:[%s1439_s1 + $0x188] sm:$0xff]   ;;  %v1150_v1 = vld [vmem:[%s1439_s1 + $0x100] sm:$0xff]  }
  0x17   :  { %975 = vmatpush3.bf16.msra.mxu0 %v1104_v21  ;;  %v1151_v2 = vld [vmem:[%s1439_s1 + $0x1c0] sm:$0xff]   ;;  %v1152_v3 = vld [vmem:[%s1440_s0 + $0x10] ss:$36 sps:$4 sm:$0xff]   ;;  %v1156_v7 = vld [vmem:[%s1440_s0 + $0x18] ss:$36 sps:$4 sm:$0xff]  }
  0x18   :  { %976 = vmatprep.subr.bf16.mxu0 %v1107_v24  ;;  %v1154_v4 = vld [vmem:[%s1440_s0 + $0x14] ss:$36 sps:$4 sm:$0xff]   ;;  %v1155_v5 = vld [vmem:[%s1439_s1 + $0x180] sm:$0xff]   ;;  %v1161_v11 = vld [vmem:[%s1439_s1 + $0x228] sm:$0xff]  }
  0x19   :  { %997 = vmatpush3.bf16.msra.mxu1 %v1106_v23  ;;  %v1158_v8 = vld [vmem:[%s1440_s0 + $0x1c] ss:$36 sps:$4 sm:$0xff]   ;;  %v1160_v10 = vld [vmem:[%s1439_s1 + $0x230] sm:$0xff]   ;;  %v1165_v15 = vld [vmem:[%s1439_s1 + $0x208] sm:$0xff]  }
  0x1a   :  { %998 = vmatprep.subr.bf16.mxu1 %v1109_v26  ;;  %v1159_v9 = vld [vmem:[%s1439_s1 + $0x238] sm:$0xff]   ;;  %v1162_v12 = vld [vmem:[%s1439_s1 + $0x220] sm:$0xff]   ;;  %v1164_v14 = vld [vmem:[%s1439_s1 + $0x210] sm:$0xff]  }
  0x1b   :  { %977 = vmatpush3.bf16.msra.mxu0 %v1108_v25  ;;  %v1163_v13 = vld [vmem:[%s1439_s1 + $0x218] sm:$0xff]   ;;  %v1166_v16 = vld [vmem:[%s1439_s1 + $0x200] sm:$0xff]  }
  0x1c   :  { %978 = vmatprep.subr.bf16.mxu0 %v1111_v28  ;;  %v1167_v17 = vld [vmem:[%s1440_s0 + $0x20] ss:$36 sps:$4 sm:$0xff]  }
  0x1d   :  { %999 = vmatpush3.bf16.msra.mxu1 %v1110_v27 }
  0x1e   :  { %1000 = vmatprep.subr.bf16.mxu1 %v1113_v30 }
  0x1f   :  { %979 = vmatpush3.bf16.msra.mxu0 %v1112_v29 }
  0x20   :  { %1008 = vmatprep.subr.bf16.mxu0 %v1118_v34 }
  0x21   :  { %1001 = vmatpush3.bf16.msra.mxu1 %v1117_v33  ;;  %v873_v33 = vld [vmem:[%s1441_s2] ss:$0 sm:$0xff] }
  0x22   :  { %687 = vmatmul.mubr.bf16.vlgmr.msra.gmra.mxu0 %v1114_v31  ;;  %1030 = vmatprep.subr.bf16.mxu1 %v1123_v38 }
  0x23   :  { %1009 = vmatpush3.bf16.msra.mxu0 %v1122_v37  ;;  %768 = vmatprep.mubr.bf16.mxu0 %v1154_v4 }
  0x24   :  { %728 = vmatmul.mubr.bf16.vlgmr.msra.gmra.mxu1 %v1119_v35  ;;  %1010 = vmatprep.subr.bf16.mxu0 %v1125_v40 }
  0x25   :  { %1031 = vmatpush3.bf16.msra.mxu1 %v1124_v39  ;;  %809 = vmatprep.mubr.bf16.mxu1 %v1158_v8 }
  0x26   :  { %1032 = vmatprep.subr.bf16.mxu1 %v1127_v42 }
  0x27   :  { %1011 = vmatpush3.bf16.msra.mxu0 %v1126_v41 }
  0x28   :  { %1012 = vmatprep.subr.bf16.mxu0 %v1129_v44 }
  0x29   :  { %1033 = vmatpush3.bf16.msra.mxu1 %v1128_v43 }
  0x2a   :  { %1034 = vmatprep.subr.bf16.mxu1 %v1131_v46 }
  0x2b   :  { %1013 = vmatpush3.bf16.msra.mxu0 %v1130_v45 }
  0x2c   :  { %1014 = vmatprep.subr.bf16.mxu0 %v1133_v48 }
  0x2d   :  { %1035 = vmatpush3.bf16.msra.mxu1 %v1132_v47 }
  0x2e   :  { %1036 = vmatprep.subr.bf16.mxu1 %v1135_v50 }
  0x2f   :  { %1015 = vmatpush3.bf16.msra.mxu0 %v1134_v49 }
  0x30   :  { %1016 = vmatprep.subr.bf16.mxu0 %v1137_v52 }
  0x31   :  { %1037 = vmatpush3.bf16.msra.mxu1 %v1136_v51 }
  0x32   :  { %1038 = vmatprep.subr.bf16.mxu1 %v1139_v54 }
  0x33   :  { %1017 = vmatpush3.bf16.msra.mxu0 %v1138_v53 }
  0x34   :  { %1018 = vmatprep.subr.bf16.mxu0 %v1141_v56 }
  0x35   :  { %1039 = vmatpush3.bf16.msra.mxu1 %v1140_v55 }
  0x36   :  { %1040 = vmatprep.subr.bf16.mxu1 %v1143_v58 }
  0x37   :  { %1019 = vmatpush3.bf16.msra.mxu0 %v1142_v57 }
  0x38   :  { %1020 = vmatprep.subr.bf16.mxu0 %v1145_v60 }
  0x39   :  { %1041 = vmatpush3.bf16.msra.mxu1 %v1144_v59 }
  0x3a   :  { %1042 = vmatprep.subr.bf16.mxu1 %v1147_v62 }
  0x3b   :  { %1021 = vmatpush3.bf16.msra.mxu0 %v1146_v61 }
  0x3c   :  { %1022 = vmatprep.subr.bf16.mxu0 %v1149_v0 }
  0x3d   :  { %1043 = vmatpush3.bf16.msra.mxu1 %v1148_v63 }
  0x3e   :  { %1044 = vmatprep.subr.bf16.mxu1 %v1151_v2 }
  0x3f   :  { %1023 = vmatpush3.bf16.msra.mxu0 %v1150_v1 }
  0x40   :  { %1061 = vmatprep.subr.bf16.mxu0 %v1168_v6 }
  0x41   :  { %1045 = vmatpush3.bf16.msra.mxu1 %v1155_v5 }
  0x42   :  { %769 = vmatmul.mubr.bf16.vlgmr.msra.gmra.mxu0 %v1152_v3 }
  0x43   :  { %1077 = vmatprep.mubr.msk.bf16.mxu0 %vm1169_vm0, %v1168_v6  ;;  %1062 = vmatpush3.bf16.msra.mxu0 %v1159_v9 }
  0x44   :  { %810 = vmatmul.mubr.bf16.vlgmr.msra.gmra.mxu1 %v1156_v7  ;;  %1063 = vmatprep.subr.bf16.mxu0 %v1168_v6 }
  0x47   :  { %1064 = vmatpush3.bf16.msra.mxu0 %v1160_v10 }
  0x48   :  { %1065 = vmatprep.subr.bf16.mxu0 %v1168_v6 }
  0x4b   :  { %1066 = vmatpush3.bf16.msra.mxu0 %v1161_v11 }
  0x4c   :  { %1067 = vmatprep.subr.bf16.mxu0 %v1168_v6 }
  0x4f   :  { %1068 = vmatpush3.bf16.msra.mxu0 %v1162_v12 }
  0x50   :  { %1069 = vmatprep.subr.bf16.mxu0 %v1168_v6 }
  0x53   :  { %1070 = vmatpush3.bf16.msra.mxu0 %v1163_v13 }
  0x54   :  { %1071 = vmatprep.subr.bf16.mxu0 %v1168_v6 }
  0x57   :  { %1072 = vmatpush3.bf16.msra.mxu0 %v1164_v14 }
  0x58   :  { %1073 = vmatprep.subr.bf16.mxu0 %v1168_v6 }
  0x5b   :  { %1074 = vmatpush3.bf16.msra.mxu0 %v1165_v15 }
  0x5c   :  { %1075 = vmatprep.subr.bf16.mxu0 %v1168_v6 }
  0x5f   :  { %1076 = vmatpush3.bf16.msra.mxu0 %v1166_v16 }
  0x62   :  { %1078 = vmatmul.mubr.bf16.vlgmr.msra.gmra.mxu0 %v1167_v17 }
  0xe2   :  { %v980_v18 = vpop.f32.mrf.mxu0 }
  0xe4   :  { %v981_v19 = vpop.f32.mrf.mxu0  ;;  %v1002_v20 = vpop.f32.mrf.mxu1 }
  0xe5   :  { %v982_v31 = vadd.f32 %v981_v19, %v980_v18 }
  0xe6   :  { %v983_v21 = vpop.f32.mrf.mxu0  ;;  %v1003_v22 = vpop.f32.mrf.mxu1 }
  0xe7   :  { %v689_v36 = vadd.f32 %v982_v31, %v873_v33  ;;  %v1004_v37 = vadd.f32 %v1003_v22, %v1002_v20 }
  0xe8   :  { %v984_v23 = vpop.f32.mrf.mxu0  ;;  %v1005_v24 = vpop.f32.mrf.mxu1 }
  0xe9   :  { %v985_v32 = vadd.f32 %v984_v23, %v983_v21  ;;  %v730_v43 = vadd.f32 %v1004_v37, %v689_v36 }
  0xea   :  { %v1006_v26 = vpop.f32.mrf.mxu1 }
  0xeb   :  { %v692_v38 = vadd.f32 %v985_v32, %v873_v33  ;;  %v1007_v39 = vadd.f32 %v1006_v26, %v1005_v24 }
  0xed   :  { %v733_v44 = vadd.f32 %v1007_v39, %v692_v38 }
 0x102   :  { %v1024_v25 = vpop.f32.mrf.mxu0 }
 0x104   :  { %v1025_v27 = vpop.f32.mrf.mxu0  ;;  %v1046_v28 = vpop.f32.mrf.mxu1 }
 0x105   :  { %v1026_v40 = vadd.f32 %v1025_v27, %v1024_v25 }
 0x106   :  { %v1027_v29 = vpop.f32.mrf.mxu0  ;;  %v1047_v30 = vpop.f32.mrf.mxu1 }
 0x107   :  { %v771_v45 = vadd.f32 %v1026_v40, %v730_v43  ;;  %v1048_v46 = vadd.f32 %v1047_v30, %v1046_v28 }
 0x108   :  { %v1028_v34 = vpop.f32.mrf.mxu0  ;;  %v1049_v35 = vpop.f32.mrf.mxu1 }
 0x109   :  { %v1029_v41 = vadd.f32 %v1028_v34, %v1027_v29  ;;  %v812_v51 = vadd.f32 %v1048_v46, %v771_v45 }
 0x10a   :  { %v1050_v42 = vpop.f32.mrf.mxu1 }
 0x10b   :  { %v774_v47 = vadd.f32 %v1029_v41, %v733_v44  ;;  %v1051_v48 = vadd.f32 %v1050_v42, %v1049_v35 }
 0x10d   :  { %v815_v52 = vadd.f32 %v1051_v48, %v774_v47 }
 0x122   :  { %v852_v49 = vpop.f32.mrf.mxu0 }
 0x123   :  { %v853_v54 = vadd.f32 %v852_v49, %v812_v51 }
 0x124   :  { %v1079_v50 = vpop.f32.mrf.mxu0 }
 0x126   :  { %v855_v53 = vpop.f32.mrf.mxu0 }
 0x127   :  { %v856_v55 = vadd.f32 %v855_v53, %v815_v52 }
 0x128   :  { %v1080_v56 = vpop.f32.mrf.mxu0 }
 0x129   :  { %v962_v57 = vpack.c.bf16 %v856_v55, %v853_v54 }
 0x12b   :  { %963 = vst [vmem:[%s1442_s3] sm:$0xff] %v962_v57  }

// kernel: _lambda_.47
= control target key start
LH: loop header
LB: loop body
LE: loop exit
PB: predicated region body
PF: predicated region fallthrough
CT: control target
= control target key end

     0   :  { %vm66_vm0 = vcmask 261120   ;;  %s319_s1 = inlined_call_operand.vmem [shape: bf16[32,128], index: 1, kind: input, shape index: {}]   ;;  %s320_s0 = inlined_call_operand.vmem [shape: bf16[64,32], index: 0, kind: input, shape index: {}]   ;;  %s321_s2 = inlined_call_operand.vmem [shape: f32[1,128], index: 2, kind: input, shape index: {}]   ;;  %s322_s3 = inlined_call_operand.vmem [shape: bf16[64,128], index: 3, kind: output, shape index: {}]  }
   0x1   :  { %v260_v0 = vld [vmem:[%s319_s1 + $0x8] sm:$0xff]   ;;  %v261_v1 = vld [vmem:[%s319_s1] sm:$0xff]   ;;  %v263_v3 = vld [vmem:[%s320_s0 + $0x10] sm:$0xff]  }
   0x2   :  { %244 = vmatprep.subr.bf16.mxu0 %v260_v0  ;;  %256 = vmatprep.subr.bf16.mxu1 %v260_v0  ;;  %v262_v2 = vld [vmem:[%s320_s0] sm:$0xff]   ;;  %v264_v4 = vld [vmem:[%s320_s0 + $0x8] sm:$0xff]   ;;  %v265_v5 = vld [vmem:[%s320_s0 + $0x18] sm:$0xff]  }
   0x3   :  { %245 = vmatpush3.bf16.msra.mxu0 %v260_v0  ;;  %258 = vmatpush3.bf16.msra.mxu1 %v260_v0  ;;  %v188_v8 = vld [vmem:[%s321_s2] ss:$0 sm:$0xff] }
   0x4   :  { %246 = vmatprep.subr.bf16.mxu0 %v261_v1  ;;  %257 = vmatprep.subr.bf16.mxu1 %v261_v1 }
   0x5   :  { %248 = vmatprep.mubr.msk.bf16.mxu0 %vm66_vm0, %v262_v2  ;;  %252 = vmatprep.mubr.msk.bf16.mxu1 %vm66_vm0, %v263_v3 }
   0x7   :  { %247 = vmatpush3.bf16.msra.mxu0 %v261_v1  ;;  %259 = vmatpush3.bf16.msra.mxu1 %v261_v1 }
   0xa   :  { %249 = vmatmul.mubr.msk.bf16.vlgmr.msra.gmra.mxu0 %vm66_vm0, %v264_v4  ;;  %253 = vmatmul.mubr.msk.bf16.vlgmr.msra.gmra.mxu1 %vm66_vm0, %v265_v5 }
  0xca   :  { %v250_v6 = vpop.f32.mrf.mxu0  ;;  %v254_v7 = vpop.f32.mrf.mxu1 }
  0xcb   :  { %v122_v13 = vadd.f32 %v250_v6, %v188_v8  ;;  %v138_v14 = vadd.f32 %v254_v7, %v188_v8 }
  0xcc   :  { %v113_v9 = vpop.f32.mrf.mxu0  ;;  %v129_v10 = vpop.f32.mrf.mxu1 }
  0xcd   :  { %v114_v17 = vadd.f32 %v188_v8, %v113_v9  ;;  %v130_v18 = vadd.f32 %v188_v8, %v129_v10 }
  0xce   :  { %v251_v11 = vpop.f32.mrf.mxu0  ;;  %v255_v12 = vpop.f32.mrf.mxu1 }
  0xcf   :  { %v125_v15 = vadd.f32 %v251_v11, %v188_v8  ;;  %v141_v16 = vadd.f32 %v255_v12, %v188_v8 }
  0xd0   :  { %v116_v19 = vpop.f32.mrf.mxu0  ;;  %v132_v20 = vpop.f32.mrf.mxu1 }
  0xd1   :  { %v223_v21 = vpack.c.bf16 %v125_v15, %v122_v13  ;;  %v233_v22 = vpack.c.bf16 %v141_v16, %v138_v14  ;;  %v117_v23 = vadd.f32 %v188_v8, %v116_v19  ;;  %v133_v24 = vadd.f32 %v188_v8, %v132_v20 }
  0xd3   :  { %235 = vst [vmem:[%s322_s3 + $0x8] sm:$0xff] %v223_v21   ;;  %237 = vst [vmem:[%s322_s3 + $0x18] sm:$0xff] %v233_v22   ;;  %v218_v25 = vpack.c.bf16 %v117_v23, %v114_v17  ;;  %v228_v26 = vpack.c.bf16 %v133_v24, %v130_v18 }
  0xd5   :  { %219 = vst [vmem:[%s322_s3] sm:$0xff] %v218_v25   ;;  %236 = vst [vmem:[%s322_s3 + $0x10] sm:$0xff] %v228_v26  }

// kernel: _lambda_.45
= control target key start
LH: loop header
LB: loop body
LE: loop exit
PB: predicated region body
PF: predicated region fallthrough
CT: control target
= control target key end

     0   :  { %vm434_vm0 = vcmask 523264   ;;  %s1165_s1 = inlined_call_operand.vmem [shape: bf16[576,128], index: 1, kind: input, shape index: {}]   ;;  %s1166_s0 = inlined_call_operand.vmem [shape: bf16[64,576], index: 0, kind: input, shape index: {}]   ;;  %s1167_s2 = inlined_call_operand.vmem [shape: f32[1,128], index: 2, kind: input, shape index: {}]   ;;  %s1168_s3 = inlined_call_operand.vmem [shape: bf16[64,128], index: 3, kind: output, shape index: {}]  }
   0x1   :  { %v898_v0 = vld [vmem:[%s1165_s1 + $0x78] sm:$0xff]   ;;  %v902_v4 = vld [vmem:[%s1165_s1 + $0x70] sm:$0xff]   ;;  %v906_v8 = vld [vmem:[%s1165_s1 + $0x68] sm:$0xff]  }
   0x2   :  { %v899_v1 = vld [vmem:[%s1165_s1 + $0xf8] sm:$0xff]   ;;  %786 = vmatprep.subr.bf16.mxu0 %v898_v0  ;;  %v903_v5 = vld [vmem:[%s1165_s1 + $0xf0] sm:$0xff]   ;;  %v907_v9 = vld [vmem:[%s1165_s1 + $0xe8] sm:$0xff]  }
   0x3   :  { %v900_v2 = vld [vmem:[%s1165_s1 + $0x38] sm:$0xff]   ;;  %826 = vmatprep.subr.bf16.mxu1 %v899_v1  ;;  %v904_v6 = vld [vmem:[%s1165_s1 + $0x30] sm:$0xff]   ;;  %v908_v10 = vld [vmem:[%s1165_s1 + $0x28] sm:$0xff]  }
   0x4   :  { %v901_v3 = vld [vmem:[%s1165_s1 + $0xb8] sm:$0xff]   ;;  %787 = vmatpush3.bf16.msra.mxu0 %v900_v2  ;;  %v905_v7 = vld [vmem:[%s1165_s1 + $0xb0] sm:$0xff]   ;;  %v909_v11 = vld [vmem:[%s1165_s1 + $0xa8] sm:$0xff]  }
   0x5   :  { %827 = vmatpush3.bf16.msra.mxu1 %v901_v3  ;;  %788 = vmatprep.subr.bf16.mxu0 %v902_v4  ;;  %v910_v12 = vld [vmem:[%s1165_s1 + $0x60] sm:$0xff]   ;;  %v914_v16 = vld [vmem:[%s1165_s1 + $0x58] sm:$0xff]   ;;  %v918_v20 = vld [vmem:[%s1165_s1 + $0x50] sm:$0xff]  }
   0x6   :  { %828 = vmatprep.subr.bf16.mxu1 %v903_v5  ;;  %v911_v13 = vld [vmem:[%s1165_s1 + $0xe0] sm:$0xff]   ;;  %v915_v17 = vld [vmem:[%s1165_s1 + $0xd8] sm:$0xff]   ;;  %v919_v21 = vld [vmem:[%s1165_s1 + $0xd0] sm:$0xff]  }
   0x7   :  { %v912_v14 = vld [vmem:[%s1165_s1 + $0x20] sm:$0xff]   ;;  %v916_v18 = vld [vmem:[%s1165_s1 + $0x18] sm:$0xff]   ;;  %v920_v22 = vld [vmem:[%s1165_s1 + $0x10] sm:$0xff]  }
   0x8   :  { %789 = vmatpush3.bf16.msra.mxu0 %v904_v6  ;;  %v913_v15 = vld [vmem:[%s1165_s1 + $0xa0] sm:$0xff]   ;;  %v917_v19 = vld [vmem:[%s1165_s1 + $0x98] sm:$0xff]   ;;  %v921_v23 = vld [vmem:[%s1165_s1 + $0x90] sm:$0xff]  }
   0x9   :  { %829 = vmatpush3.bf16.msra.mxu1 %v905_v7  ;;  %790 = vmatprep.subr.bf16.mxu0 %v906_v8  ;;  %v922_v24 = vld [vmem:[%s1165_s1 + $0x48] sm:$0xff]   ;;  %v926_v28 = vld [vmem:[%s1165_s1 + $0x40] sm:$0xff]   ;;  %v936_v36 = vld [vmem:[%s1165_s1 + $0x118] sm:$0xff]  }
   0xa   :  { %830 = vmatprep.subr.bf16.mxu1 %v907_v9  ;;  %v923_v25 = vld [vmem:[%s1165_s1 + $0xc8] sm:$0xff]   ;;  %v927_v29 = vld [vmem:[%s1165_s1 + $0xc0] sm:$0xff]   ;;  %v943_v39 = vld [vmem:[%s1165_s1 + $0x110] sm:$0xff]  }
   0xb   :  { %v924_v26 = vld [vmem:[%s1165_s1 + $0x8] sm:$0xff]   ;;  %v928_v30 = vld [vmem:[%s1165_s1] sm:$0xff]   ;;  %v946_v43 = vld [vmem:[%s1166_s0 + $0x5c] ss:$20 sps:$4 sm:$0xff]  }
   0xc   :  { %791 = vmatpush3.bf16.msra.mxu0 %v908_v10  ;;  %v925_v27 = vld [vmem:[%s1165_s1 + $0x88] sm:$0xff]   ;;  %v929_v31 = vld [vmem:[%s1165_s1 + $0x80] sm:$0xff]   ;;  %v951_v48 = vld [vmem:[%s1166_s0 + $0x7c] ss:$20 sps:$4 sm:$0xff]  }
   0xd   :  { %831 = vmatpush3.bf16.msra.mxu1 %v909_v11  ;;  %792 = vmatprep.subr.bf16.mxu0 %v910_v12  ;;  %v930_v32 = vld [vmem:[%s1166_s0] ss:$20 sps:$4 sm:$0xff]   ;;  %v932_v33 = vld [vmem:[%s1166_s0 + $0x4] ss:$20 sps:$4 sm:$0xff]   ;;  %v933_v34 = vld [vmem:[%s1166_s0 + $0x8] ss:$20 sps:$4 sm:$0xff]  }
   0xe   :  { %832 = vmatprep.subr.bf16.mxu1 %v911_v13  ;;  %v935_v35 = vld [vmem:[%s1166_s0 + $0xc] ss:$20 sps:$4 sm:$0xff]   ;;  %479 = vmatprep.mubr.bf16.mxu0 %v932_v33  ;;  %v939_v38 = vld [vmem:[%s1166_s0 + $0x34] ss:$20 sps:$4 sm:$0xff]   ;;  %v942_v41 = vld [vmem:[%s1166_s0 + $0x30] ss:$20 sps:$4 sm:$0xff]  }
   0xf   :  { %544 = vmatprep.mubr.bf16.mxu1 %v935_v35  ;;  %v937_v37 = vld [vmem:[%s1166_s0 + $0x2c] ss:$20 sps:$4 sm:$0xff]   ;;  %v941_v40 = vld [vmem:[%s1166_s0 + $0x28] ss:$20 sps:$4 sm:$0xff]   ;;  %v948_v46 = vld [vmem:[%s1166_s0 + $0x50] ss:$20 sps:$4 sm:$0xff]  }
  0x10   :  { %793 = vmatpush3.bf16.msra.mxu0 %v912_v14  ;;  %v944_v42 = vld [vmem:[%s1166_s0 + $0x54] ss:$20 sps:$4 sm:$0xff]   ;;  %v957_v45 = vld [vmem:[%s1165_s1 + $0x100] sm:$0xff]   ;;  %v949_v47 = vld [vmem:[%s1166_s0 + $0x58] ss:$20 sps:$4 sm:$0xff]  }
  0x11   :  { %833 = vmatpush3.bf16.msra.mxu1 %v913_v15  ;;  %794 = vmatprep.subr.bf16.mxu0 %v914_v16  ;;  %v950_v44 = vld [vmem:[%s1165_s1 + $0x108] sm:$0xff]   ;;  %v953_v49 = vld [vmem:[%s1166_s0 + $0x84] ss:$20 sps:$4 sm:$0xff]   ;;  %v956_v51 = vld [vmem:[%s1166_s0 + $0x80] ss:$20 sps:$4 sm:$0xff]  }
  0x12   :  { %834 = vmatprep.subr.bf16.mxu1 %v915_v17  ;;  %v955_v50 = vld [vmem:[%s1166_s0 + $0x78] ss:$20 sps:$4 sm:$0xff]   ;;  %v958_v52 = vld [vmem:[%s1166_s0 + $0x10] ss:$20 sps:$4 sm:$0xff]   ;;  %v959_v53 = vld [vmem:[%s1166_s0 + $0x60] ss:$20 sps:$4 sm:$0xff]  }
  0x13   :  { %v960_v54 = vld [vmem:[%s1166_s0 + $0x38] ss:$20 sps:$4 sm:$0xff]   ;;  %v961_v55 = vld [vmem:[%s1166_s0 + $0x88] ss:$20 sps:$4 sm:$0xff]  }
  0x14   :  { %795 = vmatpush3.bf16.msra.mxu0 %v916_v18 }
  0x15   :  { %835 = vmatpush3.bf16.msra.mxu1 %v917_v19  ;;  %796 = vmatprep.subr.bf16.mxu0 %v918_v20 }
  0x16   :  { %836 = vmatprep.subr.bf16.mxu1 %v919_v21 }
  0x18   :  { %797 = vmatpush3.bf16.msra.mxu0 %v920_v22 }
  0x19   :  { %837 = vmatpush3.bf16.msra.mxu1 %v921_v23  ;;  %798 = vmatprep.subr.bf16.mxu0 %v922_v24 }
  0x1a   :  { %838 = vmatprep.subr.bf16.mxu1 %v923_v25 }
  0x1c   :  { %799 = vmatpush3.bf16.msra.mxu0 %v924_v26  ;;  %v686_v26 = vld [vmem:[%s1167_s2] ss:$0 sm:$0xff] }
  0x1d   :  { %839 = vmatpush3.bf16.msra.mxu1 %v925_v27  ;;  %800 = vmatprep.subr.bf16.mxu0 %v926_v28 }
  0x1e   :  { %840 = vmatprep.subr.bf16.mxu1 %v927_v29 }
  0x20   :  { %801 = vmatpush3.bf16.msra.mxu0 %v928_v30 }
  0x21   :  { %841 = vmatpush3.bf16.msra.mxu1 %v929_v31  ;;  %874 = vmatprep.subr.bf16.mxu0 %v936_v36 }
  0x22   :  { %890 = vmatprep.subr.bf16.mxu1 %v936_v36 }
  0x23   :  { %480 = vmatmul.mubr.bf16.vlgmr.msra.gmra.mxu0 %v930_v32 }
  0x24   :  { %545 = vmatmul.mubr.bf16.vlgmr.msra.gmra.mxu1 %v933_v34  ;;  %875 = vmatpush3.bf16.msra.mxu0 %v936_v36 }
  0x25   :  { %894 = vmatpush3.bf16.msra.mxu1 %v936_v36  ;;  %487 = vmatprep.mubr.bf16.mxu0 %v937_v37 }
  0x26   :  { %552 = vmatprep.mubr.bf16.mxu1 %v939_v38  ;;  %876 = vmatprep.subr.bf16.mxu0 %v943_v39 }
  0x27   :  { %891 = vmatprep.subr.bf16.mxu1 %v943_v39 }
  0x28   :  { %877 = vmatpush3.bf16.msra.mxu0 %v943_v39 }
  0x29   :  { %895 = vmatpush3.bf16.msra.mxu1 %v943_v39  ;;  %878 = vmatprep.subr.bf16.mxu0 %v950_v44 }
  0x2a   :  { %892 = vmatprep.subr.bf16.mxu1 %v950_v44 }
  0x2b   :  { %488 = vmatmul.mubr.bf16.gmra.mxu0 %v941_v40 }
  0x2c   :  { %553 = vmatmul.mubr.bf16.gmra.mxu1 %v942_v41  ;;  %495 = vmatprep.mubr.bf16.mxu0 %v944_v42 }
  0x2d   :  { %560 = vmatprep.mubr.bf16.mxu1 %v946_v43  ;;  %879 = vmatpush3.bf16.msra.mxu0 %v950_v44 }
  0x2e   :  { %896 = vmatpush3.bf16.msra.mxu1 %v950_v44  ;;  %880 = vmatprep.subr.bf16.mxu0 %v957_v45 }
  0x2f   :  { %893 = vmatprep.subr.bf16.mxu1 %v957_v45 }
  0x31   :  { %881 = vmatpush3.bf16.msra.mxu0 %v957_v45 }
  0x32   :  { %897 = vmatpush3.bf16.msra.mxu1 %v957_v45 }
  0x33   :  { %496 = vmatmul.mubr.bf16.gmra.mxu0 %v948_v46 }
  0x34   :  { %561 = vmatmul.mubr.bf16.gmra.mxu1 %v949_v47  ;;  %503 = vmatprep.mubr.bf16.mxu0 %v951_v48 }
  0x35   :  { %568 = vmatprep.mubr.bf16.mxu1 %v953_v49 }
  0x3b   :  { %504 = vmatmul.mubr.bf16.gmra.mxu0 %v955_v50 }
  0x3c   :  { %569 = vmatmul.mubr.bf16.gmra.mxu1 %v956_v51  ;;  %882 = vmatprep.mubr.msk.bf16.mxu0 %vm434_vm0, %v958_v52 }
  0x3d   :  { %886 = vmatprep.mubr.msk.bf16.mxu1 %vm434_vm0, %v959_v53 }
  0x43   :  { %883 = vmatmul.mubr.msk.bf16.vlgmr.msra.gmra.mxu0 %vm434_vm0, %v960_v54 }
  0x44   :  { %887 = vmatmul.mubr.msk.bf16.vlgmr.msra.gmra.mxu1 %vm434_vm0, %v961_v55 }
  0xe3   :  { %v802_v56 = vpop.f32.mrf.mxu0 }
  0xe4   :  { %v842_v57 = vpop.f32.mrf.mxu1 }
  0xe5   :  { %v803_v58 = vpop.f32.mrf.mxu0 }
  0xe6   :  { %v843_v59 = vpop.f32.mrf.mxu1  ;;  %v804_v23 = vadd.f32 %v803_v58, %v802_v56 }
  0xe7   :  { %v805_v60 = vpop.f32.mrf.mxu0  ;;  %v844_v45 = vadd.f32 %v843_v59, %v842_v57 }
  0xe8   :  { %v845_v61 = vpop.f32.mrf.mxu1  ;;  %v482_v36 = vadd.f32 %v804_v23, %v686_v26 }
  0xe9   :  { %v806_v62 = vpop.f32.mrf.mxu0 }
  0xea   :  { %v846_v63 = vpop.f32.mrf.mxu1  ;;  %v807_v24 = vadd.f32 %v806_v62, %v805_v60  ;;  %v547_v62 = vadd.f32 %v844_v45, %v482_v36 }
  0xeb   :  { %v808_v0 = vpop.f32.mrf.mxu0  ;;  %v847_v50 = vadd.f32 %v846_v63, %v845_v61 }
  0xec   :  { %v848_v1 = vpop.f32.mrf.mxu1  ;;  %v485_v37 = vadd.f32 %v807_v24, %v686_v26 }
  0xed   :  { %v809_v2 = vpop.f32.mrf.mxu0 }
  0xee   :  { %v849_v3 = vpop.f32.mrf.mxu1  ;;  %v810_v19 = vadd.f32 %v809_v2, %v808_v0  ;;  %v550_v2 = vadd.f32 %v847_v50, %v485_v37 }
  0xef   :  { %v811_v4 = vpop.f32.mrf.mxu0  ;;  %v850_v40 = vadd.f32 %v849_v3, %v848_v1 }
  0xf0   :  { %v851_v5 = vpop.f32.mrf.mxu1  ;;  %v490_v32 = vadd.f32 %v810_v19, %v686_v26 }
  0xf1   :  { %v812_v6 = vpop.f32.mrf.mxu0 }
  0xf2   :  { %v852_v7 = vpop.f32.mrf.mxu1  ;;  %v813_v20 = vadd.f32 %v812_v6, %v811_v4  ;;  %v555_v51 = vadd.f32 %v850_v40, %v490_v32 }
  0xf3   :  { %v814_v8 = vpop.f32.mrf.mxu0  ;;  %v853_v41 = vadd.f32 %v852_v7, %v851_v5 }
  0xf4   :  { %v854_v9 = vpop.f32.mrf.mxu1  ;;  %v493_v33 = vadd.f32 %v813_v20, %v686_v26 }
  0xf5   :  { %v815_v10 = vpop.f32.mrf.mxu0 }
  0xf6   :  { %v855_v11 = vpop.f32.mrf.mxu1  ;;  %v816_v28 = vadd.f32 %v815_v10, %v814_v8  ;;  %v558_v53 = vadd.f32 %v853_v41, %v493_v33 }
  0xf7   :  { %v817_v12 = vpop.f32.mrf.mxu0  ;;  %v856_v55 = vadd.f32 %v855_v11, %v854_v9 }
  0xf8   :  { %v857_v13 = vpop.f32.mrf.mxu1  ;;  %v498_v46 = vadd.f32 %v816_v28, %v686_v26 }
  0xf9   :  { %v818_v14 = vpop.f32.mrf.mxu0 }
  0xfa   :  { %v858_v15 = vpop.f32.mrf.mxu1  ;;  %v819_v29 = vadd.f32 %v818_v14, %v817_v12  ;;  %v563_v4 = vadd.f32 %v856_v55, %v498_v46 }
  0xfb   :  { %v820_v16 = vpop.f32.mrf.mxu0  ;;  %v859_v56 = vadd.f32 %v858_v15, %v857_v13 }
  0xfc   :  { %v860_v17 = vpop.f32.mrf.mxu1  ;;  %v501_v47 = vadd.f32 %v819_v29, %v686_v26 }
  0xfd   :  { %v821_v18 = vpop.f32.mrf.mxu0 }
  0xfe   :  { %v822_v21 = vadd.f32 %v821_v18, %v820_v16  ;;  %v861_v22 = vpop.f32.mrf.mxu1  ;;  %v566_v5 = vadd.f32 %v859_v56, %v501_v47 }
  0xff   :  { %v823_v25 = vpop.f32.mrf.mxu0  ;;  %v862_v38 = vadd.f32 %v861_v22, %v860_v17 }
 0x100   :  { %v863_v27 = vpop.f32.mrf.mxu1  ;;  %v506_v30 = vadd.f32 %v822_v21, %v686_v26 }
 0x101   :  { %v824_v31 = vpop.f32.mrf.mxu0 }
 0x102   :  { %v825_v34 = vadd.f32 %v824_v31, %v823_v25  ;;  %v864_v35 = vpop.f32.mrf.mxu1  ;;  %v571_v48 = vadd.f32 %v862_v38, %v506_v30 }
 0x103   :  { %v884_v39 = vpop.f32.mrf.mxu0  ;;  %v865_v43 = vadd.f32 %v864_v35, %v863_v27 }
 0x104   :  { %v509_v42 = vadd.f32 %v825_v34, %v686_v26  ;;  %v888_v44 = vpop.f32.mrf.mxu1  ;;  %v620_v60 = vadd.f32 %v884_v39, %v555_v51 }
 0x105   :  { %v611_v49 = vpop.f32.mrf.mxu0  ;;  %v636_v3 = vadd.f32 %v888_v44, %v571_v48 }
 0x106   :  { %v627_v52 = vpop.f32.mrf.mxu1  ;;  %v574_v54 = vadd.f32 %v865_v43, %v509_v42  ;;  %v612_v6 = vadd.f32 %v611_v49, %v547_v62 }
 0x107   :  { %v885_v58 = vpop.f32.mrf.mxu0  ;;  %v628_v8 = vadd.f32 %v627_v52, %v563_v4 }
 0x108   :  { %v623_v0 = vadd.f32 %v885_v58, %v558_v53  ;;  %v889_v1 = vpop.f32.mrf.mxu1 }
 0x109   :  { %v639_v57 = vadd.f32 %v889_v1, %v574_v54  ;;  %v614_v59 = vpop.f32.mrf.mxu0 }
 0x10a   :  { %v771_v7 = vpack.c.bf16 %v623_v0, %v620_v60  ;;  %v615_v61 = vadd.f32 %v614_v59, %v550_v2  ;;  %v630_v63 = vpop.f32.mrf.mxu1 }
 0x10b   :  { %v781_v10 = vpack.c.bf16 %v639_v57, %v636_v3  ;;  %v631_v12 = vadd.f32 %v630_v63, %v566_v5 }
 0x10c   :  { %783 = vst [vmem:[%s1168_s3 + $0x8] sm:$0xff] %v771_v7   ;;  %v766_v9 = vpack.c.bf16 %v615_v61, %v612_v6 }
 0x10d   :  { %785 = vst [vmem:[%s1168_s3 + $0x18] sm:$0xff] %v781_v10   ;;  %v776_v11 = vpack.c.bf16 %v631_v12, %v628_v8 }
 0x10e   :  { %767 = vst [vmem:[%s1168_s3] sm:$0xff] %v766_v9  }
 0x10f   :  { %784 = vst [vmem:[%s1168_s3 + $0x10] sm:$0xff] %v776_v11  }

// kernel: _lambda_.50
= control target key start
LH: loop header
LB: loop body
LE: loop exit
PB: predicated region body
PF: predicated region fallthrough
CT: control target
= control target key end

     0   :  { %vm142_vm0 = vcmask 130048   ;;  %s951_s1 = inlined_call_operand.vmem [shape: bf16[16,128], index: 1, kind: input, shape index: {}]   ;;  %s952_s0 = inlined_call_operand.vmem [shape: bf16[256,16], index: 0, kind: input, shape index: {}]   ;;  %s953_s2 = inlined_call_operand.vmem [shape: f32[1,128], index: 2, kind: input, shape index: {}]   ;;  %s954_s3 = inlined_call_operand.vmem [shape: bf16[256,128], index: 3, kind: output, shape index: {}]  }
   0x1   :  { %v762_v0 = vld [vmem:[%s951_s1] sm:$0xff]   ;;  %v765_v3 = vld [vmem:[%s952_s0 + $0x8] sm:$0xff]   ;;  %v767_v5 = vld [vmem:[%s952_s0 + $0x10] sm:$0xff]  }
   0x2   :  { %v763_v1 = vld [vmem:[%s952_s0] sm:$0xff]   ;;  %726 = vmatprep.subr.bf16.mxu0 %v762_v0  ;;  %760 = vmatprep.subr.bf16.mxu1 %v762_v0  ;;  %v766_v4 = vld [vmem:[%s952_s0 + $0x48] sm:$0xff]   ;;  %v768_v6 = vld [vmem:[%s952_s0 + $0x50] sm:$0xff]  }
   0x3   :  { %v764_v2 = vld [vmem:[%s952_s0 + $0x40] sm:$0xff]   ;;  %727 = vmatpush3.bf16.msra.mxu0 %v762_v0  ;;  %761 = vmatpush3.bf16.msra.mxu1 %v762_v0  ;;  %v769_v7 = vld [vmem:[%s952_s0 + $0x18] sm:$0xff]   ;;  %v773_v11 = vld [vmem:[%s952_s0 + $0x28] sm:$0xff]  }
   0x4   :  { %728 = vmatprep.mubr.msk.bf16.mxu0 %vm142_vm0, %v763_v1  ;;  %744 = vmatprep.mubr.msk.bf16.mxu1 %vm142_vm0, %v764_v2  ;;  %v770_v8 = vld [vmem:[%s952_s0 + $0x58] sm:$0xff]   ;;  %v771_v9 = vld [vmem:[%s952_s0 + $0x20] sm:$0xff]   ;;  %v774_v12 = vld [vmem:[%s952_s0 + $0x68] sm:$0xff]  }
   0x5   :  { %v772_v10 = vld [vmem:[%s952_s0 + $0x60] sm:$0xff]   ;;  %v775_v13 = vld [vmem:[%s952_s0 + $0x30] sm:$0xff]   ;;  %v777_v15 = vld [vmem:[%s952_s0 + $0x38] sm:$0xff]  }
   0x6   :  { %729 = vmatmul.mubr.msk.bf16.vlgmr.msra.gmra.mxu0 %vm142_vm0, %v765_v3  ;;  %745 = vmatmul.mubr.msk.bf16.vlgmr.msra.gmra.mxu1 %vm142_vm0, %v766_v4  ;;  %v776_v14 = vld [vmem:[%s952_s0 + $0x70] sm:$0xff]   ;;  %v778_v16 = vld [vmem:[%s952_s0 + $0x78] sm:$0xff]   ;;  %v869_v19 = vld [vmem:[%s953_s2] ss:$0 sm:$0xff] }
   0x7   :  { %732 = vmatprep.mubr.msk.bf16.mxu0 %vm142_vm0, %v767_v5  ;;  %748 = vmatprep.mubr.msk.bf16.mxu1 %vm142_vm0, %v768_v6 }
   0xe   :  { %733 = vmatmul.mubr.msk.bf16.gmra.mxu0 %vm142_vm0, %v769_v7  ;;  %749 = vmatmul.mubr.msk.bf16.gmra.mxu1 %vm142_vm0, %v770_v8 }
   0xf   :  { %736 = vmatprep.mubr.msk.bf16.mxu0 %vm142_vm0, %v771_v9  ;;  %752 = vmatprep.mubr.msk.bf16.mxu1 %vm142_vm0, %v772_v10 }
  0x16   :  { %737 = vmatmul.mubr.msk.bf16.gmra.mxu0 %vm142_vm0, %v773_v11  ;;  %753 = vmatmul.mubr.msk.bf16.gmra.mxu1 %vm142_vm0, %v774_v12 }
  0x17   :  { %740 = vmatprep.mubr.msk.bf16.mxu0 %vm142_vm0, %v775_v13  ;;  %756 = vmatprep.mubr.msk.bf16.mxu1 %vm142_vm0, %v776_v14 }
  0x1e   :  { %741 = vmatmul.mubr.msk.bf16.gmra.mxu0 %vm142_vm0, %v777_v15  ;;  %757 = vmatmul.mubr.msk.bf16.gmra.mxu1 %vm142_vm0, %v778_v16 }
  0xc6   :  { %v730_v17 = vpop.f32.mrf.mxu0  ;;  %v746_v18 = vpop.f32.mrf.mxu1 }
  0xc7   :  { %v234_v24 = vadd.f32 %v730_v17, %v869_v19  ;;  %v298_v25 = vadd.f32 %v746_v18, %v869_v19 }
  0xc8   :  { %v225_v20 = vpop.f32.mrf.mxu0  ;;  %v289_v21 = vpop.f32.mrf.mxu1 }
  0xc9   :  { %v226_v28 = vadd.f32 %v869_v19, %v225_v20  ;;  %v290_v29 = vadd.f32 %v869_v19, %v289_v21 }
  0xca   :  { %v731_v22 = vpop.f32.mrf.mxu0  ;;  %v747_v23 = vpop.f32.mrf.mxu1 }
  0xcb   :  { %v237_v26 = vadd.f32 %v731_v22, %v869_v19  ;;  %v301_v27 = vadd.f32 %v747_v23, %v869_v19 }
  0xcc   :  { %v228_v30 = vpop.f32.mrf.mxu0  ;;  %v292_v31 = vpop.f32.mrf.mxu1 }
  0xcd   :  { %v622_v32 = vpack.c.bf16 %v237_v26, %v234_v24  ;;  %v662_v33 = vpack.c.bf16 %v301_v27, %v298_v25  ;;  %v229_v34 = vadd.f32 %v869_v19, %v228_v30  ;;  %v293_v35 = vadd.f32 %v869_v19, %v292_v31 }
  0xce   :  { %v734_v36 = vpop.f32.mrf.mxu0  ;;  %v750_v37 = vpop.f32.mrf.mxu1 }
  0xcf   :  { %694 = vst [vmem:[%s954_s3 + $0x8] sm:$0xff] %v622_v32   ;;  %702 = vst [vmem:[%s954_s3 + $0x48] sm:$0xff] %v662_v33   ;;  %v617_v38 = vpack.c.bf16 %v229_v34, %v226_v28  ;;  %v657_v39 = vpack.c.bf16 %v293_v35, %v290_v29  ;;  %v250_v44 = vadd.f32 %v734_v36, %v869_v19 }
  0xd0   :  { %v241_v40 = vpop.f32.mrf.mxu0  ;;  %v305_v41 = vpop.f32.mrf.mxu1  ;;  %v314_v45 = vadd.f32 %v750_v37, %v869_v19 }
  0xd1   :  { %618 = vst [vmem:[%s954_s3] sm:$0xff] %v617_v38   ;;  %701 = vst [vmem:[%s954_s3 + $0x40] sm:$0xff] %v657_v39   ;;  %v242_v48 = vadd.f32 %v869_v19, %v241_v40  ;;  %v306_v49 = vadd.f32 %v869_v19, %v305_v41 }
  0xd2   :  { %v735_v42 = vpop.f32.mrf.mxu0  ;;  %v751_v43 = vpop.f32.mrf.mxu1 }
  0xd3   :  { %v253_v46 = vadd.f32 %v735_v42, %v869_v19  ;;  %v317_v47 = vadd.f32 %v751_v43, %v869_v19 }
  0xd4   :  { %v244_v50 = vpop.f32.mrf.mxu0  ;;  %v308_v51 = vpop.f32.mrf.mxu1 }
  0xd5   :  { %v632_v52 = vpack.c.bf16 %v253_v46, %v250_v44  ;;  %v672_v53 = vpack.c.bf16 %v317_v47, %v314_v45  ;;  %v245_v54 = vadd.f32 %v869_v19, %v244_v50  ;;  %v309_v55 = vadd.f32 %v869_v19, %v308_v51 }
  0xd6   :  { %v738_v56 = vpop.f32.mrf.mxu0  ;;  %v754_v57 = vpop.f32.mrf.mxu1 }
  0xd7   :  { %696 = vst [vmem:[%s954_s3 + $0x18] sm:$0xff] %v632_v52   ;;  %704 = vst [vmem:[%s954_s3 + $0x58] sm:$0xff] %v672_v53   ;;  %v627_v58 = vpack.c.bf16 %v245_v54, %v242_v48  ;;  %v667_v59 = vpack.c.bf16 %v309_v55, %v306_v49  ;;  %v266_v0 = vadd.f32 %v738_v56, %v869_v19 }
  0xd8   :  { %v257_v60 = vpop.f32.mrf.mxu0  ;;  %v321_v61 = vpop.f32.mrf.mxu1  ;;  %v330_v1 = vadd.f32 %v754_v57, %v869_v19 }
  0xd9   :  { %695 = vst [vmem:[%s954_s3 + $0x10] sm:$0xff] %v627_v58   ;;  %703 = vst [vmem:[%s954_s3 + $0x50] sm:$0xff] %v667_v59   ;;  %v258_v4 = vadd.f32 %v869_v19, %v257_v60  ;;  %v322_v5 = vadd.f32 %v869_v19, %v321_v61 }
  0xda   :  { %v739_v62 = vpop.f32.mrf.mxu0  ;;  %v755_v63 = vpop.f32.mrf.mxu1 }
  0xdb   :  { %v269_v2 = vadd.f32 %v739_v62, %v869_v19  ;;  %v333_v3 = vadd.f32 %v755_v63, %v869_v19 }
  0xdc   :  { %v260_v6 = vpop.f32.mrf.mxu0  ;;  %v324_v7 = vpop.f32.mrf.mxu1 }
  0xdd   :  { %v642_v8 = vpack.c.bf16 %v269_v2, %v266_v0  ;;  %v682_v9 = vpack.c.bf16 %v333_v3, %v330_v1  ;;  %v261_v10 = vadd.f32 %v869_v19, %v260_v6  ;;  %v325_v11 = vadd.f32 %v869_v19, %v324_v7 }
  0xde   :  { %v742_v12 = vpop.f32.mrf.mxu0  ;;  %v758_v13 = vpop.f32.mrf.mxu1 }
  0xdf   :  { %698 = vst [vmem:[%s954_s3 + $0x28] sm:$0xff] %v642_v8   ;;  %706 = vst [vmem:[%s954_s3 + $0x68] sm:$0xff] %v682_v9   ;;  %v637_v14 = vpack.c.bf16 %v261_v10, %v258_v4  ;;  %v677_v15 = vpack.c.bf16 %v325_v11, %v322_v5  ;;  %v282_v21 = vadd.f32 %v742_v12, %v869_v19 }
  0xe0   :  { %v273_v16 = vpop.f32.mrf.mxu0  ;;  %v337_v17 = vpop.f32.mrf.mxu1  ;;  %v346_v22 = vadd.f32 %v758_v13, %v869_v19 }
  0xe1   :  { %697 = vst [vmem:[%s954_s3 + $0x20] sm:$0xff] %v637_v14   ;;  %705 = vst [vmem:[%s954_s3 + $0x60] sm:$0xff] %v677_v15   ;;  %v274_v25 = vadd.f32 %v869_v19, %v273_v16  ;;  %v338_v26 = vadd.f32 %v869_v19, %v337_v17 }
  0xe2   :  { %v743_v18 = vpop.f32.mrf.mxu0  ;;  %v759_v20 = vpop.f32.mrf.mxu1 }
  0xe3   :  { %v285_v23 = vadd.f32 %v743_v18, %v869_v19  ;;  %v349_v24 = vadd.f32 %v759_v20, %v869_v19 }
  0xe4   :  { %v276_v27 = vpop.f32.mrf.mxu0  ;;  %v340_v28 = vpop.f32.mrf.mxu1 }
  0xe5   :  { %v652_v29 = vpack.c.bf16 %v285_v23, %v282_v21  ;;  %v692_v30 = vpack.c.bf16 %v349_v24, %v346_v22  ;;  %v277_v31 = vadd.f32 %v869_v19, %v276_v27  ;;  %v341_v32 = vadd.f32 %v869_v19, %v340_v28 }
  0xe7   :  { %700 = vst [vmem:[%s954_s3 + $0x38] sm:$0xff] %v652_v29   ;;  %708 = vst [vmem:[%s954_s3 + $0x78] sm:$0xff] %v692_v30   ;;  %v647_v33 = vpack.c.bf16 %v277_v31, %v274_v25  ;;  %v687_v34 = vpack.c.bf16 %v341_v32, %v338_v26 }
  0xe9   :  { %699 = vst [vmem:[%s954_s3 + $0x30] sm:$0xff] %v647_v33   ;;  %707 = vst [vmem:[%s954_s3 + $0x70] sm:$0xff] %v687_v34  }

// kernel: _lambda_.48
= control target key start
LH: loop header
LB: loop body
LE: loop exit
PB: predicated region body
PF: predicated region fallthrough
CT: control target
= control target key end

     0   :  { %vm470_vm0 = vcmask 261120   ;;  %s1866_s1 = inlined_call_operand.vmem [shape: bf16[288,128], index: 1, kind: input, shape index: {}]   ;;  %s1867_s0 = inlined_call_operand.vmem [shape: bf16[256,288], index: 0, kind: input, shape index: {}]   ;;  %s1868_s2 = inlined_call_operand.vmem [shape: f32[1,128], index: 2, kind: input, shape index: {}]   ;;  %s1869_s3 = inlined_call_operand.vmem [shape: bf16[256,128], index: 3, kind: output, shape index: {}]  }
   0x1   :  { %v1429_v0 = vld [vmem:[%s1866_s1 + $0x78] sm:$0xff]   ;;  %v1431_v2 = vld [vmem:[%s1866_s1 + $0x70] sm:$0xff]   ;;  %v1433_v4 = vld [vmem:[%s1866_s1 + $0x68] sm:$0xff]  }
   0x2   :  { %v1430_v1 = vld [vmem:[%s1866_s1 + $0x38] sm:$0xff]   ;;  %1247 = vmatprep.subr.bf16.mxu0 %v1429_v0  ;;  %1413 = vmatprep.subr.bf16.mxu1 %v1429_v0  ;;  %v1432_v3 = vld [vmem:[%s1866_s1 + $0x30] sm:$0xff]   ;;  %v1434_v5 = vld [vmem:[%s1866_s1 + $0x28] sm:$0xff]  }
   0x3   :  { %1248 = vmatpush3.bf16.msra.mxu0 %v1430_v1  ;;  %1421 = vmatpush3.bf16.msra.mxu1 %v1430_v1  ;;  %v1435_v6 = vld [vmem:[%s1866_s1 + $0x60] sm:$0xff]   ;;  %v1437_v8 = vld [vmem:[%s1866_s1 + $0x58] sm:$0xff]   ;;  %v1439_v10 = vld [vmem:[%s1866_s1 + $0x50] sm:$0xff]  }
   0x4   :  { %1249 = vmatprep.subr.bf16.mxu0 %v1431_v2  ;;  %1414 = vmatprep.subr.bf16.mxu1 %v1431_v2  ;;  %v1436_v7 = vld [vmem:[%s1866_s1 + $0x20] sm:$0xff]   ;;  %v1438_v9 = vld [vmem:[%s1866_s1 + $0x18] sm:$0xff]   ;;  %v1440_v13 = vld [vmem:[%s1866_s1 + $0x10] sm:$0xff]  }
   0x5   :  { %v1447_v11 = vld [vmem:[%s1867_s0 + $0x4] ss:$12 sps:$4 sm:$0xff]   ;;  %v1441_v14 = vld [vmem:[%s1866_s1 + $0x48] sm:$0xff]   ;;  %v1458_v26 = vld [vmem:[%s1867_s0 + $0x34] ss:$12 sps:$4 sm:$0xff]  }
   0x6   :  { %v1450_v12 = vld [vmem:[%s1867_s0 + $0x124] ss:$12 sps:$4 sm:$0xff]   ;;  %551 = vmatprep.mubr.bf16.mxu0 %v1447_v11  ;;  %v1442_v15 = vld [vmem:[%s1866_s1 + $0x8] sm:$0xff]   ;;  %v1460_v27 = vld [vmem:[%s1867_s0 + $0x154] ss:$12 sps:$4 sm:$0xff]  }
   0x7   :  { %1250 = vmatpush3.bf16.msra.mxu0 %v1432_v3  ;;  %1422 = vmatpush3.bf16.msra.mxu1 %v1432_v3  ;;  %v1443_v16 = vld [vmem:[%s1866_s1 + $0x40] sm:$0xff]   ;;  %v1451_v18 = vld [vmem:[%s1866_s1 + $0x88] sm:$0xff]   ;;  %v1462_v28 = vld [vmem:[%s1867_s0 + $0x30] ss:$12 sps:$4 sm:$0xff]  }
   0x8   :  { %1251 = vmatprep.subr.bf16.mxu0 %v1433_v4  ;;  %1415 = vmatprep.subr.bf16.mxu1 %v1433_v4  ;;  %v1444_v17 = vld [vmem:[%s1866_s1] sm:$0xff]   ;;  %v1452_v21 = vld [vmem:[%s1867_s0 + $0x1c] ss:$12 sps:$4 sm:$0xff]   ;;  %v1465_v30 = vld [vmem:[%s1867_s0 + $0x4c] ss:$12 sps:$4 sm:$0xff]  }
   0x9   :  { %647 = vmatprep.mubr.bf16.mxu1 %v1450_v12  ;;  %v1445_v19 = vld [vmem:[%s1867_s0] ss:$12 sps:$4 sm:$0xff]   ;;  %v1454_v22 = vld [vmem:[%s1867_s0 + $0x13c] ss:$12 sps:$4 sm:$0xff]   ;;  %v1456_v24 = vld [vmem:[%s1867_s0 + $0x18] ss:$12 sps:$4 sm:$0xff]  }
   0xa   :  { %v1448_v20 = vld [vmem:[%s1867_s0 + $0x120] ss:$12 sps:$4 sm:$0xff]   ;;  %v1457_v25 = vld [vmem:[%s1867_s0 + $0x138] ss:$12 sps:$4 sm:$0xff]   ;;  %v1463_v29 = vld [vmem:[%s1867_s0 + $0x150] ss:$12 sps:$4 sm:$0xff]  }
   0xb   :  { %1252 = vmatpush3.bf16.msra.mxu0 %v1434_v5  ;;  %1423 = vmatpush3.bf16.msra.mxu1 %v1434_v5  ;;  %v1464_v23 = vld [vmem:[%s1866_s1 + $0x80] sm:$0xff]   ;;  %v1467_v31 = vld [vmem:[%s1867_s0 + $0x16c] ss:$12 sps:$4 sm:$0xff]   ;;  %v1469_v32 = vld [vmem:[%s1867_s0 + $0x48] ss:$12 sps:$4 sm:$0xff]  }
   0xc   :  { %1253 = vmatprep.subr.bf16.mxu0 %v1435_v6  ;;  %1416 = vmatprep.subr.bf16.mxu1 %v1435_v6  ;;  %v1470_v33 = vld [vmem:[%s1867_s0 + $0x168] ss:$12 sps:$4 sm:$0xff]   ;;  %v1471_v34 = vld [vmem:[%s1867_s0 + $0x64] ss:$12 sps:$4 sm:$0xff]   ;;  %v1474_v36 = vld [vmem:[%s1867_s0 + $0x60] ss:$12 sps:$4 sm:$0xff]  }
   0xd   :  { %v1473_v35 = vld [vmem:[%s1867_s0 + $0x8] ss:$12 sps:$4 sm:$0xff]   ;;  %v1475_v37 = vld [vmem:[%s1867_s0 + $0x20] ss:$12 sps:$4 sm:$0xff]   ;;  %v1478_v39 = vld [vmem:[%s1867_s0 + $0x38] ss:$12 sps:$4 sm:$0xff]  }
   0xe   :  { %v1476_v38 = vld [vmem:[%s1867_s0 + $0x7c] ss:$12 sps:$4 sm:$0xff]   ;;  %v1479_v40 = vld [vmem:[%s1867_s0 + $0x78] ss:$12 sps:$4 sm:$0xff]   ;;  %v1481_v42 = vld [vmem:[%s1867_s0 + $0x94] ss:$12 sps:$4 sm:$0xff]  }
   0xf   :  { %1254 = vmatpush3.bf16.msra.mxu0 %v1436_v7  ;;  %1424 = vmatpush3.bf16.msra.mxu1 %v1436_v7  ;;  %v1480_v41 = vld [vmem:[%s1867_s0 + $0x50] ss:$12 sps:$4 sm:$0xff]   ;;  %v1483_v43 = vld [vmem:[%s1867_s0 + $0x68] ss:$12 sps:$4 sm:$0xff]   ;;  %v1485_v45 = vld [vmem:[%s1867_s0 + $0x80] ss:$12 sps:$4 sm:$0xff]  }
  0x10   :  { %1255 = vmatprep.subr.bf16.mxu0 %v1437_v8  ;;  %1417 = vmatprep.subr.bf16.mxu1 %v1437_v8  ;;  %v1484_v44 = vld [vmem:[%s1867_s0 + $0x90] ss:$12 sps:$4 sm:$0xff]   ;;  %v1486_v46 = vld [vmem:[%s1867_s0 + $0xac] ss:$12 sps:$4 sm:$0xff]   ;;  %v1489_v48 = vld [vmem:[%s1867_s0 + $0xa8] ss:$12 sps:$4 sm:$0xff]  }
  0x11   :  { %v1488_v47 = vld [vmem:[%s1867_s0 + $0x98] ss:$12 sps:$4 sm:$0xff]   ;;  %v1490_v49 = vld [vmem:[%s1867_s0 + $0xb0] ss:$12 sps:$4 sm:$0xff]   ;;  %v1493_v51 = vld [vmem:[%s1867_s0 + $0xc8] ss:$12 sps:$4 sm:$0xff]  }
  0x12   :  { %v1491_v50 = vld [vmem:[%s1867_s0 + $0xc4] ss:$12 sps:$4 sm:$0xff]   ;;  %v1494_v52 = vld [vmem:[%s1867_s0 + $0xc0] ss:$12 sps:$4 sm:$0xff]   ;;  %v1496_v54 = vld [vmem:[%s1867_s0 + $0xdc] ss:$12 sps:$4 sm:$0xff]  }
  0x13   :  { %1256 = vmatpush3.bf16.msra.mxu0 %v1438_v9  ;;  %1425 = vmatpush3.bf16.msra.mxu1 %v1438_v9  ;;  %v1495_v53 = vld [vmem:[%s1867_s0 + $0xe0] ss:$12 sps:$4 sm:$0xff]   ;;  %v1498_v55 = vld [vmem:[%s1867_s0 + $0xf8] ss:$12 sps:$4 sm:$0xff]   ;;  %v1500_v57 = vld [vmem:[%s1867_s0 + $0x110] ss:$12 sps:$4 sm:$0xff]  }
  0x14   :  { %1257 = vmatprep.subr.bf16.mxu0 %v1439_v10  ;;  %1418 = vmatprep.subr.bf16.mxu1 %v1439_v10  ;;  %v1499_v56 = vld [vmem:[%s1867_s0 + $0xd8] ss:$12 sps:$4 sm:$0xff]   ;;  %v1501_v58 = vld [vmem:[%s1867_s0 + $0xf4] ss:$12 sps:$4 sm:$0xff]   ;;  %v1504_v60 = vld [vmem:[%s1867_s0 + $0xf0] ss:$12 sps:$4 sm:$0xff]  }
  0x15   :  { %v1503_v59 = vld [vmem:[%s1867_s0 + $0x128] ss:$12 sps:$4 sm:$0xff]   ;;  %v1505_v61 = vld [vmem:[%s1867_s0 + $0x140] ss:$12 sps:$4 sm:$0xff]   ;;  %v1508_v63 = vld [vmem:[%s1867_s0 + $0x158] ss:$12 sps:$4 sm:$0xff]  }
  0x16   :  { %v1506_v62 = vld [vmem:[%s1867_s0 + $0x10c] ss:$12 sps:$4 sm:$0xff]   ;;  %v1509_v0 = vld [vmem:[%s1867_s0 + $0x108] ss:$12 sps:$4 sm:$0xff]   ;;  %v1510_v1 = vld [vmem:[%s1867_s0 + $0x170] ss:$12 sps:$4 sm:$0xff]  }
  0x17   :  { %1258 = vmatpush3.bf16.msra.mxu0 %v1440_v13  ;;  %1426 = vmatpush3.bf16.msra.mxu1 %v1440_v13 }
  0x18   :  { %1259 = vmatprep.subr.bf16.mxu0 %v1441_v14  ;;  %1419 = vmatprep.subr.bf16.mxu1 %v1441_v14 }
  0x1b   :  { %1260 = vmatpush3.bf16.msra.mxu0 %v1442_v15  ;;  %1427 = vmatpush3.bf16.msra.mxu1 %v1442_v15 }
  0x1c   :  { %1261 = vmatprep.subr.bf16.mxu0 %v1443_v16  ;;  %1420 = vmatprep.subr.bf16.mxu1 %v1443_v16 }
  0x1f   :  { %1262 = vmatpush3.bf16.msra.mxu0 %v1444_v17  ;;  %1428 = vmatpush3.bf16.msra.mxu1 %v1444_v17 }
  0x20   :  { %1377 = vmatprep.subr.bf16.mxu1 %v1451_v18 }
  0x22   :  { %552 = vmatmul.mubr.bf16.vlgmr.msra.gmra.mxu0 %v1445_v19  ;;  %648 = vmatmul.mubr.bf16.vlgmr.msra.gmra.mxu1 %v1448_v20 }
  0x23   :  { %1378 = vmatpush3.bf16.msra.mxu1 %v1451_v18  ;;  %559 = vmatprep.mubr.bf16.mxu0 %v1452_v21 }
  0x24   :  { %655 = vmatprep.mubr.bf16.mxu1 %v1454_v22  ;;  %1379 = vmatprep.subr.bf16.mxu1 %v1464_v23 }
  0x27   :  { %1380 = vmatpush3.bf16.msra.mxu1 %v1464_v23 }
  0x2a   :  { %560 = vmatmul.mubr.bf16.gmra.mxu0 %v1456_v24  ;;  %656 = vmatmul.mubr.bf16.gmra.mxu1 %v1457_v25 }
  0x2b   :  { %567 = vmatprep.mubr.bf16.mxu0 %v1458_v26  ;;  %663 = vmatprep.mubr.bf16.mxu1 %v1460_v27 }
  0x32   :  { %568 = vmatmul.mubr.bf16.gmra.mxu0 %v1462_v28  ;;  %664 = vmatmul.mubr.bf16.gmra.mxu1 %v1463_v29 }
  0x33   :  { %575 = vmatprep.mubr.bf16.mxu0 %v1465_v30  ;;  %671 = vmatprep.mubr.bf16.mxu1 %v1467_v31 }
  0x3a   :  { %576 = vmatmul.mubr.bf16.gmra.mxu0 %v1469_v32  ;;  %672 = vmatmul.mubr.bf16.gmra.mxu1 %v1470_v33 }
  0x3b   :  { %583 = vmatprep.mubr.bf16.mxu0 %v1471_v34  ;;  %1381 = vmatprep.mubr.msk.bf16.mxu1 %vm470_vm0, %v1473_v35 }
  0x42   :  { %584 = vmatmul.mubr.bf16.gmra.mxu0 %v1474_v36  ;;  %1382 = vmatmul.mubr.msk.bf16.vlgmr.msra.gmra.mxu1 %vm470_vm0, %v1475_v37 }
  0x43   :  { %591 = vmatprep.mubr.bf16.mxu0 %v1476_v38  ;;  %1385 = vmatprep.mubr.msk.bf16.mxu1 %vm470_vm0, %v1478_v39 }
  0x4a   :  { %592 = vmatmul.mubr.bf16.gmra.mxu0 %v1479_v40  ;;  %1386 = vmatmul.mubr.msk.bf16.gmra.mxu1 %vm470_vm0, %v1480_v41 }
  0x4b   :  { %599 = vmatprep.mubr.bf16.mxu0 %v1481_v42  ;;  %1389 = vmatprep.mubr.msk.bf16.mxu1 %vm470_vm0, %v1483_v43 }
  0x52   :  { %600 = vmatmul.mubr.bf16.gmra.mxu0 %v1484_v44  ;;  %1390 = vmatmul.mubr.msk.bf16.gmra.mxu1 %vm470_vm0, %v1485_v45 }
  0x53   :  { %607 = vmatprep.mubr.bf16.mxu0 %v1486_v46  ;;  %1393 = vmatprep.mubr.msk.bf16.mxu1 %vm470_vm0, %v1488_v47  ;;  %v1768_v46 = vld [vmem:[%s1868_s2] ss:$0 sm:$0xff] }
  0x5a   :  { %608 = vmatmul.mubr.bf16.gmra.mxu0 %v1489_v48  ;;  %1394 = vmatmul.mubr.msk.bf16.gmra.mxu1 %vm470_vm0, %v1490_v49 }
  0x5b   :  { %615 = vmatprep.mubr.bf16.mxu0 %v1491_v50  ;;  %1397 = vmatprep.mubr.msk.bf16.mxu1 %vm470_vm0, %v1493_v51 }
  0x62   :  { %616 = vmatmul.mubr.bf16.gmra.mxu0 %v1494_v52  ;;  %1398 = vmatmul.mubr.msk.bf16.gmra.mxu1 %vm470_vm0, %v1495_v53 }
  0x63   :  { %623 = vmatprep.mubr.bf16.mxu0 %v1496_v54  ;;  %1401 = vmatprep.mubr.msk.bf16.mxu1 %vm470_vm0, %v1498_v55 }
  0x6a   :  { %624 = vmatmul.mubr.bf16.gmra.mxu0 %v1499_v56  ;;  %1402 = vmatmul.mubr.msk.bf16.gmra.mxu1 %vm470_vm0, %v1500_v57 }
  0x6b   :  { %631 = vmatprep.mubr.bf16.mxu0 %v1501_v58  ;;  %1405 = vmatprep.mubr.msk.bf16.mxu1 %vm470_vm0, %v1503_v59 }
  0x72   :  { %632 = vmatmul.mubr.bf16.gmra.mxu0 %v1504_v60  ;;  %1406 = vmatmul.mubr.msk.bf16.gmra.mxu1 %vm470_vm0, %v1505_v61 }
  0x73   :  { %639 = vmatprep.mubr.bf16.mxu0 %v1506_v62  ;;  %1409 = vmatprep.mubr.msk.bf16.mxu1 %vm470_vm0, %v1508_v63 }
  0x7a   :  { %640 = vmatmul.mubr.bf16.gmra.mxu0 %v1509_v0  ;;  %1410 = vmatmul.mubr.msk.bf16.gmra.mxu1 %vm470_vm0, %v1510_v1 }
  0xe2   :  { %v1263_v2 = vpop.f32.mrf.mxu0  ;;  %v1335_v3 = vpop.f32.mrf.mxu1 }
  0xe4   :  { %v1264_v4 = vpop.f32.mrf.mxu0  ;;  %v1336_v5 = vpop.f32.mrf.mxu1 }
  0xe5   :  { %v1745_v6 = vadd.f32 %v1336_v5, %v1335_v3  ;;  %v1265_v44 = vadd.f32 %v1264_v4, %v1263_v2 }
  0xe6   :  { %v1266_v7 = vpop.f32.mrf.mxu0  ;;  %v1338_v8 = vpop.f32.mrf.mxu1 }
  0xe7   :  { %v554_v54 = vadd.f32 %v1265_v44, %v1768_v46 }
  0xe8   :  { %v1267_v9 = vpop.f32.mrf.mxu0  ;;  %v1339_v10 = vpop.f32.mrf.mxu1 }
  0xe9   :  { %v1747_v11 = vadd.f32 %v1339_v10, %v1338_v8  ;;  %v1268_v45 = vadd.f32 %v1267_v9, %v1266_v7 }
  0xea   :  { %v1269_v12 = vpop.f32.mrf.mxu0  ;;  %v1341_v13 = vpop.f32.mrf.mxu1 }
  0xeb   :  { %v557_v56 = vadd.f32 %v1268_v45, %v1768_v46 }
  0xec   :  { %v1270_v14 = vpop.f32.mrf.mxu0  ;;  %v1342_v15 = vpop.f32.mrf.mxu1 }
  0xed   :  { %v1749_v16 = vadd.f32 %v1342_v15, %v1341_v13  ;;  %v1271_v40 = vadd.f32 %v1270_v14, %v1269_v12 }
  0xee   :  { %v1272_v17 = vpop.f32.mrf.mxu0  ;;  %v1344_v18 = vpop.f32.mrf.mxu1 }
  0xef   :  { %v562_v49 = vadd.f32 %v1271_v40, %v1768_v46 }
  0xf0   :  { %v1273_v19 = vpop.f32.mrf.mxu0  ;;  %v1345_v20 = vpop.f32.mrf.mxu1 }
  0xf1   :  { %v1751_v21 = vadd.f32 %v1345_v20, %v1344_v18  ;;  %v1274_v41 = vadd.f32 %v1273_v19, %v1272_v17 }
  0xf2   :  { %v1275_v22 = vpop.f32.mrf.mxu0  ;;  %v1347_v23 = vpop.f32.mrf.mxu1 }
  0xf3   :  { %v565_v50 = vadd.f32 %v1274_v41, %v1768_v46 }
  0xf4   :  { %v1276_v24 = vpop.f32.mrf.mxu0  ;;  %v1348_v25 = vpop.f32.mrf.mxu1 }
  0xf5   :  { %v1753_v26 = vadd.f32 %v1348_v25, %v1347_v23  ;;  %v1277_v2 = vadd.f32 %v1276_v24, %v1275_v22 }
  0xf6   :  { %v1278_v27 = vpop.f32.mrf.mxu0  ;;  %v1350_v28 = vpop.f32.mrf.mxu1 }
  0xf7   :  { %v570_v14 = vadd.f32 %v1277_v2, %v1768_v46 }
  0xf8   :  { %v1279_v29 = vpop.f32.mrf.mxu0  ;;  %v1351_v30 = vpop.f32.mrf.mxu1 }
  0xf9   :  { %v1755_v31 = vadd.f32 %v1351_v30, %v1350_v28  ;;  %v1280_v3 = vadd.f32 %v1279_v29, %v1278_v27 }
  0xfa   :  { %v1281_v32 = vpop.f32.mrf.mxu0  ;;  %v1757_v33 = vpop.f32.mrf.mxu1 }
  0xfb   :  { %v573_v17 = vadd.f32 %v1280_v3, %v1768_v46 }
  0xfc   :  { %v1282_v34 = vpop.f32.mrf.mxu0  ;;  %v1759_v35 = vpop.f32.mrf.mxu1 }
  0xfd   :  { %v1283_v57 = vadd.f32 %v1282_v34, %v1281_v32 }
  0xfe   :  { %v1284_v36 = vpop.f32.mrf.mxu0  ;;  %v1761_v37 = vpop.f32.mrf.mxu1 }
  0xff   :  { %v578_v8 = vadd.f32 %v1283_v57, %v1768_v46 }
 0x100   :  { %v1285_v38 = vpop.f32.mrf.mxu0  ;;  %v1763_v39 = vpop.f32.mrf.mxu1 }
 0x101   :  { %v1286_v60 = vadd.f32 %v1285_v38, %v1284_v36 }
 0x102   :  { %v1287_v42 = vpop.f32.mrf.mxu0  ;;  %v1383_v43 = vpop.f32.mrf.mxu1 }
 0x103   :  { %v723_v53 = vadd.f32 %v1383_v43, %v562_v49  ;;  %v581_v9 = vadd.f32 %v1286_v60, %v1768_v46 }
 0x104   :  { %v1288_v47 = vpop.f32.mrf.mxu0  ;;  %v714_v48 = vpop.f32.mrf.mxu1 }
 0x105   :  { %v715_v61 = vadd.f32 %v714_v48, %v554_v54  ;;  %v1289_v29 = vadd.f32 %v1288_v47, %v1287_v42 }
 0x106   :  { %v1290_v51 = vpop.f32.mrf.mxu0  ;;  %v1384_v52 = vpop.f32.mrf.mxu1 }
 0x107   :  { %v726_v55 = vadd.f32 %v1384_v52, %v565_v50  ;;  %v586_v42 = vadd.f32 %v1289_v29, %v1768_v46 }
 0x108   :  { %v1291_v58 = vpop.f32.mrf.mxu0  ;;  %v717_v59 = vpop.f32.mrf.mxu1 }
 0x109   :  { %v1160_v62 = vpack.c.bf16 %v726_v55, %v723_v53  ;;  %v718_v63 = vadd.f32 %v717_v59, %v557_v56  ;;  %v1292_v30 = vadd.f32 %v1291_v58, %v1290_v51 }
 0x10a   :  { %v1293_v0 = vpop.f32.mrf.mxu0  ;;  %v1387_v1 = vpop.f32.mrf.mxu1 }
 0x10b   :  { %1232 = vst [vmem:[%s1869_s3 + $0x8] sm:$0xff] %v1160_v62   ;;  %v1155_v4 = vpack.c.bf16 %v718_v63, %v715_v61  ;;  %v739_v13 = vadd.f32 %v1387_v1, %v578_v8  ;;  %v589_v47 = vadd.f32 %v1292_v30, %v1768_v46 }
 0x10c   :  { %v1294_v5 = vpop.f32.mrf.mxu0  ;;  %v730_v7 = vpop.f32.mrf.mxu1 }
 0x10d   :  { %1156 = vst [vmem:[%s1869_s3] sm:$0xff] %v1155_v4   ;;  %v1295_v18 = vadd.f32 %v1294_v5, %v1293_v0  ;;  %v731_v22 = vadd.f32 %v730_v7, %v570_v14 }
 0x10e   :  { %v1296_v10 = vpop.f32.mrf.mxu0  ;;  %v1388_v12 = vpop.f32.mrf.mxu1 }
 0x10f   :  { %v742_v15 = vadd.f32 %v1388_v12, %v581_v9  ;;  %v594_v38 = vadd.f32 %v1295_v18, %v1768_v46 }
 0x110   :  { %v1297_v19 = vpop.f32.mrf.mxu0  ;;  %v733_v20 = vpop.f32.mrf.mxu1 }
 0x111   :  { %v1170_v23 = vpack.c.bf16 %v742_v15, %v739_v13  ;;  %v1298_v24 = vadd.f32 %v1297_v19, %v1296_v10  ;;  %v734_v25 = vadd.f32 %v733_v20, %v573_v17 }
 0x112   :  { %v1299_v27 = vpop.f32.mrf.mxu0  ;;  %v1391_v28 = vpop.f32.mrf.mxu1 }
 0x113   :  { %1234 = vst [vmem:[%s1869_s3 + $0x18] sm:$0xff] %v1170_v23   ;;  %v1165_v32 = vpack.c.bf16 %v734_v25, %v731_v22  ;;  %v597_v40 = vadd.f32 %v1298_v24, %v1768_v46  ;;  %v755_v44 = vadd.f32 %v1391_v28, %v594_v38 }
 0x114   :  { %v1300_v34 = vpop.f32.mrf.mxu0  ;;  %v746_v36 = vpop.f32.mrf.mxu1 }
 0x115   :  { %1233 = vst [vmem:[%s1869_s3 + $0x10] sm:$0xff] %v1165_v32   ;;  %v747_v50 = vadd.f32 %v746_v36, %v586_v42  ;;  %v1301_v55 = vadd.f32 %v1300_v34, %v1299_v27 }
 0x116   :  { %v1302_v41 = vpop.f32.mrf.mxu0  ;;  %v1392_v43 = vpop.f32.mrf.mxu1 }
 0x117   :  { %v758_v45 = vadd.f32 %v1392_v43, %v597_v40  ;;  %v602_v63 = vadd.f32 %v1301_v55, %v1768_v46 }
 0x118   :  { %v1303_v48 = vpop.f32.mrf.mxu0  ;;  %v749_v49 = vpop.f32.mrf.mxu1 }
 0x119   :  { %v1180_v51 = vpack.c.bf16 %v758_v45, %v755_v44  ;;  %v750_v52 = vadd.f32 %v749_v49, %v589_v47  ;;  %v1304_v56 = vadd.f32 %v1303_v48, %v1302_v41 }
 0x11a   :  { %v1305_v53 = vpop.f32.mrf.mxu0  ;;  %v1395_v54 = vpop.f32.mrf.mxu1 }
 0x11b   :  { %1236 = vst [vmem:[%s1869_s3 + $0x28] sm:$0xff] %v1180_v51   ;;  %v1175_v57 = vpack.c.bf16 %v750_v52, %v747_v50  ;;  %v605_v0 = vadd.f32 %v1304_v56, %v1768_v46  ;;  %v658_v52 = vadd.f32 %v1749_v16, %v1768_v46  ;;  %v1355_v16 = vadd.f32 %v1759_v35, %v1757_v33 }
 0x11c   :  { %v1306_v58 = vpop.f32.mrf.mxu0  ;;  %v762_v59 = vpop.f32.mrf.mxu1 }
 0x11d   :  { %1235 = vst [vmem:[%s1869_s3 + $0x20] sm:$0xff] %v1175_v57   ;;  %v1307_v60 = vadd.f32 %v1306_v58, %v1305_v53  ;;  %v763_v4 = vadd.f32 %v762_v59, %v602_v63  ;;  %v661_v58 = vadd.f32 %v1751_v21, %v1768_v46  ;;  %v650_v59 = vadd.f32 %v1745_v6, %v1768_v46 }
 0x11e   :  { %v1308_v61 = vpop.f32.mrf.mxu0  ;;  %v1396_v62 = vpop.f32.mrf.mxu1 }
 0x11f   :  { %v610_v3 = vadd.f32 %v1307_v60, %v1768_v46 }
 0x120   :  { %v1309_v1 = vpop.f32.mrf.mxu0  ;;  %v765_v2 = vpop.f32.mrf.mxu1 }
 0x121   :  { %v1310_v5 = vadd.f32 %v1309_v1, %v1308_v61  ;;  %v766_v7 = vadd.f32 %v765_v2, %v605_v0  ;;  %v771_v15 = vadd.f32 %v1395_v54, %v610_v3  ;;  %v653_v1 = vadd.f32 %v1747_v11, %v1768_v46 }
 0x122   :  { %v1311_v8 = vpop.f32.mrf.mxu0  ;;  %v1399_v9 = vpop.f32.mrf.mxu1  ;;  %v1358_v2 = vadd.f32 %v1763_v39, %v1761_v37  ;;  %v674_v37 = vadd.f32 %v1355_v16, %v1768_v46 }
 0x123   :  { %v613_v10 = vadd.f32 %v1310_v5, %v1768_v46  ;;  %v1185_v12 = vpack.c.bf16 %v766_v7, %v763_v4 }
 0x124   :  { %v1312_v13 = vpop.f32.mrf.mxu0  ;;  %v778_v14 = vpop.f32.mrf.mxu1 }
 0x125   :  { %v774_v17 = vadd.f32 %v1396_v62, %v613_v10  ;;  %1237 = vst [vmem:[%s1869_s3 + $0x30] sm:$0xff] %v1185_v12   ;;  %v1313_v18 = vadd.f32 %v1312_v13, %v1311_v8 }
 0x126   :  { %v1314_v19 = vpop.f32.mrf.mxu0  ;;  %v1400_v20 = vpop.f32.mrf.mxu1 }
 0x127   :  { %v1190_v22 = vpack.c.bf16 %v774_v17, %v771_v15  ;;  %v618_v25 = vadd.f32 %v1313_v18, %v1768_v46  ;;  %v677_v15 = vadd.f32 %v1358_v2, %v1768_v46  ;;  %v666_v17 = vadd.f32 %v1753_v26, %v1768_v46 }
 0x128   :  { %v1315_v23 = vpop.f32.mrf.mxu0  ;;  %v781_v24 = vpop.f32.mrf.mxu1 }
 0x129   :  { %1238 = vst [vmem:[%s1869_s3 + $0x38] sm:$0xff] %v1190_v22   ;;  %v1316_v27 = vadd.f32 %v1315_v23, %v1314_v19  ;;  %v779_v36 = vadd.f32 %v778_v14, %v618_v25 }
 0x12a   :  { %v1317_v28 = vpop.f32.mrf.mxu0  ;;  %v1811_v29 = vpop.f32.mrf.mxu1 }
 0x12b   :  { %v621_v30 = vadd.f32 %v1316_v27, %v1768_v46 }
 0x12c   :  { %v1318_v32 = vpop.f32.mrf.mxu0  ;;  %v794_v34 = vpop.f32.mrf.mxu1 }
 0x12d   :  { %v782_v38 = vadd.f32 %v781_v24, %v621_v30  ;;  %v1319_v40 = vadd.f32 %v1318_v32, %v1317_v28  ;;  %v669_v24 = vadd.f32 %v1755_v31, %v1768_v46 }
 0x12e   :  { %v1320_v41 = vpop.f32.mrf.mxu0  ;;  %v1814_v43 = vpop.f32.mrf.mxu1 }
 0x12f   :  { %v1195_v44 = vpack.c.bf16 %v782_v38, %v779_v36  ;;  %v626_v47 = vadd.f32 %v1319_v40, %v1768_v46 }
 0x130   :  { %v1321_v42 = vpop.f32.mrf.mxu0  ;;  %v797_v45 = vpop.f32.mrf.mxu1 }
 0x131   :  { %1239 = vst [vmem:[%s1869_s3 + $0x40] sm:$0xff] %v1195_v44   ;;  %v1322_v48 = vadd.f32 %v1321_v42, %v1320_v41  ;;  %v787_v55 = vadd.f32 %v1399_v9, %v626_v47 }
 0x132   :  { %v1323_v49 = vpop.f32.mrf.mxu0  ;;  %v1407_v50 = vpop.f32.mrf.mxu1 }
 0x133   :  { %v629_v51 = vadd.f32 %v1322_v48, %v1768_v46  ;;  %v819_v63 = vadd.f32 %v1407_v50, %v658_v52 }
 0x134   :  { %v1324_v53 = vpop.f32.mrf.mxu0  ;;  %v810_v54 = vpop.f32.mrf.mxu1 }
 0x135   :  { %v790_v56 = vadd.f32 %v1400_v20, %v629_v51  ;;  %v1325_v57 = vadd.f32 %v1324_v53, %v1323_v49  ;;  %v811_v3 = vadd.f32 %v810_v54, %v650_v59 }
 0x136   :  { %v1326_v60 = vpop.f32.mrf.mxu0  ;;  %v1408_v61 = vpop.f32.mrf.mxu1 }
 0x137   :  { %v1200_v62 = vpack.c.bf16 %v790_v56, %v787_v55  ;;  %v822_v0 = vadd.f32 %v1408_v61, %v661_v58  ;;  %v634_v6 = vadd.f32 %v1325_v57, %v1768_v46 }
 0x138   :  { %v1327_v4 = vpop.f32.mrf.mxu0  ;;  %v813_v21 = vpop.f32.mrf.mxu1 }
 0x139   :  { %1240 = vst [vmem:[%s1869_s3 + $0x48] sm:$0xff] %v1200_v62   ;;  %v1220_v5 = vpack.c.bf16 %v822_v0, %v819_v63  ;;  %v1328_v7 = vadd.f32 %v1327_v4, %v1326_v60  ;;  %v814_v8 = vadd.f32 %v813_v21, %v653_v1  ;;  %v795_v12 = vadd.f32 %v794_v34, %v634_v6 }
 0x13a   :  { %v1329_v9 = vpop.f32.mrf.mxu0  ;;  %v1411_v11 = vpop.f32.mrf.mxu1 }
 0x13b   :  { %1244 = vst [vmem:[%s1869_s3 + $0x68] sm:$0xff] %v1220_v5   ;;  %v637_v33 = vadd.f32 %v1328_v7, %v1768_v46  ;;  %v1215_v35 = vpack.c.bf16 %v814_v8, %v811_v3  ;;  %v835_v22 = vadd.f32 %v1411_v11, %v674_v37 }
 0x13c   :  { %v1330_v39 = vpop.f32.mrf.mxu0  ;;  %v826_v10 = vpop.f32.mrf.mxu1 }
 0x13d   :  { %v798_v13 = vadd.f32 %v797_v45, %v637_v33  ;;  %1243 = vst [vmem:[%s1869_s3 + $0x60] sm:$0xff] %v1215_v35   ;;  %v1331_v14 = vadd.f32 %v1330_v39, %v1329_v9  ;;  %v827_v25 = vadd.f32 %v826_v10, %v666_v17 }
 0x13e   :  { %v1332_v18 = vpop.f32.mrf.mxu0  ;;  %v1412_v19 = vpop.f32.mrf.mxu1 }
 0x13f   :  { %v1205_v20 = vpack.c.bf16 %v798_v13, %v795_v12  ;;  %v838_v23 = vadd.f32 %v1412_v19, %v677_v15  ;;  %v642_v30 = vadd.f32 %v1331_v14, %v1768_v46 }
 0x140   :  { %v1333_v27 = vpop.f32.mrf.mxu0  ;;  %v829_v28 = vpop.f32.mrf.mxu1 }
 0x141   :  { %1241 = vst [vmem:[%s1869_s3 + $0x50] sm:$0xff] %v1205_v20   ;;  %v1230_v32 = vpack.c.bf16 %v838_v23, %v835_v22  ;;  %v1334_v34 = vadd.f32 %v1333_v27, %v1332_v18  ;;  %v830_v26 = vadd.f32 %v829_v28, %v669_v24  ;;  %v803_v31 = vadd.f32 %v1811_v29, %v642_v30 }
 0x143   :  { %1246 = vst [vmem:[%s1869_s3 + $0x78] sm:$0xff] %v1230_v32   ;;  %v645_v36 = vadd.f32 %v1334_v34, %v1768_v46  ;;  %v1225_v38 = vpack.c.bf16 %v830_v26, %v827_v25 }
 0x145   :  { %v806_v40 = vadd.f32 %v1814_v43, %v645_v36  ;;  %1245 = vst [vmem:[%s1869_s3 + $0x70] sm:$0xff] %v1225_v38  }
 0x147   :  { %v1210_v41 = vpack.c.bf16 %v806_v40, %v803_v31 }
 0x149   :  { %1242 = vst [vmem:[%s1869_s3 + $0x58] sm:$0xff] %v1210_v41  }

// kernel: _lambda_.51
= control target key start
LH: loop header
LB: loop body
LE: loop exit
PB: predicated region body
PF: predicated region fallthrough
CT: control target
= control target key end

     0   :  { %s2101_s12 = smov 0   ;;  %s2103_s13 = smov 0   ;;  %s2366_s0 = inlined_call_operand.vmem [shape: bf16[1024,144], index: 0, kind: input, shape index: {}]   ;;  %s2367_s1 = inlined_call_operand.vmem [shape: bf16[144,128], index: 1, kind: input, shape index: {}]   ;;  %s2368_s2 = inlined_call_operand.vmem [shape: f32[1,128], index: 2, kind: input, shape index: {}]   ;;  %s2369_s3 = inlined_call_operand.vmem [shape: bf16[1024,128], index: 3, kind: output, shape index: {}]  }
   0x1   :  { %s2105_s14 = smov 0  }
   0x2 LB: > { %s25_s15 = sadd.s32 1, %s2074_s13  ;;  %p1474_p0 = scmp.ge.s32.totalorder %s2078_s14, 1  ;;  %s2078_s14 = sphi %s2105_s14, %s13_s14   ;;  %s2074_s13 = sphi %s2103_s13, %s2371_s13   ;;  %s2070_s12 = sphi %s2101_s12, %s2370_s12  }
   0x3   : > { %p27_p1 = scmp.ge.s32.totalorder %s25_s15, 2  ;;  %p170_p2 = scmp.lt.s32.totalorder %s2078_s14, 3 }
   0x5   : > { %s2373_s15 = smov (%p27_p1, %s25_s15), 0  ;;  %p171_p3 = pnand %p1474_p0, %p170_p2 }
   0x6   : > { %s1475_s18 = sshll.u32 (!%p171_p3), %s2070_s12, 6 }
   0x7   : > { %174 = sbr.rel (%p171_p3) target bundleno = 371 (0x173), region = 32  ;;  %p206_p4 = scmp.lt.s32.totalorder (!%p171_p3), %s1475_s18, 127 }
   0xc   : > { %v1951_v0 = vld [vmem:[%s2367_s1 + $0x38] sm:$0xff]   ;;  %v2080_v1 = vmov 0   ;;  %v1952_v2 = vld [vmem:[%s2367_s1 + $0x30] sm:$0xff]   ;;  %s2375_s18 = smov (!%p206_p4, %s1475_s18), 127  ;;  %v1953_v3 = vld [vmem:[%s2367_s1 + $0x28] sm:$0xff]   ;;  %vm660_vm0 = vcmask 130048  }
   0xd   : > { %757 = vmatprep.subr.bf16.mxu0 %v2080_v1  ;;  %1908 = vmatprep.subr.bf16.mxu1 %v2080_v1  ;;  %s1652_s23 = sshll.u32 %s2375_s18, 3  ;;  %v1954_v4 = vld [vmem:[%s2367_s1 + $0x20] sm:$0xff]   ;;  %v1955_v7 = vld [vmem:[%s2367_s1 + $0x18] sm:$0xff]   ;;  %v1956_v8 = vld [vmem:[%s2367_s1 + $0x10] sm:$0xff]   ;;  %s1479_s17 = sshll.u32 %s2375_s18, 2 }
   0xe   : > { %758 = vmatpush1.bf16.msra.mxu0 %v1951_v0  ;;  %1917 = vmatpush1.bf16.msra.mxu1 %v1951_v0  ;;  %s2134_s26 = scalar_lea.vmem %s2366_s0, %s1652_s23  ;;  %v1957_v9 = vld [vmem:[%s2367_s1 + $0x8] sm:$0xff]   ;;  %v1958_v10 = vld [vmem:[%s2367_s1] sm:$0xff]   ;;  %s2263_s21 = scalar_lea.vmem %s2369_s3, %s1479_s17 }
   0xf   : > { %759 = vmatprep.subr.bf16.mxu0 %v2080_v1  ;;  %1909 = vmatprep.subr.bf16.mxu1 %v2080_v1  ;;  %v1962_v5 = vld [vmem:[%s2134_s26 + $0x4] ss:$8 sps:$4 sm:$0xff]   ;;  %v1960_v12 = vld [vmem:[%s2134_s26] ss:$8 sps:$4 sm:$0xff]   ;;  %v1966_v14 = vld [vmem:[%s2134_s26 + $0x14] ss:$8 sps:$4 sm:$0xff]  }
  0x10   : > { %v1965_v6 = vld [vmem:[%s2134_s26 + $0x104] ss:$8 sps:$4 sm:$0xff]   ;;  %1554 = vmatprep.mubr.msk.bf16.mxu0 %vm660_vm0, %v1962_v5  ;;  %v1963_v13 = vld [vmem:[%s2134_s26 + $0x100] ss:$8 sps:$4 sm:$0xff]   ;;  %v1968_v15 = vld [vmem:[%s2134_s26 + $0x114] ss:$8 sps:$4 sm:$0xff]  }
  0x11   : > { %1570 = vmatprep.mubr.msk.bf16.mxu1 %vm660_vm0, %v1965_v6  ;;  %v1959_v11 = vld [vmem:[%s2367_s1 + $0x40] sm:$0xff]   ;;  %v1970_v16 = vld [vmem:[%s2134_s26 + $0x10] ss:$8 sps:$4 sm:$0xff]   ;;  %v1978_v22 = vld [vmem:[%s2134_s26 + $0x34] ss:$8 sps:$4 sm:$0xff]  }
  0x12   : > { %760 = vmatpush1.bf16.msra.mxu0 %v1952_v2  ;;  %1918 = vmatpush1.bf16.msra.mxu1 %v1952_v2  ;;  %v1971_v17 = vld [vmem:[%s2134_s26 + $0x110] ss:$8 sps:$4 sm:$0xff]   ;;  %v1972_v18 = vld [vmem:[%s2134_s26 + $0x24] ss:$8 sps:$4 sm:$0xff]   ;;  %v1976_v20 = vld [vmem:[%s2134_s26 + $0x20] ss:$8 sps:$4 sm:$0xff]  }
  0x13   : > { %761 = vmatprep.subr.bf16.mxu0 %v2080_v1  ;;  %1910 = vmatprep.subr.bf16.mxu1 %v2080_v1  ;;  %v1974_v19 = vld [vmem:[%s2134_s26 + $0x124] ss:$8 sps:$4 sm:$0xff]   ;;  %v1977_v21 = vld [vmem:[%s2134_s26 + $0x120] ss:$8 sps:$4 sm:$0xff]   ;;  %v1980_v23 = vld [vmem:[%s2134_s26 + $0x134] ss:$8 sps:$4 sm:$0xff]  }
  0x14   : > { %v1982_v24 = vld [vmem:[%s2134_s26 + $0x30] ss:$8 sps:$4 sm:$0xff]   ;;  %v1984_v26 = vld [vmem:[%s2134_s26 + $0x44] ss:$8 sps:$4 sm:$0xff]   ;;  %v1988_v28 = vld [vmem:[%s2134_s26 + $0x40] ss:$8 sps:$4 sm:$0xff]  }
  0x15   : > { %v1983_v25 = vld [vmem:[%s2134_s26 + $0x130] ss:$8 sps:$4 sm:$0xff]   ;;  %v1986_v27 = vld [vmem:[%s2134_s26 + $0x144] ss:$8 sps:$4 sm:$0xff]   ;;  %v1989_v29 = vld [vmem:[%s2134_s26 + $0x140] ss:$8 sps:$4 sm:$0xff]  }
  0x16   : > { %762 = vmatpush1.bf16.msra.mxu0 %v1953_v3  ;;  %1919 = vmatpush1.bf16.msra.mxu1 %v1953_v3  ;;  %v1990_v30 = vld [vmem:[%s2134_s26 + $0x54] ss:$8 sps:$4 sm:$0xff]   ;;  %v1994_v32 = vld [vmem:[%s2134_s26 + $0x50] ss:$8 sps:$4 sm:$0xff]   ;;  %v1996_v34 = vld [vmem:[%s2134_s26 + $0x64] ss:$8 sps:$4 sm:$0xff]  }
  0x17   : > { %763 = vmatprep.subr.bf16.mxu0 %v2080_v1  ;;  %1911 = vmatprep.subr.bf16.mxu1 %v2080_v1  ;;  %v1992_v31 = vld [vmem:[%s2134_s26 + $0x154] ss:$8 sps:$4 sm:$0xff]   ;;  %v1995_v33 = vld [vmem:[%s2134_s26 + $0x150] ss:$8 sps:$4 sm:$0xff]   ;;  %v1998_v35 = vld [vmem:[%s2134_s26 + $0x164] ss:$8 sps:$4 sm:$0xff]  }
  0x18   : > { %v2000_v36 = vld [vmem:[%s2134_s26 + $0x60] ss:$8 sps:$4 sm:$0xff]   ;;  %v2002_v38 = vld [vmem:[%s2134_s26 + $0x74] ss:$8 sps:$4 sm:$0xff]   ;;  %v2006_v40 = vld [vmem:[%s2134_s26 + $0x70] ss:$8 sps:$4 sm:$0xff]  }
  0x19   : > { %v2001_v37 = vld [vmem:[%s2134_s26 + $0x160] ss:$8 sps:$4 sm:$0xff]   ;;  %v2004_v39 = vld [vmem:[%s2134_s26 + $0x174] ss:$8 sps:$4 sm:$0xff]   ;;  %v2007_v41 = vld [vmem:[%s2134_s26 + $0x170] ss:$8 sps:$4 sm:$0xff]  }
  0x1a   : > { %764 = vmatpush1.bf16.msra.mxu0 %v1954_v4  ;;  %1920 = vmatpush1.bf16.msra.mxu1 %v1954_v4  ;;  %v2008_v42 = vld [vmem:[%s2134_s26 + $0x84] ss:$8 sps:$4 sm:$0xff]   ;;  %v2012_v44 = vld [vmem:[%s2134_s26 + $0x80] ss:$8 sps:$4 sm:$0xff]   ;;  %v2014_v46 = vld [vmem:[%s2134_s26 + $0x94] ss:$8 sps:$4 sm:$0xff]  }
  0x1b   : > { %765 = vmatprep.subr.bf16.mxu0 %v2080_v1  ;;  %1912 = vmatprep.subr.bf16.mxu1 %v2080_v1  ;;  %v2010_v43 = vld [vmem:[%s2134_s26 + $0x184] ss:$8 sps:$4 sm:$0xff]   ;;  %v2013_v45 = vld [vmem:[%s2134_s26 + $0x180] ss:$8 sps:$4 sm:$0xff]   ;;  %v2016_v47 = vld [vmem:[%s2134_s26 + $0x194] ss:$8 sps:$4 sm:$0xff]  }
  0x1c   : > { %v2018_v48 = vld [vmem:[%s2134_s26 + $0x90] ss:$8 sps:$4 sm:$0xff]   ;;  %v2020_v50 = vld [vmem:[%s2134_s26 + $0xa4] ss:$8 sps:$4 sm:$0xff]   ;;  %v2024_v52 = vld [vmem:[%s2134_s26 + $0xa0] ss:$8 sps:$4 sm:$0xff]  }
  0x1d   : > { %v2019_v49 = vld [vmem:[%s2134_s26 + $0x190] ss:$8 sps:$4 sm:$0xff]   ;;  %v2022_v51 = vld [vmem:[%s2134_s26 + $0x1a4] ss:$8 sps:$4 sm:$0xff]   ;;  %v2025_v53 = vld [vmem:[%s2134_s26 + $0x1a0] ss:$8 sps:$4 sm:$0xff]  }
  0x1e   : > { %766 = vmatpush1.bf16.msra.mxu0 %v1955_v7  ;;  %1921 = vmatpush1.bf16.msra.mxu1 %v1955_v7  ;;  %v2026_v54 = vld [vmem:[%s2134_s26 + $0xb4] ss:$8 sps:$4 sm:$0xff]   ;;  %v2030_v56 = vld [vmem:[%s2134_s26 + $0xb0] ss:$8 sps:$4 sm:$0xff]   ;;  %v2032_v58 = vld [vmem:[%s2134_s26 + $0xc4] ss:$8 sps:$4 sm:$0xff]  }
  0x1f   : > { %767 = vmatprep.subr.bf16.mxu0 %v2080_v1  ;;  %1913 = vmatprep.subr.bf16.mxu1 %v2080_v1  ;;  %v2028_v55 = vld [vmem:[%s2134_s26 + $0x1b4] ss:$8 sps:$4 sm:$0xff]   ;;  %v2031_v57 = vld [vmem:[%s2134_s26 + $0x1b0] ss:$8 sps:$4 sm:$0xff]   ;;  %v2034_v59 = vld [vmem:[%s2134_s26 + $0x1c4] ss:$8 sps:$4 sm:$0xff]  }
  0x20   : > { %v2036_v60 = vld [vmem:[%s2134_s26 + $0xc0] ss:$8 sps:$4 sm:$0xff]   ;;  %v2038_v62 = vld [vmem:[%s2134_s26 + $0xd4] ss:$8 sps:$4 sm:$0xff]   ;;  %v2042_v0 = vld [vmem:[%s2134_s26 + $0xd0] ss:$8 sps:$4 sm:$0xff]  }
  0x21   : > { %v2037_v61 = vld [vmem:[%s2134_s26 + $0x1c0] ss:$8 sps:$4 sm:$0xff]   ;;  %v2040_v63 = vld [vmem:[%s2134_s26 + $0x1d4] ss:$8 sps:$4 sm:$0xff]   ;;  %v2044_v2 = vld [vmem:[%s2134_s26 + $0xe4] ss:$8 sps:$4 sm:$0xff]  }
  0x22   : > { %768 = vmatpush1.bf16.msra.mxu0 %v1956_v8  ;;  %1922 = vmatpush1.bf16.msra.mxu1 %v1956_v8  ;;  %v2046_v3 = vld [vmem:[%s2134_s26 + $0x1e4] ss:$8 sps:$4 sm:$0xff]   ;;  %v2048_v4 = vld [vmem:[%s2134_s26 + $0xe0] ss:$8 sps:$4 sm:$0xff]   ;;  %v2050_v6 = vld [vmem:[%s2134_s26 + $0xf4] ss:$8 sps:$4 sm:$0xff]  }
  0x23   : > { %769 = vmatprep.subr.bf16.mxu0 %v2080_v1  ;;  %1914 = vmatprep.subr.bf16.mxu1 %v2080_v1  ;;  %v2049_v5 = vld [vmem:[%s2134_s26 + $0x1e0] ss:$8 sps:$4 sm:$0xff]   ;;  %v2052_v7 = vld [vmem:[%s2134_s26 + $0x1f4] ss:$8 sps:$4 sm:$0xff]   ;;  %v2054_v8 = vld [vmem:[%s2134_s26 + $0xf0] ss:$8 sps:$4 sm:$0xff]  }
  0x26   : > { %770 = vmatpush1.bf16.msra.mxu0 %v1957_v9  ;;  %1923 = vmatpush1.bf16.msra.mxu1 %v1957_v9  ;;  %v2055_v9 = vld [vmem:[%s2134_s26 + $0x1f0] ss:$8 sps:$4 sm:$0xff]  }
  0x27   : > { %771 = vmatprep.subr.bf16.mxu0 %v2080_v1  ;;  %1915 = vmatprep.subr.bf16.mxu1 %v2080_v1 }
  0x2a   : > { %772 = vmatpush1.bf16.msra.mxu0 %v1958_v10  ;;  %1924 = vmatpush1.bf16.msra.mxu1 %v1958_v10 }
  0x2b   : > { %787 = vmatprep.subr.bf16.mxu0 %v2080_v1  ;;  %1916 = vmatprep.subr.bf16.mxu1 %v2080_v1  ;;  %v2043_v1 = vld [vmem:[%s2134_s26 + $0x1d0] ss:$8 sps:$4 sm:$0xff]  }
  0x2e   : > { %788 = vmatpush2.bf16.msra.mxu0 %v1959_v11  ;;  %1925 = vmatpush2.bf16.msra.mxu1 %v1959_v11 }
  0x31   : > { %790 = vmatmul.mubr.bf16.vlgmr.msra.gmra.mxu0 %v1960_v12  ;;  %918 = vmatmul.mubr.bf16.vlgmr.msra.gmra.mxu1 %v1963_v13  ;;  %v2253_v12 = vld [vmem:[%s2368_s2] ss:$0 sm:$0xff] }
  0x32   : > { %1555 = vmatprep.mubr.msk.bf16.mxu0 %vm660_vm0, %v1966_v14  ;;  %1571 = vmatprep.mubr.msk.bf16.mxu1 %vm660_vm0, %v1968_v15 }
  0x39   : > { %798 = vmatmul.mubr.bf16.gmra.mxu0 %v1970_v16  ;;  %926 = vmatmul.mubr.bf16.gmra.mxu1 %v1971_v17 }
  0x3a   : > { %1556 = vmatprep.mubr.msk.bf16.mxu0 %vm660_vm0, %v1972_v18  ;;  %1572 = vmatprep.mubr.msk.bf16.mxu1 %vm660_vm0, %v1974_v19 }
  0x41   : > { %806 = vmatmul.mubr.bf16.gmra.mxu0 %v1976_v20  ;;  %934 = vmatmul.mubr.bf16.gmra.mxu1 %v1977_v21 }
  0x42   : > { %1557 = vmatprep.mubr.msk.bf16.mxu0 %vm660_vm0, %v1978_v22  ;;  %1573 = vmatprep.mubr.msk.bf16.mxu1 %vm660_vm0, %v1980_v23 }
  0x49   : > { %814 = vmatmul.mubr.bf16.gmra.mxu0 %v1982_v24  ;;  %942 = vmatmul.mubr.bf16.gmra.mxu1 %v1983_v25 }
  0x4a   : > { %1558 = vmatprep.mubr.msk.bf16.mxu0 %vm660_vm0, %v1984_v26  ;;  %1574 = vmatprep.mubr.msk.bf16.mxu1 %vm660_vm0, %v1986_v27 }
  0x51   : > { %822 = vmatmul.mubr.bf16.gmra.mxu0 %v1988_v28  ;;  %950 = vmatmul.mubr.bf16.gmra.mxu1 %v1989_v29 }
  0x52   : > { %1559 = vmatprep.mubr.msk.bf16.mxu0 %vm660_vm0, %v1990_v30  ;;  %1575 = vmatprep.mubr.msk.bf16.mxu1 %vm660_vm0, %v1992_v31 }
  0x59   : > { %830 = vmatmul.mubr.bf16.gmra.mxu0 %v1994_v32  ;;  %958 = vmatmul.mubr.bf16.gmra.mxu1 %v1995_v33 }
  0x5a   : > { %1560 = vmatprep.mubr.msk.bf16.mxu0 %vm660_vm0, %v1996_v34  ;;  %1576 = vmatprep.mubr.msk.bf16.mxu1 %vm660_vm0, %v1998_v35 }
  0x61   : > { %838 = vmatmul.mubr.bf16.gmra.mxu0 %v2000_v36  ;;  %966 = vmatmul.mubr.bf16.gmra.mxu1 %v2001_v37 }
  0x62   : > { %1561 = vmatprep.mubr.msk.bf16.mxu0 %vm660_vm0, %v2002_v38  ;;  %1577 = vmatprep.mubr.msk.bf16.mxu1 %vm660_vm0, %v2004_v39 }
  0x69   : > { %846 = vmatmul.mubr.bf16.gmra.mxu0 %v2006_v40  ;;  %974 = vmatmul.mubr.bf16.gmra.mxu1 %v2007_v41 }
  0x6a   : > { %1562 = vmatprep.mubr.msk.bf16.mxu0 %vm660_vm0, %v2008_v42  ;;  %1578 = vmatprep.mubr.msk.bf16.mxu1 %vm660_vm0, %v2010_v43 }
  0x71   : > { %854 = vmatmul.mubr.bf16.gmra.mxu0 %v2012_v44  ;;  %982 = vmatmul.mubr.bf16.gmra.mxu1 %v2013_v45 }
  0x72   : > { %1563 = vmatprep.mubr.msk.bf16.mxu0 %vm660_vm0, %v2014_v46  ;;  %1579 = vmatprep.mubr.msk.bf16.mxu1 %vm660_vm0, %v2016_v47 }
  0x79   : > { %862 = vmatmul.mubr.bf16.gmra.mxu0 %v2018_v48  ;;  %990 = vmatmul.mubr.bf16.gmra.mxu1 %v2019_v49 }
  0x7a   : > { %1564 = vmatprep.mubr.msk.bf16.mxu0 %vm660_vm0, %v2020_v50  ;;  %1580 = vmatprep.mubr.msk.bf16.mxu1 %vm660_vm0, %v2022_v51 }
  0x81   : > { %870 = vmatmul.mubr.bf16.gmra.mxu0 %v2024_v52  ;;  %998 = vmatmul.mubr.bf16.gmra.mxu1 %v2025_v53 }
  0x82   : > { %1565 = vmatprep.mubr.msk.bf16.mxu0 %vm660_vm0, %v2026_v54  ;;  %1581 = vmatprep.mubr.msk.bf16.mxu1 %vm660_vm0, %v2028_v55 }
  0x89   : > { %878 = vmatmul.mubr.bf16.gmra.mxu0 %v2030_v56  ;;  %1006 = vmatmul.mubr.bf16.gmra.mxu1 %v2031_v57 }
  0x8a   : > { %1566 = vmatprep.mubr.msk.bf16.mxu0 %vm660_vm0, %v2032_v58  ;;  %1582 = vmatprep.mubr.msk.bf16.mxu1 %vm660_vm0, %v2034_v59 }
  0x91   : > { %886 = vmatmul.mubr.bf16.gmra.mxu0 %v2036_v60  ;;  %1014 = vmatmul.mubr.bf16.gmra.mxu1 %v2037_v61 }
  0x92   : > { %1567 = vmatprep.mubr.msk.bf16.mxu0 %vm660_vm0, %v2038_v62  ;;  %1583 = vmatprep.mubr.msk.bf16.mxu1 %vm660_vm0, %v2040_v63 }
  0x99   : > { %894 = vmatmul.mubr.bf16.gmra.mxu0 %v2042_v0  ;;  %1022 = vmatmul.mubr.bf16.gmra.mxu1 %v2043_v1 }
  0x9a   : > { %1568 = vmatprep.mubr.msk.bf16.mxu0 %vm660_vm0, %v2044_v2  ;;  %1584 = vmatprep.mubr.msk.bf16.mxu1 %vm660_vm0, %v2046_v3 }
  0xa1   : > { %902 = vmatmul.mubr.bf16.gmra.mxu0 %v2048_v4  ;;  %1030 = vmatmul.mubr.bf16.gmra.mxu1 %v2049_v5 }
  0xa2   : > { %1569 = vmatprep.mubr.msk.bf16.mxu0 %vm660_vm0, %v2050_v6  ;;  %1585 = vmatprep.mubr.msk.bf16.mxu1 %vm660_vm0, %v2052_v7 }
  0xa9   : > { %910 = vmatmul.mubr.bf16.gmra.mxu0 %v2054_v8  ;;  %1038 = vmatmul.mubr.bf16.gmra.mxu1 %v2055_v9 }
  0xf1   : > { %v791_v10 = vpop.f32.mrf.mxu0  ;;  %v919_v11 = vpop.f32.mrf.mxu1 }
  0xf2   : > { %v792_v17 = vadd.f32 %v2253_v12, %v791_v10  ;;  %v920_v18 = vadd.f32 %v2253_v12, %v919_v11 }
  0xf3   : > { %v793_v13 = vpop.f32.mrf.mxu0  ;;  %v921_v14 = vpop.f32.mrf.mxu1 }
  0xf5   : > { %v794_v15 = vpop.f32.mrf.mxu0  ;;  %v922_v16 = vpop.f32.mrf.mxu1 }
  0xf6   : > { %v795_v19 = vadd.f32 %v2253_v12, %v794_v15  ;;  %v923_v20 = vadd.f32 %v2253_v12, %v922_v16 }
  0xf7   : > { %v796_v21 = vpop.f32.mrf.mxu0  ;;  %v924_v22 = vpop.f32.mrf.mxu1 }
  0xf8   : > { %v1720_v23 = vpack.c.bf16 %v795_v19, %v792_v17  ;;  %v1800_v24 = vpack.c.bf16 %v923_v20, %v920_v18 }
  0xf9   : > { %v799_v25 = vpop.f32.mrf.mxu0  ;;  %v927_v26 = vpop.f32.mrf.mxu1 }
  0xfa   : > { %1721 = vst [vmem:[%s2263_s21] sm:$0xff] %v1720_v23   ;;  %1892 = vst [vmem:[%s2263_s21 + $0x80] sm:$0xff] %v1800_v24   ;;  %v800_v31 = vadd.f32 %v2253_v12, %v799_v25  ;;  %v928_v32 = vadd.f32 %v2253_v12, %v927_v26 }
  0xfb   : > { %v801_v27 = vpop.f32.mrf.mxu0  ;;  %v929_v28 = vpop.f32.mrf.mxu1 }
  0xfd   : > { %v802_v29 = vpop.f32.mrf.mxu0  ;;  %v930_v30 = vpop.f32.mrf.mxu1 }
  0xfe   : > { %v803_v33 = vadd.f32 %v2253_v12, %v802_v29  ;;  %v931_v34 = vadd.f32 %v2253_v12, %v930_v30 }
  0xff   : > { %v804_v35 = vpop.f32.mrf.mxu0  ;;  %v932_v36 = vpop.f32.mrf.mxu1 }
 0x100   : > { %v1725_v37 = vpack.c.bf16 %v803_v33, %v800_v31  ;;  %v1805_v38 = vpack.c.bf16 %v931_v34, %v928_v32 }
 0x101   : > { %v807_v39 = vpop.f32.mrf.mxu0  ;;  %v935_v40 = vpop.f32.mrf.mxu1 }
 0x102   : > { %1877 = vst [vmem:[%s2263_s21 + $0x8] sm:$0xff] %v1725_v37   ;;  %1893 = vst [vmem:[%s2263_s21 + $0x88] sm:$0xff] %v1805_v38   ;;  %v808_v45 = vadd.f32 %v2253_v12, %v807_v39  ;;  %v936_v46 = vadd.f32 %v2253_v12, %v935_v40 }
 0x103   : > { %v809_v41 = vpop.f32.mrf.mxu0  ;;  %v937_v42 = vpop.f32.mrf.mxu1 }
 0x105   : > { %v810_v43 = vpop.f32.mrf.mxu0  ;;  %v938_v44 = vpop.f32.mrf.mxu1 }
 0x106   : > { %v811_v47 = vadd.f32 %v2253_v12, %v810_v43  ;;  %v939_v48 = vadd.f32 %v2253_v12, %v938_v44 }
 0x107   : > { %v812_v49 = vpop.f32.mrf.mxu0  ;;  %v940_v50 = vpop.f32.mrf.mxu1 }
 0x108   : > { %v1730_v51 = vpack.c.bf16 %v811_v47, %v808_v45  ;;  %v1810_v52 = vpack.c.bf16 %v939_v48, %v936_v46 }
 0x109   : > { %v815_v53 = vpop.f32.mrf.mxu0  ;;  %v943_v54 = vpop.f32.mrf.mxu1 }
 0x10a   : > { %1878 = vst [vmem:[%s2263_s21 + $0x10] sm:$0xff] %v1730_v51   ;;  %1894 = vst [vmem:[%s2263_s21 + $0x90] sm:$0xff] %v1810_v52   ;;  %v816_v59 = vadd.f32 %v2253_v12, %v815_v53  ;;  %v944_v60 = vadd.f32 %v2253_v12, %v943_v54 }
 0x10b   : > { %v817_v55 = vpop.f32.mrf.mxu0  ;;  %v945_v56 = vpop.f32.mrf.mxu1 }
 0x10d   : > { %v818_v57 = vpop.f32.mrf.mxu0  ;;  %v946_v58 = vpop.f32.mrf.mxu1 }
 0x10e   : > { %v819_v61 = vadd.f32 %v2253_v12, %v818_v57  ;;  %v947_v62 = vadd.f32 %v2253_v12, %v946_v58 }
 0x10f   : > { %v820_v63 = vpop.f32.mrf.mxu0  ;;  %v948_v0 = vpop.f32.mrf.mxu1 }
 0x110   : > { %v1735_v1 = vpack.c.bf16 %v819_v61, %v816_v59  ;;  %v1815_v2 = vpack.c.bf16 %v947_v62, %v944_v60 }
 0x111   : > { %v823_v3 = vpop.f32.mrf.mxu0  ;;  %v951_v4 = vpop.f32.mrf.mxu1 }
 0x112   : > { %1879 = vst [vmem:[%s2263_s21 + $0x18] sm:$0xff] %v1735_v1   ;;  %1895 = vst [vmem:[%s2263_s21 + $0x98] sm:$0xff] %v1815_v2   ;;  %v824_v9 = vadd.f32 %v2253_v12, %v823_v3  ;;  %v952_v10 = vadd.f32 %v2253_v12, %v951_v4 }
 0x113   : > { %v825_v5 = vpop.f32.mrf.mxu0  ;;  %v953_v6 = vpop.f32.mrf.mxu1 }
 0x115   : > { %v826_v7 = vpop.f32.mrf.mxu0  ;;  %v954_v8 = vpop.f32.mrf.mxu1 }
 0x116   : > { %v827_v11 = vadd.f32 %v2253_v12, %v826_v7  ;;  %v955_v13 = vadd.f32 %v2253_v12, %v954_v8 }
 0x117   : > { %v828_v14 = vpop.f32.mrf.mxu0  ;;  %v956_v15 = vpop.f32.mrf.mxu1 }
 0x118   : > { %v1740_v16 = vpack.c.bf16 %v827_v11, %v824_v9  ;;  %v1820_v17 = vpack.c.bf16 %v955_v13, %v952_v10 }
 0x119   : > { %v831_v18 = vpop.f32.mrf.mxu0  ;;  %v959_v19 = vpop.f32.mrf.mxu1 }
 0x11a   : > { %1880 = vst [vmem:[%s2263_s21 + $0x20] sm:$0xff] %v1740_v16   ;;  %1896 = vst [vmem:[%s2263_s21 + $0xa0] sm:$0xff] %v1820_v17   ;;  %v832_v24 = vadd.f32 %v2253_v12, %v831_v18  ;;  %v960_v25 = vadd.f32 %v2253_v12, %v959_v19 }
 0x11b   : > { %v833_v20 = vpop.f32.mrf.mxu0  ;;  %v961_v21 = vpop.f32.mrf.mxu1 }
 0x11d   : > { %v834_v22 = vpop.f32.mrf.mxu0  ;;  %v962_v23 = vpop.f32.mrf.mxu1 }
 0x11e   : > { %v835_v26 = vadd.f32 %v2253_v12, %v834_v22  ;;  %v963_v27 = vadd.f32 %v2253_v12, %v962_v23 }
 0x11f   : > { %v836_v28 = vpop.f32.mrf.mxu0  ;;  %v964_v29 = vpop.f32.mrf.mxu1 }
 0x120   : > { %v1745_v30 = vpack.c.bf16 %v835_v26, %v832_v24  ;;  %v1825_v31 = vpack.c.bf16 %v963_v27, %v960_v25 }
 0x121   : > { %v839_v32 = vpop.f32.mrf.mxu0  ;;  %v967_v33 = vpop.f32.mrf.mxu1 }
 0x122   : > { %1881 = vst [vmem:[%s2263_s21 + $0x28] sm:$0xff] %v1745_v30   ;;  %1897 = vst [vmem:[%s2263_s21 + $0xa8] sm:$0xff] %v1825_v31   ;;  %v840_v38 = vadd.f32 %v2253_v12, %v839_v32  ;;  %v968_v39 = vadd.f32 %v2253_v12, %v967_v33 }
 0x123   : > { %v841_v34 = vpop.f32.mrf.mxu0  ;;  %v969_v35 = vpop.f32.mrf.mxu1 }
 0x125   : > { %v842_v36 = vpop.f32.mrf.mxu0  ;;  %v970_v37 = vpop.f32.mrf.mxu1 }
 0x126   : > { %v843_v40 = vadd.f32 %v2253_v12, %v842_v36  ;;  %v971_v41 = vadd.f32 %v2253_v12, %v970_v37 }
 0x127   : > { %v844_v42 = vpop.f32.mrf.mxu0  ;;  %v972_v43 = vpop.f32.mrf.mxu1 }
 0x128   : > { %v1750_v44 = vpack.c.bf16 %v843_v40, %v840_v38  ;;  %v1830_v45 = vpack.c.bf16 %v971_v41, %v968_v39 }
 0x129   : > { %v847_v46 = vpop.f32.mrf.mxu0  ;;  %v975_v47 = vpop.f32.mrf.mxu1 }
 0x12a   : > { %1882 = vst [vmem:[%s2263_s21 + $0x30] sm:$0xff] %v1750_v44   ;;  %1898 = vst [vmem:[%s2263_s21 + $0xb0] sm:$0xff] %v1830_v45   ;;  %v848_v52 = vadd.f32 %v2253_v12, %v847_v46  ;;  %v976_v53 = vadd.f32 %v2253_v12, %v975_v47 }
 0x12b   : > { %v849_v48 = vpop.f32.mrf.mxu0  ;;  %v977_v49 = vpop.f32.mrf.mxu1 }
 0x12d   : > { %v850_v50 = vpop.f32.mrf.mxu0  ;;  %v978_v51 = vpop.f32.mrf.mxu1 }
 0x12e   : > { %v851_v54 = vadd.f32 %v2253_v12, %v850_v50  ;;  %v979_v55 = vadd.f32 %v2253_v12, %v978_v51 }
 0x12f   : > { %v852_v56 = vpop.f32.mrf.mxu0  ;;  %v980_v57 = vpop.f32.mrf.mxu1 }
 0x130   : > { %v1755_v58 = vpack.c.bf16 %v851_v54, %v848_v52  ;;  %v1835_v59 = vpack.c.bf16 %v979_v55, %v976_v53 }
 0x131   : > { %v855_v60 = vpop.f32.mrf.mxu0  ;;  %v983_v61 = vpop.f32.mrf.mxu1 }
 0x132   : > { %1883 = vst [vmem:[%s2263_s21 + $0x38] sm:$0xff] %v1755_v58   ;;  %1899 = vst [vmem:[%s2263_s21 + $0xb8] sm:$0xff] %v1835_v59   ;;  %v856_v2 = vadd.f32 %v2253_v12, %v855_v60  ;;  %v984_v3 = vadd.f32 %v2253_v12, %v983_v61 }
 0x133   : > { %v857_v62 = vpop.f32.mrf.mxu0  ;;  %v985_v63 = vpop.f32.mrf.mxu1 }
 0x135   : > { %v858_v0 = vpop.f32.mrf.mxu0  ;;  %v986_v1 = vpop.f32.mrf.mxu1 }
 0x136   : > { %v859_v4 = vadd.f32 %v2253_v12, %v858_v0  ;;  %v987_v5 = vadd.f32 %v2253_v12, %v986_v1 }
 0x137   : > { %v860_v6 = vpop.f32.mrf.mxu0  ;;  %v988_v7 = vpop.f32.mrf.mxu1 }
 0x138   : > { %v1760_v8 = vpack.c.bf16 %v859_v4, %v856_v2  ;;  %v1840_v9 = vpack.c.bf16 %v987_v5, %v984_v3 }
 0x139   : > { %v863_v10 = vpop.f32.mrf.mxu0  ;;  %v991_v11 = vpop.f32.mrf.mxu1 }
 0x13a   : > { %1884 = vst [vmem:[%s2263_s21 + $0x40] sm:$0xff] %v1760_v8   ;;  %1900 = vst [vmem:[%s2263_s21 + $0xc0] sm:$0xff] %v1840_v9   ;;  %v864_v17 = vadd.f32 %v2253_v12, %v863_v10  ;;  %v992_v18 = vadd.f32 %v2253_v12, %v991_v11 }
 0x13b   : > { %v865_v13 = vpop.f32.mrf.mxu0  ;;  %v993_v14 = vpop.f32.mrf.mxu1 }
 0x13d   : > { %v866_v15 = vpop.f32.mrf.mxu0  ;;  %v994_v16 = vpop.f32.mrf.mxu1 }
 0x13e   : > { %v867_v19 = vadd.f32 %v2253_v12, %v866_v15  ;;  %v995_v20 = vadd.f32 %v2253_v12, %v994_v16 }
 0x13f   : > { %v868_v21 = vpop.f32.mrf.mxu0  ;;  %v996_v22 = vpop.f32.mrf.mxu1 }
 0x140   : > { %v1765_v23 = vpack.c.bf16 %v867_v19, %v864_v17  ;;  %v1845_v24 = vpack.c.bf16 %v995_v20, %v992_v18 }
 0x141   : > { %v871_v25 = vpop.f32.mrf.mxu0  ;;  %v999_v26 = vpop.f32.mrf.mxu1 }
 0x142   : > { %1885 = vst [vmem:[%s2263_s21 + $0x48] sm:$0xff] %v1765_v23   ;;  %1901 = vst [vmem:[%s2263_s21 + $0xc8] sm:$0xff] %v1845_v24   ;;  %v872_v31 = vadd.f32 %v2253_v12, %v871_v25  ;;  %v1000_v32 = vadd.f32 %v2253_v12, %v999_v26 }
 0x143   : > { %v873_v27 = vpop.f32.mrf.mxu0  ;;  %v1001_v28 = vpop.f32.mrf.mxu1 }
 0x145   : > { %v874_v29 = vpop.f32.mrf.mxu0  ;;  %v1002_v30 = vpop.f32.mrf.mxu1 }
 0x146   : > { %v875_v33 = vadd.f32 %v2253_v12, %v874_v29  ;;  %v1003_v34 = vadd.f32 %v2253_v12, %v1002_v30 }
 0x147   : > { %v876_v35 = vpop.f32.mrf.mxu0  ;;  %v1004_v36 = vpop.f32.mrf.mxu1 }
 0x148   : > { %v1770_v37 = vpack.c.bf16 %v875_v33, %v872_v31  ;;  %v1850_v38 = vpack.c.bf16 %v1003_v34, %v1000_v32 }
 0x149   : > { %v879_v39 = vpop.f32.mrf.mxu0  ;;  %v1007_v40 = vpop.f32.mrf.mxu1 }
 0x14a   : > { %1886 = vst [vmem:[%s2263_s21 + $0x50] sm:$0xff] %v1770_v37   ;;  %1902 = vst [vmem:[%s2263_s21 + $0xd0] sm:$0xff] %v1850_v38   ;;  %v880_v45 = vadd.f32 %v2253_v12, %v879_v39  ;;  %v1008_v46 = vadd.f32 %v2253_v12, %v1007_v40 }
 0x14b   : > { %v881_v41 = vpop.f32.mrf.mxu0  ;;  %v1009_v42 = vpop.f32.mrf.mxu1 }
 0x14d   : > { %v882_v43 = vpop.f32.mrf.mxu0  ;;  %v1010_v44 = vpop.f32.mrf.mxu1 }
 0x14e   : > { %v883_v47 = vadd.f32 %v2253_v12, %v882_v43  ;;  %v1011_v48 = vadd.f32 %v2253_v12, %v1010_v44 }
 0x14f   : > { %v884_v49 = vpop.f32.mrf.mxu0  ;;  %v1012_v50 = vpop.f32.mrf.mxu1 }
 0x150   : > { %v1775_v51 = vpack.c.bf16 %v883_v47, %v880_v45  ;;  %v1855_v52 = vpack.c.bf16 %v1011_v48, %v1008_v46 }
 0x151   : > { %v887_v53 = vpop.f32.mrf.mxu0  ;;  %v1015_v54 = vpop.f32.mrf.mxu1 }
 0x152   : > { %1887 = vst [vmem:[%s2263_s21 + $0x58] sm:$0xff] %v1775_v51   ;;  %1903 = vst [vmem:[%s2263_s21 + $0xd8] sm:$0xff] %v1855_v52   ;;  %v888_v59 = vadd.f32 %v2253_v12, %v887_v53  ;;  %v1016_v60 = vadd.f32 %v2253_v12, %v1015_v54 }
 0x153   : > { %v889_v55 = vpop.f32.mrf.mxu0  ;;  %v1017_v56 = vpop.f32.mrf.mxu1 }
 0x155   : > { %v890_v57 = vpop.f32.mrf.mxu0  ;;  %v1018_v58 = vpop.f32.mrf.mxu1 }
 0x156   : > { %v891_v61 = vadd.f32 %v2253_v12, %v890_v57  ;;  %v1019_v62 = vadd.f32 %v2253_v12, %v1018_v58 }
 0x157   : > { %v892_v63 = vpop.f32.mrf.mxu0  ;;  %v1020_v0 = vpop.f32.mrf.mxu1 }
 0x158   : > { %v1780_v1 = vpack.c.bf16 %v891_v61, %v888_v59  ;;  %v1860_v2 = vpack.c.bf16 %v1019_v62, %v1016_v60 }
 0x159   : > { %v895_v3 = vpop.f32.mrf.mxu0  ;;  %v1023_v4 = vpop.f32.mrf.mxu1 }
 0x15a   : > { %1888 = vst [vmem:[%s2263_s21 + $0x60] sm:$0xff] %v1780_v1   ;;  %1904 = vst [vmem:[%s2263_s21 + $0xe0] sm:$0xff] %v1860_v2   ;;  %v896_v9 = vadd.f32 %v2253_v12, %v895_v3  ;;  %v1024_v10 = vadd.f32 %v2253_v12, %v1023_v4 }
 0x15b   : > { %v897_v5 = vpop.f32.mrf.mxu0  ;;  %v1025_v6 = vpop.f32.mrf.mxu1 }
 0x15d   : > { %v898_v7 = vpop.f32.mrf.mxu0  ;;  %v1026_v8 = vpop.f32.mrf.mxu1 }
 0x15e   : > { %v899_v11 = vadd.f32 %v2253_v12, %v898_v7  ;;  %v1027_v13 = vadd.f32 %v2253_v12, %v1026_v8 }
 0x15f   : > { %v900_v14 = vpop.f32.mrf.mxu0  ;;  %v1028_v15 = vpop.f32.mrf.mxu1 }
 0x160   : > { %v1785_v16 = vpack.c.bf16 %v899_v11, %v896_v9  ;;  %v1865_v17 = vpack.c.bf16 %v1027_v13, %v1024_v10 }
 0x161   : > { %v903_v18 = vpop.f32.mrf.mxu0  ;;  %v1031_v19 = vpop.f32.mrf.mxu1 }
 0x162   : > { %1889 = vst [vmem:[%s2263_s21 + $0x68] sm:$0xff] %v1785_v16   ;;  %1905 = vst [vmem:[%s2263_s21 + $0xe8] sm:$0xff] %v1865_v17   ;;  %v904_v24 = vadd.f32 %v2253_v12, %v903_v18  ;;  %v1032_v25 = vadd.f32 %v2253_v12, %v1031_v19 }
 0x163   : > { %v905_v20 = vpop.f32.mrf.mxu0  ;;  %v1033_v21 = vpop.f32.mrf.mxu1 }
 0x165   : > { %v906_v22 = vpop.f32.mrf.mxu0  ;;  %v1034_v23 = vpop.f32.mrf.mxu1 }
 0x166   : > { %v907_v26 = vadd.f32 %v2253_v12, %v906_v22  ;;  %v1035_v27 = vadd.f32 %v2253_v12, %v1034_v23 }
 0x167   : > { %v908_v28 = vpop.f32.mrf.mxu0  ;;  %v1036_v29 = vpop.f32.mrf.mxu1 }
 0x168   : > { %v1790_v30 = vpack.c.bf16 %v907_v26, %v904_v24  ;;  %v1870_v31 = vpack.c.bf16 %v1035_v27, %v1032_v25 }
 0x169   : > { %v911_v32 = vpop.f32.mrf.mxu0  ;;  %v1039_v33 = vpop.f32.mrf.mxu1 }
 0x16a   : > { %1890 = vst [vmem:[%s2263_s21 + $0x70] sm:$0xff] %v1790_v30   ;;  %1906 = vst [vmem:[%s2263_s21 + $0xf0] sm:$0xff] %v1870_v31   ;;  %v912_v38 = vadd.f32 %v2253_v12, %v911_v32  ;;  %v1040_v39 = vadd.f32 %v2253_v12, %v1039_v33 }
 0x16b   : > { %v913_v34 = vpop.f32.mrf.mxu0  ;;  %v1041_v35 = vpop.f32.mrf.mxu1 }
 0x16d   : > { %v914_v36 = vpop.f32.mrf.mxu0  ;;  %v1042_v37 = vpop.f32.mrf.mxu1 }
 0x16e   : > { %v915_v40 = vadd.f32 %v2253_v12, %v914_v36  ;;  %v1043_v41 = vadd.f32 %v2253_v12, %v1042_v37 }
 0x16f   : > { %v916_v42 = vpop.f32.mrf.mxu0  ;;  %v1044_v43 = vpop.f32.mrf.mxu1 }
 0x170   : > { %v1795_v44 = vpack.c.bf16 %v915_v40, %v912_v38  ;;  %v1875_v45 = vpack.c.bf16 %v1043_v41, %v1040_v39 }
 0x172   : > { %1891 = vst [vmem:[%s2263_s21 + $0x78] sm:$0xff] %v1795_v44   ;;  %1907 = vst [vmem:[%s2263_s21 + $0xf8] sm:$0xff] %v1875_v45  }
 0x173 PF: > { %s13_s14 = sadd.s32 1, %s2078_s14   ;;  %s2370_s12 = smov %s2074_s13 }
 0x174   : > { %p10_p5 = scmp.ge.s32.totalorder %s13_s14, 4   ;;  %s2371_s13 = smov %s2373_s15 }
 0x176   :  { %12 = sbr.rel (!%p10_p5) target bundleno = 2 (0x2), region = 68 }

// kernel: _lambda_.53
= control target key start
LH: loop header
LB: loop body
LE: loop exit
PB: predicated region body
PF: predicated region fallthrough
CT: control target
= control target key end

     0   :  { %s2062_s12 = smov 0   ;;  %s2064_s13 = smov 0   ;;  %s2327_s0 = inlined_call_operand.vmem [shape: bf16[1024,80], index: 0, kind: input, shape index: {}]   ;;  %s2328_s1 = inlined_call_operand.vmem [shape: bf16[80,128], index: 1, kind: input, shape index: {}]   ;;  %s2329_s2 = inlined_call_operand.vmem [shape: f32[1,128], index: 2, kind: input, shape index: {}]   ;;  %s2330_s3 = inlined_call_operand.vmem [shape: f32[1024,128], index: 3, kind: output, shape index: {}]  }
   0x1   :  { %s2066_s14 = smov 0  }
   0x2 LB: > { %s25_s15 = sadd.s32 1, %s2036_s13  ;;  %p1439_p0 = scmp.ge.s32.totalorder %s2040_s14, 1  ;;  %s2040_s14 = sphi %s2066_s14, %s13_s14   ;;  %s2036_s13 = sphi %s2064_s13, %s2332_s13   ;;  %s2032_s12 = sphi %s2062_s12, %s2331_s12  }
   0x3   : > { %p27_p1 = scmp.ge.s32.totalorder %s25_s15, 2  ;;  %p169_p2 = scmp.lt.s32.totalorder %s2040_s14, 3 }
   0x5   : > { %s2334_s15 = smov (%p27_p1, %s25_s15), 0  ;;  %p170_p3 = pnand %p1439_p0, %p169_p2 }
   0x6   : > { %s1440_s18 = sshll.u32 (!%p170_p3), %s2032_s12, 6 }
   0x7   : > { %173 = sbr.rel (%p170_p3) target bundleno = 372 (0x174), region = 32  ;;  %p204_p4 = scmp.lt.s32.totalorder (!%p170_p3), %s1440_s18, 127 }
   0xc   : > { %v1725_v0 = vld [vmem:[%s2328_s1 + $0x20] sm:$0xff]   ;;  %v1726_v1 = vld [vmem:[%s2328_s1 + $0x18] sm:$0xff]   ;;  %s2336_s18 = smov (!%p204_p4, %s1440_s18), 127  ;;  %v1727_v2 = vld [vmem:[%s2328_s1 + $0x10] sm:$0xff]   ;;  %vm497_vm0 = vcmask 654336  }
   0xd   : > { %1617 = vmatprep.subr.bf16.mxu0 %v1725_v0  ;;  %1691 = vmatprep.subr.bf16.mxu1 %v1725_v0  ;;  %s1441_s23 = sshll.u32 %s2336_s18, 2  ;;  %v1728_v3 = vld [vmem:[%s2328_s1 + $0x8] sm:$0xff]   ;;  %v1729_v6 = vld [vmem:[%s2328_s1] sm:$0xff]   ;;  %s1443_s6 = sshll.u32 %s2336_s18, 3 }
   0xe   : > { %1618 = vmatpush3.bf16.msra.mxu0 %v1725_v0  ;;  %1696 = vmatpush3.bf16.msra.mxu1 %v1725_v0  ;;  %s2098_s28 = scalar_lea.vmem %s2327_s0, %s1441_s23  ;;  %v2170_v37 = vld [vmem:[%s2329_s2] ss:$0 sm:$0xff]  ;;  %s2195_s9 = scalar_lea.vmem %s2330_s3, %s1443_s6 }
   0xf   : > { %1619 = vmatprep.subr.bf16.mxu0 %v1726_v1  ;;  %1692 = vmatprep.subr.bf16.mxu1 %v1726_v1  ;;  %v1730_v4 = vld [vmem:[%s2098_s28] sm:$0xff]   ;;  %v1732_v7 = vld [vmem:[%s2098_s28 + $0x8] sm:$0xff]   ;;  %v1734_v9 = vld [vmem:[%s2098_s28 + $0x10] sm:$0xff]  }
  0x10   : > { %v1731_v5 = vld [vmem:[%s2098_s28 + $0x80] sm:$0xff]   ;;  %1627 = vmatprep.mubr.msk.bf16.mxu0 %vm497_vm0, %v1730_v4  ;;  %v1733_v8 = vld [vmem:[%s2098_s28 + $0x88] sm:$0xff]   ;;  %v1735_v10 = vld [vmem:[%s2098_s28 + $0x90] sm:$0xff]  }
  0x11   : > { %1659 = vmatprep.mubr.msk.bf16.mxu1 %vm497_vm0, %v1731_v5  ;;  %v1736_v11 = vld [vmem:[%s2098_s28 + $0x18] sm:$0xff]   ;;  %v1738_v13 = vld [vmem:[%s2098_s28 + $0x20] sm:$0xff]   ;;  %v1740_v15 = vld [vmem:[%s2098_s28 + $0x28] sm:$0xff]  }
  0x12   : > { %1620 = vmatpush3.bf16.msra.mxu0 %v1726_v1  ;;  %1697 = vmatpush3.bf16.msra.mxu1 %v1726_v1  ;;  %v1737_v12 = vld [vmem:[%s2098_s28 + $0x98] sm:$0xff]   ;;  %v1739_v14 = vld [vmem:[%s2098_s28 + $0xa0] sm:$0xff]   ;;  %v1741_v16 = vld [vmem:[%s2098_s28 + $0xa8] sm:$0xff]  }
  0x13   : > { %1621 = vmatprep.subr.bf16.mxu0 %v1727_v2  ;;  %1693 = vmatprep.subr.bf16.mxu1 %v1727_v2  ;;  %v1742_v17 = vld [vmem:[%s2098_s28 + $0x30] sm:$0xff]   ;;  %v1744_v19 = vld [vmem:[%s2098_s28 + $0x38] sm:$0xff]   ;;  %v1746_v21 = vld [vmem:[%s2098_s28 + $0x40] sm:$0xff]  }
  0x14   : > { %v1743_v18 = vld [vmem:[%s2098_s28 + $0xb0] sm:$0xff]   ;;  %v1745_v20 = vld [vmem:[%s2098_s28 + $0xb8] sm:$0xff]   ;;  %v1747_v22 = vld [vmem:[%s2098_s28 + $0xc0] sm:$0xff]  }
  0x15   : > { %v1748_v23 = vld [vmem:[%s2098_s28 + $0x48] sm:$0xff]   ;;  %v1750_v25 = vld [vmem:[%s2098_s28 + $0x50] sm:$0xff]   ;;  %v1752_v27 = vld [vmem:[%s2098_s28 + $0x58] sm:$0xff]  }
  0x16   : > { %1622 = vmatpush3.bf16.msra.mxu0 %v1727_v2  ;;  %1698 = vmatpush3.bf16.msra.mxu1 %v1727_v2  ;;  %v1749_v24 = vld [vmem:[%s2098_s28 + $0xc8] sm:$0xff]   ;;  %v1751_v26 = vld [vmem:[%s2098_s28 + $0xd0] sm:$0xff]   ;;  %v1753_v28 = vld [vmem:[%s2098_s28 + $0xd8] sm:$0xff]  }
  0x17   : > { %1623 = vmatprep.subr.bf16.mxu0 %v1728_v3  ;;  %1694 = vmatprep.subr.bf16.mxu1 %v1728_v3  ;;  %v1754_v29 = vld [vmem:[%s2098_s28 + $0x60] sm:$0xff]   ;;  %v1756_v31 = vld [vmem:[%s2098_s28 + $0x68] sm:$0xff]   ;;  %v1758_v33 = vld [vmem:[%s2098_s28 + $0x70] sm:$0xff]  }
  0x18   : > { %v1755_v30 = vld [vmem:[%s2098_s28 + $0xe0] sm:$0xff]   ;;  %v1757_v32 = vld [vmem:[%s2098_s28 + $0xe8] sm:$0xff]   ;;  %v1759_v34 = vld [vmem:[%s2098_s28 + $0xf0] sm:$0xff]  }
  0x19   : > { %v1760_v35 = vld [vmem:[%s2098_s28 + $0x78] sm:$0xff]  }
  0x1a   : > { %1624 = vmatpush3.bf16.msra.mxu0 %v1728_v3  ;;  %1699 = vmatpush3.bf16.msra.mxu1 %v1728_v3  ;;  %v1761_v36 = vld [vmem:[%s2098_s28 + $0xf8] sm:$0xff]  }
  0x1b   : > { %1625 = vmatprep.subr.bf16.mxu0 %v1729_v6  ;;  %1695 = vmatprep.subr.bf16.mxu1 %v1729_v6 }
  0x1e   : > { %1626 = vmatpush3.bf16.msra.mxu0 %v1729_v6  ;;  %1700 = vmatpush3.bf16.msra.mxu1 %v1729_v6 }
  0x21   : > { %1628 = vmatmul.mubr.msk.bf16.vlgmr.msra.gmra.mxu0 %vm497_vm0, %v1732_v7  ;;  %1660 = vmatmul.mubr.msk.bf16.vlgmr.msra.gmra.mxu1 %vm497_vm0, %v1733_v8 }
  0x22   : > { %1631 = vmatprep.mubr.msk.bf16.mxu0 %vm497_vm0, %v1734_v9  ;;  %1663 = vmatprep.mubr.msk.bf16.mxu1 %vm497_vm0, %v1735_v10 }
  0x29   : > { %1632 = vmatmul.mubr.msk.bf16.gmra.mxu0 %vm497_vm0, %v1736_v11  ;;  %1664 = vmatmul.mubr.msk.bf16.gmra.mxu1 %vm497_vm0, %v1737_v12 }
  0x2a   : > { %1635 = vmatprep.mubr.msk.bf16.mxu0 %vm497_vm0, %v1738_v13  ;;  %1667 = vmatprep.mubr.msk.bf16.mxu1 %vm497_vm0, %v1739_v14 }
  0x31   : > { %1636 = vmatmul.mubr.msk.bf16.gmra.mxu0 %vm497_vm0, %v1740_v15  ;;  %1668 = vmatmul.mubr.msk.bf16.gmra.mxu1 %vm497_vm0, %v1741_v16 }
  0x32   : > { %1639 = vmatprep.mubr.msk.bf16.mxu0 %vm497_vm0, %v1742_v17  ;;  %1671 = vmatprep.mubr.msk.bf16.mxu1 %vm497_vm0, %v1743_v18 }
  0x39   : > { %1640 = vmatmul.mubr.msk.bf16.gmra.mxu0 %vm497_vm0, %v1744_v19  ;;  %1672 = vmatmul.mubr.msk.bf16.gmra.mxu1 %vm497_vm0, %v1745_v20 }
  0x3a   : > { %1643 = vmatprep.mubr.msk.bf16.mxu0 %vm497_vm0, %v1746_v21  ;;  %1675 = vmatprep.mubr.msk.bf16.mxu1 %vm497_vm0, %v1747_v22 }
  0x41   : > { %1644 = vmatmul.mubr.msk.bf16.gmra.mxu0 %vm497_vm0, %v1748_v23  ;;  %1676 = vmatmul.mubr.msk.bf16.gmra.mxu1 %vm497_vm0, %v1749_v24 }
  0x42   : > { %1647 = vmatprep.mubr.msk.bf16.mxu0 %vm497_vm0, %v1750_v25  ;;  %1679 = vmatprep.mubr.msk.bf16.mxu1 %vm497_vm0, %v1751_v26 }
  0x49   : > { %1648 = vmatmul.mubr.msk.bf16.gmra.mxu0 %vm497_vm0, %v1752_v27  ;;  %1680 = vmatmul.mubr.msk.bf16.gmra.mxu1 %vm497_vm0, %v1753_v28 }
  0x4a   : > { %1651 = vmatprep.mubr.msk.bf16.mxu0 %vm497_vm0, %v1754_v29  ;;  %1683 = vmatprep.mubr.msk.bf16.mxu1 %vm497_vm0, %v1755_v30 }
  0x51   : > { %1652 = vmatmul.mubr.msk.bf16.gmra.mxu0 %vm497_vm0, %v1756_v31  ;;  %1684 = vmatmul.mubr.msk.bf16.gmra.mxu1 %vm497_vm0, %v1757_v32 }
  0x52   : > { %1655 = vmatprep.mubr.msk.bf16.mxu0 %vm497_vm0, %v1758_v33  ;;  %1687 = vmatprep.mubr.msk.bf16.mxu1 %vm497_vm0, %v1759_v34 }
  0x59   : > { %1656 = vmatmul.mubr.msk.bf16.gmra.mxu0 %vm497_vm0, %v1760_v35  ;;  %1688 = vmatmul.mubr.msk.bf16.gmra.mxu1 %vm497_vm0, %v1761_v36 }
  0xe1   : > { %v1629_v38 = vpop.f32.mrf.mxu0  ;;  %v1661_v39 = vpop.f32.mrf.mxu1 }
  0xe2   : > { %v637_v40 = vadd.f32 %v1629_v38, %v2170_v37  ;;  %v765_v41 = vadd.f32 %v1661_v39, %v2170_v37 }
  0xe3   : > { %v628_v42 = vpop.f32.mrf.mxu0  ;;  %v756_v43 = vpop.f32.mrf.mxu1 }
  0xe4   : > { %v1516_v44 = vmul.f32 -1.442695, %v637_v40  ;;  %v1548_v45 = vmul.f32 -1.442695, %v765_v41  ;;  %v629_v46 = vadd.f32 %v2170_v37, %v628_v42  ;;  %v757_v47 = vadd.f32 %v2170_v37, %v756_v43 }
  0xe5   : > { %v1630_v48 = vpop.f32.mrf.mxu0  ;;  %v1662_v49 = vpop.f32.mrf.mxu1 }
  0xe6   : > { %1762 = vpow2.f32 %v1516_v44  ;;  %v1514_v50 = vmul.f32 -1.442695, %v629_v46  ;;  %v1546_v51 = vmul.f32 -1.442695, %v757_v47  ;;  %v640_v52 = vadd.f32 %v1630_v48, %v2170_v37 }
  0xe7   : > { %1764 = vpow2.f32 %v1548_v45  ;;  %v768_v53 = vadd.f32 %v1662_v49, %v2170_v37  ;;  %v631_v54 = vpop.f32.mrf.mxu0  ;;  %v759_v55 = vpop.f32.mrf.mxu1 }
  0xe8   : > { %1766 = vpow2.f32 %v1514_v50  ;;  %v1517_v56 = vmul.f32 -1.442695, %v640_v52  ;;  %v632_v57 = vadd.f32 %v2170_v37, %v631_v54  ;;  %v760_v58 = vadd.f32 %v2170_v37, %v759_v55 }
  0xe9   : > { %1768 = vpow2.f32 %v1546_v51  ;;  %v1549_v59 = vmul.f32 -1.442695, %v768_v53  ;;  %v1633_v60 = vpop.f32.mrf.mxu0  ;;  %v1665_v61 = vpop.f32.mrf.mxu1 }
  0xea   : > { %1770 = vpow2.f32 %v1517_v56  ;;  %v1515_v62 = vmul.f32 -1.442695, %v632_v57  ;;  %v1547_v63 = vmul.f32 -1.442695, %v760_v58  ;;  %v653_v0 = vadd.f32 %v1633_v60, %v2170_v37 }
  0xeb   : > { %1772 = vpow2.f32 %v1549_v59  ;;  %v781_v1 = vadd.f32 %v1665_v61, %v2170_v37  ;;  %v644_v2 = vpop.f32.mrf.mxu0  ;;  %v772_v3 = vpop.f32.mrf.mxu1 }
  0xec   : > { %1774 = vpow2.f32 %v1515_v62  ;;  %v1520_v4 = vmul.f32 -1.442695, %v653_v0  ;;  %v645_v5 = vadd.f32 %v2170_v37, %v644_v2  ;;  %v773_v6 = vadd.f32 %v2170_v37, %v772_v3 }
  0xed   : > { %1776 = vpow2.f32 %v1547_v63  ;;  %v1552_v7 = vmul.f32 -1.442695, %v781_v1  ;;  %v1634_v8 = vpop.f32.mrf.mxu0  ;;  %v1666_v9 = vpop.f32.mrf.mxu1 }
  0xee   : > { %1778 = vpow2.f32 %v1520_v4  ;;  %v1518_v10 = vmul.f32 -1.442695, %v645_v5  ;;  %v1550_v11 = vmul.f32 -1.442695, %v773_v6  ;;  %v656_v12 = vadd.f32 %v1634_v8, %v2170_v37 }
  0xef   : > { %1780 = vpow2.f32 %v1552_v7  ;;  %v784_v13 = vadd.f32 %v1666_v9, %v2170_v37  ;;  %v647_v14 = vpop.f32.mrf.mxu0  ;;  %v775_v15 = vpop.f32.mrf.mxu1 }
  0xf0   : > { %1782 = vpow2.f32 %v1518_v10  ;;  %v1521_v16 = vmul.f32 -1.442695, %v656_v12  ;;  %v648_v17 = vadd.f32 %v2170_v37, %v647_v14  ;;  %v776_v18 = vadd.f32 %v2170_v37, %v775_v15 }
  0xf1   : > { %1784 = vpow2.f32 %v1550_v11  ;;  %v1553_v19 = vmul.f32 -1.442695, %v784_v13  ;;  %v1637_v20 = vpop.f32.mrf.mxu0  ;;  %v1669_v21 = vpop.f32.mrf.mxu1 }
  0xf2   : > { %1786 = vpow2.f32 %v1521_v16  ;;  %v1519_v22 = vmul.f32 -1.442695, %v648_v17  ;;  %v1551_v23 = vmul.f32 -1.442695, %v776_v18  ;;  %v669_v55 = vadd.f32 %v1637_v20, %v2170_v37 }
  0xf3   : > { %v1763_v24 = vpop.eup %1762  ;;  %1788 = vpow2.f32 %v1553_v19  ;;  %v660_v25 = vpop.f32.mrf.mxu0  ;;  %v797_v59 = vadd.f32 %v1669_v21, %v2170_v37 }
  0xf4   : > { %v788_v26 = vpop.f32.mrf.mxu1  ;;  %v1765_v27 = vpop.eup %1764  ;;  %v1077_v28 = vadd.f32 1.0, %v1763_v24  ;;  %1790 = vpow2.f32 %v1519_v22  ;;  %v661_v62 = vadd.f32 %v2170_v37, %v660_v25  ;;  %v1524_v5 = vmul.f32 -1.442695, %v669_v55 }
  0xf5   : > { %v1767_v29 = vpop.eup %1766  ;;  %v1109_v30 = vadd.f32 1.0, %v1765_v27  ;;  %1792 = vpow2.f32 %v1551_v23  ;;  %v1638_v31 = vpop.f32.mrf.mxu0  ;;  %v789_v1 = vadd.f32 %v2170_v37, %v788_v26  ;;  %v1556_v10 = vmul.f32 -1.442695, %v797_v59 }
  0xf6   : > { %v1769_v32 = vpop.eup %1768  ;;  %1794 = vrcp.f32 %v1077_v28  ;;  %v1075_v33 = vadd.f32 1.0, %v1767_v29  ;;  %v1670_v34 = vpop.f32.mrf.mxu1  ;;  %v672_v6 = vadd.f32 %v1638_v31, %v2170_v37  ;;  %v1522_v13 = vmul.f32 -1.442695, %v661_v62 }
  0xf7   : > { %v1771_v35 = vpop.eup %1770  ;;  %1796 = vrcp.f32 %v1109_v30  ;;  %v1107_v36 = vadd.f32 1.0, %v1769_v32  ;;  %v663_v42 = vpop.f32.mrf.mxu0  ;;  %v800_v11 = vadd.f32 %v1670_v34, %v2170_v37  ;;  %v1554_v16 = vmul.f32 -1.442695, %v789_v1 }
  0xf8   : > { %v1773_v38 = vpop.eup %1772  ;;  %1798 = vrcp.f32 %v1075_v33  ;;  %v1078_v39 = vadd.f32 1.0, %v1771_v35  ;;  %v791_v45 = vpop.f32.mrf.mxu1  ;;  %v664_v14 = vadd.f32 %v2170_v37, %v663_v42  ;;  %v1525_v20 = vmul.f32 -1.442695, %v672_v6 }
  0xf9   : > { %v1775_v40 = vpop.eup %1774  ;;  %1800 = vrcp.f32 %v1107_v36  ;;  %v1110_v41 = vadd.f32 1.0, %v1773_v38  ;;  %v1641_v52 = vpop.f32.mrf.mxu0  ;;  %v792_v17 = vadd.f32 %v2170_v37, %v791_v45  ;;  %v1557_v24 = vmul.f32 -1.442695, %v800_v11 }
  0xfa   : > { %v1777_v43 = vpop.eup %1776  ;;  %1802 = vrcp.f32 %v1078_v39  ;;  %v1076_v44 = vadd.f32 1.0, %v1775_v40  ;;  %v1673_v56 = vpop.f32.mrf.mxu1  ;;  %v685_v21 = vadd.f32 %v1641_v52, %v2170_v37  ;;  %v1523_v27 = vmul.f32 -1.442695, %v664_v14 }
  0xfb   : > { %v1779_v46 = vpop.eup %1778  ;;  %1804 = vrcp.f32 %v1110_v41  ;;  %v1108_v47 = vadd.f32 1.0, %v1777_v43  ;;  %v676_v2 = vpop.f32.mrf.mxu0  ;;  %v813_v25 = vadd.f32 %v1673_v56, %v2170_v37  ;;  %v1555_v30 = vmul.f32 -1.442695, %v792_v17 }
  0xfc   : > { %v1781_v48 = vpop.eup %1780  ;;  %1806 = vrcp.f32 %v1076_v44  ;;  %v1081_v49 = vadd.f32 1.0, %v1779_v46  ;;  %v804_v7 = vpop.f32.mrf.mxu1  ;;  %v677_v28 = vadd.f32 %v2170_v37, %v676_v2  ;;  %v1528_v34 = vmul.f32 -1.442695, %v685_v21 }
  0xfd   : > { %v1783_v50 = vpop.eup %1782  ;;  %1808 = vrcp.f32 %v1108_v47  ;;  %v1113_v51 = vadd.f32 1.0, %v1781_v48  ;;  %v1642_v18 = vpop.f32.mrf.mxu0  ;;  %v805_v31 = vadd.f32 %v2170_v37, %v804_v7  ;;  %v1560_v39 = vmul.f32 -1.442695, %v813_v25 }
  0xfe   : > { %v1785_v53 = vpop.eup %1784  ;;  %1810 = vrcp.f32 %v1081_v49  ;;  %v1079_v54 = vadd.f32 1.0, %v1783_v50  ;;  %v1674_v22 = vpop.f32.mrf.mxu1  ;;  %v688_v35 = vadd.f32 %v1642_v18, %v2170_v37  ;;  %v1526_v42 = vmul.f32 -1.442695, %v677_v28 }
  0xff   : > { %v1787_v57 = vpop.eup %1786  ;;  %1812 = vrcp.f32 %v1113_v51  ;;  %v1111_v58 = vadd.f32 1.0, %v1785_v53  ;;  %v679_v32 = vpop.f32.mrf.mxu0  ;;  %v816_v40 = vadd.f32 %v1674_v22, %v2170_v37  ;;  %v1558_v45 = vmul.f32 -1.442695, %v805_v31 }
 0x100   : > { %v1789_v60 = vpop.eup %1788  ;;  %1814 = vrcp.f32 %v1079_v54  ;;  %v1082_v61 = vadd.f32 1.0, %v1787_v57  ;;  %v807_v36 = vpop.f32.mrf.mxu1  ;;  %v680_v43 = vadd.f32 %v2170_v37, %v679_v32  ;;  %v1529_v49 = vmul.f32 -1.442695, %v688_v35 }
 0x101   : > { %v1791_v63 = vpop.eup %1790  ;;  %1816 = vrcp.f32 %v1111_v58  ;;  %v1114_v0 = vadd.f32 1.0, %v1789_v60  ;;  %v808_v46 = vadd.f32 %v2170_v37, %v807_v36  ;;  %v2220_v47 = vpop.f32.mrf.mxu0  ;;  %v1561_v52 = vmul.f32 -1.442695, %v816_v40 }
 0x102   : > { %v1793_v3 = vpop.eup %1792  ;;  %1818 = vrcp.f32 %v1082_v61  ;;  %v1080_v4 = vadd.f32 1.0, %v1791_v63  ;;  %v2223_v50 = vpop.f32.mrf.mxu1  ;;  %v1527_v54 = vmul.f32 -1.442695, %v680_v43 }
 0x103   : > { %v1795_v8 = vpop.eup %1794  ;;  %1820 = vrcp.f32 %v1114_v0  ;;  %v1112_v9 = vadd.f32 1.0, %v1793_v3  ;;  %v1559_v56 = vmul.f32 -1.442695, %v808_v46  ;;  %v692_v57 = vpop.f32.mrf.mxu0  ;;  %v829_v28 = vadd.f32 %v2223_v50, %v2170_v37 }
 0x104   : > { %v1797_v12 = vpop.eup %1796  ;;  %1269 = vst [vmem:[%s2195_s9 + $0x10] sm:$0xff] %v1795_v8  ;;  %1822 = vrcp.f32 %v1080_v4  ;;  %v820_v59 = vpop.f32.mrf.mxu1  ;;  %v693_v31 = vadd.f32 %v2170_v37, %v692_v57 }
 0x105   : > { %v1799_v15 = vpop.eup %1798  ;;  %1301 = vst [vmem:[%s2195_s9 + $0x110] sm:$0xff] %v1797_v12  ;;  %1824 = vrcp.f32 %v1112_v9  ;;  %v1646_v1 = vpop.f32.mrf.mxu0 }
 0x106   : > { %v1801_v19 = vpop.eup %1800  ;;  %1267 = vst [vmem:[%s2195_s9] sm:$0xff] %v1799_v15  ;;  %1826 = vpow2.f32 %v1524_v5  ;;  %v1678_v4 = vpop.f32.mrf.mxu1  ;;  %v704_v40 = vadd.f32 %v1646_v1, %v2170_v37 }
 0x107   : > { %v1803_v23 = vpop.eup %1802  ;;  %1299 = vst [vmem:[%s2195_s9 + $0x100] sm:$0xff] %v1801_v19  ;;  %1828 = vpow2.f32 %v1556_v10  ;;  %v695_v11 = vpop.f32.mrf.mxu0 }
 0x108   : > { %v1805_v26 = vpop.eup %1804  ;;  %1270 = vst [vmem:[%s2195_s9 + $0x18] sm:$0xff] %v1803_v23  ;;  %1830 = vpow2.f32 %v1522_v13  ;;  %v823_v14 = vpop.f32.mrf.mxu1 }
 0x109   : > { %v1807_v29 = vpop.eup %1806  ;;  %1302 = vst [vmem:[%s2195_s9 + $0x118] sm:$0xff] %v1805_v26  ;;  %1832 = vpow2.f32 %v1554_v16  ;;  %v1649_v21 = vpop.f32.mrf.mxu0 }
 0x10a   : > { %v1809_v33 = vpop.eup %1808  ;;  %1268 = vst [vmem:[%s2195_s9 + $0x8] sm:$0xff] %v1807_v29  ;;  %1834 = vpow2.f32 %v1525_v20  ;;  %v1681_v25 = vpop.f32.mrf.mxu1 }
 0x10b   : > { %v1811_v38 = vpop.eup %1810  ;;  %1300 = vst [vmem:[%s2195_s9 + $0x108] sm:$0xff] %v1809_v33  ;;  %1836 = vpow2.f32 %v1557_v24  ;;  %v701_v24 = vadd.f32 %v2220_v47, %v2170_v37  ;;  %v708_v35 = vpop.f32.mrf.mxu0  ;;  %v1530_v47 = vmul.f32 -1.442695, %v693_v31 }
 0x10c   : > { %v1813_v41 = vpop.eup %1812  ;;  %1273 = vst [vmem:[%s2195_s9 + $0x30] sm:$0xff] %v1811_v38  ;;  %1838 = vpow2.f32 %v1523_v27 }
 0x10d   : > { %v1815_v44 = vpop.eup %1814  ;;  %1305 = vst [vmem:[%s2195_s9 + $0x130] sm:$0xff] %v1813_v41  ;;  %1840 = vpow2.f32 %v1555_v30  ;;  %v836_v41 = vpop.f32.mrf.mxu1 }
 0x10e   : > { %v1817_v48 = vpop.eup %1816  ;;  %1271 = vst [vmem:[%s2195_s9 + $0x20] sm:$0xff] %v1815_v44  ;;  %1842 = vpow2.f32 %v1528_v34  ;;  %v821_v34 = vadd.f32 %v2170_v37, %v820_v59  ;;  %v1564_v44 = vmul.f32 -1.442695, %v829_v28  ;;  %v845_v59 = vadd.f32 %v1681_v25, %v2170_v37 }
 0x10f   : > { %v1819_v51 = vpop.eup %1818  ;;  %1303 = vst [vmem:[%s2195_s9 + $0x120] sm:$0xff] %v1817_v48  ;;  %1844 = vpow2.f32 %v1560_v39  ;;  %v1532_v39 = vmul.f32 -1.442695, %v701_v24  ;;  %v696_v48 = vadd.f32 %v2170_v37, %v695_v11  ;;  %v837_v1 = vadd.f32 %v2170_v37, %v836_v41 }
 0x110   : > { %v1821_v53 = vpop.eup %1820  ;;  %1274 = vst [vmem:[%s2195_s9 + $0x38] sm:$0xff] %v1819_v51  ;;  %1846 = vpow2.f32 %v1526_v42  ;;  %v1562_v50 = vmul.f32 -1.442695, %v821_v34  ;;  %v824_v51 = vadd.f32 %v2170_v37, %v823_v14 }
 0x111   : > { %v1823_v55 = vpop.eup %1822  ;;  %1306 = vst [vmem:[%s2195_s9 + $0x138] sm:$0xff] %v1821_v53  ;;  %1848 = vpow2.f32 %v1558_v45  ;;  %v832_v45 = vadd.f32 %v1678_v4, %v2170_v37  ;;  %v1566_v14 = vmul.f32 -1.442695, %v837_v1 }
 0x112   : > { %v1825_v58 = vpop.eup %1824  ;;  %1272 = vst [vmem:[%s2195_s9 + $0x28] sm:$0xff] %v1823_v55  ;;  %1850 = vpow2.f32 %v1529_v49  ;;  %v717_v55 = vadd.f32 %v1649_v21, %v2170_v37 }
 0x113   : > { %v1827_v60 = vpop.eup %1826  ;;  %1304 = vst [vmem:[%s2195_s9 + $0x128] sm:$0xff] %v1825_v58  ;;  %1852 = vpow2.f32 %v1561_v52  ;;  %v1650_v52 = vpop.f32.mrf.mxu0  ;;  %v1565_v58 = vmul.f32 -1.442695, %v832_v45 }
 0x114   : > { %v1829_v61 = vpop.eup %1828  ;;  %v1085_v62 = vadd.f32 1.0, %v1827_v60  ;;  %1854 = vpow2.f32 %v1527_v54  ;;  %v1533_v54 = vmul.f32 -1.442695, %v704_v40  ;;  %v1536_v4 = vmul.f32 -1.442695, %v717_v55 }
 0x115   : > { %v1831_v63 = vpop.eup %1830  ;;  %v1117_v0 = vadd.f32 1.0, %v1829_v61  ;;  %1856 = vpow2.f32 %v1559_v56  ;;  %v1682_v56 = vpop.f32.mrf.mxu1  ;;  %v1531_v61 = vmul.f32 -1.442695, %v696_v48 }
 0x116   : > { %v1833_v2 = vpop.eup %1832  ;;  %1858 = vrcp.f32 %v1085_v62  ;;  %v1083_v3 = vadd.f32 1.0, %v1831_v63  ;;  %v709_v62 = vadd.f32 %v2170_v37, %v708_v35 }
 0x117   : > { %v1835_v5 = vpop.eup %1834  ;;  %1860 = vrcp.f32 %v1117_v0  ;;  %v1115_v6 = vadd.f32 1.0, %v1833_v2  ;;  %v1563_v0 = vmul.f32 -1.442695, %v824_v51  ;;  %v711_v2 = vpop.f32.mrf.mxu0 }
 0x118   : > { %v1837_v7 = vpop.eup %1836  ;;  %1862 = vrcp.f32 %v1083_v3  ;;  %v1086_v8 = vadd.f32 1.0, %v1835_v5  ;;  %v720_v5 = vadd.f32 %v1650_v52, %v2170_v37  ;;  %v1534_v11 = vmul.f32 -1.442695, %v709_v62 }
 0x119   : > { %v1839_v9 = vpop.eup %1838  ;;  %1864 = vrcp.f32 %v1115_v6  ;;  %v1118_v10 = vadd.f32 1.0, %v1837_v7  ;;  %v839_v6 = vpop.f32.mrf.mxu1 }
 0x11a   : > { %v1841_v12 = vpop.eup %1840  ;;  %1866 = vrcp.f32 %v1086_v8  ;;  %v1084_v13 = vadd.f32 1.0, %v1839_v9  ;;  %v1568_v8 = vmul.f32 -1.442695, %v845_v59  ;;  %v848_v9 = vadd.f32 %v1682_v56, %v2170_v37 }
 0x11b   : > { %v1843_v15 = vpop.eup %1842  ;;  %1868 = vrcp.f32 %v1118_v10  ;;  %v1116_v16 = vadd.f32 1.0, %v1841_v12  ;;  %v712_v12 = vadd.f32 %v2170_v37, %v711_v2 }
 0x11c   : > { %v1845_v17 = vpop.eup %1844  ;;  %1870 = vrcp.f32 %v1084_v13  ;;  %v1089_v18 = vadd.f32 1.0, %v1843_v15  ;;  %v840_v15 = vadd.f32 %v2170_v37, %v839_v6  ;;  %v1569_v21 = vmul.f32 -1.442695, %v848_v9 }
 0x11d   : > { %v1847_v19 = vpop.eup %1846  ;;  %1872 = vrcp.f32 %v1116_v16  ;;  %v1121_v20 = vadd.f32 1.0, %v1845_v17  ;;  %v2258_v16 = vpop.f32.mrf.mxu0 }
 0x11e   : > { %v1849_v22 = vpop.eup %1848  ;;  %1874 = vrcp.f32 %v1089_v18  ;;  %v1087_v23 = vadd.f32 1.0, %v1847_v19  ;;  %v1537_v18 = vmul.f32 -1.442695, %v720_v5  ;;  %v2261_v19 = vpop.f32.mrf.mxu1  ;;  %v1567_v25 = vmul.f32 -1.442695, %v840_v15 }
 0x11f   : > { %v1851_v26 = vpop.eup %1850  ;;  %1876 = vrcp.f32 %v1121_v20  ;;  %v1119_v27 = vadd.f32 1.0, %v1849_v22  ;;  %v861_v62 = vadd.f32 %v2261_v19, %v2170_v37 }
 0x120   : > { %v1853_v29 = vpop.eup %1852  ;;  %1878 = vrcp.f32 %v1087_v23  ;;  %v1090_v30 = vadd.f32 1.0, %v1851_v26  ;;  %v1535_v23 = vmul.f32 -1.442695, %v712_v12  ;;  %v724_v26 = vpop.f32.mrf.mxu0 }
 0x121   : > { %v1855_v32 = vpop.eup %1854  ;;  %1880 = vrcp.f32 %v1119_v27  ;;  %v1122_v33 = vadd.f32 1.0, %v1853_v29  ;;  %v852_v28 = vpop.f32.mrf.mxu1  ;;  %v725_v1 = vadd.f32 %v2170_v37, %v724_v26 }
 0x122   : > { %v1857_v36 = vpop.eup %1856  ;;  %1882 = vrcp.f32 %v1090_v30  ;;  %v1088_v38 = vadd.f32 1.0, %v1855_v32  ;;  %v1654_v34 = vpop.f32.mrf.mxu0 }
 0x123   : > { %v1859_v42 = vpop.eup %1858  ;;  %1884 = vrcp.f32 %v1122_v33  ;;  %v1120_v43 = vadd.f32 1.0, %v1857_v36  ;;  %v736_v9 = vadd.f32 %v1654_v34, %v2170_v37 }
 0x124   : > { %v1861_v46 = vpop.eup %1860  ;;  %1277 = vst [vmem:[%s2195_s9 + $0x50] sm:$0xff] %v1859_v42  ;;  %1886 = vrcp.f32 %v1088_v38  ;;  %v1686_v38 = vpop.f32.mrf.mxu1 }
 0x125   : > { %v1863_v49 = vpop.eup %1862  ;;  %1309 = vst [vmem:[%s2195_s9 + $0x150] sm:$0xff] %v1861_v46  ;;  %1888 = vrcp.f32 %v1120_v43  ;;  %v727_v45 = vpop.f32.mrf.mxu0 }
 0x126   : > { %v1865_v53 = vpop.eup %1864  ;;  %1275 = vst [vmem:[%s2195_s9 + $0x40] sm:$0xff] %v1863_v49  ;;  %1890 = vpow2.f32 %v1532_v39  ;;  %v855_v48 = vpop.f32.mrf.mxu1 }
 0x127   : > { %v1867_v57 = vpop.eup %1866  ;;  %1307 = vst [vmem:[%s2195_s9 + $0x140] sm:$0xff] %v1865_v53  ;;  %1892 = vpow2.f32 %v1564_v44  ;;  %v1657_v55 = vpop.f32.mrf.mxu0 }
 0x128   : > { %v1869_v60 = vpop.eup %1868  ;;  %1278 = vst [vmem:[%s2195_s9 + $0x58] sm:$0xff] %v1867_v57  ;;  %1894 = vpow2.f32 %v1530_v47  ;;  %v1689_v59 = vpop.f32.mrf.mxu1 }
 0x129   : > { %v1871_v63 = vpop.eup %1870  ;;  %1310 = vst [vmem:[%s2195_s9 + $0x158] sm:$0xff] %v1869_v60  ;;  %1896 = vpow2.f32 %v1562_v50  ;;  %v740_v5 = vpop.f32.mrf.mxu0 }
 0x12a   : > { %v1873_v3 = vpop.eup %1872  ;;  %1276 = vst [vmem:[%s2195_s9 + $0x48] sm:$0xff] %v1871_v63  ;;  %1898 = vpow2.f32 %v1533_v54 }
 0x12b   : > { %v1875_v7 = vpop.eup %1874  ;;  %1308 = vst [vmem:[%s2195_s9 + $0x148] sm:$0xff] %v1873_v3  ;;  %1900 = vpow2.f32 %v1565_v58  ;;  %v733_v58 = vadd.f32 %v2258_v16, %v2170_v37  ;;  %v1538_v16 = vmul.f32 -1.442695, %v725_v1 }
 0x12c   : > { %v1877_v10 = vpop.eup %1876  ;;  %1281 = vst [vmem:[%s2195_s9 + $0x70] sm:$0xff] %v1875_v7  ;;  %1902 = vpow2.f32 %v1531_v61 }
 0x12d   : > { %v1879_v13 = vpop.eup %1878  ;;  %1313 = vst [vmem:[%s2195_s9 + $0x170] sm:$0xff] %v1877_v10  ;;  %1904 = vpow2.f32 %v1563_v0  ;;  %v868_v10 = vpop.f32.mrf.mxu1 }
 0x12e   : > { %v1881_v17 = vpop.eup %1880  ;;  %1279 = vst [vmem:[%s2195_s9 + $0x60] sm:$0xff] %v1879_v13  ;;  %1906 = vpow2.f32 %v1536_v4  ;;  %v853_v4 = vadd.f32 %v2170_v37, %v852_v28  ;;  %v1572_v13 = vmul.f32 -1.442695, %v861_v62  ;;  %v877_v28 = vadd.f32 %v1689_v59, %v2170_v37 }
 0x12f   : > { %v1883_v20 = vpop.eup %1882  ;;  %1311 = vst [vmem:[%s2195_s9 + $0x160] sm:$0xff] %v1881_v17  ;;  %1908 = vpow2.f32 %v1568_v8  ;;  %v1540_v8 = vmul.f32 -1.442695, %v733_v58  ;;  %v728_v17 = vadd.f32 %v2170_v37, %v727_v45  ;;  %v869_v34 = vadd.f32 %v2170_v37, %v868_v10 }
 0x130   : > { %v1885_v22 = vpop.eup %1884  ;;  %1282 = vst [vmem:[%s2195_s9 + $0x78] sm:$0xff] %v1883_v20  ;;  %1910 = vpow2.f32 %v1534_v11  ;;  %v1570_v19 = vmul.f32 -1.442695, %v853_v4  ;;  %v856_v20 = vadd.f32 %v2170_v37, %v855_v48 }
 0x131   : > { %v1887_v24 = vpop.eup %1886  ;;  %1314 = vst [vmem:[%s2195_s9 + $0x178] sm:$0xff] %v1885_v22  ;;  %1912 = vpow2.f32 %v1566_v14  ;;  %v864_v14 = vadd.f32 %v1686_v38, %v2170_v37  ;;  %v1574_v48 = vmul.f32 -1.442695, %v869_v34 }
 0x132   : > { %v1889_v27 = vpop.eup %1888  ;;  %1280 = vst [vmem:[%s2195_s9 + $0x68] sm:$0xff] %v1887_v24  ;;  %1914 = vpow2.f32 %v1537_v18  ;;  %v749_v24 = vadd.f32 %v1657_v55, %v2170_v37 }
 0x133   : > { %v1891_v29 = vpop.eup %1890  ;;  %1312 = vst [vmem:[%s2195_s9 + $0x168] sm:$0xff] %v1889_v27  ;;  %1916 = vpow2.f32 %v1569_v21  ;;  %v1658_v21 = vpop.f32.mrf.mxu0  ;;  %v1573_v27 = vmul.f32 -1.442695, %v864_v14 }
 0x134   : > { %v1893_v30 = vpop.eup %1892  ;;  %v1093_v31 = vadd.f32 1.0, %v1891_v29  ;;  %1918 = vpow2.f32 %v1535_v23  ;;  %v1541_v23 = vmul.f32 -1.442695, %v736_v9  ;;  %v1544_v38 = vmul.f32 -1.442695, %v749_v24 }
 0x135   : > { %v1895_v32 = vpop.eup %1894  ;;  %v1125_v33 = vadd.f32 1.0, %v1893_v30  ;;  %1920 = vpow2.f32 %v1567_v25  ;;  %v1690_v25 = vpop.f32.mrf.mxu1  ;;  %v1539_v30 = vmul.f32 -1.442695, %v728_v17 }
 0x136   : > { %v1897_v35 = vpop.eup %1896  ;;  %1922 = vrcp.f32 %v1093_v31  ;;  %v1091_v36 = vadd.f32 1.0, %v1895_v32  ;;  %v741_v31 = vadd.f32 %v2170_v37, %v740_v5 }
 0x137   : > { %v1899_v39 = vpop.eup %1898  ;;  %1924 = vrcp.f32 %v1125_v33  ;;  %v1123_v40 = vadd.f32 1.0, %v1897_v35  ;;  %v1571_v33 = vmul.f32 -1.442695, %v856_v20  ;;  %v743_v35 = vpop.f32.mrf.mxu0 }
 0x138   : > { %v1901_v41 = vpop.eup %1900  ;;  %1926 = vrcp.f32 %v1091_v36  ;;  %v1094_v42 = vadd.f32 1.0, %v1899_v39  ;;  %v752_v39 = vadd.f32 %v1658_v21, %v2170_v37  ;;  %v1542_v45 = vmul.f32 -1.442695, %v741_v31 }
 0x139   : > { %v1903_v43 = vpop.eup %1902  ;;  %1928 = vrcp.f32 %v1123_v40  ;;  %v1126_v44 = vadd.f32 1.0, %v1901_v41  ;;  %v871_v40 = vpop.f32.mrf.mxu1 }
 0x13a   : > { %v1905_v46 = vpop.eup %1904  ;;  %1930 = vrcp.f32 %v1094_v42  ;;  %v1092_v47 = vadd.f32 1.0, %v1903_v43  ;;  %v1576_v42 = vmul.f32 -1.442695, %v877_v28  ;;  %v880_v43 = vadd.f32 %v1690_v25, %v2170_v37 }
 0x13b   : > { %v1907_v49 = vpop.eup %1906  ;;  %1932 = vrcp.f32 %v1126_v44  ;;  %v1124_v50 = vadd.f32 1.0, %v1905_v46  ;;  %v744_v46 = vadd.f32 %v2170_v37, %v743_v35 }
 0x13c   : > { %v1909_v51 = vpop.eup %1908  ;;  %1934 = vrcp.f32 %v1092_v47  ;;  %v1097_v52 = vadd.f32 1.0, %v1907_v49  ;;  %v872_v49 = vadd.f32 %v2170_v37, %v871_v40 }
 0x13d   : > { %v1911_v53 = vpop.eup %1910  ;;  %1936 = vrcp.f32 %v1124_v50  ;;  %v1129_v54 = vadd.f32 1.0, %v1909_v51  ;;  %v1545_v51 = vmul.f32 -1.442695, %v752_v39  ;;  %v1543_v55 = vmul.f32 -1.442695, %v744_v46 }
 0x13e   : > { %v1913_v56 = vpop.eup %1912  ;;  %1938 = vrcp.f32 %v1097_v52  ;;  %v1095_v57 = vadd.f32 1.0, %v1911_v53  ;;  %v1577_v53 = vmul.f32 -1.442695, %v880_v43 }
 0x13f   : > { %v1915_v60 = vpop.eup %1914  ;;  %1940 = vrcp.f32 %v1129_v54  ;;  %v1127_v61 = vadd.f32 1.0, %v1913_v56 }
 0x140   : > { %v1917_v63 = vpop.eup %1916  ;;  %1942 = vrcp.f32 %v1095_v57  ;;  %v1098_v0 = vadd.f32 1.0, %v1915_v60  ;;  %v1575_v57 = vmul.f32 -1.442695, %v872_v49 }
 0x141   : > { %v1919_v2 = vpop.eup %1918  ;;  %1944 = vrcp.f32 %v1127_v61  ;;  %v1130_v3 = vadd.f32 1.0, %v1917_v63 }
 0x142   : > { %v1921_v6 = vpop.eup %1920  ;;  %1946 = vrcp.f32 %v1098_v0  ;;  %v1096_v7 = vadd.f32 1.0, %v1919_v2 }
 0x143   : > { %v1923_v11 = vpop.eup %1922  ;;  %1948 = vrcp.f32 %v1130_v3  ;;  %v1128_v12 = vadd.f32 1.0, %v1921_v6 }
 0x144   : > { %v1925_v15 = vpop.eup %1924  ;;  %1285 = vst [vmem:[%s2195_s9 + $0x90] sm:$0xff] %v1923_v11  ;;  %1950 = vrcp.f32 %v1096_v7 }
 0x145   : > { %v1927_v18 = vpop.eup %1926  ;;  %1317 = vst [vmem:[%s2195_s9 + $0x190] sm:$0xff] %v1925_v15  ;;  %1952 = vrcp.f32 %v1128_v12 }
 0x146   : > { %v1929_v22 = vpop.eup %1928  ;;  %1283 = vst [vmem:[%s2195_s9 + $0x80] sm:$0xff] %v1927_v18  ;;  %1954 = vpow2.f32 %v1540_v8 }
 0x147   : > { %v1931_v26 = vpop.eup %1930  ;;  %1315 = vst [vmem:[%s2195_s9 + $0x180] sm:$0xff] %v1929_v22  ;;  %1956 = vpow2.f32 %v1572_v13 }
 0x148   : > { %v1933_v29 = vpop.eup %1932  ;;  %1286 = vst [vmem:[%s2195_s9 + $0x98] sm:$0xff] %v1931_v26  ;;  %1958 = vpow2.f32 %v1538_v16 }
 0x149   : > { %v1935_v32 = vpop.eup %1934  ;;  %1318 = vst [vmem:[%s2195_s9 + $0x198] sm:$0xff] %v1933_v29  ;;  %1960 = vpow2.f32 %v1570_v19 }
 0x14a   : > { %v1937_v36 = vpop.eup %1936  ;;  %1284 = vst [vmem:[%s2195_s9 + $0x88] sm:$0xff] %v1935_v32  ;;  %1962 = vpow2.f32 %v1541_v23 }
 0x14b   : > { %v1939_v41 = vpop.eup %1938  ;;  %1316 = vst [vmem:[%s2195_s9 + $0x188] sm:$0xff] %v1937_v36  ;;  %1964 = vpow2.f32 %v1573_v27 }
 0x14c   : > { %v1941_v44 = vpop.eup %1940  ;;  %1289 = vst [vmem:[%s2195_s9 + $0xb0] sm:$0xff] %v1939_v41  ;;  %1966 = vpow2.f32 %v1539_v30 }
 0x14d   : > { %v1943_v47 = vpop.eup %1942  ;;  %1321 = vst [vmem:[%s2195_s9 + $0x1b0] sm:$0xff] %v1941_v44  ;;  %1968 = vpow2.f32 %v1571_v33 }
 0x14e   : > { %v1945_v50 = vpop.eup %1944  ;;  %1287 = vst [vmem:[%s2195_s9 + $0xa0] sm:$0xff] %v1943_v47  ;;  %1970 = vpow2.f32 %v1544_v38 }
 0x14f   : > { %v1947_v52 = vpop.eup %1946  ;;  %1319 = vst [vmem:[%s2195_s9 + $0x1a0] sm:$0xff] %v1945_v50  ;;  %1972 = vpow2.f32 %v1576_v42 }
 0x150   : > { %v1949_v54 = vpop.eup %1948  ;;  %1290 = vst [vmem:[%s2195_s9 + $0xb8] sm:$0xff] %v1947_v52  ;;  %1974 = vpow2.f32 %v1542_v45 }
 0x151   : > { %v1951_v56 = vpop.eup %1950  ;;  %1322 = vst [vmem:[%s2195_s9 + $0x1b8] sm:$0xff] %v1949_v54  ;;  %1976 = vpow2.f32 %v1574_v48 }
 0x152   : > { %v1953_v58 = vpop.eup %1952  ;;  %1288 = vst [vmem:[%s2195_s9 + $0xa8] sm:$0xff] %v1951_v56  ;;  %1978 = vpow2.f32 %v1545_v51 }
 0x153   : > { %v1955_v37 = vpop.eup %1954  ;;  %1320 = vst [vmem:[%s2195_s9 + $0x1a8] sm:$0xff] %v1953_v58  ;;  %1980 = vpow2.f32 %v1577_v53 }
 0x154   : > { %v1957_v59 = vpop.eup %1956  ;;  %v1101_v60 = vadd.f32 1.0, %v1955_v37  ;;  %1982 = vpow2.f32 %v1543_v55 }
 0x155   : > { %v1959_v61 = vpop.eup %1958  ;;  %v1133_v62 = vadd.f32 1.0, %v1957_v59  ;;  %1984 = vpow2.f32 %v1575_v57 }
 0x156   : > { %v1961_v63 = vpop.eup %1960  ;;  %1986 = vrcp.f32 %v1101_v60  ;;  %v1099_v0 = vadd.f32 1.0, %v1959_v61 }
 0x157   : > { %v1963_v1 = vpop.eup %1962  ;;  %1988 = vrcp.f32 %v1133_v62  ;;  %v1131_v2 = vadd.f32 1.0, %v1961_v63 }
 0x158   : > { %v1965_v3 = vpop.eup %1964  ;;  %1990 = vrcp.f32 %v1099_v0  ;;  %v1102_v4 = vadd.f32 1.0, %v1963_v1 }
 0x159   : > { %v1967_v5 = vpop.eup %1966  ;;  %1992 = vrcp.f32 %v1131_v2  ;;  %v1134_v6 = vadd.f32 1.0, %v1965_v3 }
 0x15a   : > { %v1969_v7 = vpop.eup %1968  ;;  %1994 = vrcp.f32 %v1102_v4  ;;  %v1100_v8 = vadd.f32 1.0, %v1967_v5 }
 0x15b   : > { %v1971_v9 = vpop.eup %1970  ;;  %1996 = vrcp.f32 %v1134_v6  ;;  %v1132_v10 = vadd.f32 1.0, %v1969_v7 }
 0x15c   : > { %v1973_v11 = vpop.eup %1972  ;;  %1998 = vrcp.f32 %v1100_v8  ;;  %v1105_v12 = vadd.f32 1.0, %v1971_v9 }
 0x15d   : > { %v1975_v13 = vpop.eup %1974  ;;  %2000 = vrcp.f32 %v1132_v10  ;;  %v1137_v14 = vadd.f32 1.0, %v1973_v11 }
 0x15e   : > { %v1977_v15 = vpop.eup %1976  ;;  %2002 = vrcp.f32 %v1105_v12  ;;  %v1103_v16 = vadd.f32 1.0, %v1975_v13 }
 0x15f   : > { %v1979_v17 = vpop.eup %1978  ;;  %2004 = vrcp.f32 %v1137_v14  ;;  %v1135_v18 = vadd.f32 1.0, %v1977_v15 }
 0x160   : > { %v1981_v19 = vpop.eup %1980  ;;  %2006 = vrcp.f32 %v1103_v16  ;;  %v1106_v20 = vadd.f32 1.0, %v1979_v17 }
 0x161   : > { %v1983_v21 = vpop.eup %1982  ;;  %2008 = vrcp.f32 %v1135_v18  ;;  %v1138_v22 = vadd.f32 1.0, %v1981_v19 }
 0x162   : > { %v1985_v23 = vpop.eup %1984  ;;  %2010 = vrcp.f32 %v1106_v20  ;;  %v1104_v24 = vadd.f32 1.0, %v1983_v21 }
 0x163   : > { %v1987_v25 = vpop.eup %1986  ;;  %2012 = vrcp.f32 %v1138_v22  ;;  %v1136_v26 = vadd.f32 1.0, %v1985_v23 }
 0x164   : > { %v1989_v27 = vpop.eup %1988  ;;  %1293 = vst [vmem:[%s2195_s9 + $0xd0] sm:$0xff] %v1987_v25  ;;  %2014 = vrcp.f32 %v1104_v24 }
 0x165   : > { %v1991_v28 = vpop.eup %1990  ;;  %1325 = vst [vmem:[%s2195_s9 + $0x1d0] sm:$0xff] %v1989_v27  ;;  %2016 = vrcp.f32 %v1136_v26 }
 0x166   : > { %v1993_v29 = vpop.eup %1992  ;;  %1291 = vst [vmem:[%s2195_s9 + $0xc0] sm:$0xff] %v1991_v28 }
 0x167   : > { %v1995_v30 = vpop.eup %1994  ;;  %1323 = vst [vmem:[%s2195_s9 + $0x1c0] sm:$0xff] %v1993_v29 }
 0x168   : > { %v1997_v31 = vpop.eup %1996  ;;  %1294 = vst [vmem:[%s2195_s9 + $0xd8] sm:$0xff] %v1995_v30 }
 0x169   : > { %v1999_v32 = vpop.eup %1998  ;;  %1326 = vst [vmem:[%s2195_s9 + $0x1d8] sm:$0xff] %v1997_v31 }
 0x16a   : > { %v2001_v33 = vpop.eup %2000  ;;  %1292 = vst [vmem:[%s2195_s9 + $0xc8] sm:$0xff] %v1999_v32 }
 0x16b   : > { %v2003_v34 = vpop.eup %2002  ;;  %1324 = vst [vmem:[%s2195_s9 + $0x1c8] sm:$0xff] %v2001_v33 }
 0x16c   : > { %v2005_v35 = vpop.eup %2004  ;;  %1297 = vst [vmem:[%s2195_s9 + $0xf0] sm:$0xff] %v2003_v34 }
 0x16d   : > { %v2007_v36 = vpop.eup %2006  ;;  %1329 = vst [vmem:[%s2195_s9 + $0x1f0] sm:$0xff] %v2005_v35 }
 0x16e   : > { %v2009_v38 = vpop.eup %2008  ;;  %1295 = vst [vmem:[%s2195_s9 + $0xe0] sm:$0xff] %v2007_v36 }
 0x16f   : > { %v2011_v39 = vpop.eup %2010  ;;  %1327 = vst [vmem:[%s2195_s9 + $0x1e0] sm:$0xff] %v2009_v38 }
 0x170   : > { %v2013_v40 = vpop.eup %2012  ;;  %1298 = vst [vmem:[%s2195_s9 + $0xf8] sm:$0xff] %v2011_v39 }
 0x171   : > { %v2015_v41 = vpop.eup %2014  ;;  %1330 = vst [vmem:[%s2195_s9 + $0x1f8] sm:$0xff] %v2013_v40 }
 0x172   : > { %v2017_v42 = vpop.eup %2016  ;;  %1296 = vst [vmem:[%s2195_s9 + $0xe8] sm:$0xff] %v2015_v41 }
 0x173   : > { %1328 = vst [vmem:[%s2195_s9 + $0x1e8] sm:$0xff] %v2017_v42 }
 0x174 PF: > { %s13_s14 = sadd.s32 1, %s2040_s14   ;;  %s2331_s12 = smov %s2036_s13 }
 0x175   : > { %p10_p5 = scmp.ge.s32.totalorder %s13_s14, 4   ;;  %s2332_s13 = smov %s2334_s15 }
 0x177   :  { %12 = sbr.rel (!%p10_p5) target bundleno = 2 (0x2), region = 68 }

</bundles_post_ra>
